<compile_context>
chip_gen: v7x
topology: tpu7x:2x2x1
jax: 0.10.0
libtpu: 0.0.40
codegen_flags: <defaults>
</compile_context>

<pallas_src>
import math
import functools

import jax
import jax.numpy as jnp
from jax.experimental import pallas as pl
from jax.experimental.pallas import tpu as pltpu

EPS = 1e-5  # PyTorch GroupNorm default eps


def _self_attention_kernel(num_heads, d_k, tq,
                           x_ref, wqkv_ref, wu_ref, bu_ref,
                           w1_ref, b1_ref, w2_ref, b2_ref,
                           gn1w_ref, gn1b_ref, gn2w_ref, gn2b_ref,
                           gammas_ref, y_ref, attn_ref):
    # x_ref block: (1, C, N) for the current batch element (tokens on lanes).
    x = x_ref[0].astype(jnp.float32)                 # (C, N)
    C, N = x.shape
    bf16 = jnp.bfloat16

    def group_norm(t, w_ref, b_ref):
        # GroupNorm(1, C): single mean/var over the whole (C, N) sample, fused
        # stats (mean then centered squares, reusing the centered tensor),
        # then per-channel affine broadcast along lanes.
        mu = jnp.mean(t)
        d = t - mu
        var = jnp.mean(d * d)
        return d * jax.lax.rsqrt(var + EPS) * w_ref[...] + b_ref[...]  # (C,N)*(C,1)+(C,1)

    # ---------------- attention branch ----------------
    x_n1 = group_norm(x, gn1w_ref, gn1b_ref)
    # 1x1 conv == W @ X (weights kept in native (out, in) conv layout, bf16 on MXU).
    qkv = jnp.dot(wqkv_ref[...], x_n1.astype(bf16),
                  preferred_element_type=jnp.float32)          # (3C, N) f32

    scale = 1.0 / math.sqrt(d_k)
    q = (qkv[0:C, :] * scale).reshape(num_heads, d_k, N)       # scale folded into q
    k = qkv[C:2 * C, :].reshape(num_heads, d_k, N).astype(bf16)
    v = qkv[2 * C:3 * C, :].reshape(num_heads, d_k, N).astype(bf16)
    # One minor-dims transpose per sample (instead of per-head .T): (H, N, d_k).
    qT = jnp.swapaxes(q, 1, 2).astype(bf16)

    # Head-batched attention, tiled over the query axis so the score matrix is
    # (H, tq, N) rather than (H, N, N).
    n_qt = N // tq
    for t in range(n_qt):                                      # static, small trip count
        q_t = qT[:, t * tq:(t + 1) * tq, :]                    # (H, tq, d_k)
        s = jnp.einsum('hid,hdj->hij', q_t, k,
                       preferred_element_type=jnp.float32)     # (H, tq, N)
        s = s - jnp.max(s, axis=-1, keepdims=True)
        p = jnp.exp(s)
        p = p * pl.reciprocal(jnp.sum(p, axis=-1, keepdims=True), approx=True)
        o_t = jnp.einsum('hdj,hij->hdi', v, p.astype(bf16),
                         preferred_element_type=jnp.float32)   # (H, d_k, tq)
        attn_ref[:, t * tq:(t + 1) * tq] = o_t.reshape(C, tq)

    proj = jnp.dot(wu_ref[...], attn_ref[...].astype(bf16),
                   preferred_element_type=jnp.float32) + bu_ref[...]   # (C, N)
    g_attn = gammas_ref[0]
    x2 = x + g_attn * proj                    # DropPath is identity in eval mode

    # ---------------- FFN branch ----------------
    x_n2 = group_norm(x2, gn2w_ref, gn2b_ref)
    hdn = jnp.dot(w1_ref[...], x_n2.astype(bf16),
                  preferred_element_type=jnp.float32) + b1_ref[...]    # (4C, N)
    hdn = hdn * jax.nn.sigmoid(hdn)                                    # SiLU in f32
    ffn = jnp.dot(w2_ref[...], hdn.astype(bf16),
                  preferred_element_type=jnp.float32) + b2_ref[...]    # (C, N)
    g_ffn = gammas_ref[1]
    y_ref[0] = (x2 + g_ffn * ffn).astype(y_ref.dtype)


def self_attention_forward(x_nchw, params, num_heads, tq=128):
    B, C, H, W = x_nchw.shape
    N = H * W
    d_k = C // num_heads

    # Channels-first token layout (B, C, N): free reshape, no HBM transpose in/out.
    x_bcn = x_nchw.reshape(B, C, N)

    bf16 = jnp.bfloat16
    wqkv = params['w_qkv'].astype(bf16)          # (3C, C) native conv (out, in)
    wu = params['w_unify'].astype(bf16)          # (C, C)
    w1 = params['w_ffn1'].astype(bf16)           # (4C, C)
    w2 = params['w_ffn2'].astype(bf16)           # (C, 4C)
    bu = params['b_unify'].reshape(C, 1).astype(jnp.float32)
    b1 = params['b_ffn1'].reshape(4 * C, 1).astype(jnp.float32)
    b2 = params['b_ffn2'].reshape(C, 1).astype(jnp.float32)
    gn1w = params['gn1_w'].reshape(C, 1).astype(jnp.float32)
    gn1b = params['gn1_b'].reshape(C, 1).astype(jnp.float32)
    gn2w = params['gn2_w'].reshape(C, 1).astype(jnp.float32)
    gn2b = params['gn2_b'].reshape(C, 1).astype(jnp.float32)
    gammas = jnp.stack([params['gamma_attn'], params['gamma_ffn']]).astype(jnp.float32)

    if N % tq != 0:                              # fall back to a single query tile
        tq = N

    def full(shape):
        return pl.BlockSpec(shape, lambda b: (0,) * len(shape))

    kernel = functools.partial(_self_attention_kernel, num_heads, d_k, tq)

    # Explicit VMEM budget sized to the actual working set (with headroom).
    f32b = 4
    est = f32b * (
        2 * 2 * C * N                 # double-buffered input + output blocks
        + 3 * C * N                   # qkv
        + 2 * num_heads * tq * N      # score + prob tile
        + 4 * C * N                   # ffn hidden
        + 2 * C * N                   # attention scratch + residual temps
    )
    vmem_limit = int(min(max(2 * est, 32 * 1024 * 1024), 100 * 1024 * 1024))

    y_bcn = pl.pallas_call(
        kernel,
        out_shape=jax.ShapeDtypeStruct((B, C, N), jnp.float32),
        grid=(B,),
        in_specs=[
            pl.BlockSpec((1, C, N), lambda b: (b, 0, 0)),       # x
            full(wqkv.shape), full(wu.shape), full(bu.shape),
            full(w1.shape), full(b1.shape), full(w2.shape), full(b2.shape),
            full(gn1w.shape), full(gn1b.shape), full(gn2w.shape), full(gn2b.shape),
            pl.BlockSpec(memory_space=pltpu.MemorySpace.SMEM),  # gamma scalars
        ],
        out_specs=pl.BlockSpec((1, C, N), lambda b: (b, 0, 0)),
        scratch_shapes=[pltpu.VMEM((C, N), jnp.float32)],       # attention output
        compiler_params=pltpu.CompilerParams(
            dimension_semantics=("parallel",),                  # shard batch on v7x cores
            vmem_limit_bytes=vmem_limit),
    )(x_bcn, wqkv, wu, bu, w1, b1, w2, b2, gn1w, gn1b, gn2w, gn2b, gammas)

    return y_bcn.reshape(B, C, H, W)


def init_params(key, C):
    ks = jax.random.split(key, 11)
    s = 0.1
    return {
        'w_qkv':   s * jax.random.normal(ks[0], (3 * C, C), jnp.float32),
        'w_unify': s * jax.random.normal(ks[1], (C, C), jnp.float32),
        'b_unify': s * jax.random.normal(ks[2], (C,), jnp.float32),
        'w_ffn1':  s * jax.random.normal(ks[3], (4 * C, C), jnp.float32),
        'b_ffn1':  s * jax.random.normal(ks[4], (4 * C,), jnp.float32),
        'w_ffn2':  s * jax.random.normal(ks[5], (C, 4 * C), jnp.float32),
        'b_ffn2':  s * jax.random.normal(ks[6], (C,), jnp.float32),
        'gn1_w': 1.0 + s * jax.random.normal(ks[7], (C,), jnp.float32),
        'gn1_b':       s * jax.random.normal(ks[8], (C,), jnp.float32),
        'gn2_w': 1.0 + s * jax.random.normal(ks[9], (C,), jnp.float32),
        'gn2_b':       s * jax.random.normal(ks[10], (C,), jnp.float32),
        # NOTE: PyTorch inits these to 0 (which would make the block an identity);
        # use nonzero deterministic values so the kernel compute is exercised.
        'gamma_attn': jnp.array(0.5, jnp.float32),
        'gamma_ffn':  jnp.array(0.3, jnp.float32),
    }


def reference_forward(x, p, num_heads):
    """Pure-JAX (f32) replica of the PyTorch forward (eval mode), NCHW layout."""
    B, C, H, W = x.shape
    N = H * W
    d_k = C // num_heads

    def gn(t, w, b):
        flat = t.reshape(B, -1)
        mu = flat.mean(axis=1).reshape(B, 1, 1, 1)
        var = ((flat - flat.mean(axis=1, keepdims=True)) ** 2).mean(axis=1).reshape(B, 1, 1, 1)
        tn = (t - mu) / jnp.sqrt(var + EPS)
        return tn * w.reshape(1, C, 1, 1) + b.reshape(1, C, 1, 1)

    xn = gn(x, p['gn1_w'], p['gn1_b'])
    qkv = jnp.einsum('oc,bchw->bohw', p['w_qkv'], xn)
    q, k, v = jnp.split(qkv, 3, axis=1)
    rs = lambda t: t.reshape(B, num_heads, d_k, N)
    q, k, v = rs(q), rs(k), rs(v)
    attn = jax.nn.softmax(jnp.einsum('bhdi,bhdj->bhij', q, k) / math.sqrt(d_k), axis=-1)
    out = jnp.einsum('bhij,bhdj->bhdi', attn, v).reshape(B, C, H, W)
    proj = jnp.einsum('oc,bchw->bohw', p['w_unify'], out) + p['b_unify'].reshape(1, C, 1, 1)
    x2 = x + p['gamma_attn'] * proj
    x2n = gn(x2, p['gn2_w'], p['gn2_b'])
    h1 = jnp.einsum('oc,bchw->bohw', p['w_ffn1'], x2n) + p['b_ffn1'].reshape(1, -1, 1, 1)
    h1 = h1 * jax.nn.sigmoid(h1)
    h2 = jnp.einsum('oc,bchw->bohw', p['w_ffn2'], h1) + p['b_ffn2'].reshape(1, C, 1, 1)
    return x2 + p['gamma_ffn'] * h2


if __name__ == "__main__":
    B, C, H, W = 2, 16, 16, 16          # N = H*W = 256 -> lane-dense token axis
    num_heads = 4

    key = jax.random.PRNGKey(0)
    k_x, k_p = jax.random.split(key)
    x = jax.random.normal(k_x, (B, C, H, W), jnp.float32)
    params = init_params(k_p, C)

    y = self_attention_forward(x, params, num_heads, tq=128)
    y = jax.block_until_ready(y)

    y_ref = reference_forward(x, params, num_heads)
    assert y.shape == (B, C, H, W)
    err = float(jnp.max(jnp.abs(y - y_ref)))
    # bf16 MXU operands (f32 accumulation) vs f32 reference -> loosened tolerance.
    assert err < 3e-2, err

    print("KERNEL_OK")
</pallas_src>

<mosaic_0001>
module attributes {stable_mosaic.version = 11 : i64} {
  func.func @_self_attention_kernel(%arg0: i32, %arg1: memref<1x16x256xf32, #tpu.memory_space<vmem>>, %arg2: memref<48x16xbf16, #tpu.memory_space<vmem>>, %arg3: memref<16x16xbf16, #tpu.memory_space<vmem>>, %arg4: memref<16x1xf32, #tpu.memory_space<vmem>>, %arg5: memref<64x16xbf16, #tpu.memory_space<vmem>>, %arg6: memref<64x1xf32, #tpu.memory_space<vmem>>, %arg7: memref<16x64xbf16, #tpu.memory_space<vmem>>, %arg8: memref<16x1xf32, #tpu.memory_space<vmem>>, %arg9: memref<16x1xf32, #tpu.memory_space<vmem>>, %arg10: memref<16x1xf32, #tpu.memory_space<vmem>>, %arg11: memref<16x1xf32, #tpu.memory_space<vmem>>, %arg12: memref<16x1xf32, #tpu.memory_space<vmem>>, %arg13: memref<2xf32, #tpu.memory_space<smem>>, %arg14: memref<1x16x256xf32, #tpu.memory_space<vmem>>, %arg15: memref<16x256xf32, #tpu.memory_space<vmem>>) attributes {dimension_semantics = [#tpu.dimension_semantics<parallel>], iteration_bounds = array<i64: 2>, scalar_prefetch = 0 : i64, scratch_operands = 1 : i64, tpu.core_type = #tpu.core_type<tc>, window_params = [{transform_indices = @transform_0, window_bounds = array<i64: 1, 16, 256>}, {pipeline_mode = #tpu.pipeline_mode<synchronous>, transform_indices = @transform_1, window_bounds = array<i64: 48, 16>}, {pipeline_mode = #tpu.pipeline_mode<synchronous>, transform_indices = @transform_2, window_bounds = array<i64: 16, 16>}, {pipeline_mode = #tpu.pipeline_mode<synchronous>, transform_indices = @transform_3, window_bounds = array<i64: 16, 1>}, {pipeline_mode = #tpu.pipeline_mode<synchronous>, transform_indices = @transform_4, window_bounds = array<i64: 64, 16>}, {pipeline_mode = #tpu.pipeline_mode<synchronous>, transform_indices = @transform_5, window_bounds = array<i64: 64, 1>}, {pipeline_mode = #tpu.pipeline_mode<synchronous>, transform_indices = @transform_6, window_bounds = array<i64: 16, 64>}, {pipeline_mode = #tpu.pipeline_mode<synchronous>, transform_indices = @transform_7, window_bounds = array<i64: 16, 1>}, {pipeline_mode = #tpu.pipeline_mode<synchronous>, transform_indices = @transform_8, window_bounds = array<i64: 16, 1>}, {pipeline_mode = #tpu.pipeline_mode<synchronous>, transform_indices = @transform_9, window_bounds = array<i64: 16, 1>}, {pipeline_mode = #tpu.pipeline_mode<synchronous>, transform_indices = @transform_10, window_bounds = array<i64: 16, 1>}, {pipeline_mode = #tpu.pipeline_mode<synchronous>, transform_indices = @transform_11, window_bounds = array<i64: 16, 1>}, {transform_indices = @transform_12, window_bounds = array<i64: 2>}, {transform_indices = @transform_13, window_bounds = array<i64: 1, 16, 256>}]} {
    %c0 = arith.constant 0 : index
    %c0_0 = arith.constant 0 : index
    %c0_1 = arith.constant 0 : index
    %0 = vector.load %arg1[%c0, %c0_0, %c0_1] : memref<1x16x256xf32, #tpu.memory_space<vmem>>, vector<1x16x256xf32>
    %1 = vector.shape_cast %0 : vector<1x16x256xf32> to vector<16x256xf32>
    %2 = vector.shape_cast %1 : vector<16x256xf32> to vector<1x16x256xf32>
    %cst = arith.constant dense<0.000000e+00> : vector<1xf32>
    %3 = vector.multi_reduction <add>, %2, %cst [1, 2] : vector<1x16x256xf32> to vector<1xf32>
    %4 = vector.shape_cast %3 : vector<1xf32> to vector<1x1x1xf32>
    %5 = vector.extract %4[0, 0, 0] : f32 from vector<1x1x1xf32>
    %cst_2 = arith.constant 4.096000e+03 : f32
    %6 = arith.divf %5, %cst_2 : f32
    %7 = vector.broadcast %6 : f32 to vector<16x256xf32>
    %8 = arith.subf %1, %7 : vector<16x256xf32>
    %9 = arith.mulf %8, %8 : vector<16x256xf32>
    %10 = vector.shape_cast %9 : vector<16x256xf32> to vector<1x16x256xf32>
    %cst_3 = arith.constant dense<0.000000e+00> : vector<1xf32>
    %11 = vector.multi_reduction <add>, %10, %cst_3 [1, 2] : vector<1x16x256xf32> to vector<1xf32>
    %12 = vector.shape_cast %11 : vector<1xf32> to vector<1x1x1xf32>
    %13 = vector.extract %12[0, 0, 0] : f32 from vector<1x1x1xf32>
    %cst_4 = arith.constant 4.096000e+03 : f32
    %14 = arith.divf %13, %cst_4 : f32
    %cst_5 = arith.constant 9.99999974E-6 : f32
    %15 = arith.addf %14, %cst_5 : f32
    %16 = math.rsqrt %15 : f32
    %17 = vector.broadcast %16 : f32 to vector<16x256xf32>
    %18 = arith.mulf %8, %17 : vector<16x256xf32>
    %c0_6 = arith.constant 0 : index
    %c0_7 = arith.constant 0 : index
    %19 = vector.load %arg9[%c0_6, %c0_7] : memref<16x1xf32, #tpu.memory_space<vmem>>, vector<16x1xf32>
    %20 = vector.broadcast %19 : vector<16x1xf32> to vector<16x256xf32>
    %21 = arith.mulf %18, %20 : vector<16x256xf32>
    %c0_8 = arith.constant 0 : index
    %c0_9 = arith.constant 0 : index
    %22 = vector.load %arg10[%c0_8, %c0_9] : memref<16x1xf32, #tpu.memory_space<vmem>>, vector<16x1xf32>
    %23 = vector.broadcast %22 : vector<16x1xf32> to vector<16x256xf32>
    %24 = arith.addf %21, %23 : vector<16x256xf32>
    %c0_10 = arith.constant 0 : index
    %c0_11 = arith.constant 0 : index
    %25 = vector.load %arg2[%c0_10, %c0_11] : memref<48x16xbf16, #tpu.memory_space<vmem>>, vector<48x16xbf16>
    %26 = arith.truncf %24 : vector<16x256xf32> to vector<16x256xbf16>
    %cst_12 = arith.constant dense<0.000000e+00> : vector<48x256xf32>
    %27 = tpu.matmul %25, %26, %cst_12 {dimension_numbers = #tpu.dot_dimension_numbers<[1], [0], [0], [1], [0, 0, 1, 1], [], []>} : vector<48x16xbf16>, vector<16x256xbf16>, vector<48x256xf32> -> vector<48x256xf32>
    %28 = vector.extract_strided_slice %27 {offsets = [0, 0], sizes = [16, 256], strides = [1, 1]} : vector<48x256xf32> to vector<16x256xf32>
    %cst_13 = arith.constant 5.000000e-01 : f32
    %29 = vector.broadcast %cst_13 : f32 to vector<16x256xf32>
    %30 = arith.mulf %28, %29 : vector<16x256xf32>
    %31 = vector.shape_cast %30 : vector<16x256xf32> to vector<4x4x256xf32>
    %32 = vector.extract_strided_slice %27 {offsets = [16, 0], sizes = [16, 256], strides = [1, 1]} : vector<48x256xf32> to vector<16x256xf32>
    %33 = vector.shape_cast %32 : vector<16x256xf32> to vector<4x4x256xf32>
    %34 = arith.truncf %33 : vector<4x4x256xf32> to vector<4x4x256xbf16>
    %35 = vector.extract_strided_slice %27 {offsets = [32, 0], sizes = [16, 256], strides = [1, 1]} : vector<48x256xf32> to vector<16x256xf32>
    %36 = vector.shape_cast %35 : vector<16x256xf32> to vector<4x4x256xf32>
    %37 = arith.truncf %36 : vector<4x4x256xf32> to vector<4x4x256xbf16>
    %38 = tpu.transpose %31, [0, 2, 1] : vector<4x4x256xf32> -> vector<4x256x4xf32>
    %39 = arith.truncf %38 : vector<4x256x4xf32> to vector<4x256x4xbf16>
    %40 = vector.extract_strided_slice %39 {offsets = [0, 0, 0], sizes = [4, 128, 4], strides = [1, 1, 1]} : vector<4x256x4xbf16> to vector<4x128x4xbf16>
    "tpu.trace_start"() <{level = 10 : i32, message = "hid,hdj->hij"}> : () -> ()
    %cst_14 = arith.constant dense<0.000000e+00> : vector<4x128x256xf32>
    %41 = tpu.matmul %40, %34, %cst_14 {dimension_numbers = #tpu.dot_dimension_numbers<[2], [1], [1], [2], [0, 0, 0, 1, 1, 2], [0], [0]>} : vector<4x128x4xbf16>, vector<4x4x256xbf16>, vector<4x128x256xf32> -> vector<4x128x256xf32>
    "tpu.trace_stop"() : () -> ()
    %cst_15 = arith.constant dense<0xFF800000> : vector<4x128xf32>
    %42 = vector.multi_reduction <maximumf>, %41, %cst_15 [2] : vector<4x128x256xf32> to vector<4x128xf32>
    %43 = vector.shape_cast %42 : vector<4x128xf32> to vector<4x128x1xf32>
    %44 = vector.broadcast %43 : vector<4x128x1xf32> to vector<4x128x256xf32>
    %45 = arith.subf %41, %44 : vector<4x128x256xf32>
    %46 = math.exp %45 : vector<4x128x256xf32>
    %cst_16 = arith.constant dense<0.000000e+00> : vector<4x128xf32>
    %47 = vector.multi_reduction <add>, %46, %cst_16 [2] : vector<4x128x256xf32> to vector<4x128xf32>
    %48 = vector.shape_cast %47 : vector<4x128xf32> to vector<4x128x1xf32>
    %49 = tpu.reciprocal %48 {approx = true} : vector<4x128x1xf32> -> vector<4x128x1xf32>
    %50 = vector.broadcast %49 : vector<4x128x1xf32> to vector<4x128x256xf32>
    %51 = arith.mulf %46, %50 : vector<4x128x256xf32>
    %52 = arith.truncf %51 : vector<4x128x256xf32> to vector<4x128x256xbf16>
    "tpu.trace_start"() <{level = 10 : i32, message = "hdj,hij->hdi"}> : () -> ()
    %cst_17 = arith.constant dense<0.000000e+00> : vector<4x4x128xf32>
    %53 = tpu.matmul %37, %52, %cst_17 {dimension_numbers = #tpu.dot_dimension_numbers<[2], [2], [1], [1], [0, 0, 0, 1, 1, 1], [0], [0]>} : vector<4x4x256xbf16>, vector<4x128x256xbf16>, vector<4x4x128xf32> -> vector<4x4x128xf32>
    "tpu.trace_stop"() : () -> ()
    %54 = vector.shape_cast %53 : vector<4x4x128xf32> to vector<16x128xf32>
    %c0_18 = arith.constant 0 : index
    %c0_19 = arith.constant 0 : index
    %55 = vector.load %arg15[%c0_18, %c0_19] : memref<16x256xf32, #tpu.memory_space<vmem>>, vector<16x128xf32>
    tpu.vector_store %arg15[%c0_18, %c0_19], %54 {strides = array<i32>} : memref<16x256xf32, #tpu.memory_space<vmem>>, vector<16x128xf32>,
    %56 = vector.extract_strided_slice %39 {offsets = [0, 128, 0], sizes = [4, 128, 4], strides = [1, 1, 1]} : vector<4x256x4xbf16> to vector<4x128x4xbf16>
    "tpu.trace_start"() <{level = 10 : i32, message = "hid,hdj->hij"}> : () -> ()
    %cst_20 = arith.constant dense<0.000000e+00> : vector<4x128x256xf32>
    %57 = tpu.matmul %56, %34, %cst_20 {dimension_numbers = #tpu.dot_dimension_numbers<[2], [1], [1], [2], [0, 0, 0, 1, 1, 2], [0], [0]>} : vector<4x128x4xbf16>, vector<4x4x256xbf16>, vector<4x128x256xf32> -> vector<4x128x256xf32>
    "tpu.trace_stop"() : () -> ()
    %cst_21 = arith.constant dense<0xFF800000> : vector<4x128xf32>
    %58 = vector.multi_reduction <maximumf>, %57, %cst_21 [2] : vector<4x128x256xf32> to vector<4x128xf32>
    %59 = vector.shape_cast %58 : vector<4x128xf32> to vector<4x128x1xf32>
    %60 = vector.broadcast %59 : vector<4x128x1xf32> to vector<4x128x256xf32>
    %61 = arith.subf %57, %60 : vector<4x128x256xf32>
    %62 = math.exp %61 : vector<4x128x256xf32>
    %cst_22 = arith.constant dense<0.000000e+00> : vector<4x128xf32>
    %63 = vector.multi_reduction <add>, %62, %cst_22 [2] : vector<4x128x256xf32> to vector<4x128xf32>
    %64 = vector.shape_cast %63 : vector<4x128xf32> to vector<4x128x1xf32>
    %65 = tpu.reciprocal %64 {approx = true} : vector<4x128x1xf32> -> vector<4x128x1xf32>
    %66 = vector.broadcast %65 : vector<4x128x1xf32> to vector<4x128x256xf32>
    %67 = arith.mulf %62, %66 : vector<4x128x256xf32>
    %68 = arith.truncf %67 : vector<4x128x256xf32> to vector<4x128x256xbf16>
    "tpu.trace_start"() <{level = 10 : i32, message = "hdj,hij->hdi"}> : () -> ()
    %cst_23 = arith.constant dense<0.000000e+00> : vector<4x4x128xf32>
    %69 = tpu.matmul %37, %68, %cst_23 {dimension_numbers = #tpu.dot_dimension_numbers<[2], [2], [1], [1], [0, 0, 0, 1, 1, 1], [0], [0]>} : vector<4x4x256xbf16>, vector<4x128x256xbf16>, vector<4x4x128xf32> -> vector<4x4x128xf32>
    "tpu.trace_stop"() : () -> ()
    %70 = vector.shape_cast %69 : vector<4x4x128xf32> to vector<16x128xf32>
    %c0_24 = arith.constant 0 : index
    %c128 = arith.constant 128 : index
    %71 = vector.load %arg15[%c0_24, %c128] : memref<16x256xf32, #tpu.memory_space<vmem>>, vector<16x128xf32>
    tpu.vector_store %arg15[%c0_24, %c128], %70 {strides = array<i32>} : memref<16x256xf32, #tpu.memory_space<vmem>>, vector<16x128xf32>,
    %c0_25 = arith.constant 0 : index
    %c0_26 = arith.constant 0 : index
    %72 = vector.load %arg3[%c0_25, %c0_26] : memref<16x16xbf16, #tpu.memory_space<vmem>>, vector<16x16xbf16>
    %c0_27 = arith.constant 0 : index
    %c0_28 = arith.constant 0 : index
    %73 = vector.load %arg15[%c0_27, %c0_28] : memref<16x256xf32, #tpu.memory_space<vmem>>, vector<16x256xf32>
    %74 = arith.truncf %73 : vector<16x256xf32> to vector<16x256xbf16>
    %cst_29 = arith.constant dense<0.000000e+00> : vector<16x256xf32>
    %75 = tpu.matmul %72, %74, %cst_29 {dimension_numbers = #tpu.dot_dimension_numbers<[1], [0], [0], [1], [0, 0, 1, 1], [], []>} : vector<16x16xbf16>, vector<16x256xbf16>, vector<16x256xf32> -> vector<16x256xf32>
    %c0_30 = arith.constant 0 : index
    %c0_31 = arith.constant 0 : index
    %76 = vector.load %arg4[%c0_30, %c0_31] : memref<16x1xf32, #tpu.memory_space<vmem>>, vector<16x1xf32>
    %77 = vector.broadcast %76 : vector<16x1xf32> to vector<16x256xf32>
    %78 = arith.addf %75, %77 : vector<16x256xf32>
    %c0_32 = arith.constant 0 : index
    %79 = memref.load %arg13[%c0_32] : memref<2xf32, #tpu.memory_space<smem>>
    %80 = vector.broadcast %79 : f32 to vector<16x256xf32>
    %81 = arith.mulf %80, %78 : vector<16x256xf32>
    %82 = arith.addf %1, %81 : vector<16x256xf32>
    %83 = vector.shape_cast %82 : vector<16x256xf32> to vector<1x16x256xf32>
    %cst_33 = arith.constant dense<0.000000e+00> : vector<1xf32>
    %84 = vector.multi_reduction <add>, %83, %cst_33 [1, 2] : vector<1x16x256xf32> to vector<1xf32>
    %85 = vector.shape_cast %84 : vector<1xf32> to vector<1x1x1xf32>
    %86 = vector.extract %85[0, 0, 0] : f32 from vector<1x1x1xf32>
    %cst_34 = arith.constant 4.096000e+03 : f32
    %87 = arith.divf %86, %cst_34 : f32
    %88 = vector.broadcast %87 : f32 to vector<16x256xf32>
    %89 = arith.subf %82, %88 : vector<16x256xf32>
    %90 = arith.mulf %89, %89 : vector<16x256xf32>
    %91 = vector.shape_cast %90 : vector<16x256xf32> to vector<1x16x256xf32>
    %cst_35 = arith.constant dense<0.000000e+00> : vector<1xf32>
    %92 = vector.multi_reduction <add>, %91, %cst_35 [1, 2] : vector<1x16x256xf32> to vector<1xf32>
    %93 = vector.shape_cast %92 : vector<1xf32> to vector<1x1x1xf32>
    %94 = vector.extract %93[0, 0, 0] : f32 from vector<1x1x1xf32>
    %cst_36 = arith.constant 4.096000e+03 : f32
    %95 = arith.divf %94, %cst_36 : f32
    %cst_37 = arith.constant 9.99999974E-6 : f32
    %96 = arith.addf %95, %cst_37 : f32
    %97 = math.rsqrt %96 : f32
    %98 = vector.broadcast %97 : f32 to vector<16x256xf32>
    %99 = arith.mulf %89, %98 : vector<16x256xf32>
    %c0_38 = arith.constant 0 : index
    %c0_39 = arith.constant 0 : index
    %100 = vector.load %arg11[%c0_38, %c0_39] : memref<16x1xf32, #tpu.memory_space<vmem>>, vector<16x1xf32>
    %101 = vector.broadcast %100 : vector<16x1xf32> to vector<16x256xf32>
    %102 = arith.mulf %99, %101 : vector<16x256xf32>
    %c0_40 = arith.constant 0 : index
    %c0_41 = arith.constant 0 : index
    %103 = vector.load %arg12[%c0_40, %c0_41] : memref<16x1xf32, #tpu.memory_space<vmem>>, vector<16x1xf32>
    %104 = vector.broadcast %103 : vector<16x1xf32> to vector<16x256xf32>
    %105 = arith.addf %102, %104 : vector<16x256xf32>
    %c0_42 = arith.constant 0 : index
    %c0_43 = arith.constant 0 : index
    %106 = vector.load %arg5[%c0_42, %c0_43] : memref<64x16xbf16, #tpu.memory_space<vmem>>, vector<64x16xbf16>
    %107 = arith.truncf %105 : vector<16x256xf32> to vector<16x256xbf16>
    %cst_44 = arith.constant dense<0.000000e+00> : vector<64x256xf32>
    %108 = tpu.matmul %106, %107, %cst_44 {dimension_numbers = #tpu.dot_dimension_numbers<[1], [0], [0], [1], [0, 0, 1, 1], [], []>} : vector<64x16xbf16>, vector<16x256xbf16>, vector<64x256xf32> -> vector<64x256xf32>
    %c0_45 = arith.constant 0 : index
    %c0_46 = arith.constant 0 : index
    %109 = vector.load %arg6[%c0_45, %c0_46] : memref<64x1xf32, #tpu.memory_space<vmem>>, vector<64x1xf32>
    %110 = vector.broadcast %109 : vector<64x1xf32> to vector<64x256xf32>
    %111 = arith.addf %108, %110 : vector<64x256xf32>
    %112 = arith.negf %111 : vector<64x256xf32>
    %113 = math.exp %112 : vector<64x256xf32>
    %cst_47 = arith.constant 1.000000e+00 : f32
    %114 = vector.broadcast %cst_47 : f32 to vector<64x256xf32>
    %115 = arith.addf %114, %113 : vector<64x256xf32>
    %116 = arith.divf %114, %115 : vector<64x256xf32>
    %117 = arith.mulf %111, %116 : vector<64x256xf32>
    %c0_48 = arith.constant 0 : index
    %c0_49 = arith.constant 0 : index
    %118 = vector.load %arg7[%c0_48, %c0_49] : memref<16x64xbf16, #tpu.memory_space<vmem>>, vector<16x64xbf16>
    %119 = arith.truncf %117 : vector<64x256xf32> to vector<64x256xbf16>
    %cst_50 = arith.constant dense<0.000000e+00> : vector<16x256xf32>
    %120 = tpu.matmul %118, %119, %cst_50 {dimension_numbers = #tpu.dot_dimension_numbers<[1], [0], [0], [1], [0, 0, 1, 1], [], []>} : vector<16x64xbf16>, vector<64x256xbf16>, vector<16x256xf32> -> vector<16x256xf32>
    %c0_51 = arith.constant 0 : index
    %c0_52 = arith.constant 0 : index
    %121 = vector.load %arg8[%c0_51, %c0_52] : memref<16x1xf32, #tpu.memory_space<vmem>>, vector<16x1xf32>
    %122 = vector.broadcast %121 : vector<16x1xf32> to vector<16x256xf32>
    %123 = arith.addf %120, %122 : vector<16x256xf32>
    %c1 = arith.constant 1 : index
    %124 = memref.load %arg13[%c1] : memref<2xf32, #tpu.memory_space<smem>>
    %125 = vector.broadcast %124 : f32 to vector<16x256xf32>
    %126 = arith.mulf %125, %123 : vector<16x256xf32>
    %127 = arith.addf %82, %126 : vector<16x256xf32>
    %c0_53 = arith.constant 0 : index
    %c0_54 = arith.constant 0 : index
    %c0_55 = arith.constant 0 : index
    %128 = vector.load %arg14[%c0_53, %c0_54, %c0_55] : memref<1x16x256xf32, #tpu.memory_space<vmem>>, vector<1x16x256xf32>
    %129 = vector.shape_cast %128 : vector<1x16x256xf32> to vector<16x256xf32>
    %130 = vector.shape_cast %127 : vector<16x256xf32> to vector<1x16x256xf32>
    tpu.vector_store %arg14[%c0_53, %c0_54, %c0_55], %130 {strides = array<i32>} : memref<1x16x256xf32, #tpu.memory_space<vmem>>, vector<1x16x256xf32>,
    return
  }
  func.func @transform_0(%arg0: i32) -> (i32, i32, i32) {
    %c0_i32 = arith.constant 0 : i32
    %c0_i32_0 = arith.constant 0 : i32
    %c0_i32_1 = arith.constant 0 : i32
    return %arg0, %c0_i32, %c0_i32_0 : i32, i32, i32
  }
  func.func @transform_1(%arg0: i32) -> (i32, i32) {
    %c0_i32 = arith.constant 0 : i32
    %c0_i32_0 = arith.constant 0 : i32
    %c0_i32_1 = arith.constant 0 : i32
    return %c0_i32, %c0_i32_0 : i32, i32
  }
  func.func @transform_2(%arg0: i32) -> (i32, i32) {
    %c0_i32 = arith.constant 0 : i32
    %c0_i32_0 = arith.constant 0 : i32
    %c0_i32_1 = arith.constant 0 : i32
    return %c0_i32, %c0_i32_0 : i32, i32
  }
  func.func @transform_3(%arg0: i32) -> (i32, i32) {
    %c0_i32 = arith.constant 0 : i32
    %c0_i32_0 = arith.constant 0 : i32
    %c0_i32_1 = arith.constant 0 : i32
    return %c0_i32, %c0_i32_0 : i32, i32
  }
  func.func @transform_4(%arg0: i32) -> (i32, i32) {
    %c0_i32 = arith.constant 0 : i32
    %c0_i32_0 = arith.constant 0 : i32
    %c0_i32_1 = arith.constant 0 : i32
    return %c0_i32, %c0_i32_0 : i32, i32
  }
  func.func @transform_5(%arg0: i32) -> (i32, i32) {
    %c0_i32 = arith.constant 0 : i32
    %c0_i32_0 = arith.constant 0 : i32
    %c0_i32_1 = arith.constant 0 : i32
    return %c0_i32, %c0_i32_0 : i32, i32
  }
  func.func @transform_6(%arg0: i32) -> (i32, i32) {
    %c0_i32 = arith.constant 0 : i32
    %c0_i32_0 = arith.constant 0 : i32
    %c0_i32_1 = arith.constant 0 : i32
    return %c0_i32, %c0_i32_0 : i32, i32
  }
  func.func @transform_7(%arg0: i32) -> (i32, i32) {
    %c0_i32 = arith.constant 0 : i32
    %c0_i32_0 = arith.constant 0 : i32
    %c0_i32_1 = arith.constant 0 : i32
    return %c0_i32, %c0_i32_0 : i32, i32
  }
  func.func @transform_8(%arg0: i32) -> (i32, i32) {
    %c0_i32 = arith.constant 0 : i32
    %c0_i32_0 = arith.constant 0 : i32
    %c0_i32_1 = arith.constant 0 : i32
    return %c0_i32, %c0_i32_0 : i32, i32
  }
  func.func @transform_9(%arg0: i32) -> (i32, i32) {
    %c0_i32 = arith.constant 0 : i32
    %c0_i32_0 = arith.constant 0 : i32
    %c0_i32_1 = arith.constant 0 : i32
    return %c0_i32, %c0_i32_0 : i32, i32
  }
  func.func @transform_10(%arg0: i32) -> (i32, i32) {
    %c0_i32 = arith.constant 0 : i32
    %c0_i32_0 = arith.constant 0 : i32
    %c0_i32_1 = arith.constant 0 : i32
    return %c0_i32, %c0_i32_0 : i32, i32
  }
  func.func @transform_11(%arg0: i32) -> (i32, i32) {
    %c0_i32 = arith.constant 0 : i32
    %c0_i32_0 = arith.constant 0 : i32
    %c0_i32_1 = arith.constant 0 : i32
    return %c0_i32, %c0_i32_0 : i32, i32
  }
  func.func @transform_12(%arg0: i32) -> i32 {
    %c0_i32 = arith.constant 0 : i32
    %c0_i32_0 = arith.constant 0 : i32
    return %c0_i32 : i32
  }
  func.func @transform_13(%arg0: i32) -> (i32, i32, i32) {
    %c0_i32 = arith.constant 0 : i32
    %c0_i32_0 = arith.constant 0 : i32
    %c0_i32_1 = arith.constant 0 : i32
    return %arg0, %c0_i32, %c0_i32_0 : i32, i32, i32
  }
}

</mosaic_0001>

<bundles_post_ra>
// kernel: tpu_custom_call.1
= control target key start
LH: loop header
LB: loop body
LE: loop exit
PB: predicated region body
PF: predicated region fallthrough
CT: control target
= control target key end

     0   :  { %s9530_s0 = inlined_call_operand.vmem [shape: f32[2,16,256], index: 0, kind: input, shape index: {}]   ;;  %s9531_s1 = inlined_call_operand.vmem [shape: bf16[48,16], index: 1, kind: input, shape index: {}]   ;;  %s9532_s2 = inlined_call_operand.vmem [shape: bf16[16,16], index: 2, kind: input, shape index: {}]   ;;  %s9533_s3 = inlined_call_operand.vmem [shape: f32[16,1], index: 3, kind: input, shape index: {}]   ;;  %s9534_s4 = inlined_call_operand.vmem [shape: bf16[64,16], index: 4, kind: input, shape index: {}]   ;;  %s9535_s5 = inlined_call_operand.vmem [shape: f32[64,1], index: 5, kind: input, shape index: {}]   ;;  %s9536_s6 = inlined_call_operand.vmem [shape: bf16[16,64], index: 6, kind: input, shape index: {}]   ;;  %s9537_s7 = inlined_call_operand.vmem [shape: f32[16,1], index: 7, kind: input, shape index: {}]   ;;  %s9538_s8 = inlined_call_operand.vmem [shape: f32[16,1], index: 8, kind: input, shape index: {}]   ;;  %s9539_s9 = inlined_call_operand.vmem [shape: f32[16,1], index: 9, kind: input, shape index: {}]   ;;  %s9540_s10 = inlined_call_operand.vmem [shape: f32[16,1], index: 10, kind: input, shape index: {}]   ;;  %s9541_s11 = inlined_call_operand.vmem [shape: f32[16,1], index: 11, kind: input, shape index: {}]   ;;  %s9542_s12 = inlined_call_operand.vmem [shape: f32[2], index: 12, kind: input, shape index: {}]   ;;  %s9543_s13 = inlined_call_operand.hbm [shape: f32[2,16,256], index: 13, kind: output, shape index: {}]  }
   0x1   :  { %9888 = sst [smem:[#allocation106_spill]] %s9530_s0 }
   0x2   :  { %9889 = sst [smem:[#allocation107_spill]] %s9531_s1 }
   0x3   :  { %9890 = sst [smem:[#allocation108_spill]] %s9532_s2 }
   0x4   :  { %18 = vsyncpa [#allocation5], 0 }
   0x5   :  { %19 = vsyncpa [#allocation4], 0 }
   0x6   :  { %21 = vsyncpa [#allocation4 + $0x1], 0  ;;  %s6694_s25 = smov 0   ;;  %s6696_s26 = smov 0  }
   0x7   :  { %s6698_s27 = smov 0   ;;  %s6700_s28 = smov 0  }
   0x8 LB: > { %s6715_s29 = sadd.s32 4294967295, %s6617_s28   ;;  %s5156_s30 = sadd.s32 4294967294, %s6617_s28   ;;  %s6617_s28 = sphi %s6700_s28, %s10588_s28   ;;  %s6613_s27 = sphi %s6698_s27, %s10587_s27   ;;  %s6609_s26 = sphi %s6696_s26, %s10586_s26   ;;  %s6605_s25 = sphi %s6694_s25, %s10585_s25  }
   0x9   : > { %s6719_s14 = sadd.s32 1, %s6617_s28   ;;  %s312_s15 = sadd.s32 1, %s6613_s27 }
   0xa   : > { %s309_s16 = ssub.s32 %s6617_s28, %s6719_s14  ;;  %p322_p0 = scmp.ne.s32.totalorder %s6613_s27, %s6609_s26 }
   0xb   : > { %p310_p1 = scmp.eq.s32.totalorder %s309_s16, 0  ;;  %p323_p2 = scmp.eq.s32.totalorder %s6715_s29, 1 }
   0xc   : > { %p328_p3 = scmp.ne.s32.totalorder %s6609_s26, %s6605_s25  ;;  %p329_p4 = scmp.eq.s32.totalorder %s5156_s30, 1 }
   0xd   : > { %s6730_s17 = scalar_select %p310_p1, %s6613_s27, %s312_s15  }
   0xe   : > { %p6732_p5 = por %p323_p2, %p322_p0  ;;  %p6736_p6 = por %p329_p4, %p328_p3 }
   0xf   : > { %p5157_p7 = scmp.ge.s32.totalorder %s6617_s28, 1  ;;  %p336_p8 = scmp.lt.s32.totalorder %s6617_s28, 3 }
  0x10   : > { %p5317_p9 = scmp.eq.s32.totalorder %s6715_s29, 0  ;;  %s382_s23 = sshll.u32 %s9542_s12, 4  ;;  %s383_s23 = int_to_ptr.vmem [resolvable:$true] %s382_s23 }
  0x11   : > { %p6743_p10 = pnand %p5157_p7, %p336_p8  ;;  %s6536_s24 = scalar_lea.vmem %s383_s23, 16 }
  0x12   : > { %p6537_p13 = scmp.ne.s32.totalorder %s383_s23, %s6536_s24  ;;  %p6544_p3 = scmp.lt.s32.totalorder %s383_s23, %s383_s23 }
  0x13   : > { %p5309_p11 = pneg %p6743_p10  ;;  %p6545_p4 = scmp.lt.s32.totalorder %s6536_s24, %s6536_s24 }
  0x15   : > { %p5310_p12 = pnand %p5317_p9, %p5309_p11  ;;  %p6546_p7 = por %p6545_p4, %p6544_p3 }
  0x17   : > { %p6538_p0 = pneg %p5310_p12 }
  0x19   : > { %p6539_p1 = pnand %p6538_p0, %p6537_p13 }
  0x1b   : > { %p6540_p2 = pneg %p6539_p1 }
  0x1d   : > { %p6547_p8 = pnand %p6546_p7, %p6540_p2 }
  0x1f   : > { %6550 = shalt.err (!%p6547_p8)
}
  0x20   : > { %s6619_s30 = smov [#allocation3]   ;;  %403 = sbr.rel (%p6743_p10) target bundleno = 3743 (0xe9f), region = 72 }
  0x21   : > { %5312 = dma.vmem_to_smem (!%p5310_p12), %s383_s23, 16, %s6619_s30, [#allocation5]  }
  0x27   : > { %6596 = dma.done.wait (%p5317_p9), [#allocation5], 16  }
  0x28   : > { %6598 = vsyncadd (%p5317_p9), [#allocation5], 4294967280 }
  0x29   : > { %409 = sfence }
  0x2a   : > { %p448_p11 = scmp.lt.s32.totalorder %s6715_s29, 1  ;;  %s9894_s0 = sld [smem:[#allocation106_spill]]  ;;  %v506_v7 = vld [vmem:[%s9538_s8] sm:$0xff]  ;;  %v9544_v8 = vmov 0   ;;  %v507_v9 = vld [vmem:[%s9538_s8 + $0x8] sm:$0xff]  ;;  %vm561_vm0 = vcmask 130048  }
  0x2b   : > { %5357 = vset.pattern.permute.xlu1 %v9544_v8  ;;  %5358 = vset.pattern.permute.xlu0 %v9544_v8  ;;  %v523_v10 = vld [vmem:[%s9539_s9 + $0x8] sm:$0xff]  ;;  %v522_v30 = vld [vmem:[%s9539_s9] sm:$0xff]  ;;  %s9895_s1 = sld [smem:[#allocation107_spill]]  ;;  %vm1059_vm1 = vcmask 1041408   ;;  %vm1034_vm2 = vcmask 31744   ;;  %s10583_s2 = sld [smem:[#allocation108_spill]] }
  0x2c   : > { %s449_s15 = scalar_select %p448_p11, %s6715_s29, 1  ;;  %510 = vperm.xlu1 %5357, %v506_v7   ;;  %603 = vmatprep.mubr.bf16.mxu0 %v9544_v8  ;;  %vm5007_vm3 = vcmask 523264  }
  0x2d   : > { %1098 = vmatprep.mubr.bf16.mxu1 %v9544_v8 }
  0x2e   : > { %s5289_s16 = sshll.u32 %s449_s15, 5 }
  0x30   : > { %s6765_s24 = scalar_lea.vmem %s9894_s0, %s5289_s16  ;;  %515 = vperm.xlu1 %5357, %v507_v9  }
  0x31   : > { %v454_v0 = vld [vmem:[%s6765_s24] sm:$0xff]  ;;  %v455_v1 = vld [vmem:[%s6765_s24 + $0x8] sm:$0xff]  ;;  %v456_v2 = vld [vmem:[%s6765_s24 + $0x10] sm:$0xff] }
  0x32   : > { %v458_v3 = vadd.f32 %v455_v1, %v454_v0  ;;  %v457_v4 = vld [vmem:[%s6765_s24 + $0x18] sm:$0xff]  ;;  %v5687_v59 = vld [vmem:[%s9895_s1] sm:$0xff]   ;;  %v5688_v60 = vld [vmem:[%s9895_s1 + $0x8] sm:$0xff]  }
  0x34   : > { %v459_v5 = vadd.f32 %v458_v3, %v456_v2  ;;  %531 = vperm.xlu1 %5357, %v523_v10  }
  0x36   : > { %v460_v6 = vadd.f32 %v459_v5, %v457_v4 }
  0x38   : > { %461 = vadd.xlane.f32.xlu0 %v460_v6 }
  0xab   : > { %v511_v40 = vpop.permute.xlu1 %510 }
  0xaf   : > { %v516_v41 = vpop.permute.xlu1 %515 }
  0xb3   : > { %v532_v52 = vpop.permute.xlu1 %531 }
  0xc5   : > { %v462_v11 = vpop.xlane.xlu0 %461 }
  0xc6   : > { %v463_v12 = vrot.slane %v462_v11, 4 }
  0xc8   : > { %v464_v13 = vadd.f32 %v463_v12, %v462_v11  ;;  %v5689_v12 = vld [vmem:[%s9895_s1 + $0x10] sm:$0xff]  }
  0xca   : > { %v465_v14 = vrot.slane %v464_v13, 2 }
  0xcc   : > { %v466_v15 = vadd.f32 %v465_v14, %v464_v13 }
  0xce   : > { %v467_v16 = vrot.slane %v466_v15, 1 }
  0xd0   : > { %v468_v17 = vadd.f32 %v467_v16, %v466_v15 }
  0xd2   : > { %5291 = vpush %v468_v17 }
 0x103   : > { %s5292_s22 = spop %5291 }
 0x104   : > { %s472_s20 = smul.f32 0.00024414063, %s5292_s22 }
 0x106   : > { %v473_v18 = vstv %s472_s20 }
 0x107   : > { %v474_v19 = vsub.f32 %v454_v0, %v473_v18  ;;  %v475_v20 = vsub.f32 %v455_v1, %v473_v18  ;;  %v476_v21 = vsub.f32 %v456_v2, %v473_v18  ;;  %v477_v22 = vsub.f32 %v457_v4, %v473_v18 }
 0x109   : > { %v478_v23 = vmul.f32 %v474_v19, %v474_v19  ;;  %v479_v24 = vmul.f32 %v475_v20, %v475_v20  ;;  %v480_v25 = vmul.f32 %v476_v21, %v476_v21  ;;  %v481_v27 = vmul.f32 %v477_v22, %v477_v22 }
 0x10b   : > { %v482_v26 = vadd.f32 %v479_v24, %v478_v23 }
 0x10d   : > { %v483_v28 = vadd.f32 %v482_v26, %v480_v25 }
 0x10f   : > { %v484_v29 = vadd.f32 %v483_v28, %v481_v27 }
 0x111   : > { %485 = vadd.xlane.f32.xlu0 %v484_v29 }
 0x127   : > { %526 = vperm.xlu0 %5358, %v522_v30  }
 0x19e   : > { %v486_v31 = vpop.xlane.xlu0 %485 }
 0x19f   : > { %v487_v32 = vrot.slane %v486_v31, 4 }
 0x1a1   : > { %v488_v33 = vadd.f32 %v487_v32, %v486_v31 }
 0x1a3   : > { %v489_v34 = vrot.slane %v488_v33, 2 }
 0x1a5   : > { %v490_v35 = vadd.f32 %v489_v34, %v488_v33 }
 0x1a6   : > { %v527_v47 = vpop.permute.xlu0 %526 }
 0x1a7   : > { %v491_v36 = vrot.slane %v490_v35, 1 }
 0x1a9   : > { %v492_v37 = vadd.f32 %v491_v36, %v490_v35 }
 0x1ab   : > { %5293 = vpush %v492_v37 }
 0x1dc   : > { %s5294_s15 = spop %5293 }
 0x1dd   : > { %s496_s16 = smul.f32 0.00024414063, %s5294_s15  ;;  %s5283_s15 = sld [smem:[#allocation3 + $0x1]] }
 0x1df   : > { %s497_s21 = sadd.f32 1e-05, %s496_s16  ;;  %s445_s16 = sand.u32 1, %s6609_s26  }
 0x1e1   : > { %v498_v38 = vstv %s497_s21  ;;  %s4615_s21 = sld [smem:[#allocation3]] }
 0x1e2   : > { %5696 = vrsqrt.f32 %v498_v38 }
 0x1ec   : > { %v5697_v39 = vpop.eup %5696 }
 0x1ed   : > { %5295 = vpush %v5697_v39 }
 0x21e   : > { %s5296_s22 = spop %5295 }
 0x21f   : > { %v501_v42 = vstv %s5296_s22 }
 0x220   : > { %v502_v43 = vmul.f32 %v501_v42, %v474_v19  ;;  %v503_v44 = vmul.f32 %v501_v42, %v475_v20  ;;  %v504_v45 = vmul.f32 %v501_v42, %v476_v21  ;;  %v505_v46 = vmul.f32 %v501_v42, %v477_v22 }
 0x222   : > { %v519_v48 = vmul.f32 %v511_v40, %v503_v44  ;;  %v521_v49 = vmul.f32 %v516_v41, %v505_v46  ;;  %v518_v50 = vmul.f32 %v511_v40, %v502_v43  ;;  %v520_v51 = vmul.f32 %v516_v41, %v504_v45 }
 0x224   : > { %v535_v53 = vadd.f32 %v527_v47, %v519_v48  ;;  %v537_v54 = vadd.f32 %v532_v52, %v521_v49  ;;  %v534_v55 = vadd.f32 %v527_v47, %v518_v50  ;;  %v536_v56 = vadd.f32 %v532_v52, %v520_v51 }
 0x226   : > { %v545_v57 = vpack.c.bf16 %v537_v54, %v535_v53  ;;  %v544_v58 = vpack.c.bf16 %v536_v56, %v534_v55 }
 0x228   : > { %571 = vmatprep.subr.bf16.mxu0 %v545_v57 }
 0x229   : > { %572 = vmatpush1.bf16.msra.mxu0 %v544_v58 }
 0x22c   : > { %5168 = vmatmul.mubr.msk.bf16.vlgmr.msra.gmra.mrb[0].mxu0 %vm561_vm0, %v5687_v59 }
 0x22d   : > { %613 = vmatprep.mubr.bf16.mxu0 %v9544_v8 }
 0x234   : > { %5169 = vmatmul.mubr.msk.bf16.gmra.mrb[4].mxu0 %vm561_vm0, %v5688_v60 }
 0x235   : > { %623 = vmatprep.mubr.bf16.mxu0 %v9544_v8 }
 0x23c   : > { %5170 = vmatmul.mubr.msk.bf16.gmra.mrb[8].mxu0 %vm561_vm0, %v5689_v12 }
 0x23d   : > { %1241 = vmatprep.mubr.bf16.mxu0 %v9544_v8 }
 0x2ff   : > { %v605_v61 = vpop.f32.mrb[0].mxu0 }
 0x300   : > { %v634_v62 = vmul.f32 0.5, %v605_v61  ;;  %v607_v63 = vpop.f32.mrb[1].mxu0 }
 0x301   : > { %v6797_v0 = vmul.f32 0.5, %v607_v63  ;;  %v609_v1 = vpop.f32.mrb[2].mxu0 }
 0x302   : > { %v636_v2 = vmul.f32 0.5, %v609_v1  ;;  %v611_v3 = vpop.f32.mrb[3].mxu0 }
 0x303   : > { %9896 = vst [vmem:[#allocation9_spill] sm:$0xff] %v6797_v0  ;;  %v6799_v4 = vmul.f32 0.5, %v611_v3  ;;  %v642_v5 = vcombine.low %v634_v62, %v6797_v0  ;;  %v643_v6 = vcombine.high %v634_v62, %v6797_v0 }
 0x305   : > { %9897 = vst [vmem:[#allocation10_spill] sm:$0xff] %v6799_v4  ;;  %v644_v7 = vcombine.low %v636_v2, %v6799_v4  ;;  %v5359_v9 = vpack.i.bf16 %v643_v6, %v642_v5  ;;  %v645_v10 = vcombine.high %v636_v2, %v6799_v4 }
 0x307   : > { %v615_v11 = vpop.f32.mrb[4].mxu0  ;;  %5360 = vxpose.xlu1.b32.start.end [1/1] (short) %v5359_v9, 128  ;;  %v5441_v13 = vpack.i.bf16 %v645_v10, %v644_v7 }
 0x308   : > { %v617_v14 = vpop.f32.mrb[5].mxu0 }
 0x309   : > { %v655_v15 = vcombine.high %v615_v11, %v617_v14  ;;  %v5172_v16 = vcombine.high %v617_v14, %v617_v14  ;;  %v619_v17 = vpop.f32.mrb[6].mxu0  ;;  %v5171_v18 = vcombine.low %v617_v14, %v617_v14  ;;  %v654_v19 = vcombine.low %v615_v11, %v617_v14  ;;  %5442 = vxpose.xlu0.b32.start.end [1/1] (short) %v5441_v13, 128 }
 0x30a   : > { %v621_v20 = vpop.f32.mrb[7].mxu0 }
 0x30b   : > { %v6810_v21 = vpack.c.bf16 %v5172_v16, %v5172_v16  ;;  %v656_v22 = vcombine.low %v619_v17, %v621_v20  ;;  %v657_v23 = vcombine.high %v619_v17, %v621_v20  ;;  %v5173_v24 = vcombine.low %v621_v20, %v621_v20 }
 0x30c   : > { %v5174_v25 = vcombine.high %v621_v20, %v621_v20  ;;  %v6812_v26 = vpack.c.bf16 %v5171_v18, %v5171_v18  ;;  %v670_v27 = vpack.c.bf16 %v654_v19, %v654_v19  ;;  %v672_v28 = vpack.c.bf16 %v655_v15, %v655_v15 }
 0x30d   : > { %9898 = vst [vmem:[#allocation11_spill] sm:$0xff] %v6810_v21  ;;  %v6814_v29 = vpack.c.bf16 %v5173_v24, %v5173_v24  ;;  %5192 = vmatprep.subr.msk.bf16.mxu0 %vm1059_vm1, %v6810_v21  ;;  %v674_v38 = vpack.c.bf16 %v656_v22, %v656_v22  ;;  %v676_v39 = vpack.c.bf16 %v657_v23, %v657_v23 }
 0x30e   : > { %9899 = vst [vmem:[#allocation12_spill] sm:$0xff] %v6812_v26  ;;  %v6818_v30 = vpack.c.bf16 %v5174_v25, %v5174_v25  ;;  %5183 = vmatprep.subr.msk.bf16.mxu1 %vm1059_vm1, %v6812_v26  ;;  %v6823_v31 = vsel %vm1059_vm1, %v670_v27, 0  ;;  %v6826_v32 = vsel %vm1059_vm1, %v672_v28, 0 }
 0x30f   : > { %9900 = vst [vmem:[#allocation13_spill] sm:$0xff] %v6814_v29  ;;  %9902 = vst [vmem:[#allocation15_spill] sm:$0xff] %v6823_v31  ;;  %1067 = vmatpush1.bf16.msra.mxu1 %v6823_v31  ;;  %1210 = vmatpush1.bf16.msra.mxu0 %v6826_v32  ;;  %v6841_v46 = vsel %vm1059_vm1, %v674_v38, 0  ;;  %v6844_v47 = vsel %vm1059_vm1, %v676_v39, 0 }
 0x310   : > { %9901 = vst [vmem:[#allocation14_spill] sm:$0xff] %v6818_v30  ;;  %9903 = vst [vmem:[#allocation16_spill] sm:$0xff] %v6826_v32  ;;  %5201 = vmatprep.subr.msk.bf16.mxu1 %vm1059_vm1, %v6814_v29  ;;  %5210 = vmatprep.subr.msk.bf16.mxu0 %vm1059_vm1, %v6818_v30 }
 0x311   : > { %9904 = vst [vmem:[#allocation17_spill] sm:$0xff] %v6841_v46  ;;  %9905 = vst [vmem:[#allocation18_spill] sm:$0xff] %v6844_v47 }
 0x387   : > { %v5361_v33 = vpop.trf.xlu1 }
 0x388   : > { %v5365_v35 = vunpack.i.h.bf16 %v5361_v33  ;;  %v5362_v36 = vunpack.i.l.bf16 %v5361_v33 }
 0x389   : > { %v6834_v34 = vpop.trf.xlu0 }
 0x38b   : > { %v5366_v37 = vpop.trf.xlu1 }
 0x38c   : > { %v5370_v40 = vunpack.i.h.bf16 %v5366_v37  ;;  %v5367_v41 = vunpack.i.l.bf16 %v5366_v37 }
 0x38d   : > { %v6836_v42 = vpop.trf.xlu0 }
 0x38e   : > { %v986_v43 = vpack.c.bf16 %v5370_v40, %v5365_v35  ;;  %v970_v44 = vpack.c.bf16 %v5367_v41, %v5362_v36 }
 0x38f   : > { %v5371_v45 = vpop.trf.xlu1 }
 0x390   : > { %5184 = vmatmul.mubr.msk.bf16.vlgmr.msra.gmra.mrb[0].mxu1 %vm1034_vm2, %v970_v44  ;;  %5193 = vmatmul.mubr.msk.bf16.vlgmr.msra.gmra.mrb[12].mxu0 %vm1034_vm2, %v986_v43  ;;  %v5375_v49 = vunpack.i.h.bf16 %v5371_v45  ;;  %v5372_v50 = vunpack.i.l.bf16 %v5371_v45 }
 0x391   : > { %1353 = vmatpush1.bf16.msra.mxu1 %v6841_v46  ;;  %1496 = vmatpush1.bf16.msra.mxu0 %v6844_v47  ;;  %v6848_v48 = vpop.trf.xlu0 }
 0x392   : > { %1108 = vmatprep.mubr.bf16.mxu1 %v9544_v8  ;;  %1251 = vmatprep.mubr.bf16.mxu0 %v9544_v8 }
 0x393   : > { %v5376_v51 = vpop.trf.xlu1 }
 0x394   : > { %v5380_v52 = vunpack.i.h.bf16 %v5376_v51  ;;  %v5377_v53 = vunpack.i.l.bf16 %v5376_v51 }
 0x395   : > { %v6852_v54 = vpop.trf.xlu0 }
 0x396   : > { %v971_v55 = vpack.c.bf16 %v5377_v53, %v5372_v50  ;;  %v987_v56 = vpack.c.bf16 %v5380_v52, %v5375_v49 }
 0x397   : > { %v5381_v57 = vpop.trf.xlu1 }
 0x398   : > { %5185 = vmatmul.mubr.msk.bf16.gmra.mrb[4].mxu1 %vm1034_vm2, %v971_v55  ;;  %5194 = vmatmul.mubr.msk.bf16.gmra.mrb[16].mxu0 %vm1034_vm2, %v987_v56  ;;  %v5385_v59 = vunpack.i.h.bf16 %v5381_v57  ;;  %v5382_v60 = vunpack.i.l.bf16 %v5381_v57 }
 0x399   : > { %1118 = vmatprep.mubr.bf16.mxu1 %v9544_v8  ;;  %1261 = vmatprep.mubr.bf16.mxu0 %v9544_v8  ;;  %v6858_v58 = vpop.trf.xlu0 }
 0x39b   : > { %v5386_v61 = vpop.trf.xlu1 }
 0x39c   : > { %v5390_v62 = vunpack.i.h.bf16 %v5386_v61  ;;  %v5387_v63 = vunpack.i.l.bf16 %v5386_v61 }
 0x39d   : > { %v6860_v1 = vpop.trf.xlu0 }
 0x39e   : > { %v972_v2 = vpack.c.bf16 %v5387_v63, %v5382_v60  ;;  %v988_v3 = vpack.c.bf16 %v5390_v62, %v5385_v59 }
 0x39f   : > { %v5391_v5 = vpop.trf.xlu1 }
 0x3a0   : > { %5186 = vmatmul.mubr.msk.bf16.gmra.mrb[8].mxu1 %vm1034_vm2, %v972_v2  ;;  %5195 = vmatmul.mubr.msk.bf16.gmra.mrb[20].mxu0 %vm1034_vm2, %v988_v3  ;;  %v5395_v7 = vunpack.i.h.bf16 %v5391_v5  ;;  %v5392_v9 = vunpack.i.l.bf16 %v5391_v5 }
 0x3a1   : > { %1128 = vmatprep.mubr.bf16.mxu1 %v9544_v8  ;;  %1271 = vmatprep.mubr.bf16.mxu0 %v9544_v8  ;;  %v6866_v6 = vpop.trf.xlu0 }
 0x3a3   : > { %v5396_v10 = vpop.trf.xlu1 }
 0x3a4   : > { %v5400_v11 = vunpack.i.h.bf16 %v5396_v10  ;;  %v5397_v12 = vunpack.i.l.bf16 %v5396_v10  ;;  %v5447_v10 = vunpack.i.h.bf16 %v6834_v34 }
 0x3a5   : > { %v6868_v13 = vpop.trf.xlu0 }
 0x3a6   : > { %v973_v14 = vpack.c.bf16 %v5397_v12, %v5392_v9  ;;  %v989_v15 = vpack.c.bf16 %v5400_v11, %v5395_v7  ;;  %v5444_v11 = vunpack.i.l.bf16 %v6834_v34  ;;  %v5452_v12 = vunpack.i.h.bf16 %v6836_v42 }
 0x3a7   : > { %v5401_v16 = vpop.trf.xlu1  ;;  %v5462_v34 = vunpack.i.h.bf16 %v6852_v54 }
 0x3a8   : > { %5187 = vmatmul.mubr.msk.bf16.gmra.mrb[12].mxu1 %vm1034_vm2, %v973_v14  ;;  %5196 = vmatmul.mubr.msk.bf16.gmra.mrb[24].mxu0 %vm1034_vm2, %v989_v15  ;;  %v5405_v18 = vunpack.i.h.bf16 %v5401_v16  ;;  %v5402_v19 = vunpack.i.l.bf16 %v5401_v16  ;;  %v5449_v14 = vunpack.i.l.bf16 %v6836_v42  ;;  %v1018_v16 = vpack.c.bf16 %v5452_v12, %v5447_v10 }
 0x3a9   : > { %1138 = vmatprep.mubr.bf16.mxu1 %v9544_v8  ;;  %1281 = vmatprep.mubr.bf16.mxu0 %v9544_v8  ;;  %v6874_v17 = vpop.trf.xlu0 }
 0x3aa   : > { %v1002_v15 = vpack.c.bf16 %v5449_v14, %v5444_v11 }
 0x3ab   : > { %v5406_v20 = vpop.trf.xlu1 }
 0x3ac   : > { %v5410_v22 = vunpack.i.h.bf16 %v5406_v20  ;;  %v5407_v23 = vunpack.i.l.bf16 %v5406_v20  ;;  %v5459_v20 = vunpack.i.l.bf16 %v6852_v54  ;;  %v625_v54 = vpop.f32.mrb[8].mxu0 }
 0x3ad   : > { %v6876_v24 = vpop.trf.xlu0 }
 0x3ae   : > { %v974_v25 = vpack.c.bf16 %v5407_v23, %v5402_v19  ;;  %v990_v27 = vpack.c.bf16 %v5410_v22, %v5405_v18  ;;  %v5457_v18 = vunpack.i.h.bf16 %v6848_v48  ;;  %v5454_v19 = vunpack.i.l.bf16 %v6848_v48 }
 0x3af   : > { %v5411_v28 = vpop.trf.xlu1  ;;  %v5467_v23 = vunpack.i.h.bf16 %v6858_v58  ;;  %v5472_v48 = vunpack.i.h.bf16 %v6860_v1 }
 0x3b0   : > { %5188 = vmatmul.mubr.msk.bf16.gmra.mrb[16].mxu1 %vm1034_vm2, %v974_v25  ;;  %5197 = vmatmul.mubr.msk.bf16.gmra.mrb[28].mxu0 %vm1034_vm2, %v990_v27  ;;  %v5415_v35 = vunpack.i.h.bf16 %v5411_v28  ;;  %v5412_v36 = vunpack.i.l.bf16 %v5411_v28  ;;  %v1003_v42 = vpack.c.bf16 %v5459_v20, %v5454_v19  ;;  %v1019_v22 = vpack.c.bf16 %v5462_v34, %v5457_v18 }
 0x3b1   : > { %1148 = vmatprep.mubr.bf16.mxu1 %v9544_v8  ;;  %1291 = vmatprep.mubr.bf16.mxu0 %v9544_v8  ;;  %v6882_v33 = vpop.trf.xlu0  ;;  %v5464_v25 = vunpack.i.l.bf16 %v6858_v58  ;;  %v5469_v27 = vunpack.i.l.bf16 %v6860_v1 }
 0x3b3   : > { %v5416_v37 = vpop.trf.xlu1  ;;  %v1004_v28 = vpack.c.bf16 %v5469_v27, %v5464_v25 }
 0x3b4   : > { %v5420_v38 = vunpack.i.h.bf16 %v5416_v37  ;;  %v5417_v39 = vunpack.i.l.bf16 %v5416_v37 }
 0x3b5   : > { %v6884_v40 = vpop.trf.xlu0 }
 0x3b6   : > { %v975_v41 = vpack.c.bf16 %v5417_v39, %v5412_v36  ;;  %v991_v43 = vpack.c.bf16 %v5420_v38, %v5415_v35  ;;  %v1020_v35 = vpack.c.bf16 %v5472_v48, %v5467_v23  ;;  %v627_v36 = vpop.f32.mrb[9].mxu0 }
 0x3b7   : > { %v5421_v44 = vpop.trf.xlu1  ;;  %v6926_v37 = vcombine.low %v625_v54, %v627_v36  ;;  %v6928_v38 = vcombine.high %v625_v54, %v627_v36  ;;  %v629_v58 = vpop.f32.mrb[10].mxu0 }
 0x3b8   : > { %5189 = vmatmul.mubr.msk.bf16.gmra.mrb[20].mxu1 %vm1034_vm2, %v975_v41  ;;  %5198 = vmatmul.mubr.msk.bf16.gmra.mrb[32].mxu0 %vm1034_vm2, %v991_v43  ;;  %v5425_v49 = vunpack.i.h.bf16 %v5421_v44  ;;  %v5422_v50 = vunpack.i.l.bf16 %v5421_v44  ;;  %v6930_v39 = vpop.f32.mrb[11].mxu0  ;;  %v5477_v43 = vunpack.i.h.bf16 %v6866_v6  ;;  %v5474_v44 = vunpack.i.l.bf16 %v6866_v6 }
 0x3b9   : > { %1158 = vmatprep.mubr.bf16.mxu1 %v9544_v8  ;;  %1301 = vmatprep.mubr.bf16.mxu0 %v9544_v8  ;;  %v6890_v45 = vpop.trf.xlu0  ;;  %9906 = vst [vmem:[#allocation19_spill] sm:$0xff] %v6926_v37  ;;  %9907 = vst [vmem:[#allocation20_spill] sm:$0xff] %v6928_v38  ;;  %v6933_v41 = vcombine.low %v629_v58, %v6930_v39  ;;  %v6936_v1 = vcombine.high %v629_v58, %v6930_v39  ;;  %v5492_v6 = vunpack.i.h.bf16 %v6876_v24 }
 0x3ba   : > { %9908 = vst [vmem:[#allocation21_spill] sm:$0xff] %v6930_v39 }
 0x3bb   : > { %v5426_v51 = vpop.trf.xlu1  ;;  %9909 = vst [vmem:[#allocation22_spill] sm:$0xff] %v6933_v41  ;;  %9910 = vst [vmem:[#allocation23_spill] sm:$0xff] %v6936_v1 }
 0x3bc   : > { %v5430_v52 = vunpack.i.h.bf16 %v5426_v51  ;;  %v5427_v53 = vunpack.i.l.bf16 %v5426_v51 }
 0x3bd   : > { %v6892_v55 = vpop.trf.xlu0 }
 0x3be   : > { %v976_v56 = vpack.c.bf16 %v5427_v53, %v5422_v50  ;;  %v992_v57 = vpack.c.bf16 %v5430_v52, %v5425_v49  ;;  %v5482_v49 = vunpack.i.h.bf16 %v6868_v13  ;;  %v5479_v50 = vunpack.i.l.bf16 %v6868_v13 }
 0x3bf   : > { %v5431_v59 = vpop.trf.xlu1  ;;  %v5487_v53 = vunpack.i.h.bf16 %v6874_v17 }
 0x3c0   : > { %5190 = vmatmul.mubr.msk.bf16.gmra.mrb[24].mxu1 %vm1034_vm2, %v976_v56  ;;  %5199 = vmatmul.mubr.msk.bf16.gmra.mrb[36].mxu0 %vm1034_vm2, %v992_v57  ;;  %v5435_v61 = vunpack.i.h.bf16 %v5431_v59  ;;  %v5432_v62 = vunpack.i.l.bf16 %v5431_v59  ;;  %v1005_v51 = vpack.c.bf16 %v5479_v50, %v5474_v44  ;;  %v1021_v52 = vpack.c.bf16 %v5482_v49, %v5477_v43 }
 0x3c1   : > { %1168 = vmatprep.mubr.bf16.mxu1 %v9544_v8  ;;  %1311 = vmatprep.mubr.bf16.mxu0 %v9544_v8  ;;  %v6898_v60 = vpop.trf.xlu0  ;;  %v5484_v56 = vunpack.i.l.bf16 %v6874_v17  ;;  %v5489_v57 = vunpack.i.l.bf16 %v6876_v24  ;;  %v1022_v59 = vpack.c.bf16 %v5492_v6, %v5487_v53  ;;  %v5502_v17 = vunpack.i.h.bf16 %v6884_v40 }
 0x3c2   : > { %v5517_v11 = vunpack.i.h.bf16 %v6898_v60  ;;  %v5514_v12 = vunpack.i.l.bf16 %v6898_v60 }
 0x3c3   : > { %v5436_v63 = vpop.trf.xlu1  ;;  %v1006_v13 = vpack.c.bf16 %v5489_v57, %v5484_v56 }
 0x3c4   : > { %v5440_v2 = vunpack.i.h.bf16 %v5436_v63  ;;  %v5437_v3 = vunpack.i.l.bf16 %v5436_v63  ;;  %v5499_v63 = vunpack.i.l.bf16 %v6884_v40 }
 0x3c5   : > { %v6900_v5 = vpop.trf.xlu0 }
 0x3c6   : > { %v977_v7 = vpack.c.bf16 %v5437_v3, %v5432_v62  ;;  %v993_v9 = vpack.c.bf16 %v5440_v2, %v5435_v61  ;;  %v5497_v61 = vunpack.i.h.bf16 %v6882_v33  ;;  %v5494_v62 = vunpack.i.l.bf16 %v6882_v33 }
 0x3c7   : > { %v5507_v3 = vunpack.i.h.bf16 %v6890_v45  ;;  %v5512_v33 = vunpack.i.h.bf16 %v6892_v55  ;;  %v5519_v14 = vunpack.i.l.bf16 %v6900_v5 }
 0x3c8   : > { %5191 = vmatmul.mubr.msk.bf16.gmra.mrb[28].mxu1 %vm1034_vm2, %v977_v7  ;;  %5200 = vmatmul.mubr.msk.bf16.gmra.mrb[40].mxu0 %vm1034_vm2, %v993_v9  ;;  %v1007_v24 = vpack.c.bf16 %v5499_v63, %v5494_v62  ;;  %v1023_v2 = vpack.c.bf16 %v5502_v17, %v5497_v61  ;;  %v5504_v7 = vunpack.i.l.bf16 %v6890_v45  ;;  %v5509_v9 = vunpack.i.l.bf16 %v6892_v55 }
 0x3c9   : > { %1384 = vmatprep.mubr.bf16.mxu1 %v9544_v8  ;;  %1527 = vmatprep.mubr.bf16.mxu0 %v9544_v8  ;;  %v1024_v10 = vpack.c.bf16 %v5512_v33, %v5507_v3  ;;  %v5522_v45 = vunpack.i.h.bf16 %v6900_v5  ;;  %v5175_v55 = vcombine.low %v627_v36, %v627_v36 }
 0x3ca   : > { %v1008_v40 = vpack.c.bf16 %v5509_v9, %v5504_v7 }
 0x3cb   : > { %v1025_v18 = vpack.c.bf16 %v5522_v45, %v5517_v11  ;;  %v6978_v19 = vpack.c.bf16 %v5175_v55, %v5175_v55 }
 0x3cd   : > { %9911 = vst [vmem:[#allocation24_spill] sm:$0xff] %v6978_v19 }
 0x3d0   : > { %5202 = vmatmul.mubr.msk.bf16.vlgmr.msra.gmra.mrb[32].mxu1 %vm1034_vm2, %v1002_v15  ;;  %5211 = vmatmul.mubr.msk.bf16.vlgmr.msra.gmra.mrb[44].mxu0 %vm1034_vm2, %v1018_v16  ;;  %v5176_v15 = vcombine.high %v627_v36, %v627_v36  ;;  %v1009_v16 = vpack.c.bf16 %v5519_v14, %v5514_v12 }
 0x3d1   : > { %1394 = vmatprep.mubr.bf16.mxu1 %v9544_v8  ;;  %1537 = vmatprep.mubr.bf16.mxu0 %v9544_v8 }
 0x3d2   : > { %v6980_v34 = vpack.c.bf16 %v5176_v15, %v5176_v15 }
 0x3d4   : > { %9912 = vst [vmem:[#allocation25_spill] sm:$0xff] %v6980_v34 }
 0x3d8   : > { %5203 = vmatmul.mubr.msk.bf16.gmra.mrb[36].mxu1 %vm1034_vm2, %v1003_v42  ;;  %5212 = vmatmul.mubr.msk.bf16.gmra.mrb[48].mxu0 %vm1034_vm2, %v1019_v22 }
 0x3d9   : > { %1404 = vmatprep.mubr.bf16.mxu1 %v9544_v8  ;;  %1547 = vmatprep.mubr.bf16.mxu0 %v9544_v8 }
 0x3e0   : > { %5204 = vmatmul.mubr.msk.bf16.gmra.mrb[40].mxu1 %vm1034_vm2, %v1004_v28  ;;  %5213 = vmatmul.mubr.msk.bf16.gmra.mrb[52].mxu0 %vm1034_vm2, %v1020_v35 }
 0x3e1   : > { %1414 = vmatprep.mubr.bf16.mxu1 %v9544_v8  ;;  %1557 = vmatprep.mubr.bf16.mxu0 %v9544_v8 }
 0x3e8   : > { %5205 = vmatmul.mubr.msk.bf16.gmra.mrb[44].mxu1 %vm1034_vm2, %v1005_v51  ;;  %5214 = vmatmul.mubr.msk.bf16.gmra.mrb[56].mxu0 %vm1034_vm2, %v1021_v52 }
 0x3e9   : > { %1424 = vmatprep.mubr.bf16.mxu1 %v9544_v8  ;;  %1567 = vmatprep.mubr.bf16.mxu0 %v9544_v8 }
 0x3f0   : > { %5206 = vmatmul.mubr.msk.bf16.gmra.mrb[48].mxu1 %vm1034_vm2, %v1006_v13  ;;  %5215 = vmatmul.mubr.msk.bf16.gmra.mrb[60].mxu0 %vm1034_vm2, %v1022_v59 }
 0x3f1   : > { %1434 = vmatprep.mubr.bf16.mxu1 %v9544_v8  ;;  %1577 = vmatprep.mubr.bf16.mxu0 %v9544_v8 }
 0x3f8   : > { %5207 = vmatmul.mubr.msk.bf16.gmra.mrb[52].mxu1 %vm1034_vm2, %v1007_v24  ;;  %5216 = vmatmul.mubr.msk.bf16.gmra.mrb[64].mxu0 %vm1034_vm2, %v1023_v2 }
 0x3f9   : > { %1444 = vmatprep.mubr.bf16.mxu1 %v9544_v8  ;;  %1587 = vmatprep.mubr.bf16.mxu0 %v9544_v8 }
 0x400   : > { %5208 = vmatmul.mubr.msk.bf16.gmra.mrb[56].mxu1 %vm1034_vm2, %v1008_v40  ;;  %5217 = vmatmul.mubr.msk.bf16.gmra.mrb[68].mxu0 %vm1034_vm2, %v1024_v10 }
 0x401   : > { %1454 = vmatprep.mubr.bf16.mxu1 %v9544_v8  ;;  %1597 = vmatprep.mubr.bf16.mxu0 %v9544_v8 }
 0x408   : > { %5209 = vmatmul.mubr.msk.bf16.gmra.mrb[60].mxu1 %vm1034_vm2, %v1009_v16  ;;  %5218 = vmatmul.mubr.msk.bf16.gmra.mrb[72].mxu0 %vm1034_vm2, %v1025_v18 }
 0x409   : > { %2664 = vmatprep.mubr.bf16.mxu1 %v6978_v19  ;;  %2704 = vmatprep.mubr.bf16.mxu0 %v6980_v34 }
 0x463   : > { %v6986_v60 = vpop.f32.mrb[0].mxu1  ;;  %v6988_v5 = vpop.f32.mrb[12].mxu0 }
 0x464   : > { %v6990_v20 = vpop.f32.mrb[1].mxu1  ;;  %v6992_v42 = vpop.f32.mrb[13].mxu0 }
 0x465   : > { %v6994_v22 = vpop.f32.mrb[2].mxu1  ;;  %v6996_v23 = vpop.f32.mrb[14].mxu0  ;;  %v1608_v25 = vmax.f32 %v6986_v60, %v6990_v20  ;;  %v1656_v48 = vmax.f32 %v6988_v5, %v6992_v42 }
 0x466   : > { %v7002_v27 = vpop.f32.mrb[3].mxu1  ;;  %v7004_v54 = vpop.f32.mrb[15].mxu0 }
 0x467   : > { %1609 = vmax.xlane.f32.xlu1 %v1608_v25  ;;  %v1611_v28 = vmax.f32 %v6994_v22, %v7002_v27  ;;  %v1659_v35 = vmax.f32 %v6996_v23, %v7004_v54 }
 0x469   : > { %1612 = vmax.xlane.f32.xlu0 %v1611_v28 }
 0x46b   : > { %v7010_v36 = vpop.f32.mrb[4].mxu1  ;;  %1657 = vmax.xlane.f32.xlu1 %v1656_v48  ;;  %v7012_v58 = vpop.f32.mrb[16].mxu0 }
 0x46c   : > { %v7014_v43 = vpop.f32.mrb[5].mxu1  ;;  %v7016_v44 = vpop.f32.mrb[17].mxu0 }
 0x46d   : > { %v7018_v49 = vpop.f32.mrb[6].mxu1  ;;  %v7020_v50 = vpop.f32.mrb[18].mxu0  ;;  %v1614_v51 = vmax.f32 %v7010_v36, %v7014_v43  ;;  %v1662_v52 = vmax.f32 %v7012_v58, %v7016_v44 }
 0x46e   : > { %v7026_v53 = vpop.f32.mrb[7].mxu1  ;;  %v7028_v56 = vpop.f32.mrb[19].mxu0 }
 0x46f   : > { %1660 = vmax.xlane.f32.xlu1 %v1659_v35  ;;  %v1617_v6 = vmax.f32 %v7018_v49, %v7026_v53  ;;  %v1665_v57 = vmax.f32 %v7020_v50, %v7028_v56 }
 0x473   : > { %1615 = vmax.xlane.f32.xlu1 %v1614_v51  ;;  %v7034_v13 = vpop.f32.mrb[20].mxu0  ;;  %v7036_v59 = vpop.f32.mrb[8].mxu1 }
 0x474   : > { %v7038_v61 = vpop.f32.mrb[21].mxu0  ;;  %v7040_v62 = vpop.f32.mrb[9].mxu1 }
 0x475   : > { %v7042_v17 = vpop.f32.mrb[22].mxu0  ;;  %v7044_v63 = vpop.f32.mrb[10].mxu1  ;;  %v1620_v24 = vmax.f32 %v7036_v59, %v7040_v62  ;;  %v1668_v2 = vmax.f32 %v7034_v13, %v7038_v61 }
 0x476   : > { %v7050_v3 = vpop.f32.mrb[23].mxu0  ;;  %v7052_v7 = vpop.f32.mrb[11].mxu1 }
 0x477   : > { %1663 = vmax.xlane.f32.xlu1 %v1662_v52  ;;  %v1671_v33 = vmax.f32 %v7042_v17, %v7050_v3  ;;  %v1623_v9 = vmax.f32 %v7044_v63, %v7052_v7 }
 0x479   : > { %1672 = vmax.xlane.f32.xlu0 %v1671_v33 }
 0x47b   : > { %v7058_v40 = vpop.f32.mrb[12].mxu1  ;;  %1618 = vmax.xlane.f32.xlu1 %v1617_v6  ;;  %v7060_v10 = vpop.f32.mrb[24].mxu0 }
 0x47c   : > { %v7062_v11 = vpop.f32.mrb[13].mxu1  ;;  %v7064_v12 = vpop.f32.mrb[25].mxu0 }
 0x47d   : > { %v7066_v45 = vpop.f32.mrb[14].mxu1  ;;  %v7068_v14 = vpop.f32.mrb[26].mxu0  ;;  %v1626_v55 = vmax.f32 %v7058_v40, %v7062_v11  ;;  %v1674_v15 = vmax.f32 %v7060_v10, %v7064_v12 }
 0x47e   : > { %v7074_v16 = vpop.f32.mrb[15].mxu1  ;;  %v7076_v18 = vpop.f32.mrb[27].mxu0 }
 0x47f   : > { %1666 = vmax.xlane.f32.xlu1 %v1665_v57  ;;  %v1629_v25 = vmax.f32 %v7066_v45, %v7074_v16  ;;  %v1677_v48 = vmax.f32 %v7068_v14, %v7076_v18 }
 0x481   : > { %1630 = vmax.xlane.f32.xlu0 %v1629_v25 }
 0x483   : > { %v7082_v28 = vpop.f32.mrb[16].mxu1  ;;  %1621 = vmax.xlane.f32.xlu1 %v1620_v24  ;;  %v7084_v35 = vpop.f32.mrb[28].mxu0 }
 0x484   : > { %v7086_v51 = vpop.f32.mrb[17].mxu1  ;;  %v7088_v52 = vpop.f32.mrb[29].mxu0 }
 0x485   : > { %v7090_v6 = vpop.f32.mrb[18].mxu1  ;;  %1678 = vmax.xlane.f32.xlu0 %v1677_v48  ;;  %v7092_v57 = vpop.f32.mrb[30].mxu0  ;;  %v1632_v33 = vmax.f32 %v7082_v28, %v7086_v51  ;;  %v1680_v25 = vmax.f32 %v7084_v35, %v7088_v52 }
 0x486   : > { %v7098_v8 = vpop.f32.mrb[19].mxu1  ;;  %v7100_v24 = vpop.f32.mrb[31].mxu0 }
 0x487   : > { %1669 = vmax.xlane.f32.xlu1 %v1668_v2  ;;  %v1635_v34 = vmax.f32 %v7090_v6, %v7098_v8  ;;  %v1683_v19 = vmax.f32 %v7092_v57, %v7100_v24 }
 0x489   : > { %1636 = vmax.xlane.f32.xlu0 %v1635_v34 }
 0x48b   : > { %v7106_v48 = vpop.f32.mrb[20].mxu1  ;;  %1624 = vmax.xlane.f32.xlu1 %v1623_v9  ;;  %v7108_v47 = vpop.f32.mrb[32].mxu0 }
 0x48c   : > { %9913 = vst [vmem:[#allocation26_spill] sm:$0xff] %v7108_v47  ;;  %v7110_v46 = vpop.f32.mrb[21].mxu1  ;;  %v7112_v30 = vpop.f32.mrb[33].mxu0 }
 0x48d   : > { %9914 = vst [vmem:[#allocation27_spill] sm:$0xff] %v7112_v30  ;;  %v7114_v32 = vpop.f32.mrb[22].mxu1  ;;  %1684 = vmax.xlane.f32.xlu0 %v1683_v19  ;;  %v7116_v2 = vpop.f32.mrb[34].mxu0  ;;  %v1638_v29 = vmax.f32 %v7106_v48, %v7110_v46  ;;  %v1686_v34 = vmax.f32 %v7108_v47, %v7112_v30 }
 0x48e   : > { %v7122_v1 = vpop.f32.mrb[23].mxu1  ;;  %v7124_v9 = vpop.f32.mrb[35].mxu0 }
 0x48f   : > { %1627 = vmax.xlane.f32.xlu1 %v1626_v55  ;;  %v1641_v31 = vmax.f32 %v7114_v32, %v7122_v1  ;;  %v1689_v21 = vmax.f32 %v7116_v2, %v7124_v9 }
 0x491   : > { %1642 = vmax.xlane.f32.xlu0 %v1641_v31 }
 0x493   : > { %v7130_v19 = vpop.f32.mrb[24].mxu1  ;;  %1675 = vmax.xlane.f32.xlu1 %v1674_v15  ;;  %v7132_v41 = vpop.f32.mrb[36].mxu0 }
 0x494   : > { %9915 = vst [vmem:[#allocation28_spill] sm:$0xff] %v7130_v19  ;;  %9916 = vst [vmem:[#allocation29_spill] sm:$0xff] %v7132_v41  ;;  %v7134_v26 = vpop.f32.mrb[25].mxu1  ;;  %v7136_v38 = vpop.f32.mrb[37].mxu0 }
 0x495   : > { %9917 = vst [vmem:[#allocation30_spill] sm:$0xff] %v7134_v26  ;;  %9918 = vst [vmem:[#allocation31_spill] sm:$0xff] %v7136_v38  ;;  %v7138_v37 = vpop.f32.mrb[26].mxu1  ;;  %1690 = vmax.xlane.f32.xlu0 %v1689_v21  ;;  %v7140_v55 = vpop.f32.mrb[38].mxu0  ;;  %v1644_v39 = vmax.f32 %v7130_v19, %v7134_v26  ;;  %v1692_v31 = vmax.f32 %v7132_v41, %v7136_v38 }
 0x496   : > { %9919 = vst [vmem:[#allocation32_spill] sm:$0xff] %v7138_v37  ;;  %9920 = vst [vmem:[#allocation33_spill] sm:$0xff] %v7140_v55  ;;  %v7146_v0 = vpop.f32.mrb[27].mxu1  ;;  %v7148_v15 = vpop.f32.mrb[39].mxu0 }
 0x497   : > { %9921 = vst [vmem:[#allocation34_spill] sm:$0xff] %v7146_v0  ;;  %9922 = vst [vmem:[#allocation35_spill] sm:$0xff] %v7148_v15  ;;  %1633 = vmax.xlane.f32.xlu1 %v1632_v33  ;;  %v1647_v4 = vmax.f32 %v7138_v37, %v7146_v0  ;;  %v1695_v30 = vmax.f32 %v7140_v55, %v7148_v15 }
 0x499   : > { %1648 = vmax.xlane.f32.xlu0 %v1647_v4 }
 0x49b   : > { %v7154_v21 = vpop.f32.mrb[28].mxu1  ;;  %1681 = vmax.xlane.f32.xlu1 %v1680_v25  ;;  %v7156_v47 = vpop.f32.mrb[40].mxu0 }
 0x49c   : > { %9923 = vst [vmem:[#allocation36_spill] sm:$0xff] %v7154_v21  ;;  %9924 = vst [vmem:[#allocation37_spill] sm:$0xff] %v7156_v47  ;;  %v7158_v26 = vpop.f32.mrb[29].mxu1  ;;  %v7160_v38 = vpop.f32.mrb[41].mxu0 }
 0x49d   : > { %9925 = vst [vmem:[#allocation38_spill] sm:$0xff] %v7158_v26  ;;  %9926 = vst [vmem:[#allocation39_spill] sm:$0xff] %v7160_v38  ;;  %v7162_v41 = vpop.f32.mrb[30].mxu1  ;;  %1696 = vmax.xlane.f32.xlu0 %v1695_v30  ;;  %v7164_v33 = vpop.f32.mrb[42].mxu0  ;;  %v1650_v19 = vmax.f32 %v7154_v21, %v7158_v26  ;;  %v1698_v4 = vmax.f32 %v7156_v47, %v7160_v38 }
 0x49e   : > { %9927 = vst [vmem:[#allocation40_spill] sm:$0xff] %v7162_v41  ;;  %9928 = vst [vmem:[#allocation41_spill] sm:$0xff] %v7164_v33  ;;  %v7170_v15 = vpop.f32.mrb[31].mxu1  ;;  %v7172_v25 = vpop.f32.mrb[43].mxu0 }
 0x49f   : > { %9929 = vst [vmem:[#allocation42_spill] sm:$0xff] %v7170_v15  ;;  %9930 = vst [vmem:[#allocation43_spill] sm:$0xff] %v7172_v25  ;;  %1639 = vmax.xlane.f32.xlu1 %v1638_v29  ;;  %v1653_v55 = vmax.f32 %v7162_v41, %v7170_v15  ;;  %v1701_v0 = vmax.f32 %v7164_v33, %v7172_v25 }
 0x4a1   : > { %1654 = vmax.xlane.f32.xlu0 %v1653_v55 }
 0x4a3   : > { %v7178_v30 = vpop.f32.mrb[32].mxu1  ;;  %1687 = vmax.xlane.f32.xlu1 %v1686_v34  ;;  %v7180_v37 = vpop.f32.mrb[44].mxu0 }
 0x4a4   : > { %9931 = vst [vmem:[#allocation44_spill] sm:$0xff] %v7178_v30  ;;  %9932 = vst [vmem:[#allocation45_spill] sm:$0xff] %v7180_v37  ;;  %v7182_v26 = vpop.f32.mrb[33].mxu1  ;;  %v7184_v38 = vpop.f32.mrb[45].mxu0 }
 0x4a5   : > { %9933 = vst [vmem:[#allocation46_spill] sm:$0xff] %v7182_v26  ;;  %9934 = vst [vmem:[#allocation47_spill] sm:$0xff] %v7184_v38  ;;  %v7186_v47 = vpop.f32.mrb[34].mxu1  ;;  %1702 = vmax.xlane.f32.xlu0 %v1701_v0  ;;  %v7188_v29 = vpop.f32.mrb[46].mxu0  ;;  %v1704_v21 = vmax.f32 %v7178_v30, %v7182_v26  ;;  %v1752_v55 = vmax.f32 %v7180_v37, %v7184_v38 }
 0x4a6   : > { %9935 = vst [vmem:[#allocation48_spill] sm:$0xff] %v7186_v47  ;;  %9936 = vst [vmem:[#allocation49_spill] sm:$0xff] %v7188_v29  ;;  %v7194_v25 = vpop.f32.mrb[35].mxu1  ;;  %v7196_v34 = vpop.f32.mrb[47].mxu0 }
 0x4a7   : > { %9937 = vst [vmem:[#allocation50_spill] sm:$0xff] %v7194_v25  ;;  %9938 = vst [vmem:[#allocation51_spill] sm:$0xff] %v7196_v34  ;;  %1645 = vmax.xlane.f32.xlu1 %v1644_v39  ;;  %v1707_v33 = vmax.f32 %v7186_v47, %v7194_v25  ;;  %v1755_v15 = vmax.f32 %v7188_v29, %v7196_v34 }
 0x4a9   : > { %1708 = vmax.xlane.f32.xlu0 %v1707_v33 }
 0x4ab   : > { %v7202_v0 = vpop.f32.mrb[36].mxu1  ;;  %1693 = vmax.xlane.f32.xlu1 %v1692_v31  ;;  %v7204_v41 = vpop.f32.mrb[48].mxu0 }
 0x4ac   : > { %9939 = vst [vmem:[#allocation52_spill] sm:$0xff] %v7202_v0  ;;  %9940 = vst [vmem:[#allocation53_spill] sm:$0xff] %v7204_v41  ;;  %v7206_v26 = vpop.f32.mrb[37].mxu1  ;;  %v7208_v38 = vpop.f32.mrb[49].mxu0 }
 0x4ad   : > { %9941 = vst [vmem:[#allocation54_spill] sm:$0xff] %v7206_v26  ;;  %9942 = vst [vmem:[#allocation55_spill] sm:$0xff] %v7208_v38  ;;  %v7210_v37 = vpop.f32.mrb[38].mxu1  ;;  %1756 = vmax.xlane.f32.xlu0 %v1755_v15  ;;  %v7212_v39 = vpop.f32.mrb[50].mxu0  ;;  %v1710_v30 = vmax.f32 %v7202_v0, %v7206_v26  ;;  %v1758_v33 = vmax.f32 %v7204_v41, %v7208_v38 }
 0x4ae   : > { %9943 = vst [vmem:[#allocation56_spill] sm:$0xff] %v7210_v37  ;;  %9944 = vst [vmem:[#allocation57_spill] sm:$0xff] %v7212_v39  ;;  %v7218_v34 = vpop.f32.mrb[39].mxu1  ;;  %v7220_v31 = vpop.f32.mrb[51].mxu0 }
 0x4af   : > { %9945 = vst [vmem:[#allocation58_spill] sm:$0xff] %v7218_v34  ;;  %9946 = vst [vmem:[#allocation59_spill] sm:$0xff] %v7220_v31  ;;  %1651 = vmax.xlane.f32.xlu1 %v1650_v19  ;;  %v1713_v29 = vmax.f32 %v7210_v37, %v7218_v34  ;;  %v1761_v25 = vmax.f32 %v7212_v39, %v7220_v31 }
 0x4b1   : > { %1714 = vmax.xlane.f32.xlu0 %v1713_v29 }
 0x4b3   : > { %v7226_v15 = vpop.f32.mrb[40].mxu1  ;;  %1699 = vmax.xlane.f32.xlu1 %v1698_v4  ;;  %v7228_v47 = vpop.f32.mrb[52].mxu0 }
 0x4b4   : > { %9947 = vst [vmem:[#allocation60_spill] sm:$0xff] %v7226_v15  ;;  %9948 = vst [vmem:[#allocation61_spill] sm:$0xff] %v7228_v47  ;;  %v7230_v26 = vpop.f32.mrb[41].mxu1  ;;  %v7232_v38 = vpop.f32.mrb[53].mxu0 }
 0x4b5   : > { %9949 = vst [vmem:[#allocation62_spill] sm:$0xff] %v7230_v26  ;;  %9950 = vst [vmem:[#allocation63_spill] sm:$0xff] %v7232_v38  ;;  %v7234_v41 = vpop.f32.mrb[42].mxu1  ;;  %1762 = vmax.xlane.f32.xlu0 %v1761_v25  ;;  %v7236_v19 = vpop.f32.mrb[54].mxu0  ;;  %v1716_v0 = vmax.f32 %v7226_v15, %v7230_v26  ;;  %v1764_v29 = vmax.f32 %v7228_v47, %v7232_v38 }
 0x4b6   : > { %9951 = vst [vmem:[#allocation64_spill] sm:$0xff] %v7234_v41  ;;  %9952 = vst [vmem:[#allocation65_spill] sm:$0xff] %v7236_v19  ;;  %v7242_v31 = vpop.f32.mrb[43].mxu1  ;;  %v7244_v4 = vpop.f32.mrb[55].mxu0 }
 0x4b7   : > { %9953 = vst [vmem:[#allocation66_spill] sm:$0xff] %v7242_v31  ;;  %9954 = vst [vmem:[#allocation67_spill] sm:$0xff] %v7244_v4  ;;  %1705 = vmax.xlane.f32.xlu1 %v1704_v21  ;;  %v1719_v39 = vmax.f32 %v7234_v41, %v7242_v31  ;;  %v1767_v34 = vmax.f32 %v7236_v19, %v7244_v4 }
 0x4b9   : > { %1720 = vmax.xlane.f32.xlu0 %v1719_v39 }
 0x4bb   : > { %v7250_v25 = vpop.f32.mrb[44].mxu1  ;;  %1753 = vmax.xlane.f32.xlu1 %v1752_v55  ;;  %v7252_v37 = vpop.f32.mrb[56].mxu0 }
 0x4bc   : > { %9955 = vst [vmem:[#allocation68_spill] sm:$0xff] %v7250_v25  ;;  %9956 = vst [vmem:[#allocation69_spill] sm:$0xff] %v7252_v37  ;;  %v7254_v26 = vpop.f32.mrb[45].mxu1  ;;  %v7256_v38 = vpop.f32.mrb[57].mxu0 }
 0x4bd   : > { %9957 = vst [vmem:[#allocation70_spill] sm:$0xff] %v7254_v26  ;;  %9958 = vst [vmem:[#allocation71_spill] sm:$0xff] %v7256_v38  ;;  %v7258_v47 = vpop.f32.mrb[46].mxu1  ;;  %1768 = vmax.xlane.f32.xlu0 %v1767_v34  ;;  %v7260_v21 = vpop.f32.mrb[58].mxu0  ;;  %v1722_v15 = vmax.f32 %v7250_v25, %v7254_v26  ;;  %v1770_v39 = vmax.f32 %v7252_v37, %v7256_v38 }
 0x4be   : > { %9959 = vst [vmem:[#allocation72_spill] sm:$0xff] %v7258_v47  ;;  %9960 = vst [vmem:[#allocation73_spill] sm:$0xff] %v7260_v21  ;;  %v7266_v4 = vpop.f32.mrb[47].mxu1  ;;  %v7268_v55 = vpop.f32.mrb[59].mxu0 }
 0x4bf   : > { %9961 = vst [vmem:[#allocation74_spill] sm:$0xff] %v7266_v4  ;;  %9962 = vst [vmem:[#allocation75_spill] sm:$0xff] %v7268_v55  ;;  %1711 = vmax.xlane.f32.xlu1 %v1710_v30  ;;  %v1725_v19 = vmax.f32 %v7258_v47, %v7266_v4  ;;  %v1773_v31 = vmax.f32 %v7260_v21, %v7268_v55 }
 0x4c1   : > { %1726 = vmax.xlane.f32.xlu0 %v1725_v19 }
 0x4c3   : > { %v7274_v34 = vpop.f32.mrb[48].mxu1  ;;  %1759 = vmax.xlane.f32.xlu1 %v1758_v33  ;;  %v7276_v41 = vpop.f32.mrb[60].mxu0 }
 0x4c4   : > { %9963 = vst [vmem:[#allocation76_spill] sm:$0xff] %v7274_v34  ;;  %9964 = vst [vmem:[#allocation77_spill] sm:$0xff] %v7276_v41  ;;  %v7278_v26 = vpop.f32.mrb[49].mxu1  ;;  %v7280_v38 = vpop.f32.mrb[61].mxu0 }
 0x4c5   : > { %9965 = vst [vmem:[#allocation78_spill] sm:$0xff] %v7278_v26  ;;  %9966 = vst [vmem:[#allocation79_spill] sm:$0xff] %v7280_v38  ;;  %v7282_v37 = vpop.f32.mrb[50].mxu1  ;;  %1774 = vmax.xlane.f32.xlu0 %v1773_v31  ;;  %v7284_v30 = vpop.f32.mrb[62].mxu0  ;;  %v1728_v25 = vmax.f32 %v7274_v34, %v7278_v26  ;;  %v1776_v19 = vmax.f32 %v7276_v41, %v7280_v38 }
 0x4c6   : > { %9967 = vst [vmem:[#allocation80_spill] sm:$0xff] %v7284_v30  ;;  %v7290_v55 = vpop.f32.mrb[51].mxu1  ;;  %v7292_v33 = vpop.f32.mrb[63].mxu0 }
 0x4c7   : > { %9968 = vst [vmem:[#allocation81_spill] sm:$0xff] %v7290_v55  ;;  %9969 = vst [vmem:[#allocation82_spill] sm:$0xff] %v7292_v33  ;;  %1717 = vmax.xlane.f32.xlu1 %v1716_v0  ;;  %v1731_v21 = vmax.f32 %v7282_v37, %v7290_v55  ;;  %v1779_v4 = vmax.f32 %v7284_v30, %v7292_v33 }
 0x4c9   : > { %1732 = vmax.xlane.f32.xlu0 %v1731_v21 }
 0x4cb   : > { %v7298_v31 = vpop.f32.mrb[52].mxu1  ;;  %1765 = vmax.xlane.f32.xlu1 %v1764_v29  ;;  %v7300_v47 = vpop.f32.mrb[64].mxu0 }
 0x4cc   : > { %9970 = vst [vmem:[#allocation83_spill] sm:$0xff] %v7298_v31  ;;  %9971 = vst [vmem:[#allocation84_spill] sm:$0xff] %v7300_v47  ;;  %v7302_v26 = vpop.f32.mrb[53].mxu1  ;;  %v7304_v38 = vpop.f32.mrb[65].mxu0 }
 0x4cd   : > { %9972 = vst [vmem:[#allocation85_spill] sm:$0xff] %v7302_v26  ;;  %9973 = vst [vmem:[#allocation86_spill] sm:$0xff] %v7304_v38  ;;  %v1734_v41 = vmax.f32 %v7298_v31, %v7302_v26  ;;  %v7308_v0 = vpop.f32.mrb[54].mxu1  ;;  %1780 = vmax.xlane.f32.xlu0 %v1779_v4  ;;  %v1782_v34 = vmax.f32 %v7300_v47, %v7304_v38  ;;  %v7312_v33 = vpop.f32.mrb[66].mxu0 }
 0x4ce   : > { %9974 = vst [vmem:[#allocation87_spill] sm:$0xff] %v7308_v0  ;;  %9975 = vst [vmem:[#allocation88_spill] sm:$0xff] %v7312_v33  ;;  %v7314_v21 = vpop.f32.mrb[55].mxu1  ;;  %v7316_v29 = vpop.f32.mrb[67].mxu0 }
 0x4cf   : > { %9976 = vst [vmem:[#allocation89_spill] sm:$0xff] %v7314_v21  ;;  %9977 = vst [vmem:[#allocation90_spill] sm:$0xff] %v7316_v29  ;;  %1723 = vmax.xlane.f32.xlu1 %v1722_v15  ;;  %v1737_v30 = vmax.f32 %v7308_v0, %v7314_v21  ;;  %v1785_v55 = vmax.f32 %v7312_v33, %v7316_v29 }
 0x4d1   : > { %1738 = vmax.xlane.f32.xlu0 %v1737_v30 }
 0x4d3   : > { %v7322_v26 = vpop.f32.mrb[56].mxu1  ;;  %1771 = vmax.xlane.f32.xlu1 %v1770_v39  ;;  %v7324_v4 = vpop.f32.mrb[68].mxu0 }
 0x4d4   : > { %9978 = vst [vmem:[#allocation91_spill] sm:$0xff] %v7322_v26  ;;  %9979 = vst [vmem:[#allocation92_spill] sm:$0xff] %v7324_v4  ;;  %v7326_v38 = vpop.f32.mrb[57].mxu1  ;;  %v7328_v47 = vpop.f32.mrb[69].mxu0 }
 0x4d5   : > { %9980 = vst [vmem:[#allocation93_spill] sm:$0xff] %v7326_v38  ;;  %9981 = vst [vmem:[#allocation94_spill] sm:$0xff] %v7328_v47  ;;  %v1740_v31 = vmax.f32 %v7322_v26, %v7326_v38  ;;  %v7332_v15 = vpop.f32.mrb[58].mxu1  ;;  %1786 = vmax.xlane.f32.xlu0 %v1785_v55  ;;  %v1788_v21 = vmax.f32 %v7324_v4, %v7328_v47  ;;  %v7336_v29 = vpop.f32.mrb[70].mxu0 }
 0x4d6   : > { %9982 = vst [vmem:[#allocation95_spill] sm:$0xff] %v7332_v15  ;;  %9983 = vst [vmem:[#allocation96_spill] sm:$0xff] %v7336_v29  ;;  %v7338_v30 = vpop.f32.mrb[59].mxu1  ;;  %v7340_v39 = vpop.f32.mrb[71].mxu0 }
 0x4d7   : > { %9984 = vst [vmem:[#allocation97_spill] sm:$0xff] %v7338_v30  ;;  %9985 = vst [vmem:[#allocation98_spill] sm:$0xff] %v7340_v39  ;;  %1729 = vmax.xlane.f32.xlu1 %v1728_v25  ;;  %v1743_v33 = vmax.f32 %v7332_v15, %v7338_v30  ;;  %v1791_v0 = vmax.f32 %v7336_v29, %v7340_v39 }
 0x4d9   : > { %1744 = vmax.xlane.f32.xlu0 %v1743_v33 }
 0x4db   : > { %v7346_v38 = vpop.f32.mrb[60].mxu1  ;;  %1777 = vmax.xlane.f32.xlu1 %v1776_v19  ;;  %v7348_v55 = vpop.f32.mrb[72].mxu0 }
 0x4dc   : > { %9986 = vst [vmem:[#allocation99_spill] sm:$0xff] %v7346_v38  ;;  %9987 = vst [vmem:[#allocation100_spill] sm:$0xff] %v7348_v55  ;;  %v7350_v47 = vpop.f32.mrb[61].mxu1  ;;  %v7352_v4 = vpop.f32.mrb[73].mxu0 }
 0x4dd   : > { %9988 = vst [vmem:[#allocation101_spill] sm:$0xff] %v7350_v47  ;;  %9989 = vst [vmem:[#allocation102_spill] sm:$0xff] %v7352_v4  ;;  %v1746_v26 = vmax.f32 %v7346_v38, %v7350_v47  ;;  %v7356_v25 = vpop.f32.mrb[62].mxu1  ;;  %1792 = vmax.xlane.f32.xlu0 %v1791_v0  ;;  %v1794_v30 = vmax.f32 %v7348_v55, %v7352_v4  ;;  %v7360_v39 = vpop.f32.mrb[74].mxu0 }
 0x4de   : > { %9990 = vst [vmem:[#allocation103_spill] sm:$0xff] %v7356_v25  ;;  %v7362_v33 = vpop.f32.mrb[63].mxu1  ;;  %v7364_v19 = vpop.f32.mrb[75].mxu0 }
 0x4df   : > { %9991 = vst [vmem:[#allocation104_spill] sm:$0xff] %v7362_v33  ;;  %9992 = vst [vmem:[#allocation105_spill] sm:$0xff] %v7364_v19  ;;  %1735 = vmax.xlane.f32.xlu1 %v1734_v41  ;;  %v1749_v29 = vmax.f32 %v7356_v25, %v7362_v33  ;;  %v1797_v15 = vmax.f32 %v7360_v39, %v7364_v19 }
 0x4e1   : > { %1750 = vmax.xlane.f32.xlu0 %v1749_v29 }
 0x4e3   : > { %1783 = vmax.xlane.f32.xlu1 %v1782_v34 }
 0x4e5   : > { %1798 = vmax.xlane.f32.xlu0 %v1797_v15 }
 0x4e7   : > { %1741 = vmax.xlane.f32.xlu1 %v1740_v31 }
 0x4eb   : > { %1789 = vmax.xlane.f32.xlu1 %v1788_v21 }
 0x4ef   : > { %1747 = vmax.xlane.f32.xlu1 %v1746_v26 }
 0x4f3   : > { %1795 = vmax.xlane.f32.xlu1 %v1794_v30 }
 0x4f4   : > { %v1610_v0 = vpop.xlane.xlu1 %1609 }
 0x4f5   : > { %v1800_v4 = vsub.f32 %v6986_v60, %v1610_v0  ;;  %v1801_v55 = vsub.f32 %v6990_v20, %v1610_v0 }
 0x4f6   : > { %v1613_v47 = vpop.xlane.xlu0 %1612 }
 0x4f7   : > { %v1928_v41 = vmul.f32 1.442695, %v1800_v4  ;;  %v1930_v38 = vmul.f32 1.442695, %v1801_v55  ;;  %v1802_v33 = vsub.f32 %v6994_v22, %v1613_v47  ;;  %v1803_v25 = vsub.f32 %v7002_v27, %v1613_v47 }
 0x4f8   : > { %v1658_v19 = vpop.xlane.xlu1 %1657 }
 0x4f9   : > { %5698 = vpow2.f32 %v1928_v41  ;;  %v1932_v34 = vmul.f32 1.442695, %v1802_v33  ;;  %v1934_v29 = vmul.f32 1.442695, %v1803_v25  ;;  %v1832_v31 = vsub.f32 %v6988_v5, %v1658_v19 }
 0x4fa   : > { %5700 = vpow2.f32 %v1930_v38  ;;  %v1833_v26 = vsub.f32 %v6992_v42, %v1658_v19 }
 0x4fb   : > { %5702 = vpow2.f32 %v1932_v34  ;;  %v1992_v60 = vmul.f32 1.442695, %v1832_v31 }
 0x4fc   : > { %5704 = vpow2.f32 %v1934_v29  ;;  %v1994_v20 = vmul.f32 1.442695, %v1833_v26  ;;  %v1661_v21 = vpop.xlane.xlu1 %1660 }
 0x4fd   : > { %5706 = vpow2.f32 %v1992_v60  ;;  %v1834_v4 = vsub.f32 %v6996_v23, %v1661_v21  ;;  %v1835_v22 = vsub.f32 %v7004_v54, %v1661_v21 }
 0x4fe   : > { %5708 = vpow2.f32 %v1994_v20 }
 0x4ff   : > { %v1996_v47 = vmul.f32 1.442695, %v1834_v4  ;;  %v1998_v27 = vmul.f32 1.442695, %v1835_v22 }
 0x500   : > { %v1616_v15 = vpop.xlane.xlu1 %1615 }
 0x501   : > { %5710 = vpow2.f32 %v1996_v47  ;;  %v1804_v5 = vsub.f32 %v7010_v36, %v1616_v15  ;;  %v1805_v38 = vsub.f32 %v7014_v43, %v1616_v15 }
 0x502   : > { %5712 = vpow2.f32 %v1998_v27 }
 0x503   : > { %v7380_v42 = vpop.eup %5698  ;;  %v1936_v30 = vmul.f32 1.442695, %v1804_v5  ;;  %v1938_v55 = vmul.f32 1.442695, %v1805_v38 }
 0x504   : > { %v7382_v25 = vpop.eup %5700  ;;  %v1664_v33 = vpop.xlane.xlu1 %1663 }
 0x505   : > { %v7384_v23 = vpop.eup %5702  ;;  %5714 = vpow2.f32 %v1936_v30  ;;  %v1836_v54 = vsub.f32 %v7012_v58, %v1664_v33  ;;  %v1837_v19 = vsub.f32 %v7016_v44, %v1664_v33  ;;  %v2184_v36 = vadd.f32 %v7382_v25, %v7380_v42 }
 0x506   : > { %v7390_v0 = vpop.eup %5704  ;;  %5716 = vpow2.f32 %v1938_v55  ;;  %v1673_v44 = vpop.xlane.xlu0 %1672 }
 0x507   : > { %v7392_v43 = vpop.eup %5706  ;;  %v2000_v41 = vmul.f32 1.442695, %v1836_v54  ;;  %v2002_v34 = vmul.f32 1.442695, %v1837_v19  ;;  %2185 = vadd.xlane.f32.xlu1 %v2184_v36  ;;  %v2187_v26 = vadd.f32 %v7390_v0, %v7384_v23 }
 0x508   : > { %v7394_v29 = vpop.eup %5708  ;;  %v1619_v31 = vpop.xlane.xlu1 %1618 }
 0x509   : > { %5718 = vpow2.f32 %v2000_v41  ;;  %v1806_v58 = vsub.f32 %v7018_v49, %v1619_v31  ;;  %v1807_v60 = vsub.f32 %v7026_v53, %v1619_v31  ;;  %2188 = vadd.xlane.f32.xlu0 %v2187_v26  ;;  %v2232_v20 = vadd.f32 %v7394_v29, %v7392_v43 }
 0x50a   : > { %5720 = vpow2.f32 %v2002_v34  ;;  %v1842_v26 = vsub.f32 %v7042_v17, %v1673_v44 }
 0x50b   : > { %v7402_v21 = vpop.eup %5710  ;;  %v1940_v4 = vmul.f32 1.442695, %v1806_v58  ;;  %v1942_v47 = vmul.f32 1.442695, %v1807_v60  ;;  %2233 = vadd.xlane.f32.xlu1 %v2232_v20 }
 0x50c   : > { %v7404_v22 = vpop.eup %5712  ;;  %v1667_v27 = vpop.xlane.xlu1 %1666 }
 0x50d   : > { %5722 = vpow2.f32 %v1940_v4  ;;  %v1838_v15 = vsub.f32 %v7020_v50, %v1667_v27  ;;  %v1839_v49 = vsub.f32 %v7028_v56, %v1667_v27  ;;  %v2235_v53 = vadd.f32 %v7404_v22, %v7402_v21 }
 0x50e   : > { %5724 = vpow2.f32 %v1942_v47  ;;  %v1631_v5 = vpop.xlane.xlu0 %1630  ;;  %v1843_v27 = vsub.f32 %v7050_v3, %v1673_v44 }
 0x50f   : > { %v7410_v38 = vpop.eup %5714  ;;  %v2004_v30 = vmul.f32 1.442695, %v1838_v15  ;;  %v2006_v55 = vmul.f32 1.442695, %v1839_v49  ;;  %2236 = vadd.xlane.f32.xlu0 %v2235_v53  ;;  %v2012_v49 = vmul.f32 1.442695, %v1842_v26  ;;  %v1814_v53 = vsub.f32 %v7066_v45, %v1631_v5 }
 0x510   : > { %v7412_v33 = vpop.eup %5716  ;;  %v1622_v54 = vpop.xlane.xlu1 %1621 }
 0x511   : > { %5726 = vpow2.f32 %v2004_v30  ;;  %v1808_v19 = vsub.f32 %v7036_v59, %v1622_v54  ;;  %v1809_v50 = vsub.f32 %v7040_v62, %v1622_v54  ;;  %v2190_v36 = vadd.f32 %v7412_v33, %v7410_v38 }
 0x512   : > { %5728 = vpow2.f32 %v2006_v55  ;;  %v7416_v56 = vpop.xlane.xlu0 %1678 }
 0x513   : > { %v7420_v41 = vpop.eup %5718  ;;  %v1944_v34 = vmul.f32 1.442695, %v1808_v19  ;;  %v1946_v58 = vmul.f32 1.442695, %v1809_v50  ;;  %2191 = vadd.xlane.f32.xlu1 %v2190_v36  ;;  %v2014_v19 = vmul.f32 1.442695, %v1843_v27  ;;  %v1815_v50 = vsub.f32 %v7074_v16, %v1631_v5 }
 0x514   : > { %v7422_v31 = vpop.eup %5720  ;;  %v1670_v60 = vpop.xlane.xlu1 %1669 }
 0x515   : > { %5730 = vpow2.f32 %v1944_v34  ;;  %v1840_v59 = vsub.f32 %v7034_v13, %v1670_v60  ;;  %v1841_v62 = vsub.f32 %v7038_v61, %v1670_v60  ;;  %v2238_v4 = vadd.f32 %v7422_v31, %v7420_v41 }
 0x516   : > { %5732 = vpow2.f32 %v1946_v58  ;;  %v7427_v20 = vpop.xlane.xlu0 %1636  ;;  %v1956_v34 = vmul.f32 1.442695, %v1814_v53 }
 0x517   : > { %v7431_v47 = vpop.eup %5722  ;;  %v2008_v15 = vmul.f32 1.442695, %v1840_v59  ;;  %v2010_v30 = vmul.f32 1.442695, %v1841_v62  ;;  %2239 = vadd.xlane.f32.xlu1 %v2238_v4  ;;  %v1958_v62 = vmul.f32 1.442695, %v1815_v50 }
 0x518   : > { %v7434_v17 = vpop.eup %5724  ;;  %v1625_v13 = vpop.xlane.xlu1 %1624 }
 0x519   : > { %5734 = vpow2.f32 %v2008_v15  ;;  %v1810_v61 = vsub.f32 %v7044_v63, %v1625_v13  ;;  %v1811_v55 = vsub.f32 %v7052_v7, %v1625_v13  ;;  %v2193_v3 = vadd.f32 %v7434_v17, %v7431_v47 }
 0x51a   : > { %5736 = vpow2.f32 %v2010_v30  ;;  %v7439_v54 = vpop.xlane.xlu0 %1684  ;;  %v1846_v63 = vsub.f32 %v7068_v14, %v7416_v56  ;;  %v1847_v14 = vsub.f32 %v7076_v18, %v7416_v56 }
 0x51b   : > { %v7443_v44 = vpop.eup %5726  ;;  %v1948_v45 = vmul.f32 1.442695, %v1810_v61  ;;  %5738 = vpow2.f32 %v2012_v49  ;;  %v1950_v26 = vmul.f32 1.442695, %v1811_v55  ;;  %2194 = vadd.xlane.f32.xlu0 %v2193_v3 }
 0x51c   : > { %v7446_v36 = vpop.eup %5728  ;;  %v1628_v7 = vpop.xlane.xlu1 %1627  ;;  %v2022_v61 = vmul.f32 1.442695, %v1847_v14 }
 0x51d   : > { %5740 = vpow2.f32 %v1948_v45  ;;  %v1812_v58 = vsub.f32 %v7058_v40, %v1628_v7  ;;  %v1813_v60 = vsub.f32 %v7062_v11, %v1628_v7  ;;  %v2241_v16 = vadd.f32 %v7446_v36, %v7443_v44 }
 0x51e   : > { %5742 = vpow2.f32 %v1950_v26  ;;  %v7452_v59 = vpop.xlane.xlu0 %1642  ;;  %v2020_v40 = vmul.f32 1.442695, %v1846_v63  ;;  %v1818_v11 = vsub.f32 %v7090_v6, %v7427_v20  ;;  %v1819_v6 = vsub.f32 %v7098_v8, %v7427_v20 }
 0x51f   : > { %v7456_v5 = vpop.eup %5730  ;;  %5744 = vpow2.f32 %v2014_v19  ;;  %v1952_v4 = vmul.f32 1.442695, %v1812_v58  ;;  %v1954_v15 = vmul.f32 1.442695, %v1813_v60  ;;  %2242 = vadd.xlane.f32.xlu0 %v2241_v16  ;;  %v1851_v7 = vsub.f32 %v7100_v24, %v7439_v54 }
 0x520   : > { %v7460_v27 = vpop.eup %5732  ;;  %5746 = vpow2.f32 %v1956_v34  ;;  %v1676_v49 = vpop.xlane.xlu1 %1675 }
 0x521   : > { %5748 = vpow2.f32 %v1952_v4  ;;  %v1844_v53 = vsub.f32 %v7060_v10, %v1676_v49  ;;  %v1845_v30 = vsub.f32 %v7064_v12, %v1676_v49  ;;  %v2196_v18 = vadd.f32 %v7460_v27, %v7456_v5 }
 0x522   : > { %5750 = vpow2.f32 %v1954_v15  ;;  %v7466_v13 = vpop.xlane.xlu0 %1690  ;;  %v1964_v10 = vmul.f32 1.442695, %v1818_v11  ;;  %v1850_v12 = vsub.f32 %v7092_v57, %v7439_v54  ;;  %v1966_v57 = vmul.f32 1.442695, %v1819_v6 }
 0x523   : > { %v7470_v56 = vpop.eup %5734  ;;  %5752 = vpow2.f32 %v1958_v62  ;;  %v2016_v55 = vmul.f32 1.442695, %v1844_v53  ;;  %v2018_v19 = vmul.f32 1.442695, %v1845_v30  ;;  %2197 = vadd.xlane.f32.xlu1 %v2196_v18  ;;  %v1823_v49 = vsub.f32 %v7122_v1, %v7452_v59 }
 0x524   : > { %v7474_v3 = vpop.eup %5736  ;;  %5754 = vpow2.f32 %v2020_v40  ;;  %v1634_v50 = vpop.xlane.xlu1 %1633 }
 0x525   : > { %5756 = vpow2.f32 %v2016_v55  ;;  %v1816_v45 = vsub.f32 %v7082_v28, %v1634_v50  ;;  %v7479_v34 = vpop.eup %5738  ;;  %v1817_v63 = vsub.f32 %v7086_v51, %v1634_v50  ;;  %v2244_v20 = vadd.f32 %v7474_v3, %v7470_v56 }
 0x526   : > { %5758 = vpow2.f32 %v2018_v19  ;;  %v7482_v8 = vpop.xlane.xlu0 %1648  ;;  %v2028_v28 = vmul.f32 1.442695, %v1850_v12  ;;  %v1822_v51 = vsub.f32 %v7114_v32, %v7452_v59  ;;  %v2030_v32 = vmul.f32 1.442695, %v1851_v7 }
 0x527   : > { %v7486_v26 = vpop.eup %5740  ;;  %5760 = vpow2.f32 %v2022_v61  ;;  %v1960_v58 = vmul.f32 1.442695, %v1816_v45  ;;  %v1962_v16 = vmul.f32 1.442695, %v1817_v63  ;;  %2245 = vadd.xlane.f32.xlu1 %v2244_v20  ;;  %v1974_v50 = vmul.f32 1.442695, %v1823_v49 }
 0x528   : > { %v7490_v60 = vpop.eup %5742  ;;  %5762 = vpow2.f32 %v1964_v10  ;;  %v1682_v62 = vpop.xlane.xlu1 %1681  ;;  %v9993_v20 = vld [vmem:[#allocation32_spill] sm:$0xff] }
 0x529   : > { %v7494_v14 = vpop.eup %5744  ;;  %5764 = vpow2.f32 %v1960_v58  ;;  %v1848_v4 = vsub.f32 %v7084_v35, %v1682_v62  ;;  %v1849_v24 = vsub.f32 %v7088_v52, %v1682_v62  ;;  %v2199_v11 = vadd.f32 %v7490_v60, %v7486_v26 }
 0x52a   : > { %v7497_v40 = vpop.eup %5746  ;;  %5766 = vpow2.f32 %v1962_v16  ;;  %v7500_v54 = vpop.xlane.xlu0 %1696  ;;  %v1972_v35 = vmul.f32 1.442695, %v1822_v51  ;;  %v1854_v52 = vsub.f32 %v7116_v2, %v7466_v13  ;;  %v2247_v2 = vadd.f32 %v7494_v14, %v7479_v34  ;;  %v9994_v51 = vld [vmem:[#allocation26_spill] sm:$0xff] }
 0x52b   : > { %v7504_v15 = vpop.eup %5748  ;;  %5768 = vpow2.f32 %v1966_v57  ;;  %v2024_v53 = vmul.f32 1.442695, %v1848_v4  ;;  %v2026_v18 = vmul.f32 1.442695, %v1849_v24  ;;  %2200 = vadd.xlane.f32.xlu0 %v2199_v11  ;;  %v1826_v57 = vsub.f32 %v9993_v20, %v7482_v8 }
 0x52c   : > { %v7508_v30 = vpop.eup %5750  ;;  %5770 = vpow2.f32 %v2028_v28  ;;  %v1640_v61 = vpop.xlane.xlu1 %1639 }
 0x52d   : > { %v7512_v6 = vpop.eup %5752  ;;  %5772 = vpow2.f32 %v2024_v53  ;;  %v1820_v55 = vsub.f32 %v7106_v48, %v1640_v61  ;;  %v1821_v1 = vsub.f32 %v7110_v46, %v1640_v61  ;;  %v2202_v12 = vadd.f32 %v7508_v30, %v7504_v15  ;;  %v9998_v53 = vld [vmem:[#allocation34_spill] sm:$0xff] }
 0x52e   : > { %v7515_v10 = vpop.eup %5754  ;;  %5774 = vpow2.f32 %v2026_v18  ;;  %v7518_v59 = vpop.xlane.xlu0 %1654  ;;  %v1855_v48 = vsub.f32 %v7124_v9, %v7466_v13  ;;  %v2036_v46 = vmul.f32 1.442695, %v1854_v52  ;;  %v9996_v9 = vld [vmem:[#allocation27_spill] sm:$0xff]  ;;  %v2205_v11 = vadd.f32 %v7512_v6, %v7497_v40 }
 0x52f   : > { %v7524_v19 = vpop.eup %5756  ;;  %5776 = vpow2.f32 %v2030_v32  ;;  %v1968_v45 = vmul.f32 1.442695, %v1820_v55  ;;  %v1970_v7 = vmul.f32 1.442695, %v1821_v1  ;;  %2203 = vadd.xlane.f32.xlu1 %v2202_v12  ;;  %2248 = vadd.xlane.f32.xlu0 %v2247_v2  ;;  %v1980_v61 = vmul.f32 1.442695, %v1826_v57 }
 0x530   : > { %v7528_v63 = vpop.eup %5758  ;;  %5778 = vpow2.f32 %v1972_v35  ;;  %v1688_v58 = vpop.xlane.xlu1 %1687  ;;  %v2038_v49 = vmul.f32 1.442695, %v1855_v48  ;;  %v1827_v35 = vsub.f32 %v9998_v53, %v7482_v8  ;;  %v9999_v55 = vld [vmem:[#allocation33_spill] sm:$0xff]  ;;  %v10003_v8 = vld [vmem:[#allocation30_spill] sm:$0xff] }
 0x531   : > { %v7532_v28 = vpop.eup %5760  ;;  %5780 = vpow2.f32 %v1968_v45  ;;  %v1852_v16 = vsub.f32 %v9994_v51, %v1688_v58  ;;  %v1853_v13 = vsub.f32 %v9996_v9, %v1688_v58  ;;  %v2250_v24 = vadd.f32 %v7528_v63, %v7524_v19  ;;  %v10005_v9 = vld [vmem:[#allocation35_spill] sm:$0xff] }
 0x532   : > { %v7535_v62 = vpop.eup %5762  ;;  %5782 = vpow2.f32 %v1970_v7  ;;  %v7538_v4 = vpop.xlane.xlu0 %1702  ;;  %v1858_v1 = vsub.f32 %v9999_v55, %v7500_v54  ;;  %v2253_v57 = vadd.f32 %v7532_v28, %v7515_v10 }
 0x533   : > { %9995 = vst [vmem:[#allocation32_spill] sm:$0xff] %v7535_v62  ;;  %v7544_v32 = vpop.eup %5764  ;;  %5784 = vpow2.f32 %v1974_v50  ;;  %v2032_v52 = vmul.f32 1.442695, %v1852_v16  ;;  %v2034_v12 = vmul.f32 1.442695, %v1853_v13  ;;  %2251 = vadd.xlane.f32.xlu1 %v2250_v24  ;;  %2206 = vadd.xlane.f32.xlu0 %v2205_v11  ;;  %v10001_v50 = vld [vmem:[#allocation28_spill] sm:$0xff]  ;;  %v1859_v13 = vsub.f32 %v10005_v9, %v7500_v54 }
 0x534   : > { %9997 = vst [vmem:[#allocation26_spill] sm:$0xff] %v7544_v32  ;;  %v7548_v18 = vpop.eup %5766  ;;  %5786 = vpow2.f32 %v2036_v46  ;;  %v1646_v2 = vpop.xlane.xlu1 %1645  ;;  %v1982_v16 = vmul.f32 1.442695, %v1827_v35  ;;  %v2044_v53 = vmul.f32 1.442695, %v1858_v1  ;;  %v10011_v54 = vld [vmem:[#allocation31_spill] sm:$0xff] }
 0x535   : > { %v7552_v45 = vpop.eup %5768  ;;  %5788 = vpow2.f32 %v2032_v52  ;;  %v1824_v48 = vsub.f32 %v10001_v50, %v1646_v2  ;;  %v1825_v7 = vsub.f32 %v10003_v8, %v1646_v2  ;;  %v2208_v46 = vadd.f32 %v7548_v18, %v7544_v32  ;;  %v10007_v52 = vld [vmem:[#allocation40_spill] sm:$0xff] }
 0x536   : > { %10000 = vst [vmem:[#allocation27_spill] sm:$0xff] %v7552_v45  ;;  %v7555_v20 = vpop.eup %5770  ;;  %5790 = vpow2.f32 %v2034_v12  ;;  %v7558_v58 = vpop.xlane.xlu0 %1708  ;;  %v1830_v55 = vsub.f32 %v10007_v52, %v7518_v59  ;;  %v2211_v1 = vadd.f32 %v7552_v45, %v7535_v62 }
 0x537   : > { %10002 = vst [vmem:[#allocation34_spill] sm:$0xff] %v7555_v20  ;;  %v7564_v51 = vpop.eup %5772  ;;  %5792 = vpow2.f32 %v2038_v49  ;;  %v1976_v24 = vmul.f32 1.442695, %v1824_v48  ;;  %v1978_v12 = vmul.f32 1.442695, %v1825_v7  ;;  %2209 = vadd.xlane.f32.xlu1 %v2208_v46  ;;  %2254 = vadd.xlane.f32.xlu0 %v2253_v57  ;;  %v10009_v49 = vld [vmem:[#allocation29_spill] sm:$0xff] }
 0x538   : > { %10004 = vst [vmem:[#allocation33_spill] sm:$0xff] %v7564_v51  ;;  %v7568_v11 = vpop.eup %5774  ;;  %5794 = vpow2.f32 %v1980_v61  ;;  %v1694_v2 = vpop.xlane.xlu1 %1693  ;;  %v2046_v46 = vmul.f32 1.442695, %v1859_v13  ;;  %v10013_v57 = vld [vmem:[#allocation42_spill] sm:$0xff] }
 0x539   : > { %10006 = vst [vmem:[#allocation28_spill] sm:$0xff] %v7568_v11  ;;  %v7572_v50 = vpop.eup %5776  ;;  %5796 = vpow2.f32 %v1976_v24  ;;  %v1856_v35 = vsub.f32 %v10009_v49, %v1694_v2  ;;  %v1857_v48 = vsub.f32 %v10011_v54, %v1694_v2  ;;  %v2256_v61 = vadd.f32 %v7568_v11, %v7564_v51  ;;  %v10015_v2 = vld [vmem:[#allocation41_spill] sm:$0xff] }
 0x53a   : > { %10008 = vst [vmem:[#allocation30_spill] sm:$0xff] %v7572_v50  ;;  %v7575_v8 = vpop.eup %5778  ;;  %5798 = vpow2.f32 %v1978_v12  ;;  %v7578_v9 = vpop.xlane.xlu0 %1756  ;;  %v1831_v24 = vsub.f32 %v10013_v57, %v7518_v59  ;;  %v1988_v12 = vmul.f32 1.442695, %v1830_v55  ;;  %v1862_v54 = vsub.f32 %v10015_v2, %v7538_v4  ;;  %v10019_v59 = vld [vmem:[#allocation38_spill] sm:$0xff] }
 0x53b   : > { %10010 = vst [vmem:[#allocation35_spill] sm:$0xff] %v7575_v8  ;;  %v7584_v7 = vpop.eup %5780  ;;  %5800 = vpow2.f32 %v1982_v16  ;;  %v2040_v52 = vmul.f32 1.442695, %v1856_v35  ;;  %v2042_v32 = vmul.f32 1.442695, %v1857_v48  ;;  %2257 = vadd.xlane.f32.xlu1 %v2256_v61  ;;  %2212 = vadd.xlane.f32.xlu0 %v2211_v1  ;;  %v10017_v16 = vld [vmem:[#allocation36_spill] sm:$0xff]  ;;  %v2259_v55 = vadd.f32 %v7572_v50, %v7555_v20 }
 0x53c   : > { %10012 = vst [vmem:[#allocation40_spill] sm:$0xff] %v7584_v7  ;;  %v7588_v49 = vpop.eup %5782  ;;  %5802 = vpow2.f32 %v2044_v53  ;;  %v1652_v51 = vpop.xlane.xlu1 %1651  ;;  %v1990_v61 = vmul.f32 1.442695, %v1831_v24  ;;  %v10021_v1 = vld [vmem:[#allocation43_spill] sm:$0xff] }
 0x53d   : > { %10014 = vst [vmem:[#allocation29_spill] sm:$0xff] %v7588_v49  ;;  %v7592_v11 = vpop.eup %5784  ;;  %5804 = vpow2.f32 %v2040_v52  ;;  %v1828_v13 = vsub.f32 %v10017_v16, %v1652_v51  ;;  %v1829_v35 = vsub.f32 %v10019_v59, %v1652_v51  ;;  %v2214_v53 = vadd.f32 %v7588_v49, %v7584_v7  ;;  %v10023_v51 = vld [vmem:[#allocation48_spill] sm:$0xff] }
 0x53e   : > { %10016 = vst [vmem:[#allocation31_spill] sm:$0xff] %v7592_v11  ;;  %v7595_v62 = vpop.eup %5786  ;;  %5806 = vpow2.f32 %v2042_v32  ;;  %v7598_v57 = vpop.xlane.xlu0 %1714  ;;  %v1863_v52 = vsub.f32 %v10021_v1, %v7538_v4  ;;  %v2052_v32 = vmul.f32 1.442695, %v1862_v54  ;;  %v1866_v59 = vsub.f32 %v10023_v51, %v7558_v58  ;;  %v10027_v4 = vld [vmem:[#allocation39_spill] sm:$0xff] }
 0x53f   : > { %10018 = vst [vmem:[#allocation42_spill] sm:$0xff] %v7595_v62  ;;  %v7604_v48 = vpop.eup %5788  ;;  %5808 = vpow2.f32 %v2046_v46  ;;  %v1984_v2 = vmul.f32 1.442695, %v1828_v13  ;;  %v1986_v45 = vmul.f32 1.442695, %v1829_v35  ;;  %2215 = vadd.xlane.f32.xlu1 %v2214_v53  ;;  %2260 = vadd.xlane.f32.xlu0 %v2259_v55  ;;  %v10025_v46 = vld [vmem:[#allocation37_spill] sm:$0xff]  ;;  %v2217_v54 = vadd.f32 %v7592_v11, %v7575_v8 }
 0x540   : > { %10020 = vst [vmem:[#allocation41_spill] sm:$0xff] %v7604_v48  ;;  %v7608_v16 = vpop.eup %5790  ;;  %5810 = vpow2.f32 %v1988_v12  ;;  %v1700_v7 = vpop.xlane.xlu1 %1699  ;;  %v2054_v53 = vmul.f32 1.442695, %v1863_v52  ;;  %v10029_v55 = vld [vmem:[#allocation50_spill] sm:$0xff] }
 0x541   : > { %10022 = vst [vmem:[#allocation36_spill] sm:$0xff] %v7608_v16  ;;  %v7612_v49 = vpop.eup %5792  ;;  %5812 = vpow2.f32 %v1984_v2  ;;  %v1860_v24 = vsub.f32 %v10025_v46, %v1700_v7  ;;  %v1861_v13 = vsub.f32 %v10027_v4, %v1700_v7  ;;  %v2262_v12 = vadd.f32 %v7608_v16, %v7604_v48  ;;  %v10031_v7 = vld [vmem:[#allocation49_spill] sm:$0xff] }
 0x542   : > { %10024 = vst [vmem:[#allocation38_spill] sm:$0xff] %v7612_v49  ;;  %v7615_v20 = vpop.eup %5794  ;;  %5814 = vpow2.f32 %v1986_v45  ;;  %v7618_v1 = vpop.xlane.xlu0 %1762  ;;  %v1867_v2 = vsub.f32 %v10029_v55, %v7558_v58  ;;  %v2060_v45 = vmul.f32 1.442695, %v1866_v59  ;;  %v1898_v4 = vsub.f32 %v10031_v7, %v7578_v9  ;;  %v10035_v58 = vld [vmem:[#allocation46_spill] sm:$0xff] }
 0x543   : > { %10026 = vst [vmem:[#allocation43_spill] sm:$0xff] %v7615_v20  ;;  %v7624_v35 = vpop.eup %5796  ;;  %5816 = vpow2.f32 %v1990_v61  ;;  %v2048_v51 = vmul.f32 1.442695, %v1860_v24  ;;  %v2050_v50 = vmul.f32 1.442695, %v1861_v13  ;;  %2263 = vadd.xlane.f32.xlu1 %v2262_v12  ;;  %2218 = vadd.xlane.f32.xlu0 %v2217_v54  ;;  %v10033_v61 = vld [vmem:[#allocation44_spill] sm:$0xff]  ;;  %v2265_v59 = vadd.f32 %v7612_v49, %v7595_v62 }
 0x544   : > { %10028 = vst [vmem:[#allocation48_spill] sm:$0xff] %v7624_v35  ;;  %v7628_v46 = vpop.eup %5798  ;;  %5818 = vpow2.f32 %v2052_v32  ;;  %v1706_v48 = vpop.xlane.xlu1 %1705  ;;  %v2062_v12 = vmul.f32 1.442695, %v1867_v2  ;;  %v10037_v54 = vld [vmem:[#allocation51_spill] sm:$0xff] }
 0x545   : > { %10030 = vst [vmem:[#allocation37_spill] sm:$0xff] %v7628_v46  ;;  %v7632_v16 = vpop.eup %5800  ;;  %5820 = vpow2.f32 %v2048_v51  ;;  %v1864_v52 = vsub.f32 %v10033_v61, %v1706_v48  ;;  %v1865_v24 = vsub.f32 %v10035_v58, %v1706_v48  ;;  %v2220_v32 = vadd.f32 %v7628_v46, %v7624_v35  ;;  %v10039_v48 = vld [vmem:[#allocation56_spill] sm:$0xff] }
 0x546   : > { %10032 = vst [vmem:[#allocation39_spill] sm:$0xff] %v7632_v16  ;;  %v7635_v8 = vpop.eup %5802  ;;  %5822 = vpow2.f32 %v2050_v50  ;;  %v7638_v55 = vpop.xlane.xlu0 %1720  ;;  %v1899_v51 = vsub.f32 %v10037_v54, %v7578_v9  ;;  %v2124_v50 = vmul.f32 1.442695, %v1898_v4  ;;  %v1870_v58 = vsub.f32 %v10039_v48, %v7598_v57  ;;  %v10043_v9 = vld [vmem:[#allocation47_spill] sm:$0xff] }
 0x547   : > { %10034 = vst [vmem:[#allocation50_spill] sm:$0xff] %v7635_v8  ;;  %v7644_v13 = vpop.eup %5804  ;;  %5824 = vpow2.f32 %v2054_v53  ;;  %v2056_v7 = vmul.f32 1.442695, %v1864_v52  ;;  %v2058_v11 = vmul.f32 1.442695, %v1865_v24  ;;  %2221 = vadd.xlane.f32.xlu1 %v2220_v32  ;;  %2266 = vadd.xlane.f32.xlu0 %v2265_v59  ;;  %v10041_v53 = vld [vmem:[#allocation45_spill] sm:$0xff]  ;;  %v2223_v4 = vadd.f32 %v7632_v16, %v7615_v20 }
 0x548   : > { %10036 = vst [vmem:[#allocation49_spill] sm:$0xff] %v7644_v13  ;;  %v7648_v61 = vpop.eup %5806  ;;  %5826 = vpow2.f32 %v2060_v45  ;;  %v1754_v35 = vpop.xlane.xlu1 %1753  ;;  %v2126_v32 = vmul.f32 1.442695, %v1899_v51  ;;  %v10045_v59 = vld [vmem:[#allocation58_spill] sm:$0xff] }
 0x549   : > { %10038 = vst [vmem:[#allocation44_spill] sm:$0xff] %v7648_v61  ;;  %v7652_v46 = vpop.eup %5808  ;;  %5828 = vpow2.f32 %v2056_v7  ;;  %v1896_v2 = vsub.f32 %v10041_v53, %v1754_v35  ;;  %v1897_v52 = vsub.f32 %v10043_v9, %v1754_v35  ;;  %v2268_v45 = vadd.f32 %v7648_v61, %v7644_v13  ;;  %v10047_v35 = vld [vmem:[#allocation57_spill] sm:$0xff] }
 0x54a   : > { %10040 = vst [vmem:[#allocation46_spill] sm:$0xff] %v7652_v46  ;;  %v7655_v62 = vpop.eup %5810  ;;  %5830 = vpow2.f32 %v2058_v11  ;;  %v7658_v54 = vpop.xlane.xlu0 %1768  ;;  %v1871_v7 = vsub.f32 %v10045_v59, %v7598_v57  ;;  %v2068_v11 = vmul.f32 1.442695, %v1870_v58  ;;  %v1902_v9 = vsub.f32 %v10047_v35, %v7618_v1  ;;  %v10051_v57 = vld [vmem:[#allocation54_spill] sm:$0xff] }
 0x54b   : > { %10042 = vst [vmem:[#allocation51_spill] sm:$0xff] %v7655_v62  ;;  %v7664_v24 = vpop.eup %5812  ;;  %5832 = vpow2.f32 %v2062_v12  ;;  %v2120_v48 = vmul.f32 1.442695, %v1896_v2  ;;  %v2122_v49 = vmul.f32 1.442695, %v1897_v52  ;;  %2269 = vadd.xlane.f32.xlu1 %v2268_v45  ;;  %2224 = vadd.xlane.f32.xlu0 %v2223_v4  ;;  %v10049_v12 = vld [vmem:[#allocation52_spill] sm:$0xff]  ;;  %v2271_v58 = vadd.f32 %v7652_v46, %v7635_v8 }
 0x54c   : > { %10044 = vst [vmem:[#allocation56_spill] sm:$0xff] %v7664_v24  ;;  %v7668_v53 = vpop.eup %5814  ;;  %5834 = vpow2.f32 %v2124_v50  ;;  %v1712_v13 = vpop.xlane.xlu1 %1711  ;;  %v2070_v45 = vmul.f32 1.442695, %v1871_v7  ;;  %v10053_v4 = vld [vmem:[#allocation59_spill] sm:$0xff] }
 0x54d   : > { %10046 = vst [vmem:[#allocation45_spill] sm:$0xff] %v7668_v53  ;;  %v7672_v61 = vpop.eup %5816  ;;  %5836 = vpow2.f32 %v2120_v48  ;;  %v1868_v51 = vsub.f32 %v10049_v12, %v1712_v13  ;;  %v1869_v2 = vsub.f32 %v10051_v57, %v1712_v13  ;;  %v2226_v50 = vadd.f32 %v7668_v53, %v7664_v24  ;;  %v10055_v13 = vld [vmem:[#allocation64_spill] sm:$0xff] }
 0x54e   : > { %10048 = vst [vmem:[#allocation47_spill] sm:$0xff] %v7672_v61  ;;  %v7675_v20 = vpop.eup %5818  ;;  %5838 = vpow2.f32 %v2122_v49  ;;  %v7678_v59 = vpop.xlane.xlu0 %1726  ;;  %v1903_v48 = vsub.f32 %v10053_v4, %v7618_v1  ;;  %v2132_v49 = vmul.f32 1.442695, %v1902_v9  ;;  %v1874_v57 = vsub.f32 %v10055_v13, %v7638_v55  ;;  %v10059_v1 = vld [vmem:[#allocation55_spill] sm:$0xff] }
 0x54f   : > { %10050 = vst [vmem:[#allocation58_spill] sm:$0xff] %v7675_v20  ;;  %v7684_v52 = vpop.eup %5820  ;;  %5840 = vpow2.f32 %v2126_v32  ;;  %v2064_v35 = vmul.f32 1.442695, %v1868_v51  ;;  %v2066_v16 = vmul.f32 1.442695, %v1869_v2  ;;  %2227 = vadd.xlane.f32.xlu1 %v2226_v50  ;;  %2272 = vadd.xlane.f32.xlu0 %v2271_v58  ;;  %v10057_v32 = vld [vmem:[#allocation53_spill] sm:$0xff]  ;;  %v2229_v9 = vadd.f32 %v7672_v61, %v7655_v62 }
 0x550   : > { %10052 = vst [vmem:[#allocation57_spill] sm:$0xff] %v7684_v52  ;;  %v7688_v12 = vpop.eup %5822  ;;  %5842 = vpow2.f32 %v2068_v11  ;;  %v1760_v24 = vpop.xlane.xlu1 %1759  ;;  %v2134_v50 = vmul.f32 1.442695, %v1903_v48  ;;  %v10061_v58 = vld [vmem:[#allocation66_spill] sm:$0xff] }
 0x551   : > { %10054 = vst [vmem:[#allocation52_spill] sm:$0xff] %v7688_v12  ;;  %v7692_v53 = vpop.eup %5824  ;;  %5844 = vpow2.f32 %v2064_v35  ;;  %v1900_v7 = vsub.f32 %v10057_v32, %v1760_v24  ;;  %v1901_v51 = vsub.f32 %v10059_v1, %v1760_v24  ;;  %v2274_v11 = vadd.f32 %v7688_v12, %v7684_v52  ;;  %v10063_v24 = vld [vmem:[#allocation65_spill] sm:$0xff] }
 0x552   : > { %10056 = vst [vmem:[#allocation54_spill] sm:$0xff] %v7692_v53  ;;  %v7695_v8 = vpop.eup %5826  ;;  %5846 = vpow2.f32 %v2066_v16  ;;  %v7698_v4 = vpop.xlane.xlu0 %1774  ;;  %v1875_v35 = vsub.f32 %v10061_v58, %v7638_v55  ;;  %v2076_v16 = vmul.f32 1.442695, %v1874_v57  ;;  %v1906_v1 = vsub.f32 %v10063_v24, %v7658_v54  ;;  %v10066_v55 = vld [vmem:[#allocation62_spill] sm:$0xff] }
 0x553   : > { %10058 = vst [vmem:[#allocation59_spill] sm:$0xff] %v7695_v8  ;;  %v7704_v2 = vpop.eup %5828  ;;  %5848 = vpow2.f32 %v2070_v45  ;;  %v2128_v13 = vmul.f32 1.442695, %v1900_v7  ;;  %v2130_v46 = vmul.f32 1.442695, %v1901_v51  ;;  %2275 = vadd.xlane.f32.xlu1 %v2274_v11  ;;  %2230 = vadd.xlane.f32.xlu0 %v2229_v9  ;;  %v10064_v45 = vld [vmem:[#allocation60_spill] sm:$0xff]  ;;  %v2277_v57 = vadd.f32 %v7692_v53, %v7675_v20 }
 0x554   : > { %10060 = vst [vmem:[#allocation64_spill] sm:$0xff] %v7704_v2  ;;  %v7708_v32 = vpop.eup %5830  ;;  %5850 = vpow2.f32 %v2132_v49  ;;  %v1718_v52 = vpop.xlane.xlu1 %1717  ;;  %v2078_v11 = vmul.f32 1.442695, %v1875_v35  ;;  %v10068_v9 = vld [vmem:[#allocation67_spill] sm:$0xff] }
 0x555   : > { %10062 = vst [vmem:[#allocation53_spill] sm:$0xff] %v7708_v32  ;;  %v7712_v12 = vpop.eup %5832  ;;  %5852 = vpow2.f32 %v2128_v13  ;;  %v1872_v48 = vsub.f32 %v10064_v45, %v1718_v52  ;;  %v1873_v7 = vsub.f32 %v10066_v55, %v1718_v52  ;;  %v2280_v49 = vadd.f32 %v7708_v32, %v7704_v2  ;;  %v10070_v52 = vld [vmem:[#allocation72_spill] sm:$0xff] }
 0x556   : > { %v7715_v62 = vpop.eup %5834  ;;  %5854 = vpow2.f32 %v2130_v46  ;;  %v7718_v58 = vpop.xlane.xlu0 %1732  ;;  %v1907_v13 = vsub.f32 %v10068_v9, %v7658_v54  ;;  %v2140_v46 = vmul.f32 1.442695, %v1906_v1  ;;  %v1878_v55 = vsub.f32 %v10070_v52, %v7678_v59  ;;  %v10073_v54 = vld [vmem:[#allocation63_spill] sm:$0xff] }
 0x557   : > { %10065 = vst [vmem:[#allocation55_spill] sm:$0xff] %v7715_v62  ;;  %v7724_v51 = vpop.eup %5836  ;;  %5856 = vpow2.f32 %v2134_v50  ;;  %v2072_v24 = vmul.f32 1.442695, %v1872_v48  ;;  %v2074_v61 = vmul.f32 1.442695, %v1873_v7  ;;  %2281 = vadd.xlane.f32.xlu1 %v2280_v49  ;;  %2278 = vadd.xlane.f32.xlu0 %v2277_v57  ;;  %v10071_v50 = vld [vmem:[#allocation61_spill] sm:$0xff]  ;;  %v2283_v1 = vadd.f32 %v7712_v12, %v7695_v8 }
 0x558   : > { %10067 = vst [vmem:[#allocation66_spill] sm:$0xff] %v7724_v51  ;;  %v7728_v45 = vpop.eup %5838  ;;  %5858 = vpow2.f32 %v2076_v16  ;;  %v1766_v2 = vpop.xlane.xlu1 %1765  ;;  %v2142_v49 = vmul.f32 1.442695, %v1907_v13  ;;  %v10075_v57 = vld [vmem:[#allocation74_spill] sm:$0xff] }
 0x559   : > { %10069 = vst [vmem:[#allocation65_spill] sm:$0xff] %v7728_v45  ;;  %v7732_v32 = vpop.eup %5840  ;;  %5860 = vpow2.f32 %v2072_v24  ;;  %v1904_v35 = vsub.f32 %v10071_v50, %v1766_v2  ;;  %v1905_v48 = vsub.f32 %v10073_v54, %v1766_v2  ;;  %v2328_v16 = vadd.f32 %v7728_v45, %v7724_v51  ;;  %v10077_v2 = vld [vmem:[#allocation73_spill] sm:$0xff] }
 0x55a   : > { %v7735_v20 = vpop.eup %5842  ;;  %5862 = vpow2.f32 %v2074_v61  ;;  %v7738_v9 = vpop.xlane.xlu0 %1780  ;;  %v1879_v24 = vsub.f32 %v10075_v57, %v7678_v59  ;;  %v2084_v61 = vmul.f32 1.442695, %v1878_v55  ;;  %v1910_v54 = vsub.f32 %v10077_v2, %v7698_v4  ;;  %v10081_v59 = vld [vmem:[#allocation70_spill] sm:$0xff] }
 0x55b   : > { %10072 = vst [vmem:[#allocation60_spill] sm:$0xff] %v7735_v20  ;;  %v7744_v7 = vpop.eup %5844  ;;  %5864 = vpow2.f32 %v2078_v11  ;;  %v2136_v52 = vmul.f32 1.442695, %v1904_v35  ;;  %v2138_v53 = vmul.f32 1.442695, %v1905_v48  ;;  %2329 = vadd.xlane.f32.xlu1 %v2328_v16  ;;  %2284 = vadd.xlane.f32.xlu0 %v2283_v1  ;;  %v10079_v11 = vld [vmem:[#allocation68_spill] sm:$0xff]  ;;  %v2331_v55 = vadd.f32 %v7732_v32, %v7715_v62 }
 0x55c   : > { %10074 = vst [vmem:[#allocation62_spill] sm:$0xff] %v7744_v7  ;;  %v7748_v50 = vpop.eup %5846  ;;  %5866 = vpow2.f32 %v2140_v46  ;;  %v1724_v51 = vpop.xlane.xlu1 %1723  ;;  %v2086_v16 = vmul.f32 1.442695, %v1879_v24  ;;  %v10083_v1 = vld [vmem:[#allocation75_spill] sm:$0xff] }
 0x55d   : > { %10076 = vst [vmem:[#allocation67_spill] sm:$0xff] %v7748_v50  ;;  %v7752_v45 = vpop.eup %5848  ;;  %5868 = vpow2.f32 %v2136_v52  ;;  %v1876_v13 = vsub.f32 %v10079_v11, %v1724_v51  ;;  %v1877_v35 = vsub.f32 %v10081_v59, %v1724_v51  ;;  %v2286_v46 = vadd.f32 %v7748_v50, %v7744_v7 }
 0x55e   : > { %10078 = vst [vmem:[#allocation72_spill] sm:$0xff] %v7752_v45  ;;  %v7755_v8 = vpop.eup %5850  ;;  %5870 = vpow2.f32 %v2138_v53  ;;  %v1911_v57 = vsub.f32 %v10083_v1, %v7698_v4  ;;  %v7766_v2 = vpop.xlane.xlu0 %1738  ;;  %v2148_v53 = vmul.f32 1.442695, %v1910_v54  ;;  %v1882_v51 = vsub.f32 %v7282_v37, %v7718_v58 }
 0x55f   : > { %10080 = vst [vmem:[#allocation61_spill] sm:$0xff] %v7755_v8  ;;  %v7762_v48 = vpop.eup %5852  ;;  %5872 = vpow2.f32 %v2142_v49  ;;  %v2080_v52 = vmul.f32 1.442695, %v1876_v13  ;;  %v2082_v59 = vmul.f32 1.442695, %v1877_v35  ;;  %2287 = vadd.xlane.f32.xlu1 %v2286_v46  ;;  %2332 = vadd.xlane.f32.xlu0 %v2331_v55  ;;  %v10085_v49 = vld [vmem:[#allocation69_spill] sm:$0xff]  ;;  %v2289_v37 = vadd.f32 %v7752_v45, %v7735_v20 }
 0x560   : > { %10082 = vst [vmem:[#allocation63_spill] sm:$0xff] %v7762_v48  ;;  %v7768_v11 = vpop.eup %5854  ;;  %5874 = vpow2.f32 %v2084_v61  ;;  %v1772_v7 = vpop.xlane.xlu1 %1771  ;;  %v10087_v13 = vld [vmem:[#allocation71_spill] sm:$0xff]  ;;  %v2150_v35 = vmul.f32 1.442695, %v1911_v57  ;;  %v10089_v46 = vld [vmem:[#allocation81_spill] sm:$0xff]  ;;  %v10093_v57 = vld [vmem:[#allocation76_spill] sm:$0xff] }
 0x561   : > { %10084 = vst [vmem:[#allocation74_spill] sm:$0xff] %v7768_v11  ;;  %v7772_v50 = vpop.eup %5856  ;;  %5876 = vpow2.f32 %v2080_v52  ;;  %v1908_v24 = vsub.f32 %v10085_v49, %v1772_v7  ;;  %v1909_v1 = vsub.f32 %v10087_v13, %v1772_v7  ;;  %v2334_v61 = vadd.f32 %v7768_v11, %v7762_v48  ;;  %v10091_v7 = vld [vmem:[#allocation80_spill] sm:$0xff] }
 0x562   : > { %v7775_v4 = vpop.eup %5858  ;;  %5878 = vpow2.f32 %v2082_v59  ;;  %v1883_v55 = vsub.f32 %v10089_v46, %v7718_v58  ;;  %v2092_v59 = vmul.f32 1.442695, %v1882_v51  ;;  %v1914_v13 = vsub.f32 %v10091_v7, %v7738_v9  ;;  %v10097_v46 = vld [vmem:[#allocation82_spill] sm:$0xff] }
 0x563   : > { %10086 = vst [vmem:[#allocation73_spill] sm:$0xff] %v7775_v4  ;;  %v7782_v54 = vpop.eup %5860  ;;  %5880 = vpow2.f32 %v2086_v16  ;;  %v2144_v52 = vmul.f32 1.442695, %v1908_v24  ;;  %v2146_v62 = vmul.f32 1.442695, %v1909_v1  ;;  %2335 = vadd.xlane.f32.xlu1 %v2334_v61  ;;  %2290 = vadd.xlane.f32.xlu0 %v2289_v37  ;;  %v7792_v16 = vpop.xlane.xlu0 %1786  ;;  %v10095_v24 = vld [vmem:[#allocation78_spill] sm:$0xff]  ;;  %v2337_v1 = vadd.f32 %v7772_v50, %v7755_v8 }
 0x564   : > { %10088 = vst [vmem:[#allocation68_spill] sm:$0xff] %v7782_v54  ;;  %v7786_v49 = vpop.eup %5862  ;;  %5882 = vpow2.f32 %v2148_v53  ;;  %v1730_v48 = vpop.xlane.xlu1 %1729  ;;  %v2094_v37 = vmul.f32 1.442695, %v1883_v55 }
 0x565   : > { %10090 = vst [vmem:[#allocation70_spill] sm:$0xff] %v7786_v49  ;;  %v7790_v11 = vpop.eup %5864  ;;  %5884 = vpow2.f32 %v2144_v52  ;;  %v1880_v20 = vsub.f32 %v10093_v57, %v1730_v48  ;;  %v1881_v53 = vsub.f32 %v10095_v24, %v1730_v48  ;;  %v2292_v51 = vadd.f32 %v7786_v49, %v7782_v54  ;;  %v10099_v48 = vld [vmem:[#allocation87_spill] sm:$0xff] }
 0x566   : > { %10092 = vst [vmem:[#allocation75_spill] sm:$0xff] %v7790_v11  ;;  %v7795_v58 = vpop.eup %5866  ;;  %5886 = vpow2.f32 %v2146_v62  ;;  %v1915_v52 = vsub.f32 %v10097_v46, %v7738_v9  ;;  %v2156_v62 = vmul.f32 1.442695, %v1914_v13  ;;  %v1886_v24 = vsub.f32 %v10099_v48, %v7766_v2 }
 0x567   : > { %10094 = vst [vmem:[#allocation69_spill] sm:$0xff] %v7795_v58  ;;  %v7802_v61 = vpop.eup %5868  ;;  %5888 = vpow2.f32 %v2150_v35  ;;  %v2088_v7 = vmul.f32 1.442695, %v1880_v20  ;;  %v2090_v45 = vmul.f32 1.442695, %v1881_v53  ;;  %2293 = vadd.xlane.f32.xlu1 %v2292_v51  ;;  %2338 = vadd.xlane.f32.xlu0 %v2337_v1  ;;  %v10101_v35 = vld [vmem:[#allocation77_spill] sm:$0xff]  ;;  %v2295_v13 = vadd.f32 %v7790_v11, %v7775_v4 }
 0x568   : > { %10096 = vst [vmem:[#allocation71_spill] sm:$0xff] %v7802_v61  ;;  %v7806_v57 = vpop.eup %5870  ;;  %5890 = vpow2.f32 %v2092_v59  ;;  %v1778_v54 = vpop.xlane.xlu1 %1777  ;;  %v10103_v20 = vld [vmem:[#allocation79_spill] sm:$0xff]  ;;  %v2158_v51 = vmul.f32 1.442695, %v1915_v52  ;;  %v10105_v1 = vld [vmem:[#allocation89_spill] sm:$0xff] }
 0x569   : > { %10098 = vst [vmem:[#allocation81_spill] sm:$0xff] %v7806_v57  ;;  %v7810_v49 = vpop.eup %5872  ;;  %5892 = vpow2.f32 %v2088_v7  ;;  %v1912_v55 = vsub.f32 %v10101_v35, %v1778_v54  ;;  %v1913_v9 = vsub.f32 %v10103_v20, %v1778_v54  ;;  %v2340_v59 = vadd.f32 %v7806_v57, %v7802_v61  ;;  %v7824_v7 = vpop.xlane.xlu0 %1744  ;;  %v10107_v54 = vld [vmem:[#allocation88_spill] sm:$0xff] }
 0x56a   : > { %10100 = vst [vmem:[#allocation80_spill] sm:$0xff] %v7810_v49  ;;  %v7813_v8 = vpop.eup %5874  ;;  %5894 = vpow2.f32 %v2090_v45  ;;  %v1887_v46 = vsub.f32 %v10105_v1, %v7766_v2  ;;  %v2100_v45 = vmul.f32 1.442695, %v1886_v24  ;;  %v1918_v20 = vsub.f32 %v10107_v54, %v7792_v16 }
 0x56b   : > { %10102 = vst [vmem:[#allocation76_spill] sm:$0xff] %v7813_v8  ;;  %v7820_v53 = vpop.eup %5876  ;;  %5896 = vpow2.f32 %v2094_v37  ;;  %v2152_v48 = vmul.f32 1.442695, %v1912_v55  ;;  %v2154_v61 = vmul.f32 1.442695, %v1913_v9  ;;  %2341 = vadd.xlane.f32.xlu1 %v2340_v59  ;;  %2296 = vadd.xlane.f32.xlu0 %v2295_v13  ;;  %v10109_v37 = vld [vmem:[#allocation83_spill] sm:$0xff]  ;;  %v2343_v24 = vadd.f32 %v7810_v49, %v7795_v58 }
 0x56c   : > { %10104 = vst [vmem:[#allocation78_spill] sm:$0xff] %v7820_v53  ;;  %v7826_v35 = vpop.eup %5878  ;;  %5898 = vpow2.f32 %v2156_v62  ;;  %v1736_v57 = vpop.xlane.xlu1 %1735  ;;  %v10111_v55 = vld [vmem:[#allocation85_spill] sm:$0xff]  ;;  %v2102_v59 = vmul.f32 1.442695, %v1887_v46  ;;  %v10113_v13 = vld [vmem:[#allocation90_spill] sm:$0xff] }
 0x56d   : > { %10106 = vst [vmem:[#allocation82_spill] sm:$0xff] %v7826_v35  ;;  %v7830_v4 = vpop.eup %5880  ;;  %5900 = vpow2.f32 %v2152_v48  ;;  %v1884_v52 = vsub.f32 %v10109_v37, %v1736_v57  ;;  %v1885_v1 = vsub.f32 %v10111_v55, %v1736_v57  ;;  %v2298_v62 = vadd.f32 %v7826_v35, %v7820_v53  ;;  %v10115_v57 = vld [vmem:[#allocation95_spill] sm:$0xff]  ;;  %v1793_v58 = vpop.xlane.xlu0 %1792 }
 0x56e   : > { %10108 = vst [vmem:[#allocation87_spill] sm:$0xff] %v7830_v4  ;;  %v7833_v2 = vpop.eup %5882  ;;  %5902 = vpow2.f32 %v2154_v61  ;;  %v1919_v48 = vsub.f32 %v10113_v13, %v7792_v16  ;;  %v2164_v61 = vmul.f32 1.442695, %v1918_v20  ;;  %v1890_v55 = vsub.f32 %v10115_v57, %v7824_v7  ;;  %v10119_v16 = vld [vmem:[#allocation86_spill] sm:$0xff] }
 0x56f   : > { %10110 = vst [vmem:[#allocation77_spill] sm:$0xff] %v7833_v2  ;;  %v7840_v9 = vpop.eup %5884  ;;  %5904 = vpow2.f32 %v2158_v51  ;;  %v2096_v54 = vmul.f32 1.442695, %v1884_v52  ;;  %v2098_v11 = vmul.f32 1.442695, %v1885_v1  ;;  %2299 = vadd.xlane.f32.xlu1 %v2298_v62  ;;  %2344 = vadd.xlane.f32.xlu0 %v2343_v24  ;;  %v10117_v51 = vld [vmem:[#allocation84_spill] sm:$0xff]  ;;  %v2301_v20 = vadd.f32 %v7830_v4, %v7813_v8 }
 0x570   : > { %10112 = vst [vmem:[#allocation79_spill] sm:$0xff] %v7840_v9  ;;  %v7844_v37 = vpop.eup %5886  ;;  %5906 = vpow2.f32 %v2100_v45  ;;  %v1784_v53 = vpop.xlane.xlu1 %1783  ;;  %v2166_v62 = vmul.f32 1.442695, %v1919_v48 }
 0x571   : > { %10114 = vst [vmem:[#allocation89_spill] sm:$0xff] %v7844_v37  ;;  %v7848_v35 = vpop.eup %5888  ;;  %5908 = vpow2.f32 %v2096_v54  ;;  %v1916_v46 = vsub.f32 %v10117_v51, %v1784_v53  ;;  %v1917_v52 = vsub.f32 %v10119_v16, %v1784_v53  ;;  %v2346_v45 = vadd.f32 %v7844_v37, %v7840_v9  ;;  %v10122_v54 = vld [vmem:[#allocation97_spill] sm:$0xff]  ;;  %v10124_v9 = vld [vmem:[#allocation91_spill] sm:$0xff] }
 0x572   : > { %10116 = vst [vmem:[#allocation88_spill] sm:$0xff] %v7848_v35  ;;  %v7851_v49 = vpop.eup %5890  ;;  %5910 = vpow2.f32 %v2098_v11  ;;  %v1891_v57 = vsub.f32 %v10122_v54, %v7824_v7  ;;  %v2108_v11 = vmul.f32 1.442695, %v1890_v55  ;;  %v2349_v7 = vadd.f32 %v7848_v35, %v7833_v2  ;;  %v10129_v54 = vld [vmem:[#allocation98_spill] sm:$0xff] }
 0x573   : > { %10118 = vst [vmem:[#allocation83_spill] sm:$0xff] %v7851_v49  ;;  %v7858_v1 = vpop.eup %5892  ;;  %5912 = vpow2.f32 %v2102_v59  ;;  %v2160_v24 = vmul.f32 1.442695, %v1916_v46  ;;  %v2162_v51 = vmul.f32 1.442695, %v1917_v52  ;;  %2347 = vadd.xlane.f32.xlu1 %v2346_v45  ;;  %2302 = vadd.xlane.f32.xlu0 %v2301_v20  ;;  %v10125_v59 = vld [vmem:[#allocation93_spill] sm:$0xff]  ;;  %v1751_v45 = vpop.xlane.xlu0 %1750 }
 0x574   : > { %10120 = vst [vmem:[#allocation85_spill] sm:$0xff] %v7858_v1  ;;  %v7860_v13 = vpop.eup %5894  ;;  %5914 = vpow2.f32 %v2164_v61  ;;  %v1742_v53 = vpop.xlane.xlu1 %1741  ;;  %v10127_v46 = vld [vmem:[#allocation96_spill] sm:$0xff] }
 0x575   : > { %10121 = vst [vmem:[#allocation90_spill] sm:$0xff] %v7860_v13  ;;  %v7864_v16 = vpop.eup %5896  ;;  %5916 = vpow2.f32 %v2160_v24  ;;  %v1888_v37 = vsub.f32 %v10124_v9, %v1742_v53  ;;  %v1889_v48 = vsub.f32 %v10125_v59, %v1742_v53  ;;  %v2304_v61 = vadd.f32 %v7860_v13, %v7858_v1  ;;  %v10130_v13 = vld [vmem:[#allocation92_spill] sm:$0xff] }
 0x576   : > { %10123 = vst [vmem:[#allocation95_spill] sm:$0xff] %v7864_v16  ;;  %v7867_v8 = vpop.eup %5898  ;;  %5918 = vpow2.f32 %v2162_v51  ;;  %v1922_v52 = vsub.f32 %v10127_v46, %v1793_v58  ;;  %v2110_v9 = vmul.f32 1.442695, %v1891_v57  ;;  %v1923_v51 = vsub.f32 %v10129_v54, %v1793_v58 }
 0x577   : > { %v7874_v55 = vpop.eup %5900  ;;  %5920 = vpow2.f32 %v2166_v62  ;;  %v2104_v20 = vmul.f32 1.442695, %v1888_v37  ;;  %v2106_v53 = vmul.f32 1.442695, %v1889_v48  ;;  %2305 = vadd.xlane.f32.xlu1 %v2304_v61  ;;  %2350 = vadd.xlane.f32.xlu0 %v2349_v7  ;;  %v10131_v62 = vld [vmem:[#allocation94_spill] sm:$0xff]  ;;  %v2307_v58 = vadd.f32 %v7864_v16, %v7851_v49  ;;  %v10133_v48 = vld [vmem:[#allocation103_spill] sm:$0xff] }
 0x578   : > { %10126 = vst [vmem:[#allocation84_spill] sm:$0xff] %v7874_v55  ;;  %v7877_v24 = vpop.eup %5902  ;;  %5922 = vpow2.f32 %v2108_v11  ;;  %v1790_v59 = vpop.xlane.xlu1 %1789  ;;  %v2172_v11 = vmul.f32 1.442695, %v1922_v52  ;;  %v1894_v61 = vsub.f32 %v10133_v48, %v1751_v45  ;;  %v10136_v49 = vld [vmem:[#allocation99_spill] sm:$0xff]  ;;  %v10137_v52 = vld [vmem:[#allocation101_spill] sm:$0xff] }
 0x579   : > { %10128 = vst [vmem:[#allocation86_spill] sm:$0xff] %v7877_v24  ;;  %v7880_v1 = vpop.eup %5904  ;;  %5924 = vpow2.f32 %v2104_v20  ;;  %v1920_v2 = vsub.f32 %v10130_v13, %v1790_v59  ;;  %v1921_v35 = vsub.f32 %v10131_v62, %v1790_v59  ;;  %v2352_v37 = vadd.f32 %v7877_v24, %v7874_v55  ;;  %v10135_v59 = vld [vmem:[#allocation104_spill] sm:$0xff]  ;;  %v1799_v24 = vpop.xlane.xlu0 %1798 }
 0x57a   : > { %v7886_v46 = vpop.eup %5906  ;;  %5926 = vpow2.f32 %v2106_v53  ;;  %v2174_v13 = vmul.f32 1.442695, %v1923_v51  ;;  %v1895_v62 = vsub.f32 %v10135_v59, %v1751_v45  ;;  %v2355_v45 = vadd.f32 %v7880_v1, %v7867_v8 }
 0x57b   : > { %v7890_v57 = vpop.eup %5908  ;;  %v2168_v7 = vmul.f32 1.442695, %v1920_v2  ;;  %v2170_v20 = vmul.f32 1.442695, %v1921_v35  ;;  %5928 = vpow2.f32 %v2110_v9  ;;  %2353 = vadd.xlane.f32.xlu1 %v2352_v37  ;;  %2308 = vadd.xlane.f32.xlu0 %v2307_v58  ;;  %v2116_v51 = vmul.f32 1.442695, %v1894_v61 }
 0x57c   : > { %10132 = vst [vmem:[#allocation97_spill] sm:$0xff] %v7890_v57  ;;  %v7893_v54 = vpop.eup %5910  ;;  %v1748_v55 = vpop.xlane.xlu1 %1747 }
 0x57d   : > { %10134 = vst [vmem:[#allocation91_spill] sm:$0xff] %v7893_v54  ;;  %v7896_v53 = vpop.eup %5912  ;;  %5930 = vpow2.f32 %v2168_v7  ;;  %v1892_v16 = vsub.f32 %v10136_v49, %v1748_v55  ;;  %v1893_v4 = vsub.f32 %v10137_v52, %v1748_v55  ;;  %v2310_v35 = vadd.f32 %v7893_v54, %v7890_v57  ;;  %v10138_v7 = vld [vmem:[#allocation105_spill] sm:$0xff]  ;;  %v10139_v57 = vld [vmem:[#allocation100_spill] sm:$0xff] }
 0x57e   : > { %v7902_v2 = vpop.eup %5914  ;;  %5932 = vpow2.f32 %v2170_v20  ;;  %v2118_v49 = vmul.f32 1.442695, %v1895_v62  ;;  %v1926_v55 = vsub.f32 %v7360_v39, %v1799_v24  ;;  %v1927_v59 = vsub.f32 %v10138_v7, %v1799_v24 }
 0x57f   : > { %v7906_v9 = vpop.eup %5916  ;;  %5934 = vpow2.f32 %v2172_v11  ;;  %v2112_v37 = vmul.f32 1.442695, %v1892_v16  ;;  %v2114_v58 = vmul.f32 1.442695, %v1893_v4  ;;  %2311 = vadd.xlane.f32.xlu1 %v2310_v35  ;;  %2356 = vadd.xlane.f32.xlu0 %v2355_v45  ;;  %v10140_v11 = vld [vmem:[#allocation102_spill] sm:$0xff]  ;;  %v2313_v39 = vadd.f32 %v7896_v53, %v7886_v46 }
 0x580   : > { %v7908_v48 = vpop.eup %5918  ;;  %5936 = vpow2.f32 %v2174_v13  ;;  %v1796_v20 = vpop.xlane.xlu1 %1795  ;;  %v2182_v45 = vmul.f32 1.442695, %v1927_v59 }
 0x581   : > { %v7912_v52 = vpop.eup %5920  ;;  %5938 = vpow2.f32 %v2112_v37  ;;  %v1924_v54 = vsub.f32 %v10139_v57, %v1796_v20  ;;  %v1925_v61 = vsub.f32 %v10140_v11, %v1796_v20  ;;  %v2358_v4 = vadd.f32 %v7908_v48, %v7906_v9 }
 0x582   : > { %v7918_v16 = vpop.eup %5922  ;;  %5940 = vpow2.f32 %v2114_v58  ;;  %v2180_v57 = vmul.f32 1.442695, %v1926_v55  ;;  %v2361_v7 = vadd.f32 %v7912_v52, %v7902_v2 }
 0x583   : > { %v7922_v24 = vpop.eup %5924  ;;  %5942 = vpow2.f32 %v2116_v51  ;;  %v2176_v13 = vmul.f32 1.442695, %v1924_v54  ;;  %v2178_v62 = vmul.f32 1.442695, %v1925_v61  ;;  %2359 = vadd.xlane.f32.xlu1 %v2358_v4  ;;  %2314 = vadd.xlane.f32.xlu0 %v2313_v39 }
 0x584   : > { %v7924_v35 = vpop.eup %5926  ;;  %5944 = vpow2.f32 %v2118_v49 }
 0x585   : > { %5946 = vpow2.f32 %v2176_v13  ;;  %v2316_v37 = vadd.f32 %v7924_v35, %v7922_v24  ;;  %v7928_v58 = vpop.eup %5928 }
 0x586   : > { %5948 = vpow2.f32 %v2178_v62  ;;  %v2319_v20 = vadd.f32 %v7928_v58, %v7918_v16 }
 0x587   : > { %v7932_v51 = vpop.eup %5930  ;;  %5950 = vpow2.f32 %v2180_v57  ;;  %2317 = vadd.xlane.f32.xlu1 %v2316_v37  ;;  %2362 = vadd.xlane.f32.xlu0 %v2361_v7 }
 0x588   : > { %10141 = vst [vmem:[#allocation93_spill] sm:$0xff] %v7932_v51  ;;  %v7934_v54 = vpop.eup %5932  ;;  %5952 = vpow2.f32 %v2182_v45 }
 0x589   : > { %v7936_v49 = vpop.eup %5934  ;;  %v2364_v55 = vadd.f32 %v7934_v54, %v7932_v51 }
 0x58a   : > { %10142 = vst [vmem:[#allocation96_spill] sm:$0xff] %v7936_v49  ;;  %v7940_v59 = vpop.eup %5936 }
 0x58b   : > { %10143 = vst [vmem:[#allocation98_spill] sm:$0xff] %v7940_v59  ;;  %v7944_v11 = vpop.eup %5938  ;;  %2365 = vadd.xlane.f32.xlu1 %v2364_v55  ;;  %2320 = vadd.xlane.f32.xlu0 %v2319_v20  ;;  %v2367_v62 = vadd.f32 %v7940_v59, %v7936_v49 }
 0x58c   : > { %10144 = vst [vmem:[#allocation92_spill] sm:$0xff] %v7944_v11  ;;  %v7946_v61 = vpop.eup %5940 }
 0x58d   : > { %10145 = vst [vmem:[#allocation94_spill] sm:$0xff] %v7946_v61  ;;  %v7948_v4 = vpop.eup %5942  ;;  %v2322_v39 = vadd.f32 %v7946_v61, %v7944_v11 }
 0x58e   : > { %10146 = vst [vmem:[#allocation103_spill] sm:$0xff] %v7948_v4  ;;  %v7952_v13 = vpop.eup %5944 }
 0x58f   : > { %10147 = vst [vmem:[#allocation104_spill] sm:$0xff] %v7952_v13  ;;  %v7956_v57 = vpop.eup %5946  ;;  %2323 = vadd.xlane.f32.xlu1 %v2322_v39  ;;  %2368 = vadd.xlane.f32.xlu0 %v2367_v62  ;;  %v2325_v55 = vadd.f32 %v7952_v13, %v7948_v4 }
 0x590   : > { %10148 = vst [vmem:[#allocation99_spill] sm:$0xff] %v7956_v57  ;;  %v7958_v45 = vpop.eup %5948 }
 0x591   : > { %10149 = vst [vmem:[#allocation101_spill] sm:$0xff] %v7958_v45  ;;  %v2370_v37 = vadd.f32 %v7958_v45, %v7956_v57  ;;  %v7962_v7 = vpop.eup %5950 }
 0x592   : > { %10150 = vst [vmem:[#allocation105_spill] sm:$0xff] %v7962_v7  ;;  %v7966_v20 = vpop.eup %5952 }
 0x593   : > { %10151 = vst [vmem:[#allocation100_spill] sm:$0xff] %v7966_v20  ;;  %2371 = vadd.xlane.f32.xlu1 %v2370_v37  ;;  %2326 = vadd.xlane.f32.xlu0 %v2325_v55  ;;  %v2373_v61 = vadd.f32 %v7966_v20, %v7962_v7 }
 0x594   : > { %v2186_v11 = vpop.xlane.xlu1 %2185 }
 0x595   : > { %5954 = vrcp.f32 %v2186_v11 }
 0x596   : > { %v2189_v49 = vpop.xlane.xlu0 %2188 }
 0x597   : > { %5956 = vrcp.f32 %v2189_v49  ;;  %2374 = vadd.xlane.f32.xlu0 %v2373_v61 }
 0x598   : > { %v2234_v39 = vpop.xlane.xlu1 %2233 }
 0x599   : > { %5958 = vrcp.f32 %v2234_v39 }
 0x59c   : > { %v2237_v62 = vpop.xlane.xlu0 %2236 }
 0x59d   : > { %5960 = vrcp.f32 %v2237_v62 }
 0x59f   : > { %v5955_v57 = vpop.eup %5954 }
 0x5a0   : > { %v2192_v51 = vpop.xlane.xlu1 %2191  ;;  %v2441_v4 = vmul.f32 %v5955_v57, %v7382_v25  ;;  %v2440_v55 = vmul.f32 %v5955_v57, %v7380_v42 }
 0x5a1   : > { %v5957_v45 = vpop.eup %5956  ;;  %5962 = vrcp.f32 %v2192_v51 }
 0x5a2   : > { %v2443_v37 = vmul.f32 %v5957_v45, %v7390_v0  ;;  %v2442_v11 = vmul.f32 %v5957_v45, %v7384_v23 }
 0x5a3   : > { %v5959_v13 = vpop.eup %5958 }
 0x5a4   : > { %v2569_v7 = vpack.c.bf16 %v2443_v37, %v2441_v4  ;;  %v2568_v20 = vpack.c.bf16 %v2442_v11, %v2440_v55  ;;  %v2473_v61 = vmul.f32 %v5959_v13, %v7394_v29  ;;  %v2472_v62 = vmul.f32 %v5959_v13, %v7392_v43  ;;  %v2240_v0 = vpop.xlane.xlu1 %2239 }
 0x5a6   : > { %2632 = vmatprep.subr.bf16.mxu1 %v2569_v7 }
 0x5a7   : > { %v5961_v49 = vpop.eup %5960  ;;  %2633 = vmatpush1.bf16.xpose.msra.mxu1 %v2568_v20 }
 0x5a8   : > { %v2475_v39 = vmul.f32 %v5961_v49, %v7404_v22  ;;  %v2474_v25 = vmul.f32 %v5961_v49, %v7402_v21  ;;  %v2195_v59 = vpop.xlane.xlu0 %2194 }
 0x5a9   : > { %5964 = vrcp.f32 %v2195_v59 }
 0x5aa   : > { %v2585_v42 = vpack.c.bf16 %v2475_v39, %v2473_v61  ;;  %v2584_v23 = vpack.c.bf16 %v2474_v25, %v2472_v62  ;;  %5966 = vrcp.f32 %v2240_v0  ;;  %v10152_v62 = vld [vmem:[#allocation10_spill] sm:$0xff] }
 0x5ab   : > { %v5963_v51 = vpop.eup %5962  ;;  %v5181_v25 = vcombine.low %v10152_v62, %v10152_v62 }
 0x5ac   : > { %2672 = vmatprep.subr.bf16.mxu0 %v2585_v42  ;;  %v2243_v4 = vpop.xlane.xlu0 %2242  ;;  %v2445_v29 = vmul.f32 %v5963_v51, %v7412_v33  ;;  %v2444_v43 = vmul.f32 %v5963_v51, %v7410_v38 }
 0x5ad   : > { %2673 = vmatpush1.bf16.xpose.msra.mxu0 %v2584_v23  ;;  %5968 = vrcp.f32 %v2243_v4 }
 0x5b0   : > { %v2198_v57 = vpop.xlane.xlu1 %2197 }
 0x5b1   : > { %5970 = vrcp.f32 %v2198_v57 }
 0x5b3   : > { %v5965_v45 = vpop.eup %5964 }
 0x5b4   : > { %v2447_v22 = vmul.f32 %v5965_v45, %v7434_v17  ;;  %v2446_v21 = vmul.f32 %v5965_v45, %v7431_v47  ;;  %v5967_v13 = vpop.eup %5966  ;;  %v2246_v37 = vpop.xlane.xlu1 %2245 }
 0x5b5   : > { %v2477_v11 = vmul.f32 %v5967_v13, %v7422_v31  ;;  %v2476_v33 = vmul.f32 %v5967_v13, %v7420_v41  ;;  %v5182_v31 = vcombine.high %v10152_v62, %v10152_v62 }
 0x5b6   : > { %v2571_v59 = vpack.c.bf16 %v2447_v22, %v2445_v29  ;;  %v2570_v7 = vpack.c.bf16 %v2446_v21, %v2444_v43 }
 0x5b7   : > { %v5969_v20 = vpop.eup %5968  ;;  %v5605_v4 = vpack.i.bf16 %v5182_v31, %v5181_v25 }
 0x5b8   : > { %2634 = vmatprep.subr.bf16.mxu1 %v2571_v59  ;;  %v2201_v55 = vpop.xlane.xlu0 %2200  ;;  %v2479_v49 = vmul.f32 %v5969_v20, %v7446_v36  ;;  %v2478_v17 = vmul.f32 %v5969_v20, %v7443_v44  ;;  %v10153_v36 = vld [vmem:[#allocation9_spill] sm:$0xff] }
 0x5b9   : > { %5972 = vrcp.f32 %v2201_v55  ;;  %2635 = vmatpush1.bf16.xpose.msra.mxu1 %v2570_v7  ;;  %v5179_v41 = vcombine.low %v10153_v36, %v10153_v36  ;;  %v5180_v44 = vcombine.high %v10153_v36, %v10153_v36 }
 0x5ba   : > { %v2587_v38 = vpack.c.bf16 %v2479_v49, %v2477_v11  ;;  %v2586_v47 = vpack.c.bf16 %v2478_v17, %v2476_v33  ;;  %5974 = vrcp.f32 %v2246_v37 }
 0x5bb   : > { %v5971_v0 = vpop.eup %5970  ;;  %v5523_v57 = vpack.i.bf16 %v5180_v44, %v5179_v41 }
 0x5bc   : > { %v2204_v61 = vpop.xlane.xlu1 %2203  ;;  %2674 = vmatprep.subr.bf16.mxu0 %v2587_v38  ;;  %v2249_v39 = vpop.xlane.xlu0 %2248  ;;  %v2449_v45 = vmul.f32 %v5971_v0, %v7460_v27  ;;  %v2448_v21 = vmul.f32 %v5971_v0, %v7456_v5 }
 0x5bd   : > { %2675 = vmatpush1.bf16.xpose.msra.mxu0 %v2586_v47  ;;  %5976 = vrcp.f32 %v2249_v39 }
 0x5be   : > { %5978 = vrcp.f32 %v2204_v61 }
 0x5c0   : > { %v2252_v42 = vpop.xlane.xlu1 %2251  ;;  %v2207_v23 = vpop.xlane.xlu0 %2206 }
 0x5c1   : > { %5980 = vrcp.f32 %v2207_v23 }
 0x5c2   : > { %5982 = vrcp.f32 %v2252_v42 }
 0x5c3   : > { %v5973_v51 = vpop.eup %5972 }
 0x5c4   : > { %v2210_v29 = vpop.xlane.xlu1 %2209  ;;  %5606 = vxpose.xlu0.b32.start.end [1/1] (short) %v5605_v4, 128  ;;  %v2255_v22 = vpop.xlane.xlu0 %2254  ;;  %v2451_v43 = vmul.f32 %v5973_v51, %v7490_v60  ;;  %v2450_v13 = vmul.f32 %v5973_v51, %v7486_v26 }
 0x5c5   : > { %v5975_v59 = vpop.eup %5974  ;;  %5984 = vrcp.f32 %v2255_v22  ;;  %v10156_v22 = vld [vmem:[#allocation32_spill] sm:$0xff] }
 0x5c6   : > { %5524 = vxpose.xlu1.b32.start.end [1/1] (short) %v5523_v57, 128  ;;  %v2573_v7 = vpack.c.bf16 %v2451_v43, %v2449_v45  ;;  %v2572_v20 = vpack.c.bf16 %v2450_v13, %v2448_v21  ;;  %5986 = vrcp.f32 %v2210_v29  ;;  %v2481_v11 = vmul.f32 %v5975_v59, %v7474_v3  ;;  %v10154_v45 = vld [vmem:[#allocation27_spill] sm:$0xff]  ;;  %v10155_v29 = vld [vmem:[#allocation26_spill] sm:$0xff] }
 0x5c7   : > { %v5977_v37 = vpop.eup %5976  ;;  %v2480_v60 = vmul.f32 %v5975_v59, %v7470_v56 }
 0x5c8   : > { %v2258_v55 = vpop.xlane.xlu1 %2257  ;;  %2636 = vmatprep.subr.bf16.mxu1 %v2573_v7  ;;  %v2213_v27 = vpop.xlane.xlu0 %2212  ;;  %v2483_v49 = vmul.f32 %v5977_v37, %v7494_v14  ;;  %v2482_v5 = vmul.f32 %v5977_v37, %v7479_v34 }
 0x5c9   : > { %2637 = vmatpush1.bf16.xpose.msra.mxu1 %v2572_v20  ;;  %v5979_v26 = vpop.eup %5978  ;;  %5988 = vrcp.f32 %v2213_v27  ;;  %v10157_v20 = vld [vmem:[#allocation28_spill] sm:$0xff]  ;;  %v10159_v27 = vld [vmem:[#allocation33_spill] sm:$0xff] }
 0x5ca   : > { %v2589_v33 = vpack.c.bf16 %v2483_v49, %v2481_v11  ;;  %v2588_v17 = vpack.c.bf16 %v2482_v5, %v2480_v60  ;;  %5990 = vrcp.f32 %v2258_v55  ;;  %v2453_v39 = vmul.f32 %v5979_v26, %v7508_v30  ;;  %v10158_v55 = vld [vmem:[#allocation30_spill] sm:$0xff] }
 0x5cb   : > { %v5981_v38 = vpop.eup %5980  ;;  %v2452_v3 = vmul.f32 %v5979_v26, %v7504_v15  ;;  %v10160_v49 = vld [vmem:[#allocation34_spill] sm:$0xff] }
 0x5cc   : > { %v2216_v47 = vpop.xlane.xlu1 %2215  ;;  %v2261_v61 = vpop.xlane.xlu0 %2260  ;;  %2676 = vmatprep.subr.bf16.mxu0 %v2589_v33  ;;  %v2455_v62 = vmul.f32 %v5981_v38, %v7512_v6  ;;  %v2454_v14 = vmul.f32 %v5981_v38, %v7497_v40 }
 0x5cd   : > { %v5983_v56 = vpop.eup %5982  ;;  %5992 = vrcp.f32 %v2261_v61  ;;  %2677 = vmatpush1.bf16.xpose.msra.mxu0 %v2588_v17  ;;  %v10161_v61 = vld [vmem:[#allocation29_spill] sm:$0xff] }
 0x5ce   : > { %v2575_v34 = vpack.c.bf16 %v2455_v62, %v2453_v39  ;;  %v2574_v25 = vpack.c.bf16 %v2454_v14, %v2452_v3  ;;  %5994 = vrcp.f32 %v2216_v47  ;;  %v2485_v44 = vmul.f32 %v5983_v56, %v7528_v63  ;;  %v10162_v62 = vld [vmem:[#allocation31_spill] sm:$0xff]  ;;  %v10163_v14 = vld [vmem:[#allocation40_spill] sm:$0xff] }
 0x5cf   : > { %v5985_v31 = vpop.eup %5984  ;;  %v2484_v6 = vmul.f32 %v5983_v56, %v7524_v19 }
 0x5d0   : > { %v2264_v36 = vpop.xlane.xlu1 %2263  ;;  %v2219_v41 = vpop.xlane.xlu0 %2218  ;;  %2638 = vmatprep.subr.bf16.mxu1 %v2575_v34  ;;  %v2487_v30 = vmul.f32 %v5985_v31, %v7532_v28  ;;  %v2486_v15 = vmul.f32 %v5985_v31, %v7515_v10  ;;  %v10164_v34 = vld [vmem:[#allocation35_spill] sm:$0xff] }
 0x5d1   : > { %v5987_v0 = vpop.eup %5986  ;;  %5996 = vrcp.f32 %v2219_v41  ;;  %2639 = vmatpush1.bf16.xpose.msra.mxu1 %v2574_v25 }
 0x5d2   : > { %v2591_v40 = vpack.c.bf16 %v2487_v30, %v2485_v44  ;;  %v2590_v42 = vpack.c.bf16 %v2486_v15, %v2484_v6  ;;  %5998 = vrcp.f32 %v2264_v36  ;;  %v2457_v57 = vmul.f32 %v5987_v0, %v7548_v18  ;;  %v10165_v15 = vld [vmem:[#allocation36_spill] sm:$0xff] }
 0x5d3   : > { %v5989_v23 = vpop.eup %5988  ;;  %v2456_v28 = vmul.f32 %v5987_v0, %v10155_v29 }
 0x5d4   : > { %v2222_v4 = vpop.xlane.xlu1 %2221  ;;  %v2267_v51 = vpop.xlane.xlu0 %2266  ;;  %2678 = vmatprep.subr.bf16.mxu0 %v2591_v40  ;;  %v2459_v63 = vmul.f32 %v5989_v23, %v10154_v45  ;;  %v2458_v19 = vmul.f32 %v5989_v23, %v10156_v22  ;;  %v10166_v40 = vld [vmem:[#allocation38_spill] sm:$0xff]  ;;  %v10167_v23 = vld [vmem:[#allocation41_spill] sm:$0xff] }
 0x5d5   : > { %v5991_v43 = vpop.eup %5990  ;;  %6000 = vrcp.f32 %v2267_v51  ;;  %2679 = vmatpush1.bf16.xpose.msra.mxu0 %v2590_v42  ;;  %v10168_v51 = vld [vmem:[#allocation42_spill] sm:$0xff] }
 0x5d6   : > { %v2577_v10 = vpack.c.bf16 %v2459_v63, %v2457_v57  ;;  %v2576_v21 = vpack.c.bf16 %v2458_v19, %v2456_v28  ;;  %6002 = vrcp.f32 %v2222_v4  ;;  %v2489_v37 = vmul.f32 %v5991_v43, %v10157_v20  ;;  %v10172_v20 = vld [vmem:[#allocation43_spill] sm:$0xff] }
 0x5d7   : > { %v5993_v13 = vpop.eup %5992  ;;  %v2488_v11 = vmul.f32 %v5991_v43, %v10159_v27  ;;  %v10169_v43 = vld [vmem:[#allocation37_spill] sm:$0xff] }
 0x5d8   : > { %v2270_v59 = vpop.xlane.xlu1 %2269  ;;  %v2225_v7 = vpop.xlane.xlu0 %2224  ;;  %2640 = vmatprep.subr.bf16.mxu1 %v2577_v10  ;;  %v2491_v18 = vmul.f32 %v5993_v13, %v10158_v55  ;;  %v2490_v60 = vmul.f32 %v5993_v13, %v10160_v49 }
 0x5d9   : > { %v5995_v5 = vpop.eup %5994  ;;  %6004 = vrcp.f32 %v2225_v7  ;;  %2641 = vmatpush1.bf16.xpose.msra.mxu1 %v2576_v21  ;;  %v10170_v21 = vld [vmem:[#allocation39_spill] sm:$0xff] }
 0x5da   : > { %v2593_v26 = vpack.c.bf16 %v2491_v18, %v2489_v37  ;;  %v2592_v33 = vpack.c.bf16 %v2490_v60, %v2488_v11  ;;  %6006 = vrcp.f32 %v2270_v59  ;;  %v2461_v39 = vmul.f32 %v5995_v5, %v10161_v61  ;;  %v10171_v59 = vld [vmem:[#allocation48_spill] sm:$0xff]  ;;  %v10176_v61 = vld [vmem:[#allocation50_spill] sm:$0xff] }
 0x5db   : > { %v5997_v17 = vpop.eup %5996  ;;  %v2460_v56 = vmul.f32 %v5995_v5, %v10163_v14  ;;  %v10173_v5 = vld [vmem:[#allocation44_spill] sm:$0xff] }
 0x5dc   : > { %v2228_v38 = vpop.xlane.xlu1 %2227  ;;  %v2273_v47 = vpop.xlane.xlu0 %2272  ;;  %2680 = vmatprep.subr.bf16.mxu0 %v2593_v26  ;;  %v2463_v3 = vmul.f32 %v5997_v17, %v10162_v62  ;;  %v2462_v25 = vmul.f32 %v5997_v17, %v10164_v34 }
 0x5dd   : > { %v5999_v31 = vpop.eup %5998  ;;  %6008 = vrcp.f32 %v2273_v47  ;;  %2681 = vmatpush1.bf16.xpose.msra.mxu0 %v2592_v33  ;;  %v10174_v33 = vld [vmem:[#allocation46_spill] sm:$0xff] }
 0x5de   : > { %v2579_v36 = vpack.c.bf16 %v2463_v3, %v2461_v39  ;;  %v2578_v41 = vpack.c.bf16 %v2462_v25, %v2460_v56  ;;  %6010 = vrcp.f32 %v2228_v38  ;;  %v2493_v0 = vmul.f32 %v5999_v31, %v10165_v15  ;;  %v10175_v38 = vld [vmem:[#allocation49_spill] sm:$0xff]  ;;  %v10180_v15 = vld [vmem:[#allocation51_spill] sm:$0xff] }
 0x5df   : > { %v6001_v44 = vpop.eup %6000  ;;  %v2492_v4 = vmul.f32 %v5999_v31, %v10167_v23  ;;  %v10177_v31 = vld [vmem:[#allocation45_spill] sm:$0xff] }
 0x5e0   : > { %v2276_v30 = vpop.xlane.xlu1 %2275  ;;  %v2231_v6 = vpop.xlane.xlu0 %2230  ;;  %2642 = vmatprep.subr.bf16.mxu1 %v2579_v36  ;;  %v2495_v42 = vmul.f32 %v6001_v44, %v10166_v40  ;;  %v2494_v57 = vmul.f32 %v6001_v44, %v10168_v51 }
 0x5e1   : > { %v6003_v45 = vpop.eup %6002  ;;  %6012 = vrcp.f32 %v2231_v6  ;;  %2643 = vmatpush1.bf16.xpose.msra.mxu1 %v2578_v41  ;;  %v10178_v41 = vld [vmem:[#allocation47_spill] sm:$0xff] }
 0x5e2   : > { %v2595_v63 = vpack.c.bf16 %v2495_v42, %v2493_v0  ;;  %v2594_v29 = vpack.c.bf16 %v2494_v57, %v2492_v4  ;;  %6014 = vrcp.f32 %v2276_v30  ;;  %v2465_v10 = vmul.f32 %v6003_v45, %v10169_v43  ;;  %v10179_v30 = vld [vmem:[#allocation56_spill] sm:$0xff]  ;;  %v10184_v43 = vld [vmem:[#allocation58_spill] sm:$0xff] }
 0x5e3   : > { %v6005_v28 = vpop.eup %6004  ;;  %v2464_v7 = vmul.f32 %v6003_v45, %v10171_v59  ;;  %v10181_v45 = vld [vmem:[#allocation52_spill] sm:$0xff] }
 0x5e4   : > { %v2282_v22 = vpop.xlane.xlu1 %2281  ;;  %v2279_v19 = vpop.xlane.xlu0 %2278  ;;  %2682 = vmatprep.subr.bf16.mxu0 %v2595_v63  ;;  %v2467_v13 = vmul.f32 %v6005_v28, %v10170_v21  ;;  %v2466_v37 = vmul.f32 %v6005_v28, %v10172_v20 }
 0x5e5   : > { %v6007_v55 = vpop.eup %6006  ;;  %6016 = vrcp.f32 %v2279_v19  ;;  %2683 = vmatpush1.bf16.xpose.msra.mxu0 %v2594_v29  ;;  %v10182_v29 = vld [vmem:[#allocation54_spill] sm:$0xff] }
 0x5e6   : > { %v2581_v18 = vpack.c.bf16 %v2467_v13, %v2465_v10  ;;  %v2580_v27 = vpack.c.bf16 %v2466_v37, %v2464_v7  ;;  %6018 = vrcp.f32 %v2282_v22  ;;  %v2497_v26 = vmul.f32 %v6007_v55, %v10173_v5  ;;  %v10183_v22 = vld [vmem:[#allocation57_spill] sm:$0xff]  ;;  %v10187_v5 = vld [vmem:[#allocation64_spill] sm:$0xff] }
 0x5e7   : > { %v6009_v11 = vpop.eup %6008  ;;  %v2496_v47 = vmul.f32 %v6007_v55, %v10175_v38  ;;  %v10185_v55 = vld [vmem:[#allocation21_spill] sm:$0xff]  ;;  %v10189_v38 = vld [vmem:[#allocation19_spill] sm:$0xff] }
 0x5e8   : > { %v2330_v49 = vpop.xlane.xlu1 %2329  ;;  %v2285_v60 = vpop.xlane.xlu0 %2284  ;;  %2644 = vmatprep.subr.bf16.mxu1 %v2581_v18  ;;  %v2499_v17 = vmul.f32 %v6009_v11, %v10174_v33  ;;  %v2498_v39 = vmul.f32 %v6009_v11, %v10176_v61  ;;  %v5177_v18 = vcombine.low %v10185_v55, %v10185_v55  ;;  %v10186_v11 = vld [vmem:[#allocation53_spill] sm:$0xff]  ;;  %v10188_v33 = vld [vmem:[#allocation59_spill] sm:$0xff] }
 0x5e9   : > { %v6011_v62 = vpop.eup %6010  ;;  %6020 = vrcp.f32 %v2285_v60  ;;  %2645 = vmatpush1.bf16.xpose.msra.mxu1 %v2580_v27 }
 0x5ea   : > { %6022 = vrcp.f32 %v2330_v49  ;;  %v2597_v3 = vpack.c.bf16 %v2499_v17, %v2497_v26  ;;  %v2596_v14 = vpack.c.bf16 %v2498_v39, %v2496_v47  ;;  %v2469_v36 = vmul.f32 %v6011_v62, %v10177_v31 }
 0x5eb   : > { %v6013_v56 = vpop.eup %6012  ;;  %v2468_v6 = vmul.f32 %v6011_v62, %v10179_v30  ;;  %v8050_v47 = vpack.c.bf16 %v10189_v38, %v10189_v38  ;;  %v10194_v30 = vld [vmem:[#allocation55_spill] sm:$0xff] }
 0x5ec   : > { %v2288_v34 = vpop.xlane.xlu1 %2287  ;;  %v2333_v25 = vpop.xlane.xlu0 %2332  ;;  %2684 = vmatprep.subr.bf16.mxu0 %v2597_v3  ;;  %v2471_v44 = vmul.f32 %v6013_v56, %v10178_v41  ;;  %v2470_v0 = vmul.f32 %v6013_v56, %v10180_v15  ;;  %v8052_v56 = vpack.c.bf16 %v5177_v18, %v5177_v18  ;;  %v10193_v41 = vld [vmem:[#allocation66_spill] sm:$0xff]  ;;  %v10195_v15 = vld [vmem:[#allocation20_spill] sm:$0xff] }
 0x5ed   : > { %v6015_v40 = vpop.eup %6014  ;;  %6024 = vrcp.f32 %v2333_v25  ;;  %2685 = vmatpush1.bf16.xpose.msra.mxu0 %v2596_v14  ;;  %10190 = vst [vmem:[#allocation102_spill] sm:$0xff] %v8050_v47  ;;  %v5178_v25 = vcombine.high %v10185_v55, %v10185_v55 }
 0x5ee   : > { %6026 = vrcp.f32 %v2288_v34  ;;  %v2583_v42 = vpack.c.bf16 %v2471_v44, %v2469_v36  ;;  %v2582_v23 = vpack.c.bf16 %v2470_v0, %v2468_v6  ;;  %v2501_v63 = vmul.f32 %v6015_v40, %v10181_v45  ;;  %10191 = vst [vmem:[#allocation10_spill] sm:$0xff] %v8052_v56  ;;  %v10192_v34 = vld [vmem:[#allocation65_spill] sm:$0xff] }
 0x5ef   : > { %v6017_v4 = vpop.eup %6016  ;;  %v2500_v19 = vmul.f32 %v6015_v40, %v10183_v22  ;;  %v8064_v0 = vpack.c.bf16 %v10195_v15, %v10195_v15  ;;  %v10209_v15 = vld [vmem:[#allocation81_spill] sm:$0xff] }
 0x5f0   : > { %v2336_v51 = vpop.xlane.xlu1 %2335  ;;  %v2291_v57 = vpop.xlane.xlu0 %2290  ;;  %2646 = vmatprep.subr.bf16.mxu1 %v2583_v42  ;;  %v2503_v28 = vmul.f32 %v6017_v4, %v10182_v29  ;;  %v2502_v10 = vmul.f32 %v6017_v4, %v10184_v43 }
 0x5f1   : > { %v6019_v21 = vpop.eup %6018  ;;  %6028 = vrcp.f32 %v2291_v57  ;;  %2647 = vmatpush1.bf16.xpose.msra.mxu1 %v2582_v23  ;;  %10196 = vst [vmem:[#allocation9_spill] sm:$0xff] %v8064_v0  ;;  %v8066_v57 = vpack.c.bf16 %v5178_v25, %v5178_v25 }
 0x5f2   : > { %v2599_v13 = vpack.c.bf16 %v2503_v28, %v2501_v63  ;;  %v2598_v59 = vpack.c.bf16 %v2502_v10, %v2500_v19  ;;  %6030 = vrcp.f32 %v2336_v51  ;;  %v2505_v49 = vmul.f32 %v6019_v21, %v10186_v11  ;;  %v10199_v63 = vld [vmem:[#allocation72_spill] sm:$0xff]  ;;  %v10200_v28 = vld [vmem:[#allocation62_spill] sm:$0xff] }
 0x5f3   : > { %v6021_v7 = vpop.eup %6020  ;;  %v2504_v26 = vmul.f32 %v6019_v21, %v10187_v5  ;;  %10197 = vst [vmem:[#allocation27_spill] sm:$0xff] %v8066_v57  ;;  %v10201_v19 = vld [vmem:[#allocation60_spill] sm:$0xff] }
 0x5f4   : > { %v2294_v20 = vpop.xlane.xlu1 %2293  ;;  %v2339_v37 = vpop.xlane.xlu0 %2338  ;;  %2686 = vmatprep.subr.bf16.mxu0 %v2599_v13  ;;  %v2507_v60 = vmul.f32 %v6021_v7, %v7712_v12  ;;  %v2506_v17 = vmul.f32 %v6021_v7, %v10188_v33 }
 0x5f5   : > { %v6023_v27 = vpop.eup %6022  ;;  %6032 = vrcp.f32 %v2339_v37  ;;  %2687 = vmatpush1.bf16.xpose.msra.mxu0 %v2598_v59  ;;  %v10202_v37 = vld [vmem:[#allocation74_spill] sm:$0xff] }
 0x5f6   : > { %v2601_v61 = vpack.c.bf16 %v2507_v60, %v2505_v49  ;;  %v2600_v39 = vpack.c.bf16 %v2506_v17, %v2504_v26  ;;  %6034 = vrcp.f32 %v2294_v20  ;;  %v2537_v12 = vmul.f32 %v6023_v27, %v10192_v34  ;;  %v10204_v49 = vld [vmem:[#allocation61_spill] sm:$0xff]  ;;  %v10207_v34 = vld [vmem:[#allocation68_spill] sm:$0xff] }
 0x5f7   : > { %v6025_v62 = vpop.eup %6024  ;;  %v2536_v44 = vmul.f32 %v6023_v27, %v10193_v41  ;;  %v10203_v27 = vld [vmem:[#allocation63_spill] sm:$0xff] }
 0x5f8   : > { %v2342_v3 = vpop.xlane.xlu1 %2341  ;;  %v2297_v14 = vpop.xlane.xlu0 %2296  ;;  %2665 = vmatmul.mubr.bf16.vlgmr.msra.gmra.mrb[64].mxu1 %v8050_v47  ;;  %2712 = vmatprep.subr.bf16.mxu1 %v2601_v61  ;;  %v2539_v36 = vmul.f32 %v6025_v62, %v7732_v32  ;;  %v2538_v6 = vmul.f32 %v6025_v62, %v10194_v30  ;;  %v10198_v32 = vld [vmem:[#allocation67_spill] sm:$0xff] }
 0x5f9   : > { %v6027_v31 = vpop.eup %6026  ;;  %6036 = vrcp.f32 %v2297_v14  ;;  %2713 = vmatpush1.bf16.xpose.msra.mxu1 %v2600_v39  ;;  %2744 = vmatprep.mubr.bf16.mxu1 %v8052_v56  ;;  %v10205_v39 = vld [vmem:[#allocation70_spill] sm:$0xff] }
 0x5fa   : > { %v2617_v40 = vpack.c.bf16 %v2539_v36, %v2537_v12  ;;  %v2616_v42 = vpack.c.bf16 %v2538_v6, %v2536_v44  ;;  %6038 = vrcp.f32 %v2342_v3  ;;  %v2509_v45 = vmul.f32 %v6027_v31, %v10198_v32  ;;  %v10206_v3 = vld [vmem:[#allocation75_spill] sm:$0xff]  ;;  %v10208_v12 = vld [vmem:[#allocation73_spill] sm:$0xff] }
 0x5fb   : > { %v6029_v23 = vpop.eup %6028  ;;  %v2508_v22 = vmul.f32 %v6027_v31, %v10200_v28  ;;  %v10212_v32 = vld [vmem:[#allocation69_spill] sm:$0xff] }
 0x5fc   : > { %v2300_v4 = vpop.xlane.xlu1 %2299  ;;  %v2345_v51 = vpop.xlane.xlu0 %2344  ;;  %2705 = vmatmul.mubr.bf16.vlgmr.msra.gmra.mrb[76].mxu0 %v8064_v0  ;;  %2752 = vmatprep.subr.bf16.mxu0 %v2617_v40  ;;  %v2511_v29 = vmul.f32 %v6029_v23, %v10199_v63  ;;  %v2510_v43 = vmul.f32 %v6029_v23, %v10201_v19 }
 0x5fd   : > { %v6031_v10 = vpop.eup %6030  ;;  %6040 = vrcp.f32 %v2345_v51  ;;  %2753 = vmatpush1.bf16.xpose.msra.mxu0 %v2616_v42  ;;  %2784 = vmatprep.mubr.bf16.mxu0 %v8066_v57  ;;  %v10210_v42 = vld [vmem:[#allocation80_spill] sm:$0xff] }
 0x5fe   : > { %v2603_v21 = vpack.c.bf16 %v2511_v29, %v2509_v45  ;;  %v2602_v13 = vpack.c.bf16 %v2510_v43, %v2508_v22  ;;  %6042 = vrcp.f32 %v2300_v4  ;;  %v2541_v55 = vmul.f32 %v6031_v10, %v10202_v37  ;;  %v10211_v4 = vld [vmem:[#allocation71_spill] sm:$0xff]  ;;  %v10216_v37 = vld [vmem:[#allocation76_spill] sm:$0xff] }
 0x5ff   : > { %v6033_v59 = vpop.eup %6032  ;;  %v2540_v11 = vmul.f32 %v6031_v10, %v10203_v27  ;;  %v10213_v10 = vld [vmem:[#allocation82_spill] sm:$0xff] }
 0x600   : > { %v2348_v7 = vpop.xlane.xlu1 %2347  ;;  %v2303_v20 = vpop.xlane.xlu0 %2302  ;;  %2714 = vmatprep.subr.bf16.mxu1 %v2603_v21  ;;  %v2543_v18 = vmul.f32 %v6033_v59, %v7772_v50  ;;  %v2542_v60 = vmul.f32 %v6033_v59, %v10204_v49 }
 0x601   : > { %v6035_v5 = vpop.eup %6034  ;;  %6044 = vrcp.f32 %v2303_v20  ;;  %2715 = vmatpush1.bf16.xpose.msra.mxu1 %v2602_v13  ;;  %v10214_v13 = vld [vmem:[#allocation87_spill] sm:$0xff] }
 0x602   : > { %v2619_v26 = vpack.c.bf16 %v2543_v18, %v2541_v55  ;;  %v2618_v33 = vpack.c.bf16 %v2542_v60, %v2540_v11  ;;  %6046 = vrcp.f32 %v2348_v7  ;;  %v2513_v62 = vmul.f32 %v6035_v5, %v10205_v39  ;;  %v10215_v7 = vld [vmem:[#allocation78_spill] sm:$0xff] }
 0x603   : > { %v6037_v17 = vpop.eup %6036  ;;  %v2512_v50 = vmul.f32 %v6035_v5, %v10207_v34 }
 0x604   : > { %v2306_v38 = vpop.xlane.xlu1 %2305  ;;  %v2351_v61 = vpop.xlane.xlu0 %2350  ;;  %2754 = vmatprep.subr.bf16.mxu0 %v2619_v26  ;;  %v2515_v14 = vmul.f32 %v6037_v17, %v10206_v3  ;;  %v2514_v25 = vmul.f32 %v6037_v17, %v10208_v12  ;;  %v10217_v26 = vld [vmem:[#allocation89_spill] sm:$0xff]  ;;  %v10218_v17 = vld [vmem:[#allocation88_spill] sm:$0xff] }
 0x605   : > { %v6039_v31 = vpop.eup %6038  ;;  %6048 = vrcp.f32 %v2351_v61  ;;  %2755 = vmatpush1.bf16.xpose.msra.mxu0 %v2618_v33  ;;  %v10219_v61 = vld [vmem:[#allocation79_spill] sm:$0xff] }
 0x606   : > { %v2605_v36 = vpack.c.bf16 %v2515_v14, %v2513_v62  ;;  %v2604_v41 = vpack.c.bf16 %v2514_v25, %v2512_v50  ;;  %6050 = vrcp.f32 %v2306_v38  ;;  %v2545_v40 = vmul.f32 %v6039_v31, %v10209_v15  ;;  %v10220_v62 = vld [vmem:[#allocation77_spill] sm:$0xff] }
 0x607   : > { %v6041_v44 = vpop.eup %6040  ;;  %v2544_v51 = vmul.f32 %v6039_v31, %v10211_v4 }
 0x608   : > { %v2354_v30 = vpop.xlane.xlu1 %2353  ;;  %v2309_v6 = vpop.xlane.xlu0 %2308  ;;  %2716 = vmatprep.subr.bf16.mxu1 %v2605_v36  ;;  %v2547_v23 = vmul.f32 %v6041_v44, %v10210_v42  ;;  %v2546_v45 = vmul.f32 %v6041_v44, %v10212_v32  ;;  %v10221_v36 = vld [vmem:[#allocation90_spill] sm:$0xff]  ;;  %v10222_v44 = vld [vmem:[#allocation95_spill] sm:$0xff] }
 0x609   : > { %v6043_v63 = vpop.eup %6042  ;;  %6052 = vrcp.f32 %v2309_v6  ;;  %2717 = vmatpush1.bf16.xpose.msra.mxu1 %v2604_v41  ;;  %v10223_v6 = vld [vmem:[#allocation85_spill] sm:$0xff] }
 0x60a   : > { %v2621_v29 = vpack.c.bf16 %v2547_v23, %v2545_v40  ;;  %v2620_v28 = vpack.c.bf16 %v2546_v45, %v2544_v51  ;;  %6054 = vrcp.f32 %v2354_v30  ;;  %v2517_v21 = vmul.f32 %v6043_v63, %v10213_v10  ;;  %v10224_v40 = vld [vmem:[#allocation83_spill] sm:$0xff] }
 0x60b   : > { %v6045_v22 = vpop.eup %6044  ;;  %v2516_v20 = vmul.f32 %v6043_v63, %v10215_v7 }
 0x60c   : > { %v2312_v19 = vpop.xlane.xlu1 %2311  ;;  %v2357_v43 = vpop.xlane.xlu0 %2356  ;;  %2756 = vmatprep.subr.bf16.mxu0 %v2621_v29  ;;  %v2519_v59 = vmul.f32 %v6045_v22, %v10214_v13  ;;  %v2518_v55 = vmul.f32 %v6045_v22, %v10216_v37  ;;  %v10225_v29 = vld [vmem:[#allocation86_spill] sm:$0xff] }
 0x60d   : > { %v6047_v18 = vpop.eup %6046  ;;  %6056 = vrcp.f32 %v2357_v43  ;;  %2757 = vmatpush1.bf16.xpose.msra.mxu0 %v2620_v28 }
 0x60e   : > { %v2607_v27 = vpack.c.bf16 %v2519_v59, %v2517_v21  ;;  %v2606_v11 = vpack.c.bf16 %v2518_v55, %v2516_v20  ;;  %6058 = vrcp.f32 %v2312_v19  ;;  %v2549_v33 = vmul.f32 %v6047_v18, %v10217_v26  ;;  %v10226_v19 = vld [vmem:[#allocation84_spill] sm:$0xff]  ;;  %v10227_v55 = vld [vmem:[#allocation91_spill] sm:$0xff] }
 0x60f   : > { %v6049_v49 = vpop.eup %6048  ;;  %v2548_v39 = vmul.f32 %v6047_v18, %v10219_v61 }
 0x610   : > { %v2360_v60 = vpop.xlane.xlu1 %2359  ;;  %v2315_v5 = vpop.xlane.xlu0 %2314  ;;  %2718 = vmatprep.subr.bf16.mxu1 %v2607_v27  ;;  %v2551_v38 = vmul.f32 %v6049_v49, %v10218_v17  ;;  %v2550_v3 = vmul.f32 %v6049_v49, %v10220_v62 }
 0x611   : > { %v6051_v14 = vpop.eup %6050  ;;  %6060 = vrcp.f32 %v2315_v5  ;;  %2719 = vmatpush1.bf16.xpose.msra.mxu1 %v2606_v11  ;;  %v10228_v11 = vld [vmem:[#allocation97_spill] sm:$0xff] }
 0x612   : > { %v2623_v34 = vpack.c.bf16 %v2551_v38, %v2549_v33  ;;  %v2622_v50 = vpack.c.bf16 %v2550_v3, %v2548_v39  ;;  %6062 = vrcp.f32 %v2360_v60  ;;  %v2521_v41 = vmul.f32 %v6051_v14, %v10221_v36 }
 0x613   : > { %v6053_v12 = vpop.eup %6052  ;;  %v2520_v15 = vmul.f32 %v6051_v14, %v10223_v6  ;;  %v10231_v6 = vld [vmem:[#allocation96_spill] sm:$0xff] }
 0x614   : > { %v2318_v25 = vpop.xlane.xlu1 %2317  ;;  %v2363_v31 = vpop.xlane.xlu0 %2362  ;;  %2758 = vmatprep.subr.bf16.mxu0 %v2623_v34  ;;  %v2523_v30 = vmul.f32 %v6053_v12, %v10222_v44  ;;  %v2522_v42 = vmul.f32 %v6053_v12, %v10224_v40 }
 0x615   : > { %v6055_v23 = vpop.eup %6054  ;;  %6064 = vrcp.f32 %v2363_v31  ;;  %2759 = vmatpush1.bf16.xpose.msra.mxu0 %v2622_v50 }
 0x616   : > { %6066 = vrcp.f32 %v2318_v25  ;;  %v2609_v4 = vpack.c.bf16 %v2523_v30, %v2521_v41  ;;  %v2608_v51 = vpack.c.bf16 %v2522_v42, %v2520_v15  ;;  %v2553_v28 = vmul.f32 %v6055_v23, %v10225_v29  ;;  %v10229_v41 = vld [vmem:[#allocation98_spill] sm:$0xff]  ;;  %v10230_v30 = vld [vmem:[#allocation93_spill] sm:$0xff] }
 0x617   : > { %v6057_v32 = vpop.eup %6056  ;;  %v2552_v43 = vmul.f32 %v6055_v23, %v10226_v19  ;;  %v10232_v23 = vld [vmem:[#allocation94_spill] sm:$0xff] }
 0x618   : > { %v2366_v45 = vpop.xlane.xlu1 %2365  ;;  %v2321_v63 = vpop.xlane.xlu0 %2320  ;;  %2720 = vmatprep.subr.bf16.mxu1 %v2609_v4  ;;  %v2555_v22 = vmul.f32 %v6057_v32, %v7880_v1  ;;  %v2554_v10 = vmul.f32 %v6057_v32, %v7867_v8 }
 0x619   : > { %v6059_v21 = vpop.eup %6058  ;;  %6068 = vrcp.f32 %v2321_v63  ;;  %2721 = vmatpush1.bf16.xpose.msra.mxu1 %v2608_v51  ;;  %v10233_v51 = vld [vmem:[#allocation104_spill] sm:$0xff] }
 0x61a   : > { %v2625_v13 = vpack.c.bf16 %v2555_v22, %v2553_v28  ;;  %v2624_v59 = vpack.c.bf16 %v2554_v10, %v2552_v43  ;;  %6070 = vrcp.f32 %v2366_v45  ;;  %v2525_v18 = vmul.f32 %v6059_v21, %v10227_v55  ;;  %v10234_v45 = vld [vmem:[#allocation92_spill] sm:$0xff]  ;;  %v10236_v43 = vld [vmem:[#allocation101_spill] sm:$0xff] }
 0x61b   : > { %v6061_v7 = vpop.eup %6060  ;;  %v2524_v1 = vmul.f32 %v6059_v21, %v10228_v11  ;;  %v10237_v21 = vld [vmem:[#allocation100_spill] sm:$0xff]  ;;  %v10241_v11 = vld [vmem:[#allocation22_spill] sm:$0xff] }
 0x61c   : > { %v2324_v20 = vpop.xlane.xlu1 %2323  ;;  %v2369_v37 = vpop.xlane.xlu0 %2368  ;;  %2760 = vmatprep.subr.bf16.mxu0 %v2625_v13  ;;  %v2527_v27 = vmul.f32 %v6061_v7, %v7896_v53  ;;  %v2526_v49 = vmul.f32 %v6061_v7, %v7886_v46 }
 0x61d   : > { %v6063_v60 = vpop.eup %6062  ;;  %6072 = vrcp.f32 %v2369_v37  ;;  %2761 = vmatpush1.bf16.xpose.msra.mxu0 %v2624_v59  ;;  %v10238_v59 = vld [vmem:[#allocation99_spill] sm:$0xff] }
 0x61e   : > { %v2611_v8 = vpack.c.bf16 %v2527_v27, %v2525_v18  ;;  %v2610_v5 = vpack.c.bf16 %v2526_v49, %v2524_v1  ;;  %6074 = vrcp.f32 %v2324_v20  ;;  %v2557_v61 = vmul.f32 %v6063_v60, %v7908_v48  ;;  %v10239_v20 = vld [vmem:[#allocation105_spill] sm:$0xff]  ;;  %v10240_v27 = vld [vmem:[#allocation12_spill] sm:$0xff]  ;;  %v10243_v49 = vld [vmem:[#allocation11_spill] sm:$0xff] }
 0x61f   : > { %v6065_v26 = vpop.eup %6064  ;;  %v2556_v53 = vmul.f32 %v6063_v60, %v7906_v9  ;;  %v8130_v1 = vpack.c.bf16 %v10241_v11, %v10241_v11  ;;  %v10244_v60 = vld [vmem:[#allocation15_spill] sm:$0xff] }
 0x620   : > { %v2372_v33 = vpop.xlane.xlu1 %2371  ;;  %v2327_v17 = vpop.xlane.xlu0 %2326  ;;  %2722 = vmatprep.subr.bf16.mxu1 %v2611_v8  ;;  %v2559_v39 = vmul.f32 %v6065_v26, %v7912_v52  ;;  %v2558_v62 = vmul.f32 %v6065_v26, %v7902_v2  ;;  %v10245_v8 = vmov 0  }
 0x621   : > { %v6067_v38 = vpop.eup %6066  ;;  %6076 = vrcp.f32 %v2327_v17  ;;  %2723 = vmatpush1.bf16.xpose.msra.mxu1 %v2610_v5  ;;  %10242 = vst [vmem:[#allocation26_spill] sm:$0xff] %v8130_v1  ;;  %v10246_v5 = vld [vmem:[#allocation23_spill] sm:$0xff]  ;;  %v10249_v17 = vld [vmem:[#allocation16_spill] sm:$0xff] }
 0x622   : > { %6078 = vrcp.f32 %v2372_v33  ;;  %v2627_v46 = vpack.c.bf16 %v2559_v39, %v2557_v61  ;;  %v2626_v3 = vpack.c.bf16 %v2558_v62, %v2556_v53  ;;  %v2529_v50 = vmul.f32 %v6067_v38, %v7924_v35  ;;  %v10248_v33 = vld [vmem:[#allocation13_spill] sm:$0xff] }
 0x623   : > { %v6069_v14 = vpop.eup %6068  ;;  %v2528_v48 = vmul.f32 %v6067_v38, %v7922_v24  ;;  %v8139_v26 = vpack.c.bf16 %v10246_v5, %v10246_v5  ;;  %v10250_v38 = vld [vmem:[#allocation14_spill] sm:$0xff] }
 0x624   : > { %v2375_v34 = vpop.xlane.xlu0 %2374  ;;  %2762 = vmatprep.subr.bf16.mxu0 %v2627_v46  ;;  %v2531_v12 = vmul.f32 %v6069_v14, %v7928_v58  ;;  %v2530_v52 = vmul.f32 %v6069_v14, %v7918_v16  ;;  %v6071_v9 = vpop.eup %6070 }
 0x625   : > { %6080 = vrcp.f32 %v2375_v34  ;;  %2763 = vmatpush1.bf16.xpose.msra.mxu0 %v2626_v3  ;;  %v2561_v36 = vmul.f32 %v6071_v9, %v7934_v54  ;;  %v2560_v35 = vmul.f32 %v6071_v9, %v10230_v30  ;;  %v10235_v54 = vld [vmem:[#allocation103_spill] sm:$0xff]  ;;  %10247 = vst [vmem:[#allocation32_spill] sm:$0xff] %v8139_v26  ;;  %v10251_v9 = vld [vmem:[#allocation17_spill] sm:$0xff] }
 0x626   : > { %v2613_v2 = vpack.c.bf16 %v2531_v12, %v2529_v50  ;;  %v2612_v25 = vpack.c.bf16 %v2530_v52, %v2528_v48 }
 0x627   : > { %v6073_v31 = vpop.eup %6072 }
 0x628   : > { %2724 = vmatprep.subr.bf16.mxu1 %v2613_v2  ;;  %v2563_v44 = vmul.f32 %v6073_v31, %v10229_v41  ;;  %v2562_v15 = vmul.f32 %v6073_v31, %v10231_v6  ;;  %v6075_v40 = vpop.eup %6074  ;;  %v10252_v2 = vld [vmem:[#allocation18_spill] sm:$0xff] }
 0x629   : > { %2725 = vmatpush1.bf16.xpose.msra.mxu1 %v2612_v25  ;;  %v2533_v4 = vmul.f32 %v6075_v40, %v10232_v23  ;;  %v2532_v63 = vmul.f32 %v6075_v40, %v10234_v45 }
 0x62a   : > { %v2629_v58 = vpack.c.bf16 %v2563_v44, %v2561_v36  ;;  %v2628_v24 = vpack.c.bf16 %v2562_v15, %v2560_v35 }
 0x62b   : > { %v6077_v42 = vpop.eup %6076 }
 0x62c   : > { %v6079_v16 = vpop.eup %6078  ;;  %2764 = vmatprep.subr.bf16.mxu0 %v2629_v58  ;;  %v2535_v32 = vmul.f32 %v6077_v42, %v10233_v51  ;;  %v2534_v29 = vmul.f32 %v6077_v42, %v10235_v54 }
 0x62d   : > { %2765 = vmatpush1.bf16.xpose.msra.mxu0 %v2628_v24  ;;  %v2565_v10 = vmul.f32 %v6079_v16, %v10236_v43  ;;  %v2564_v7 = vmul.f32 %v6079_v16, %v10238_v59 }
 0x62e   : > { %v2615_v22 = vpack.c.bf16 %v2535_v32, %v2533_v4  ;;  %v2614_v19 = vpack.c.bf16 %v2534_v29, %v2532_v63 }
 0x62f   : > { %v6081_v28 = vpop.eup %6080 }
 0x630   : > { %v2567_v13 = vmul.f32 %v6081_v28, %v10237_v21  ;;  %v2566_v37 = vmul.f32 %v6081_v28, %v10239_v20  ;;  %2726 = vmatprep.subr.bf16.mxu1 %v2615_v22 }
 0x631   : > { %2727 = vmatpush1.bf16.xpose.msra.mxu1 %v2614_v19 }
 0x632   : > { %v2631_v55 = vpack.c.bf16 %v2567_v13, %v2565_v10  ;;  %v2630_v18 = vpack.c.bf16 %v2566_v37, %v2564_v7  ;;  %5219 = vmatprep.subr.msk.bf16.mxu1 %vm1059_vm1, %v10240_v27 }
 0x634   : > { %2766 = vmatprep.subr.bf16.mxu0 %v2631_v55 }
 0x635   : > { %2767 = vmatpush1.bf16.xpose.msra.mxu0 %v2630_v18 }
 0x636   : > { %5228 = vmatprep.subr.msk.bf16.mxu0 %vm1059_vm1, %v10243_v49 }
 0x638   : > { %2745 = vmatmul.mubr.bf16.vlgmr.msra.gmra.mrb[68].mxu1 %v8130_v1 }
 0x639   : > { %2827 = vmatpush1.bf16.msra.mxu1 %v10244_v60  ;;  %2858 = vmatprep.mubr.bf16.mxu1 %v10245_v8 }
 0x63a   : > { %5237 = vmatprep.subr.msk.bf16.mxu1 %vm1059_vm1, %v10248_v33 }
 0x63c   : > { %2785 = vmatmul.mubr.bf16.vlgmr.msra.gmra.mrb[80].mxu0 %v8139_v26 }
 0x63d   : > { %2964 = vmatpush1.bf16.msra.mxu0 %v10249_v17  ;;  %2995 = vmatprep.mubr.bf16.mxu0 %v10245_v8 }
 0x63e   : > { %5246 = vmatprep.subr.msk.bf16.mxu0 %vm1059_vm1, %v10250_v38 }
 0x644   : > { %v8148_v61 = vpop.trf.xlu0 }
 0x646   : > { %v5525_v39 = vpop.trf.xlu1 }
 0x647   : > { %v5529_v62 = vunpack.i.h.bf16 %v5525_v39  ;;  %v5526_v46 = vunpack.i.l.bf16 %v5525_v39 }
 0x648   : > { %v8150_v53 = vpop.trf.xlu0 }
 0x64a   : > { %v5530_v3 = vpop.trf.xlu1 }
 0x64b   : > { %v5534_v14 = vunpack.i.h.bf16 %v5530_v3  ;;  %v5531_v34 = vunpack.i.l.bf16 %v5530_v3 }
 0x64c   : > { %v8152_v50 = vpop.trf.xlu0 }
 0x64d   : > { %v978_v12 = vpack.c.bf16 %v5531_v34, %v5526_v46  ;;  %v994_v48 = vpack.c.bf16 %v5534_v14, %v5529_v62 }
 0x64e   : > { %v5535_v52 = vpop.trf.xlu1 }
 0x64f   : > { %5220 = vmatmul.mubr.msk.bf16.vlgmr.msra.gmra.mrb[72].mxu1 %vm1034_vm2, %v978_v12  ;;  %5229 = vmatmul.mubr.msk.bf16.vlgmr.msra.gmra.mrb[84].mxu0 %vm1034_vm2, %v994_v48  ;;  %v5539_v31 = vunpack.i.h.bf16 %v5535_v52  ;;  %v5536_v36 = vunpack.i.l.bf16 %v5535_v52 }
 0x650   : > { %3101 = vmatpush1.bf16.msra.mxu1 %v10251_v9  ;;  %3238 = vmatpush1.bf16.msra.mxu0 %v10252_v2  ;;  %v8158_v25 = vpop.trf.xlu0 }
 0x651   : > { %2868 = vmatprep.mubr.bf16.mxu1 %v10245_v8  ;;  %3005 = vmatprep.mubr.bf16.mxu0 %v10245_v8 }
 0x652   : > { %v5540_v41 = vpop.trf.xlu1 }
 0x653   : > { %v5544_v44 = vunpack.i.h.bf16 %v5540_v41  ;;  %v5541_v30 = vunpack.i.l.bf16 %v5540_v41 }
 0x654   : > { %v8162_v35 = vpop.trf.xlu0 }
 0x655   : > { %v979_v6 = vpack.c.bf16 %v5541_v30, %v5536_v36  ;;  %v995_v15 = vpack.c.bf16 %v5544_v44, %v5539_v31 }
 0x656   : > { %v5545_v40 = vpop.trf.xlu1 }
 0x657   : > { %5221 = vmatmul.mubr.msk.bf16.gmra.mrb[76].mxu1 %vm1034_vm2, %v979_v6  ;;  %5230 = vmatmul.mubr.msk.bf16.gmra.mrb[88].mxu0 %vm1034_vm2, %v995_v15  ;;  %v5549_v24 = vunpack.i.h.bf16 %v5545_v40  ;;  %v5546_v42 = vunpack.i.l.bf16 %v5545_v40 }
 0x658   : > { %2878 = vmatprep.mubr.bf16.mxu1 %v10245_v8  ;;  %3015 = vmatprep.mubr.bf16.mxu0 %v10245_v8  ;;  %v8168_v58 = vpop.trf.xlu0 }
 0x65a   : > { %v5550_v16 = vpop.trf.xlu1 }
 0x65b   : > { %v5554_v23 = vunpack.i.h.bf16 %v5550_v16  ;;  %v5551_v4 = vunpack.i.l.bf16 %v5550_v16 }
 0x65c   : > { %v8170_v51 = vpop.trf.xlu0 }
 0x65d   : > { %v980_v32 = vpack.c.bf16 %v5551_v4, %v5546_v42  ;;  %v996_v45 = vpack.c.bf16 %v5554_v23, %v5549_v24 }
 0x65e   : > { %v5555_v63 = vpop.trf.xlu1 }
 0x65f   : > { %5222 = vmatmul.mubr.msk.bf16.gmra.mrb[80].mxu1 %vm1034_vm2, %v980_v32  ;;  %5231 = vmatmul.mubr.msk.bf16.gmra.mrb[92].mxu0 %vm1034_vm2, %v996_v45  ;;  %v5559_v29 = vunpack.i.h.bf16 %v5555_v63  ;;  %v5556_v28 = vunpack.i.l.bf16 %v5555_v63  ;;  %v5611_v45 = vunpack.i.h.bf16 %v8148_v61  ;;  %v5608_v63 = vunpack.i.l.bf16 %v8148_v61 }
 0x660   : > { %2888 = vmatprep.mubr.bf16.mxu1 %v10245_v8  ;;  %3025 = vmatprep.mubr.bf16.mxu0 %v10245_v8  ;;  %v8176_v54 = vpop.trf.xlu0  ;;  %v5626_v61 = vunpack.i.h.bf16 %v8158_v25 }
 0x662   : > { %v5560_v22 = vpop.trf.xlu1 }
 0x663   : > { %v5564_v19 = vunpack.i.h.bf16 %v5560_v22  ;;  %v5561_v43 = vunpack.i.l.bf16 %v5560_v22 }
 0x664   : > { %v8178_v10 = vpop.trf.xlu0 }
 0x665   : > { %v981_v21 = vpack.c.bf16 %v5561_v43, %v5556_v28  ;;  %v997_v13 = vpack.c.bf16 %v5564_v19, %v5559_v29  ;;  %v5616_v29 = vunpack.i.h.bf16 %v8150_v53  ;;  %v5613_v28 = vunpack.i.l.bf16 %v8150_v53 }
 0x666   : > { %v5565_v59 = vpop.trf.xlu1  ;;  %v5621_v43 = vunpack.i.h.bf16 %v8152_v50 }
 0x667   : > { %5223 = vmatmul.mubr.msk.bf16.gmra.mrb[84].mxu1 %vm1034_vm2, %v981_v21  ;;  %5232 = vmatmul.mubr.msk.bf16.gmra.mrb[96].mxu0 %vm1034_vm2, %v997_v13  ;;  %v5569_v20 = vunpack.i.h.bf16 %v5565_v59  ;;  %v5566_v37 = vunpack.i.l.bf16 %v5565_v59  ;;  %v1010_v22 = vpack.c.bf16 %v5613_v28, %v5608_v63  ;;  %v1026_v19 = vpack.c.bf16 %v5616_v29, %v5611_v45 }
 0x668   : > { %2898 = vmatprep.mubr.bf16.mxu1 %v10245_v8  ;;  %3035 = vmatprep.mubr.bf16.mxu0 %v10245_v8  ;;  %v8184_v7 = vpop.trf.xlu0  ;;  %v5618_v21 = vunpack.i.l.bf16 %v8152_v50  ;;  %v5623_v13 = vunpack.i.l.bf16 %v8158_v25  ;;  %v1027_v53 = vpack.c.bf16 %v5626_v61, %v5621_v43  ;;  %v5636_v50 = vunpack.i.h.bf16 %v8168_v58 }
 0x66a   : > { %v5570_v55 = vpop.trf.xlu1  ;;  %v1011_v59 = vpack.c.bf16 %v5623_v13, %v5618_v21 }
 0x66b   : > { %v5574_v18 = vunpack.i.h.bf16 %v5570_v55  ;;  %v5571_v27 = vunpack.i.l.bf16 %v5570_v55  ;;  %v5633_v55 = vunpack.i.l.bf16 %v8168_v58 }
 0x66c   : > { %v8186_v11 = vpop.trf.xlu0 }
 0x66d   : > { %v982_v49 = vpack.c.bf16 %v5571_v27, %v5566_v37  ;;  %v998_v60 = vpack.c.bf16 %v5574_v18, %v5569_v20  ;;  %v5631_v20 = vunpack.i.h.bf16 %v8162_v35  ;;  %v5628_v37 = vunpack.i.l.bf16 %v8162_v35 }
 0x66e   : > { %v5575_v5 = vpop.trf.xlu1  ;;  %v5641_v27 = vunpack.i.h.bf16 %v8170_v51  ;;  %v5646_v35 = vunpack.i.h.bf16 %v8176_v54 }
 0x66f   : > { %5224 = vmatmul.mubr.msk.bf16.gmra.mrb[88].mxu1 %vm1034_vm2, %v982_v49  ;;  %5233 = vmatmul.mubr.msk.bf16.gmra.mrb[100].mxu0 %vm1034_vm2, %v998_v60  ;;  %v5579_v17 = vunpack.i.h.bf16 %v5575_v5  ;;  %v5576_v38 = vunpack.i.l.bf16 %v5575_v5  ;;  %v1012_v18 = vpack.c.bf16 %v5633_v55, %v5628_v37  ;;  %v1028_v25 = vpack.c.bf16 %v5636_v50, %v5631_v20 }
 0x670   : > { %2908 = vmatprep.mubr.bf16.mxu1 %v10245_v8  ;;  %3045 = vmatprep.mubr.bf16.mxu0 %v10245_v8  ;;  %v8192_v33 = vpop.trf.xlu0  ;;  %v5638_v49 = vunpack.i.l.bf16 %v8170_v51  ;;  %v5643_v60 = vunpack.i.l.bf16 %v8176_v54  ;;  %v1029_v58 = vpack.c.bf16 %v5646_v35, %v5641_v27  ;;  %v5656_v51 = vunpack.i.h.bf16 %v8184_v7 }
 0x672   : > { %v5580_v39 = vpop.trf.xlu1  ;;  %v1013_v5 = vpack.c.bf16 %v5643_v60, %v5638_v49 }
 0x673   : > { %v5584_v62 = vunpack.i.h.bf16 %v5580_v39  ;;  %v5581_v46 = vunpack.i.l.bf16 %v5580_v39  ;;  %v5653_v39 = vunpack.i.l.bf16 %v8184_v7 }
 0x674   : > { %v8194_v3 = vpop.trf.xlu0 }
 0x675   : > { %v983_v14 = vpack.c.bf16 %v5581_v46, %v5576_v38  ;;  %v999_v34 = vpack.c.bf16 %v5584_v62, %v5579_v17  ;;  %v5651_v17 = vunpack.i.h.bf16 %v8178_v10  ;;  %v5648_v38 = vunpack.i.l.bf16 %v8178_v10 }
 0x676   : > { %v5585_v12 = vpop.trf.xlu1  ;;  %v5661_v46 = vunpack.i.h.bf16 %v8186_v11  ;;  %v5666_v10 = vunpack.i.h.bf16 %v8192_v33 }
 0x677   : > { %5225 = vmatmul.mubr.msk.bf16.gmra.mrb[92].mxu1 %vm1034_vm2, %v983_v14  ;;  %5234 = vmatmul.mubr.msk.bf16.gmra.mrb[104].mxu0 %vm1034_vm2, %v999_v34  ;;  %v5589_v52 = vunpack.i.h.bf16 %v5585_v12  ;;  %v5586_v9 = vunpack.i.l.bf16 %v5585_v12  ;;  %v1014_v62 = vpack.c.bf16 %v5653_v39, %v5648_v38  ;;  %v1030_v54 = vpack.c.bf16 %v5656_v51, %v5651_v17 }
 0x678   : > { %2918 = vmatprep.mubr.bf16.mxu1 %v10245_v8  ;;  %3055 = vmatprep.mubr.bf16.mxu0 %v10245_v8  ;;  %v8200_v48 = vpop.trf.xlu0  ;;  %v5658_v14 = vunpack.i.l.bf16 %v8186_v11  ;;  %v5663_v34 = vunpack.i.l.bf16 %v8192_v33  ;;  %v1031_v7 = vpack.c.bf16 %v5666_v10, %v5661_v46 }
 0x679   : > { %v5676_v11 = vunpack.i.h.bf16 %v8200_v48 }
 0x67a   : > { %v5590_v2 = vpop.trf.xlu1  ;;  %v1015_v12 = vpack.c.bf16 %v5663_v34, %v5658_v14 }
 0x67b   : > { %v5594_v31 = vunpack.i.h.bf16 %v5590_v2  ;;  %v5591_v36 = vunpack.i.l.bf16 %v5590_v2  ;;  %v5673_v2 = vunpack.i.l.bf16 %v8200_v48 }
 0x67c   : > { %v8202_v41 = vpop.trf.xlu0 }
 0x67d   : > { %v984_v44 = vpack.c.bf16 %v5591_v36, %v5586_v9  ;;  %v1000_v30 = vpack.c.bf16 %v5594_v31, %v5589_v52  ;;  %v5671_v52 = vunpack.i.h.bf16 %v8194_v3  ;;  %v5668_v9 = vunpack.i.l.bf16 %v8194_v3 }
 0x67e   : > { %v5595_v6 = vpop.trf.xlu1  ;;  %v5681_v36 = vunpack.i.h.bf16 %v8202_v41 }
 0x67f   : > { %5226 = vmatmul.mubr.msk.bf16.gmra.mrb[96].mxu1 %vm1034_vm2, %v984_v44  ;;  %5235 = vmatmul.mubr.msk.bf16.gmra.mrb[108].mxu0 %vm1034_vm2, %v1000_v30  ;;  %v5599_v40 = vunpack.i.h.bf16 %v5595_v6  ;;  %v5596_v24 = vunpack.i.l.bf16 %v5595_v6  ;;  %v1016_v31 = vpack.c.bf16 %v5673_v2, %v5668_v9  ;;  %v1032_v33 = vpack.c.bf16 %v5676_v11, %v5671_v52 }
 0x680   : > { %2928 = vmatprep.mubr.bf16.mxu1 %v10245_v8  ;;  %3065 = vmatprep.mubr.bf16.mxu0 %v10245_v8  ;;  %v8208_v15 = vpop.trf.xlu0  ;;  %v5678_v44 = vunpack.i.l.bf16 %v8202_v41 }
 0x681   : > { %v5686_v3 = vunpack.i.h.bf16 %v8208_v15  ;;  %v5683_v30 = vunpack.i.l.bf16 %v8208_v15 }
 0x682   : > { %v5600_v42 = vpop.trf.xlu1 }
 0x683   : > { %v5604_v16 = vunpack.i.h.bf16 %v5600_v42  ;;  %v5601_v23 = vunpack.i.l.bf16 %v5600_v42  ;;  %v1017_v6 = vpack.c.bf16 %v5683_v30, %v5678_v44  ;;  %v1033_v48 = vpack.c.bf16 %v5686_v3, %v5681_v36 }
 0x685   : > { %v985_v4 = vpack.c.bf16 %v5601_v23, %v5596_v24  ;;  %v1001_v32 = vpack.c.bf16 %v5604_v16, %v5599_v40  ;;  %v10253_v40 = vld [vmem:[#allocation24_spill] sm:$0xff]  ;;  %v10254_v24 = vld [vmem:[#allocation25_spill] sm:$0xff] }
 0x687   : > { %5227 = vmatmul.mubr.msk.bf16.gmra.mrb[100].mxu1 %vm1034_vm2, %v985_v4  ;;  %5236 = vmatmul.mubr.msk.bf16.gmra.mrb[112].mxu0 %vm1034_vm2, %v1001_v32 }
 0x688   : > { %3132 = vmatprep.mubr.bf16.mxu1 %v10245_v8  ;;  %3269 = vmatprep.mubr.bf16.mxu0 %v10245_v8 }
 0x68f   : > { %5238 = vmatmul.mubr.msk.bf16.vlgmr.msra.gmra.mrb[104].mxu1 %vm1034_vm2, %v1010_v22  ;;  %5247 = vmatmul.mubr.msk.bf16.vlgmr.msra.gmra.mrb[116].mxu0 %vm1034_vm2, %v1026_v19 }
 0x690   : > { %3142 = vmatprep.mubr.bf16.mxu1 %v10245_v8  ;;  %3279 = vmatprep.mubr.bf16.mxu0 %v10245_v8 }
 0x697   : > { %5239 = vmatmul.mubr.msk.bf16.gmra.mrb[108].mxu1 %vm1034_vm2, %v1011_v59  ;;  %5248 = vmatmul.mubr.msk.bf16.gmra.mrb[120].mxu0 %vm1034_vm2, %v1027_v53 }
 0x698   : > { %3152 = vmatprep.mubr.bf16.mxu1 %v10245_v8  ;;  %3289 = vmatprep.mubr.bf16.mxu0 %v10245_v8 }
 0x69f   : > { %5240 = vmatmul.mubr.msk.bf16.gmra.mrb[112].mxu1 %vm1034_vm2, %v1012_v18  ;;  %5249 = vmatmul.mubr.msk.bf16.gmra.mrb[124].mxu0 %vm1034_vm2, %v1028_v25 }
 0x6a0   : > { %3162 = vmatprep.mubr.bf16.mxu1 %v10245_v8  ;;  %3299 = vmatprep.mubr.bf16.mxu0 %v10245_v8 }
 0x6a7   : > { %5241 = vmatmul.mubr.msk.bf16.gmra.mrb[116].mxu1 %vm1034_vm2, %v1013_v5  ;;  %5250 = vmatmul.mubr.msk.bf16.gmra.mrb[128].mxu0 %vm1034_vm2, %v1029_v58 }
 0x6a8   : > { %3172 = vmatprep.mubr.bf16.mxu1 %v10245_v8  ;;  %3309 = vmatprep.mubr.bf16.mxu0 %v10245_v8 }
 0x6af   : > { %5242 = vmatmul.mubr.msk.bf16.gmra.mrb[120].mxu1 %vm1034_vm2, %v1014_v62  ;;  %5251 = vmatmul.mubr.msk.bf16.gmra.mrb[132].mxu0 %vm1034_vm2, %v1030_v54 }
 0x6b0   : > { %3182 = vmatprep.mubr.bf16.mxu1 %v10245_v8  ;;  %3319 = vmatprep.mubr.bf16.mxu0 %v10245_v8 }
 0x6b7   : > { %5243 = vmatmul.mubr.msk.bf16.gmra.mrb[124].mxu1 %vm1034_vm2, %v1015_v12  ;;  %5252 = vmatmul.mubr.msk.bf16.gmra.mrb[136].mxu0 %vm1034_vm2, %v1031_v7 }
 0x6b8   : > { %3192 = vmatprep.mubr.bf16.mxu1 %v10245_v8  ;;  %3329 = vmatprep.mubr.bf16.mxu0 %v10245_v8 }
 0x6bf   : > { %5244 = vmatmul.mubr.msk.bf16.gmra.mrb[128].mxu1 %vm1034_vm2, %v1016_v31  ;;  %5253 = vmatmul.mubr.msk.bf16.gmra.mrb[140].mxu0 %vm1034_vm2, %v1032_v33 }
 0x6c0   : > { %3202 = vmatprep.mubr.bf16.mxu1 %v10245_v8  ;;  %3339 = vmatprep.mubr.bf16.mxu0 %v10245_v8 }
 0x6c7   : > { %5245 = vmatmul.mubr.msk.bf16.gmra.mrb[132].mxu1 %vm1034_vm2, %v1017_v6  ;;  %5254 = vmatmul.mubr.msk.bf16.gmra.mrb[144].mxu0 %vm1034_vm2, %v1033_v48 }
 0x6c8   : > { %4406 = vmatprep.mubr.bf16.mxu1 %v10253_v40  ;;  %4446 = vmatprep.mubr.bf16.mxu0 %v10254_v24 }
 0x6cb   : > { %v2666_v42 = vpop.f32.mrb[64].mxu1 }
 0x6cc   : > { %v2668_v16 = vpop.f32.mrb[65].mxu1 }
 0x6cd   : > { %v2669_v23 = vpop.f32.mrb[66].mxu1 }
 0x6ce   : > { %v2670_v4 = vpop.f32.mrb[67].mxu1 }
 0x6cf   : > { %v2706_v32 = vpop.f32.mrb[76].mxu0 }
 0x6d0   : > { %v2796_v41 = vcombine.low %v2666_v42, %v2706_v32  ;;  %v2708_v45 = vpop.f32.mrb[77].mxu0 }
 0x6d1   : > { %v2709_v63 = vpop.f32.mrb[78].mxu0 }
 0x6d2   : > { %v2710_v29 = vpop.f32.mrb[79].mxu0 }
 0x70b   : > { %v2746_v15 = vpop.f32.mrb[68].mxu1 }
 0x70c   : > { %v2748_v28 = vpop.f32.mrb[69].mxu1 }
 0x70d   : > { %v2749_v22 = vpop.f32.mrb[70].mxu1 }
 0x70e   : > { %v2750_v19 = vpop.f32.mrb[71].mxu1 }
 0x70f   : > { %v2786_v43 = vpop.f32.mrb[80].mxu0 }
 0x710   : > { %v2797_v21 = vcombine.low %v2746_v15, %v2786_v43  ;;  %v2788_v61 = vpop.f32.mrb[81].mxu0 }
 0x711   : > { %v2789_v13 = vpop.f32.mrb[82].mxu0 }
 0x712   : > { %v8278_v59 = vpack.c.bf16 %v2797_v21, %v2796_v41  ;;  %v2790_v53 = vpop.f32.mrb[83].mxu0 }
 0x714   : > { %10255 = vst [vmem:[#allocation28_spill] sm:$0xff] %v8278_v59 }
 0x722   : > { %v8280_v20 = vpop.f32.mrb[72].mxu1  ;;  %v8282_v37 = vpop.f32.mrb[84].mxu0 }
 0x723   : > { %v8284_v50 = vpop.f32.mrb[73].mxu1  ;;  %v8286_v55 = vpop.f32.mrb[85].mxu0 }
 0x724   : > { %v3350_v18 = vmax.f32 %v8280_v20, %v8284_v50  ;;  %v3398_v25 = vmax.f32 %v8282_v37, %v8286_v55  ;;  %v8292_v27 = vpop.f32.mrb[74].mxu1  ;;  %v8294_v49 = vpop.f32.mrb[86].mxu0 }
 0x725   : > { %v8296_v35 = vpop.f32.mrb[75].mxu1  ;;  %v8298_v60 = vpop.f32.mrb[87].mxu0 }
 0x726   : > { %v3353_v5 = vmax.f32 %v8292_v27, %v8296_v35  ;;  %v3401_v58 = vmax.f32 %v8294_v49, %v8298_v60  ;;  %3399 = vmax.xlane.f32.xlu1 %v3398_v25  ;;  %3351 = vmax.xlane.f32.xlu0 %v3350_v18 }
 0x72a   : > { %v8304_v17 = vpop.f32.mrb[88].mxu0  ;;  %3402 = vmax.xlane.f32.xlu0 %v3401_v58  ;;  %3354 = vmax.xlane.f32.xlu1 %v3353_v5  ;;  %v8306_v38 = vpop.f32.mrb[76].mxu1 }
 0x72b   : > { %v8308_v51 = vpop.f32.mrb[77].mxu1  ;;  %v8310_v39 = vpop.f32.mrb[89].mxu0 }
 0x72c   : > { %v3356_v62 = vmax.f32 %v8306_v38, %v8308_v51  ;;  %v3404_v54 = vmax.f32 %v8304_v17, %v8310_v39  ;;  %v8316_v46 = vpop.f32.mrb[78].mxu1  ;;  %v8318_v14 = vpop.f32.mrb[90].mxu0 }
 0x72d   : > { %v8320_v10 = vpop.f32.mrb[79].mxu1  ;;  %v8322_v34 = vpop.f32.mrb[91].mxu0 }
 0x72e   : > { %v3359_v12 = vmax.f32 %v8316_v46, %v8320_v10  ;;  %v3407_v7 = vmax.f32 %v8318_v14, %v8322_v34  ;;  %3357 = vmax.xlane.f32.xlu1 %v3356_v62 }
 0x730   : > { %3360 = vmax.xlane.f32.xlu0 %v3359_v12 }
 0x732   : > { %v8328_v52 = vpop.f32.mrb[92].mxu0  ;;  %3405 = vmax.xlane.f32.xlu1 %v3404_v54  ;;  %v8330_v9 = vpop.f32.mrb[80].mxu1 }
 0x733   : > { %v8332_v11 = vpop.f32.mrb[81].mxu1  ;;  %v8334_v2 = vpop.f32.mrb[93].mxu0 }
 0x734   : > { %v3362_v31 = vmax.f32 %v8330_v9, %v8332_v11  ;;  %v3410_v33 = vmax.f32 %v8328_v52, %v8334_v2  ;;  %v8340_v36 = vpop.f32.mrb[94].mxu0  ;;  %3408 = vmax.xlane.f32.xlu0 %v3407_v7  ;;  %v8342_v44 = vpop.f32.mrb[82].mxu1 }
 0x735   : > { %v8344_v3 = vpop.f32.mrb[83].mxu1  ;;  %v8346_v30 = vpop.f32.mrb[95].mxu0 }
 0x736   : > { %v3365_v6 = vmax.f32 %v8342_v44, %v8344_v3  ;;  %v3413_v48 = vmax.f32 %v8340_v36, %v8346_v30  ;;  %3363 = vmax.xlane.f32.xlu1 %v3362_v31 }
 0x738   : > { %3366 = vmax.xlane.f32.xlu0 %v3365_v6 }
 0x73a   : > { %v8352_v40 = vpop.f32.mrb[96].mxu0  ;;  %3411 = vmax.xlane.f32.xlu1 %v3410_v33  ;;  %v8354_v24 = vpop.f32.mrb[84].mxu1 }
 0x73b   : > { %v8356_v42 = vpop.f32.mrb[85].mxu1  ;;  %v8358_v16 = vpop.f32.mrb[97].mxu0 }
 0x73c   : > { %v3368_v23 = vmax.f32 %v8354_v24, %v8356_v42  ;;  %v3416_v4 = vmax.f32 %v8352_v40, %v8358_v16  ;;  %v8364_v32 = vpop.f32.mrb[98].mxu0  ;;  %3414 = vmax.xlane.f32.xlu0 %v3413_v48  ;;  %v8366_v41 = vpop.f32.mrb[86].mxu1 }
 0x73d   : > { %v8368_v45 = vpop.f32.mrb[87].mxu1  ;;  %v8370_v63 = vpop.f32.mrb[99].mxu0 }
 0x73e   : > { %v3371_v29 = vmax.f32 %v8366_v41, %v8368_v45  ;;  %v3419_v15 = vmax.f32 %v8364_v32, %v8370_v63  ;;  %3369 = vmax.xlane.f32.xlu1 %v3368_v23 }
 0x740   : > { %3372 = vmax.xlane.f32.xlu0 %v3371_v29 }
 0x742   : > { %v8376_v28 = vpop.f32.mrb[100].mxu0  ;;  %3417 = vmax.xlane.f32.xlu1 %v3416_v4  ;;  %v8378_v22 = vpop.f32.mrb[88].mxu1 }
 0x743   : > { %v8380_v19 = vpop.f32.mrb[89].mxu1  ;;  %v8382_v43 = vpop.f32.mrb[101].mxu0 }
 0x744   : > { %v3374_v21 = vmax.f32 %v8378_v22, %v8380_v19  ;;  %v3422_v61 = vmax.f32 %v8376_v28, %v8382_v43  ;;  %v8388_v13 = vpop.f32.mrb[102].mxu0  ;;  %3420 = vmax.xlane.f32.xlu0 %v3419_v15  ;;  %v8390_v53 = vpop.f32.mrb[90].mxu1 }
 0x745   : > { %v8392_v18 = vpop.f32.mrb[91].mxu1  ;;  %v8394_v25 = vpop.f32.mrb[103].mxu0 }
 0x746   : > { %v3377_v5 = vmax.f32 %v8390_v53, %v8392_v18  ;;  %v3425_v58 = vmax.f32 %v8388_v13, %v8394_v25  ;;  %3375 = vmax.xlane.f32.xlu1 %v3374_v21 }
 0x748   : > { %3378 = vmax.xlane.f32.xlu0 %v3377_v5 }
 0x74a   : > { %v8400_v62 = vpop.f32.mrb[104].mxu0  ;;  %3423 = vmax.xlane.f32.xlu1 %v3422_v61  ;;  %v8402_v54 = vpop.f32.mrb[92].mxu1 }
 0x74b   : > { %v8404_v12 = vpop.f32.mrb[93].mxu1  ;;  %v8406_v7 = vpop.f32.mrb[105].mxu0 }
 0x74c   : > { %v3380_v31 = vmax.f32 %v8402_v54, %v8404_v12  ;;  %v3428_v33 = vmax.f32 %v8400_v62, %v8406_v7  ;;  %v8412_v6 = vpop.f32.mrb[106].mxu0  ;;  %3426 = vmax.xlane.f32.xlu0 %v3425_v58  ;;  %v8414_v48 = vpop.f32.mrb[94].mxu1 }
 0x74d   : > { %v8416_v23 = vpop.f32.mrb[95].mxu1  ;;  %v8418_v4 = vpop.f32.mrb[107].mxu0 }
 0x74e   : > { %10256 = vst [vmem:[#allocation30_spill] sm:$0xff] %v8418_v4  ;;  %v3383_v29 = vmax.f32 %v8414_v48, %v8416_v23  ;;  %v3431_v15 = vmax.f32 %v8412_v6, %v8418_v4  ;;  %3381 = vmax.xlane.f32.xlu1 %v3380_v31 }
 0x750   : > { %3384 = vmax.xlane.f32.xlu0 %v3383_v29 }
 0x752   : > { %v8424_v21 = vpop.f32.mrb[108].mxu0  ;;  %3429 = vmax.xlane.f32.xlu1 %v3428_v33  ;;  %v8426_v61 = vpop.f32.mrb[96].mxu1 }
 0x753   : > { %10257 = vst [vmem:[#allocation33_spill] sm:$0xff] %v8424_v21  ;;  %10258 = vst [vmem:[#allocation34_spill] sm:$0xff] %v8426_v61  ;;  %v8428_v5 = vpop.f32.mrb[97].mxu1  ;;  %v8430_v58 = vpop.f32.mrb[109].mxu0 }
 0x754   : > { %10259 = vst [vmem:[#allocation29_spill] sm:$0xff] %v8428_v5  ;;  %10260 = vst [vmem:[#allocation31_spill] sm:$0xff] %v8430_v58  ;;  %v3386_v59 = vmax.f32 %v8426_v61, %v8428_v5  ;;  %v3434_v26 = vmax.f32 %v8424_v21, %v8430_v58  ;;  %v8436_v8 = vpop.f32.mrb[110].mxu0  ;;  %3432 = vmax.xlane.f32.xlu0 %v3431_v15  ;;  %v8438_v31 = vpop.f32.mrb[98].mxu1 }
 0x755   : > { %10261 = vst [vmem:[#allocation40_spill] sm:$0xff] %v8436_v8  ;;  %10262 = vst [vmem:[#allocation35_spill] sm:$0xff] %v8438_v31  ;;  %v8440_v29 = vpop.f32.mrb[99].mxu1  ;;  %v8442_v33 = vpop.f32.mrb[111].mxu0 }
 0x756   : > { %10263 = vst [vmem:[#allocation36_spill] sm:$0xff] %v8440_v29  ;;  %10264 = vst [vmem:[#allocation38_spill] sm:$0xff] %v8442_v33  ;;  %v3389_v1 = vmax.f32 %v8438_v31, %v8440_v29  ;;  %v3437_v57 = vmax.f32 %v8436_v8, %v8442_v33  ;;  %3387 = vmax.xlane.f32.xlu1 %v3386_v59 }
 0x758   : > { %3390 = vmax.xlane.f32.xlu0 %v3389_v1 }
 0x75a   : > { %v8448_v0 = vpop.f32.mrb[112].mxu0  ;;  %3435 = vmax.xlane.f32.xlu1 %v3434_v26  ;;  %v8450_v56 = vpop.f32.mrb[100].mxu1 }
 0x75b   : > { %10265 = vst [vmem:[#allocation41_spill] sm:$0xff] %v8448_v0  ;;  %10266 = vst [vmem:[#allocation42_spill] sm:$0xff] %v8450_v56  ;;  %v8452_v15 = vpop.f32.mrb[101].mxu1  ;;  %v8454_v47 = vpop.f32.mrb[113].mxu0 }
 0x75c   : > { %10267 = vst [vmem:[#allocation37_spill] sm:$0xff] %v8452_v15  ;;  %10268 = vst [vmem:[#allocation39_spill] sm:$0xff] %v8454_v47  ;;  %v3392_v58 = vmax.f32 %v8450_v56, %v8452_v15  ;;  %v3440_v21 = vmax.f32 %v8448_v0, %v8454_v47  ;;  %v8460_v29 = vpop.f32.mrb[114].mxu0  ;;  %3438 = vmax.xlane.f32.xlu0 %v3437_v57  ;;  %v8462_v59 = vpop.f32.mrb[102].mxu1 }
 0x75d   : > { %10269 = vst [vmem:[#allocation48_spill] sm:$0xff] %v8460_v29  ;;  %10270 = vst [vmem:[#allocation43_spill] sm:$0xff] %v8462_v59  ;;  %v8464_v1 = vpop.f32.mrb[103].mxu1  ;;  %v8466_v26 = vpop.f32.mrb[115].mxu0 }
 0x75e   : > { %10271 = vst [vmem:[#allocation44_spill] sm:$0xff] %v8464_v1  ;;  %10272 = vst [vmem:[#allocation46_spill] sm:$0xff] %v8466_v26  ;;  %v3395_v33 = vmax.f32 %v8462_v59, %v8464_v1  ;;  %v3443_v8 = vmax.f32 %v8460_v29, %v8466_v26  ;;  %3393 = vmax.xlane.f32.xlu1 %v3392_v58 }
 0x760   : > { %3396 = vmax.xlane.f32.xlu0 %v3395_v33 }
 0x762   : > { %v8472_v15 = vpop.f32.mrb[116].mxu0  ;;  %3441 = vmax.xlane.f32.xlu1 %v3440_v21  ;;  %v8474_v47 = vpop.f32.mrb[104].mxu1 }
 0x763   : > { %10273 = vst [vmem:[#allocation49_spill] sm:$0xff] %v8472_v15  ;;  %10274 = vst [vmem:[#allocation50_spill] sm:$0xff] %v8474_v47  ;;  %v8476_v57 = vpop.f32.mrb[105].mxu1  ;;  %v8478_v0 = vpop.f32.mrb[117].mxu0 }
 0x764   : > { %10275 = vst [vmem:[#allocation45_spill] sm:$0xff] %v8476_v57  ;;  %10276 = vst [vmem:[#allocation47_spill] sm:$0xff] %v8478_v0  ;;  %v3446_v56 = vmax.f32 %v8474_v47, %v8476_v57  ;;  %v3494_v1 = vmax.f32 %v8472_v15, %v8478_v0  ;;  %v8484_v59 = vpop.f32.mrb[118].mxu0  ;;  %3444 = vmax.xlane.f32.xlu0 %v3443_v8  ;;  %v8486_v58 = vpop.f32.mrb[106].mxu1 }
 0x765   : > { %10277 = vst [vmem:[#allocation56_spill] sm:$0xff] %v8484_v59  ;;  %10278 = vst [vmem:[#allocation51_spill] sm:$0xff] %v8486_v58  ;;  %v8488_v33 = vpop.f32.mrb[107].mxu1  ;;  %v8490_v21 = vpop.f32.mrb[119].mxu0 }
 0x766   : > { %10279 = vst [vmem:[#allocation52_spill] sm:$0xff] %v8488_v33  ;;  %10280 = vst [vmem:[#allocation54_spill] sm:$0xff] %v8490_v21  ;;  %v3449_v26 = vmax.f32 %v8486_v58, %v8488_v33  ;;  %v3497_v29 = vmax.f32 %v8484_v59, %v8490_v21  ;;  %3447 = vmax.xlane.f32.xlu1 %v3446_v56 }
 0x768   : > { %3450 = vmax.xlane.f32.xlu0 %v3449_v26 }
 0x76a   : > { %v8496_v57 = vpop.f32.mrb[120].mxu0  ;;  %3495 = vmax.xlane.f32.xlu1 %v3494_v1  ;;  %v8498_v0 = vpop.f32.mrb[108].mxu1 }
 0x76b   : > { %10281 = vst [vmem:[#allocation57_spill] sm:$0xff] %v8496_v57  ;;  %10282 = vst [vmem:[#allocation58_spill] sm:$0xff] %v8498_v0  ;;  %v8500_v8 = vpop.f32.mrb[109].mxu1  ;;  %v8502_v15 = vpop.f32.mrb[121].mxu0 }
 0x76c   : > { %10283 = vst [vmem:[#allocation21_spill] sm:$0xff] %v8500_v8  ;;  %10284 = vst [vmem:[#allocation53_spill] sm:$0xff] %v8502_v15  ;;  %v3452_v47 = vmax.f32 %v8498_v0, %v8500_v8  ;;  %v3500_v33 = vmax.f32 %v8496_v57, %v8502_v15  ;;  %v8508_v58 = vpop.f32.mrb[122].mxu0  ;;  %3498 = vmax.xlane.f32.xlu0 %v3497_v29  ;;  %v8510_v56 = vpop.f32.mrb[110].mxu1 }
 0x76d   : > { %10285 = vst [vmem:[#allocation64_spill] sm:$0xff] %v8508_v58  ;;  %10286 = vst [vmem:[#allocation59_spill] sm:$0xff] %v8510_v56  ;;  %v8512_v26 = vpop.f32.mrb[111].mxu1  ;;  %v8514_v1 = vpop.f32.mrb[123].mxu0 }
 0x76e   : > { %10287 = vst [vmem:[#allocation19_spill] sm:$0xff] %v8512_v26  ;;  %10288 = vst [vmem:[#allocation65_spill] sm:$0xff] %v8514_v1  ;;  %v3455_v21 = vmax.f32 %v8510_v56, %v8512_v26  ;;  %v3503_v59 = vmax.f32 %v8508_v58, %v8514_v1  ;;  %3453 = vmax.xlane.f32.xlu1 %v3452_v47 }
 0x770   : > { %3456 = vmax.xlane.f32.xlu0 %v3455_v21 }
 0x772   : > { %v8520_v8 = vpop.f32.mrb[124].mxu0  ;;  %3501 = vmax.xlane.f32.xlu1 %v3500_v33  ;;  %v8522_v15 = vpop.f32.mrb[112].mxu1 }
 0x773   : > { %10289 = vst [vmem:[#allocation66_spill] sm:$0xff] %v8520_v8  ;;  %10290 = vst [vmem:[#allocation55_spill] sm:$0xff] %v8522_v15  ;;  %v8524_v29 = vpop.f32.mrb[113].mxu1  ;;  %v8526_v57 = vpop.f32.mrb[125].mxu0 }
 0x774   : > { %10291 = vst [vmem:[#allocation20_spill] sm:$0xff] %v8524_v29  ;;  %10292 = vst [vmem:[#allocation67_spill] sm:$0xff] %v8526_v57  ;;  %v3458_v0 = vmax.f32 %v8522_v15, %v8524_v29  ;;  %v3506_v26 = vmax.f32 %v8520_v8, %v8526_v57  ;;  %v8532_v56 = vpop.f32.mrb[126].mxu0  ;;  %3504 = vmax.xlane.f32.xlu0 %v3503_v59  ;;  %v8534_v47 = vpop.f32.mrb[114].mxu1 }
 0x775   : > { %10293 = vst [vmem:[#allocation72_spill] sm:$0xff] %v8532_v56  ;;  %10294 = vst [vmem:[#allocation62_spill] sm:$0xff] %v8534_v47  ;;  %v8536_v21 = vpop.f32.mrb[115].mxu1  ;;  %v8538_v33 = vpop.f32.mrb[127].mxu0 }
 0x776   : > { %10295 = vst [vmem:[#allocation60_spill] sm:$0xff] %v8536_v21  ;;  %10296 = vst [vmem:[#allocation74_spill] sm:$0xff] %v8538_v33  ;;  %v3461_v1 = vmax.f32 %v8534_v47, %v8536_v21  ;;  %v3509_v58 = vmax.f32 %v8532_v56, %v8538_v33  ;;  %3459 = vmax.xlane.f32.xlu1 %v3458_v0 }
 0x778   : > { %3462 = vmax.xlane.f32.xlu0 %v3461_v1 }
 0x77a   : > { %v8544_v29 = vpop.f32.mrb[128].mxu0  ;;  %3507 = vmax.xlane.f32.xlu1 %v3506_v26  ;;  %v8546_v57 = vpop.f32.mrb[116].mxu1 }
 0x77b   : > { %10297 = vst [vmem:[#allocation63_spill] sm:$0xff] %v8544_v29  ;;  %10298 = vst [vmem:[#allocation61_spill] sm:$0xff] %v8546_v57  ;;  %v8548_v59 = vpop.f32.mrb[117].mxu1  ;;  %v8550_v8 = vpop.f32.mrb[129].mxu0 }
 0x77c   : > { %10299 = vst [vmem:[#allocation70_spill] sm:$0xff] %v8548_v59  ;;  %10300 = vst [vmem:[#allocation75_spill] sm:$0xff] %v8550_v8  ;;  %v3464_v15 = vmax.f32 %v8546_v57, %v8548_v59  ;;  %v3512_v21 = vmax.f32 %v8544_v29, %v8550_v8  ;;  %v8556_v47 = vpop.f32.mrb[130].mxu0  ;;  %3510 = vmax.xlane.f32.xlu0 %v3509_v58  ;;  %v8558_v0 = vpop.f32.mrb[118].mxu1 }
 0x77d   : > { %10301 = vst [vmem:[#allocation68_spill] sm:$0xff] %v8556_v47  ;;  %10302 = vst [vmem:[#allocation73_spill] sm:$0xff] %v8558_v0  ;;  %v8560_v1 = vpop.f32.mrb[119].mxu1  ;;  %v8562_v26 = vpop.f32.mrb[131].mxu0 }
 0x77e   : > { %10303 = vst [vmem:[#allocation81_spill] sm:$0xff] %v8560_v1  ;;  %10304 = vst [vmem:[#allocation80_spill] sm:$0xff] %v8562_v26  ;;  %v3467_v33 = vmax.f32 %v8558_v0, %v8560_v1  ;;  %v3515_v56 = vmax.f32 %v8556_v47, %v8562_v26  ;;  %3465 = vmax.xlane.f32.xlu1 %v3464_v15 }
 0x780   : > { %3468 = vmax.xlane.f32.xlu0 %v3467_v33 }
 0x782   : > { %v8568_v59 = vpop.f32.mrb[132].mxu0  ;;  %3513 = vmax.xlane.f32.xlu1 %v3512_v21  ;;  %v8570_v8 = vpop.f32.mrb[120].mxu1 }
 0x783   : > { %10305 = vst [vmem:[#allocation71_spill] sm:$0xff] %v8568_v59  ;;  %10306 = vst [vmem:[#allocation69_spill] sm:$0xff] %v8570_v8  ;;  %v8572_v58 = vpop.f32.mrb[121].mxu1  ;;  %v8574_v29 = vpop.f32.mrb[133].mxu0 }
 0x784   : > { %10307 = vst [vmem:[#allocation82_spill] sm:$0xff] %v8572_v58  ;;  %10308 = vst [vmem:[#allocation87_spill] sm:$0xff] %v8574_v29  ;;  %v3470_v57 = vmax.f32 %v8570_v8, %v8572_v58  ;;  %v3518_v1 = vmax.f32 %v8568_v59, %v8574_v29  ;;  %v8580_v0 = vpop.f32.mrb[134].mxu0  ;;  %3516 = vmax.xlane.f32.xlu0 %v3515_v56  ;;  %v8582_v15 = vpop.f32.mrb[122].mxu1 }
 0x785   : > { %10309 = vst [vmem:[#allocation78_spill] sm:$0xff] %v8580_v0  ;;  %10310 = vst [vmem:[#allocation76_spill] sm:$0xff] %v8582_v15  ;;  %v8584_v33 = vpop.f32.mrb[123].mxu1  ;;  %v8586_v21 = vpop.f32.mrb[135].mxu0 }
 0x786   : > { %10311 = vst [vmem:[#allocation89_spill] sm:$0xff] %v8584_v33  ;;  %10312 = vst [vmem:[#allocation88_spill] sm:$0xff] %v8586_v21  ;;  %v3473_v26 = vmax.f32 %v8582_v15, %v8584_v33  ;;  %v3521_v47 = vmax.f32 %v8580_v0, %v8586_v21  ;;  %3471 = vmax.xlane.f32.xlu1 %v3470_v57 }
 0x788   : > { %3474 = vmax.xlane.f32.xlu0 %v3473_v26 }
 0x78a   : > { %v8592_v58 = vpop.f32.mrb[136].mxu0  ;;  %3519 = vmax.xlane.f32.xlu1 %v3518_v1  ;;  %v8594_v29 = vpop.f32.mrb[124].mxu1 }
 0x78b   : > { %10313 = vst [vmem:[#allocation79_spill] sm:$0xff] %v8592_v58  ;;  %10314 = vst [vmem:[#allocation77_spill] sm:$0xff] %v8594_v29  ;;  %v8596_v56 = vpop.f32.mrb[125].mxu1  ;;  %v8598_v59 = vpop.f32.mrb[137].mxu0 }
 0x78c   : > { %10315 = vst [vmem:[#allocation90_spill] sm:$0xff] %v8596_v56  ;;  %10316 = vst [vmem:[#allocation95_spill] sm:$0xff] %v8598_v59  ;;  %v3476_v8 = vmax.f32 %v8594_v29, %v8596_v56  ;;  %v3524_v33 = vmax.f32 %v8592_v58, %v8598_v59  ;;  %v8604_v15 = vpop.f32.mrb[138].mxu0  ;;  %3522 = vmax.xlane.f32.xlu0 %v3521_v47  ;;  %v8606_v57 = vpop.f32.mrb[126].mxu1 }
 0x78d   : > { %10317 = vst [vmem:[#allocation85_spill] sm:$0xff] %v8604_v15  ;;  %10318 = vst [vmem:[#allocation83_spill] sm:$0xff] %v8606_v57  ;;  %v8608_v26 = vpop.f32.mrb[127].mxu1  ;;  %v8610_v1 = vpop.f32.mrb[139].mxu0 }
 0x78e   : > { %10319 = vst [vmem:[#allocation86_spill] sm:$0xff] %v8608_v26  ;;  %10320 = vst [vmem:[#allocation84_spill] sm:$0xff] %v8610_v1  ;;  %v3479_v21 = vmax.f32 %v8606_v57, %v8608_v26  ;;  %v3527_v0 = vmax.f32 %v8604_v15, %v8610_v1  ;;  %3477 = vmax.xlane.f32.xlu1 %v3476_v8 }
 0x790   : > { %3480 = vmax.xlane.f32.xlu0 %v3479_v21 }
 0x792   : > { %v8616_v56 = vpop.f32.mrb[140].mxu0  ;;  %3525 = vmax.xlane.f32.xlu1 %v3524_v33  ;;  %v8618_v59 = vpop.f32.mrb[128].mxu1 }
 0x793   : > { %10321 = vst [vmem:[#allocation91_spill] sm:$0xff] %v8616_v56  ;;  %10322 = vst [vmem:[#allocation97_spill] sm:$0xff] %v8618_v59  ;;  %v8620_v47 = vpop.f32.mrb[129].mxu1  ;;  %v8622_v58 = vpop.f32.mrb[141].mxu0 }
 0x794   : > { %10323 = vst [vmem:[#allocation98_spill] sm:$0xff] %v8620_v47  ;;  %10324 = vst [vmem:[#allocation93_spill] sm:$0xff] %v8622_v58  ;;  %v3482_v29 = vmax.f32 %v8618_v59, %v8620_v47  ;;  %v3530_v26 = vmax.f32 %v8616_v56, %v8622_v58  ;;  %v8628_v57 = vpop.f32.mrb[142].mxu0  ;;  %3528 = vmax.xlane.f32.xlu0 %v3527_v0  ;;  %v8630_v8 = vpop.f32.mrb[130].mxu1 }
 0x795   : > { %10325 = vst [vmem:[#allocation96_spill] sm:$0xff] %v8628_v57  ;;  %10326 = vst [vmem:[#allocation94_spill] sm:$0xff] %v8630_v8  ;;  %v8632_v21 = vpop.f32.mrb[131].mxu1  ;;  %v8634_v33 = vpop.f32.mrb[143].mxu0 }
 0x796   : > { %10327 = vst [vmem:[#allocation104_spill] sm:$0xff] %v8632_v21  ;;  %10328 = vst [vmem:[#allocation92_spill] sm:$0xff] %v8634_v33  ;;  %v3485_v1 = vmax.f32 %v8630_v8, %v8632_v21  ;;  %v3533_v15 = vmax.f32 %v8628_v57, %v8634_v33  ;;  %3483 = vmax.xlane.f32.xlu1 %v3482_v29 }
 0x798   : > { %3486 = vmax.xlane.f32.xlu0 %v3485_v1 }
 0x79a   : > { %v8640_v47 = vpop.f32.mrb[144].mxu0  ;;  %3531 = vmax.xlane.f32.xlu1 %v3530_v26  ;;  %v8642_v58 = vpop.f32.mrb[132].mxu1 }
 0x79b   : > { %10329 = vst [vmem:[#allocation103_spill] sm:$0xff] %v8640_v47  ;;  %10330 = vst [vmem:[#allocation101_spill] sm:$0xff] %v8642_v58  ;;  %v8644_v0 = vpop.f32.mrb[133].mxu1  ;;  %v8646_v56 = vpop.f32.mrb[145].mxu0 }
 0x79c   : > { %10331 = vst [vmem:[#allocation100_spill] sm:$0xff] %v8644_v0  ;;  %10332 = vst [vmem:[#allocation99_spill] sm:$0xff] %v8646_v56  ;;  %v3488_v59 = vmax.f32 %v8642_v58, %v8644_v0  ;;  %v3536_v21 = vmax.f32 %v8640_v47, %v8646_v56  ;;  %v8652_v8 = vpop.f32.mrb[146].mxu0  ;;  %3534 = vmax.xlane.f32.xlu0 %v3533_v15  ;;  %v8654_v29 = vpop.f32.mrb[134].mxu1 }
 0x79d   : > { %10333 = vst [vmem:[#allocation105_spill] sm:$0xff] %v8654_v29  ;;  %v8656_v1 = vpop.f32.mrb[135].mxu1  ;;  %v8658_v26 = vpop.f32.mrb[147].mxu0 }
 0x79e   : > { %10334 = vst [vmem:[#allocation12_spill] sm:$0xff] %v8656_v1  ;;  %10335 = vst [vmem:[#allocation22_spill] sm:$0xff] %v8658_v26  ;;  %v3491_v33 = vmax.f32 %v8654_v29, %v8656_v1  ;;  %v3539_v57 = vmax.f32 %v8652_v8, %v8658_v26  ;;  %3489 = vmax.xlane.f32.xlu1 %v3488_v59 }
 0x7a0   : > { %3492 = vmax.xlane.f32.xlu0 %v3491_v33 }
 0x7a2   : > { %3537 = vmax.xlane.f32.xlu1 %v3536_v21 }
 0x7a4   : > { %3540 = vmax.xlane.f32.xlu0 %v3539_v57 }
 0x7b3   : > { %v3400_v56 = vpop.xlane.xlu1 %3399  ;;  %v3352_v47 = vpop.xlane.xlu0 %3351 }
 0x7b4   : > { %v3574_v15 = vsub.f32 %v8282_v37, %v3400_v56  ;;  %v3575_v0 = vsub.f32 %v8286_v55, %v3400_v56  ;;  %v3542_v58 = vsub.f32 %v8280_v20, %v3352_v47  ;;  %v3543_v31 = vsub.f32 %v8284_v50, %v3352_v47 }
 0x7b6   : > { %v3734_v5 = vmul.f32 1.442695, %v3574_v15  ;;  %v3736_v61 = vmul.f32 1.442695, %v3575_v0  ;;  %v3670_v1 = vmul.f32 1.442695, %v3542_v58 }
 0x7b7   : > { %v3672_v29 = vmul.f32 1.442695, %v3543_v31  ;;  %v3403_v4 = vpop.xlane.xlu0 %3402  ;;  %v3355_v26 = vpop.xlane.xlu1 %3354 }
 0x7b8   : > { %6082 = vpow2.f32 %v3734_v5  ;;  %v3576_v59 = vsub.f32 %v8294_v49, %v3403_v4  ;;  %v3577_v57 = vsub.f32 %v8298_v60, %v3403_v4  ;;  %v3544_v21 = vsub.f32 %v8292_v27, %v3355_v26 }
 0x7b9   : > { %6084 = vpow2.f32 %v3736_v61  ;;  %v3545_v37 = vsub.f32 %v8296_v35, %v3355_v26 }
 0x7ba   : > { %6086 = vpow2.f32 %v3670_v1  ;;  %v3738_v20 = vmul.f32 1.442695, %v3576_v59  ;;  %v3740_v55 = vmul.f32 1.442695, %v3577_v57  ;;  %v3674_v50 = vmul.f32 1.442695, %v3544_v21 }
 0x7bb   : > { %6088 = vpow2.f32 %v3672_v29  ;;  %v3676_v56 = vmul.f32 1.442695, %v3545_v37  ;;  %v3358_v58 = vpop.xlane.xlu1 %3357 }
 0x7bc   : > { %6090 = vpow2.f32 %v3738_v20  ;;  %v3546_v31 = vsub.f32 %v8306_v38, %v3358_v58  ;;  %v3547_v5 = vsub.f32 %v8308_v51, %v3358_v58 }
 0x7bd   : > { %6092 = vpow2.f32 %v3740_v55  ;;  %v3361_v49 = vpop.xlane.xlu0 %3360 }
 0x7be   : > { %6094 = vpow2.f32 %v3674_v50  ;;  %v3678_v60 = vmul.f32 1.442695, %v3546_v31  ;;  %v3680_v27 = vmul.f32 1.442695, %v3547_v5  ;;  %v3548_v4 = vsub.f32 %v8316_v46, %v3361_v49 }
 0x7bf   : > { %6096 = vpow2.f32 %v3676_v56  ;;  %v3549_v35 = vsub.f32 %v8320_v10, %v3361_v49  ;;  %v3406_v61 = vpop.xlane.xlu1 %3405 }
 0x7c0   : > { %6098 = vpow2.f32 %v3678_v60  ;;  %v3682_v47 = vmul.f32 1.442695, %v3548_v4  ;;  %v3578_v33 = vsub.f32 %v8304_v17, %v3406_v61  ;;  %v3579_v0 = vsub.f32 %v8310_v39, %v3406_v61 }
 0x7c1   : > { %6100 = vpow2.f32 %v3680_v27  ;;  %v3684_v38 = vmul.f32 1.442695, %v3549_v35  ;;  %v3409_v51 = vpop.xlane.xlu0 %3408 }
 0x7c2   : > { %v8678_v29 = vpop.eup %6082  ;;  %6102 = vpow2.f32 %v3682_v47  ;;  %v3742_v1 = vmul.f32 1.442695, %v3578_v33  ;;  %v3744_v26 = vmul.f32 1.442695, %v3579_v0  ;;  %v3580_v46 = vsub.f32 %v8318_v14, %v3409_v51 }
 0x7c3   : > { %v8681_v15 = vpop.eup %6084  ;;  %6104 = vpow2.f32 %v3684_v38  ;;  %v3581_v10 = vsub.f32 %v8322_v34, %v3409_v51  ;;  %v3364_v59 = vpop.xlane.xlu1 %3363 }
 0x7c4   : > { %v8684_v57 = vpop.eup %6086  ;;  %6106 = vpow2.f32 %v3742_v1  ;;  %v3746_v17 = vmul.f32 1.442695, %v3580_v46  ;;  %v3550_v39 = vsub.f32 %v8330_v9, %v3364_v59  ;;  %v3551_v21 = vsub.f32 %v8332_v11, %v3364_v59 }
 0x7c5   : > { %v8688_v37 = vpop.eup %6088  ;;  %6108 = vpow2.f32 %v3744_v26  ;;  %v3748_v20 = vmul.f32 1.442695, %v3581_v10  ;;  %v3367_v55 = vpop.xlane.xlu0 %3366 }
 0x7c6   : > { %v8690_v14 = vpop.eup %6090  ;;  %6110 = vpow2.f32 %v3746_v17  ;;  %v3686_v50 = vmul.f32 1.442695, %v3550_v39  ;;  %v3688_v56 = vmul.f32 1.442695, %v3551_v21  ;;  %v3552_v34 = vsub.f32 %v8342_v44, %v3367_v55 }
 0x7c7   : > { %v8693_v58 = vpop.eup %6092  ;;  %6112 = vpow2.f32 %v3748_v20  ;;  %v3553_v31 = vsub.f32 %v8344_v3, %v3367_v55  ;;  %v3926_v9 = vadd.f32 %v8688_v37, %v8684_v57  ;;  %v3412_v11 = vpop.xlane.xlu1 %3411 }
 0x7c8   : > { %v8698_v5 = vpop.eup %6094  ;;  %6114 = vpow2.f32 %v3686_v50  ;;  %v3690_v49 = vmul.f32 1.442695, %v3552_v34  ;;  %v3582_v60 = vsub.f32 %v8328_v52, %v3412_v11  ;;  %v3583_v27 = vsub.f32 %v8334_v2, %v3412_v11 }
 0x7c9   : > { %v8702_v4 = vpop.eup %6096  ;;  %6116 = vpow2.f32 %v3688_v56  ;;  %v3692_v44 = vmul.f32 1.442695, %v3553_v31  ;;  %3927 = vadd.xlane.f32.xlu1 %v3926_v9  ;;  %v3415_v35 = vpop.xlane.xlu0 %3414  ;;  %v3974_v2 = vadd.f32 %v8681_v15, %v8678_v29  ;;  %v3977_v50 = vadd.f32 %v8693_v58, %v8690_v14 }
 0x7ca   : > { %v8704_v61 = vpop.eup %6098  ;;  %6118 = vpow2.f32 %v3690_v49  ;;  %v3750_v3 = vmul.f32 1.442695, %v3582_v60  ;;  %v3752_v47 = vmul.f32 1.442695, %v3583_v27  ;;  %v3584_v33 = vsub.f32 %v8340_v36, %v3415_v35 }
 0x7cb   : > { %v8707_v0 = vpop.eup %6100  ;;  %6120 = vpow2.f32 %v3692_v44  ;;  %v3585_v52 = vsub.f32 %v8346_v30, %v3415_v35  ;;  %v3929_v38 = vadd.f32 %v8702_v4, %v8698_v5  ;;  %v3370_v51 = vpop.xlane.xlu1 %3369 }
 0x7cc   : > { %v8714_v1 = vpop.eup %6102  ;;  %6122 = vpow2.f32 %v3750_v3  ;;  %v3754_v26 = vmul.f32 1.442695, %v3584_v33  ;;  %v3554_v46 = vsub.f32 %v8354_v24, %v3370_v51  ;;  %v3555_v36 = vsub.f32 %v8356_v42, %v3370_v51 }
 0x7cd   : > { %v8718_v10 = vpop.eup %6104  ;;  %6124 = vpow2.f32 %v3752_v47  ;;  %v3756_v59 = vmul.f32 1.442695, %v3585_v52  ;;  %3975 = vadd.xlane.f32.xlu1 %v3974_v2  ;;  %3930 = vadd.xlane.f32.xlu0 %v3929_v38  ;;  %v3373_v30 = vpop.xlane.xlu0 %3372  ;;  %v3932_v17 = vadd.f32 %v8707_v0, %v8704_v61 }
 0x7ce   : > { %v8722_v39 = vpop.eup %6106  ;;  %6126 = vpow2.f32 %v3754_v26  ;;  %v3694_v21 = vmul.f32 1.442695, %v3554_v46  ;;  %v3696_v20 = vmul.f32 1.442695, %v3555_v36  ;;  %v3556_v55 = vsub.f32 %v8366_v41, %v3373_v30 }
 0x7cf   : > { %v8725_v24 = vpop.eup %6108  ;;  %6128 = vpow2.f32 %v3756_v59  ;;  %v3557_v42 = vsub.f32 %v8368_v45, %v3373_v30  ;;  %v3418_v56 = vpop.xlane.xlu1 %3417  ;;  %v3935_v47 = vadd.f32 %v8718_v10, %v8714_v1 }
 0x7d0   : > { %v8730_v34 = vpop.eup %6110  ;;  %6130 = vpow2.f32 %v3694_v21  ;;  %v3698_v31 = vmul.f32 1.442695, %v3556_v55  ;;  %v3586_v9 = vsub.f32 %v8352_v40, %v3418_v56  ;;  %v3587_v11 = vsub.f32 %v8358_v16, %v3418_v56 }
 0x7d1   : > { %v8734_v49 = vpop.eup %6112  ;;  %6132 = vpow2.f32 %v3696_v20  ;;  %v3700_v41 = vmul.f32 1.442695, %v3557_v42  ;;  %3933 = vadd.xlane.f32.xlu1 %v3932_v17  ;;  %3978 = vadd.xlane.f32.xlu0 %v3977_v50  ;;  %v3421_v60 = vpop.xlane.xlu0 %3420  ;;  %v3980_v45 = vadd.f32 %v8725_v24, %v8722_v39 }
 0x7d2   : > { %v8738_v27 = vpop.eup %6114  ;;  %6134 = vpow2.f32 %v3698_v31  ;;  %v3758_v44 = vmul.f32 1.442695, %v3586_v9  ;;  %v3760_v35 = vmul.f32 1.442695, %v3587_v11  ;;  %v3588_v3 = vsub.f32 %v8364_v32, %v3421_v60 }
 0x7d3   : > { %v8741_v40 = vpop.eup %6116  ;;  %6136 = vpow2.f32 %v3700_v41  ;;  %v3589_v16 = vsub.f32 %v8370_v63, %v3421_v60  ;;  %v3376_v33 = vpop.xlane.xlu1 %3375  ;;  %v3983_v21 = vadd.f32 %v8734_v49, %v8730_v34 }
 0x7d4   : > { %v8746_v52 = vpop.eup %6118  ;;  %6138 = vpow2.f32 %v3758_v44  ;;  %v3762_v2 = vmul.f32 1.442695, %v3588_v3  ;;  %v3558_v38 = vsub.f32 %v8378_v22, %v3376_v33  ;;  %v3559_v51 = vsub.f32 %v8380_v19, %v3376_v33 }
 0x7d5   : > { %v8750_v26 = vpop.eup %6120  ;;  %6140 = vpow2.f32 %v3760_v35  ;;  %v3764_v32 = vmul.f32 1.442695, %v3589_v16  ;;  %3981 = vadd.xlane.f32.xlu1 %v3980_v45  ;;  %3936 = vadd.xlane.f32.xlu0 %v3935_v47  ;;  %v3379_v46 = vpop.xlane.xlu0 %3378  ;;  %v3938_v63 = vadd.f32 %v8741_v40, %v8738_v27 }
 0x7d6   : > { %v8754_v36 = vpop.eup %6122  ;;  %6142 = vpow2.f32 %v3762_v2  ;;  %v3702_v59 = vmul.f32 1.442695, %v3558_v38  ;;  %v3704_v30 = vmul.f32 1.442695, %v3559_v51  ;;  %v3560_v17 = vsub.f32 %v8390_v53, %v3379_v46 }
 0x7d7   : > { %v8757_v22 = vpop.eup %6124  ;;  %6144 = vpow2.f32 %v3764_v32  ;;  %v3561_v19 = vsub.f32 %v8392_v18, %v3379_v46  ;;  %v3424_v20 = vpop.xlane.xlu1 %3423  ;;  %v3941_v44 = vadd.f32 %v8750_v26, %v8746_v52 }
 0x7d8   : > { %v8762_v55 = vpop.eup %6126  ;;  %6146 = vpow2.f32 %v3702_v59  ;;  %v3706_v42 = vmul.f32 1.442695, %v3560_v17  ;;  %v3590_v50 = vsub.f32 %v8376_v28, %v3424_v20  ;;  %v3591_v56 = vsub.f32 %v8382_v43, %v3424_v20 }
 0x7d9   : > { %v8766_v31 = vpop.eup %6128  ;;  %6148 = vpow2.f32 %v3704_v30  ;;  %v3708_v53 = vmul.f32 1.442695, %v3561_v19  ;;  %3939 = vadd.xlane.f32.xlu1 %v3938_v63  ;;  %3984 = vadd.xlane.f32.xlu0 %v3983_v21  ;;  %v3427_v9 = vpop.xlane.xlu0 %3426  ;;  %v3986_v18 = vadd.f32 %v8757_v22, %v8754_v36 }
 0x7da   : > { %v8770_v11 = vpop.eup %6130  ;;  %6150 = vpow2.f32 %v3706_v42  ;;  %v3766_v41 = vmul.f32 1.442695, %v3590_v50  ;;  %v3768_v60 = vmul.f32 1.442695, %v3591_v56  ;;  %v3592_v45 = vsub.f32 %v8388_v13, %v3427_v9 }
 0x7db   : > { %v8773_v28 = vpop.eup %6132  ;;  %6152 = vpow2.f32 %v3708_v53  ;;  %v3593_v43 = vsub.f32 %v8394_v25, %v3427_v9  ;;  %v3382_v35 = vpop.xlane.xlu1 %3381  ;;  %v3989_v59 = vadd.f32 %v8766_v31, %v8762_v55 }
 0x7dc   : > { %v8778_v3 = vpop.eup %6134  ;;  %6154 = vpow2.f32 %v3766_v41  ;;  %v3770_v16 = vmul.f32 1.442695, %v3592_v45  ;;  %v3562_v47 = vsub.f32 %v8402_v54, %v3382_v35  ;;  %v3563_v33 = vsub.f32 %v8404_v12, %v3382_v35  ;;  %v10337_v35 = vld [vmem:[#allocation34_spill] sm:$0xff] }
 0x7dd   : > { %v8782_v2 = vpop.eup %6136  ;;  %6156 = vpow2.f32 %v3768_v60  ;;  %v3772_v13 = vmul.f32 1.442695, %v3593_v43  ;;  %3987 = vadd.xlane.f32.xlu1 %v3986_v18  ;;  %3942 = vadd.xlane.f32.xlu0 %v3941_v44  ;;  %v3385_v38 = vpop.xlane.xlu0 %3384  ;;  %v3944_v25 = vadd.f32 %v8773_v28, %v8770_v11 }
 0x7de   : > { %v8786_v51 = vpop.eup %6138  ;;  %6158 = vpow2.f32 %v3770_v16  ;;  %v3710_v32 = vmul.f32 1.442695, %v3562_v47  ;;  %v3712_v46 = vmul.f32 1.442695, %v3563_v33  ;;  %v3564_v63 = vsub.f32 %v8414_v48, %v3385_v38  ;;  %v10338_v47 = vld [vmem:[#allocation29_spill] sm:$0xff] }
 0x7df   : > { %v8789_v54 = vpop.eup %6140  ;;  %6160 = vpow2.f32 %v3772_v13  ;;  %v3565_v12 = vsub.f32 %v8416_v23, %v3385_v38  ;;  %v3430_v30 = vpop.xlane.xlu1 %3429  ;;  %v3947_v60 = vadd.f32 %v8782_v2, %v8778_v3 }
 0x7e0   : > { %v8794_v17 = vpop.eup %6142  ;;  %6162 = vpow2.f32 %v3710_v32  ;;  %v3714_v19 = vmul.f32 1.442695, %v3564_v63  ;;  %v3594_v21 = vsub.f32 %v8400_v62, %v3430_v30  ;;  %v3595_v20 = vsub.f32 %v8406_v7, %v3430_v30  ;;  %v10336_v7 = vld [vmem:[#allocation30_spill] sm:$0xff] }
 0x7e1   : > { %v8798_v42 = vpop.eup %6144  ;;  %6164 = vpow2.f32 %v3712_v46  ;;  %v3716_v48 = vmul.f32 1.442695, %v3565_v12  ;;  %3945 = vadd.xlane.f32.xlu1 %v3944_v25  ;;  %3990 = vadd.xlane.f32.xlu0 %v3989_v59  ;;  %v3433_v50 = vpop.xlane.xlu0 %3432  ;;  %v3992_v23 = vadd.f32 %v8789_v54, %v8786_v51  ;;  %v10339_v12 = vld [vmem:[#allocation35_spill] sm:$0xff] }
 0x7e2   : > { %v8802_v56 = vpop.eup %6146  ;;  %6166 = vpow2.f32 %v3714_v19  ;;  %v3774_v53 = vmul.f32 1.442695, %v3594_v21  ;;  %v3776_v9 = vmul.f32 1.442695, %v3595_v20  ;;  %v3596_v18 = vsub.f32 %v8412_v6, %v3433_v50  ;;  %v10340_v19 = vld [vmem:[#allocation36_spill] sm:$0xff] }
 0x7e3   : > { %v8805_v62 = vpop.eup %6148  ;;  %6168 = vpow2.f32 %v3716_v48  ;;  %v3597_v41 = vsub.f32 %v10336_v7, %v3433_v50  ;;  %v3388_v45 = vpop.xlane.xlu1 %3387  ;;  %v3995_v20 = vadd.f32 %v8798_v42, %v8794_v17 }
 0x7e4   : > { %v8810_v43 = vpop.eup %6150  ;;  %6170 = vpow2.f32 %v3774_v53  ;;  %v3778_v44 = vmul.f32 1.442695, %v3596_v18  ;;  %v3566_v16 = vsub.f32 %v10337_v35, %v3388_v45  ;;  %v3567_v33 = vsub.f32 %v10338_v47, %v3388_v45  ;;  %v10342_v53 = vld [vmem:[#allocation33_spill] sm:$0xff]  ;;  %v10343_v18 = vld [vmem:[#allocation31_spill] sm:$0xff] }
 0x7e5   : > { %v8814_v13 = vpop.eup %6152  ;;  %6172 = vpow2.f32 %v3776_v9  ;;  %v3780_v6 = vmul.f32 1.442695, %v3597_v41  ;;  %3993 = vadd.xlane.f32.xlu1 %v3992_v23  ;;  %3948 = vadd.xlane.f32.xlu0 %v3947_v60  ;;  %v3391_v38 = vpop.xlane.xlu0 %3390  ;;  %v3950_v25 = vadd.f32 %v8805_v62, %v8802_v56 }
 0x7e6   : > { %v8818_v32 = vpop.eup %6154  ;;  %6174 = vpow2.f32 %v3778_v44  ;;  %v3718_v46 = vmul.f32 1.442695, %v3566_v16  ;;  %v3720_v63 = vmul.f32 1.442695, %v3567_v33  ;;  %v3568_v59 = vsub.f32 %v10339_v12, %v3391_v38  ;;  %v10345_v33 = vld [vmem:[#allocation40_spill] sm:$0xff] }
 0x7e7   : > { %v8821_v30 = vpop.eup %6156  ;;  %6176 = vpow2.f32 %v3780_v6  ;;  %v3569_v21 = vsub.f32 %v10340_v19, %v3391_v38  ;;  %v3436_v48 = vpop.xlane.xlu1 %3435 }
 0x7e8   : > { %v8826_v50 = vpop.eup %6158  ;;  %6178 = vpow2.f32 %v3718_v46  ;;  %v3722_v23 = vmul.f32 1.442695, %v3568_v59  ;;  %v3598_v9 = vsub.f32 %v10342_v53, %v3436_v48  ;;  %v3599_v7 = vsub.f32 %v10343_v18, %v3436_v48  ;;  %v10347_v46 = vld [vmem:[#allocation38_spill] sm:$0xff]  ;;  %v10350_v48 = vld [vmem:[#allocation37_spill] sm:$0xff] }
 0x7e9   : > { %10341 = vst [vmem:[#allocation11_spill] sm:$0xff] %v8826_v50  ;;  %v8830_v41 = vpop.eup %6160  ;;  %6180 = vpow2.f32 %v3720_v63  ;;  %v3724_v60 = vmul.f32 1.442695, %v3569_v21  ;;  %3951 = vadd.xlane.f32.xlu1 %v3950_v25  ;;  %3996 = vadd.xlane.f32.xlu0 %v3995_v20  ;;  %v3439_v45 = vpop.xlane.xlu0 %3438  ;;  %v3998_v44 = vadd.f32 %v8821_v30, %v8818_v32  ;;  %v3953_v25 = vadd.f32 %v8814_v13, %v8810_v43  ;;  %v10349_v21 = vld [vmem:[#allocation42_spill] sm:$0xff] }
 0x7ea   : > { %v8834_v35 = vpop.eup %6162  ;;  %6182 = vpow2.f32 %v3722_v23  ;;  %v3782_v16 = vmul.f32 1.442695, %v3598_v9  ;;  %v3784_v47 = vmul.f32 1.442695, %v3599_v7  ;;  %v3600_v6 = vsub.f32 %v10345_v33, %v3439_v45  ;;  %v10353_v33 = vld [vmem:[#allocation43_spill] sm:$0xff] }
 0x7eb   : > { %10344 = vst [vmem:[#allocation15_spill] sm:$0xff] %v8834_v35  ;;  %v8837_v38 = vpop.eup %6164  ;;  %6184 = vpow2.f32 %v3724_v60  ;;  %v3601_v12 = vsub.f32 %v10347_v46, %v3439_v45  ;;  %v3394_v63 = vpop.xlane.xlu1 %3393 }
 0x7ec   : > { %10346 = vst [vmem:[#allocation23_spill] sm:$0xff] %v8837_v38  ;;  %v8842_v59 = vpop.eup %6166  ;;  %6186 = vpow2.f32 %v3782_v16  ;;  %v3786_v19 = vmul.f32 1.442695, %v3600_v6  ;;  %v3570_v20 = vsub.f32 %v10349_v21, %v3394_v63  ;;  %v3571_v23 = vsub.f32 %v10350_v48, %v3394_v63  ;;  %v10355_v63 = vld [vmem:[#allocation44_spill] sm:$0xff]  ;;  %v10357_v48 = vld [vmem:[#allocation41_spill] sm:$0xff] }
 0x7ed   : > { %10348 = vst [vmem:[#allocation13_spill] sm:$0xff] %v8842_v59  ;;  %v8846_v53 = vpop.eup %6168  ;;  %6188 = vpow2.f32 %v3784_v47  ;;  %v3788_v9 = vmul.f32 1.442695, %v3601_v12  ;;  %3999 = vadd.xlane.f32.xlu1 %v3998_v44  ;;  %3954 = vadd.xlane.f32.xlu0 %v3953_v25  ;;  %v3397_v18 = vpop.xlane.xlu0 %3396  ;;  %v3956_v7 = vadd.f32 %v8837_v38, %v8834_v35  ;;  %v4001_v44 = vadd.f32 %v8830_v41, %v8826_v50 }
 0x7ee   : > { %10351 = vst [vmem:[#allocation16_spill] sm:$0xff] %v8846_v53  ;;  %v8850_v60 = vpop.eup %6170  ;;  %6190 = vpow2.f32 %v3786_v19  ;;  %v3726_v45 = vmul.f32 1.442695, %v3570_v20  ;;  %v3728_v16 = vmul.f32 1.442695, %v3571_v23  ;;  %v3572_v6 = vsub.f32 %v10353_v33, %v3397_v18  ;;  %v10358_v19 = vld [vmem:[#allocation39_spill] sm:$0xff] }
 0x7ef   : > { %10352 = vst [vmem:[#allocation14_spill] sm:$0xff] %v8850_v60  ;;  %v8853_v46 = vpop.eup %6172  ;;  %6192 = vpow2.f32 %v3788_v9  ;;  %v3573_v21 = vsub.f32 %v10355_v63, %v3397_v18  ;;  %v3442_v47 = vpop.xlane.xlu1 %3441 }
 0x7f0   : > { %10354 = vst [vmem:[#allocation17_spill] sm:$0xff] %v8853_v46  ;;  %v8858_v12 = vpop.eup %6174  ;;  %6194 = vpow2.f32 %v3726_v45  ;;  %v3730_v25 = vmul.f32 1.442695, %v3572_v6  ;;  %v3602_v35 = vsub.f32 %v10357_v48, %v3442_v47  ;;  %v3603_v20 = vsub.f32 %v10358_v19, %v3442_v47  ;;  %v10361_v6 = vld [vmem:[#allocation48_spill] sm:$0xff]  ;;  %v10363_v47 = vld [vmem:[#allocation46_spill] sm:$0xff] }
 0x7f1   : > { %10356 = vst [vmem:[#allocation18_spill] sm:$0xff] %v8858_v12  ;;  %v8862_v23 = vpop.eup %6176  ;;  %6196 = vpow2.f32 %v3728_v16  ;;  %v3732_v33 = vmul.f32 1.442695, %v3573_v21  ;;  %3957 = vadd.xlane.f32.xlu1 %v3956_v7  ;;  %4002 = vadd.xlane.f32.xlu0 %v4001_v44  ;;  %v3445_v9 = vpop.xlane.xlu0 %3444  ;;  %v4004_v18 = vadd.f32 %v8853_v46, %v8850_v60  ;;  %v3959_v7 = vadd.f32 %v8846_v53, %v8842_v59  ;;  %v10365_v60 = vld [vmem:[#allocation50_spill] sm:$0xff] }
 0x7f2   : > { %10359 = vst [vmem:[#allocation24_spill] sm:$0xff] %v8862_v23  ;;  %v8866_v63 = vpop.eup %6178  ;;  %6198 = vpow2.f32 %v3730_v25  ;;  %v3790_v38 = vmul.f32 1.442695, %v3602_v35  ;;  %v3792_v45 = vmul.f32 1.442695, %v3603_v20  ;;  %v3604_v50 = vsub.f32 %v10361_v6, %v3445_v9  ;;  %v10366_v25 = vld [vmem:[#allocation45_spill] sm:$0xff] }
 0x7f3   : > { %10360 = vst [vmem:[#allocation25_spill] sm:$0xff] %v8866_v63  ;;  %v8869_v48 = vpop.eup %6180  ;;  %6200 = vpow2.f32 %v3732_v33  ;;  %v3605_v19 = vsub.f32 %v10363_v47, %v3445_v9  ;;  %v3448_v16 = vpop.xlane.xlu1 %3447 }
 0x7f4   : > { %10362 = vst [vmem:[#allocation30_spill] sm:$0xff] %v8869_v48  ;;  %v8874_v21 = vpop.eup %6182  ;;  %6202 = vpow2.f32 %v3790_v38  ;;  %v3794_v44 = vmul.f32 1.442695, %v3604_v50  ;;  %v3606_v46 = vsub.f32 %v10365_v60, %v3448_v16  ;;  %v3607_v35 = vsub.f32 %v10366_v25, %v3448_v16  ;;  %v10369_v50 = vld [vmem:[#allocation51_spill] sm:$0xff]  ;;  %v10371_v16 = vld [vmem:[#allocation52_spill] sm:$0xff] }
 0x7f5   : > { %10364 = vst [vmem:[#allocation34_spill] sm:$0xff] %v8874_v21  ;;  %v8878_v20 = vpop.eup %6184  ;;  %6204 = vpow2.f32 %v3792_v45  ;;  %v3796_v6 = vmul.f32 1.442695, %v3605_v19  ;;  %4005 = vadd.xlane.f32.xlu1 %v4004_v18  ;;  %3960 = vadd.xlane.f32.xlu0 %v3959_v7  ;;  %v3451_v33 = vpop.xlane.xlu0 %3450  ;;  %v3962_v9 = vadd.f32 %v8869_v48, %v8866_v63  ;;  %v4007_v18 = vadd.f32 %v8862_v23, %v8858_v12  ;;  %v10373_v63 = vld [vmem:[#allocation49_spill] sm:$0xff] }
 0x7f6   : > { %10367 = vst [vmem:[#allocation29_spill] sm:$0xff] %v8878_v20  ;;  %v8882_v47 = vpop.eup %6186  ;;  %6206 = vpow2.f32 %v3794_v44  ;;  %v3798_v59 = vmul.f32 1.442695, %v3606_v46  ;;  %v3800_v38 = vmul.f32 1.442695, %v3607_v35  ;;  %v3608_v53 = vsub.f32 %v10369_v50, %v3451_v33  ;;  %v10374_v44 = vld [vmem:[#allocation47_spill] sm:$0xff] }
 0x7f7   : > { %10368 = vst [vmem:[#allocation35_spill] sm:$0xff] %v8882_v47  ;;  %v8885_v60 = vpop.eup %6188  ;;  %6208 = vpow2.f32 %v3796_v6  ;;  %v3609_v25 = vsub.f32 %v10371_v16, %v3451_v33  ;;  %v3496_v45 = vpop.xlane.xlu1 %3495 }
 0x7f8   : > { %10370 = vst [vmem:[#allocation36_spill] sm:$0xff] %v8885_v60  ;;  %v8890_v19 = vpop.eup %6190  ;;  %6210 = vpow2.f32 %v3798_v59  ;;  %v3802_v7 = vmul.f32 1.442695, %v3608_v53  ;;  %v3638_v48 = vsub.f32 %v10373_v63, %v3496_v45  ;;  %v3639_v46 = vsub.f32 %v10374_v44, %v3496_v45  ;;  %v10377_v53 = vld [vmem:[#allocation56_spill] sm:$0xff]  ;;  %v10379_v45 = vld [vmem:[#allocation54_spill] sm:$0xff] }
 0x7f9   : > { %10372 = vst [vmem:[#allocation33_spill] sm:$0xff] %v8890_v19  ;;  %v8894_v35 = vpop.eup %6192  ;;  %6212 = vpow2.f32 %v3800_v38  ;;  %v3804_v50 = vmul.f32 1.442695, %v3609_v25  ;;  %3963 = vadd.xlane.f32.xlu1 %v3962_v9  ;;  %4008 = vadd.xlane.f32.xlu0 %v4007_v18  ;;  %v3499_v6 = vpop.xlane.xlu0 %3498  ;;  %v4010_v33 = vadd.f32 %v8885_v60, %v8882_v47  ;;  %v3965_v9 = vadd.f32 %v8878_v20, %v8874_v21  ;;  %v10381_v47 = vld [vmem:[#allocation58_spill] sm:$0xff] }
 0x7fa   : > { %10375 = vst [vmem:[#allocation31_spill] sm:$0xff] %v8894_v35  ;;  %v8898_v16 = vpop.eup %6194  ;;  %6214 = vpow2.f32 %v3802_v7  ;;  %v3862_v12 = vmul.f32 1.442695, %v3638_v48  ;;  %v3864_v59 = vmul.f32 1.442695, %v3639_v46  ;;  %v3640_v23 = vsub.f32 %v10377_v53, %v3499_v6  ;;  %v10382_v7 = vld [vmem:[#allocation21_spill] sm:$0xff] }
 0x7fb   : > { %10376 = vst [vmem:[#allocation40_spill] sm:$0xff] %v8898_v16  ;;  %v8901_v63 = vpop.eup %6196  ;;  %6216 = vpow2.f32 %v3804_v50  ;;  %v3641_v44 = vsub.f32 %v10379_v45, %v3499_v6  ;;  %v3454_v38 = vpop.xlane.xlu1 %3453 }
 0x7fc   : > { %10378 = vst [vmem:[#allocation38_spill] sm:$0xff] %v8901_v63  ;;  %v8906_v25 = vpop.eup %6198  ;;  %6218 = vpow2.f32 %v3862_v12  ;;  %v3866_v18 = vmul.f32 1.442695, %v3640_v23  ;;  %v3610_v60 = vsub.f32 %v10381_v47, %v3454_v38  ;;  %v3611_v48 = vsub.f32 %v10382_v7, %v3454_v38  ;;  %v10385_v23 = vld [vmem:[#allocation59_spill] sm:$0xff] }
 0x7fd   : > { %10380 = vst [vmem:[#allocation42_spill] sm:$0xff] %v8906_v25  ;;  %v8910_v46 = vpop.eup %6200  ;;  %6220 = vpow2.f32 %v3864_v59  ;;  %v3868_v53 = vmul.f32 1.442695, %v3641_v44  ;;  %4011 = vadd.xlane.f32.xlu1 %v4010_v33  ;;  %3966 = vadd.xlane.f32.xlu0 %v3965_v9  ;;  %v3457_v50 = vpop.xlane.xlu0 %3456  ;;  %v3968_v6 = vadd.f32 %v8901_v63, %v8898_v16  ;;  %v10387_v38 = vld [vmem:[#allocation19_spill] sm:$0xff]  ;;  %v4013_v33 = vadd.f32 %v8894_v35, %v8890_v19  ;;  %v10389_v16 = vld [vmem:[#allocation57_spill] sm:$0xff] }
 0x7fe   : > { %10383 = vst [vmem:[#allocation37_spill] sm:$0xff] %v8910_v46  ;;  %v8914_v45 = vpop.eup %6202  ;;  %6222 = vpow2.f32 %v3866_v18  ;;  %v3806_v21 = vmul.f32 1.442695, %v3610_v60  ;;  %v3808_v12 = vmul.f32 1.442695, %v3611_v48  ;;  %v3612_v20 = vsub.f32 %v10385_v23, %v3457_v50  ;;  %v10390_v18 = vld [vmem:[#allocation53_spill] sm:$0xff] }
 0x7ff   : > { %10384 = vst [vmem:[#allocation43_spill] sm:$0xff] %v8914_v45  ;;  %v8917_v47 = vpop.eup %6204  ;;  %6224 = vpow2.f32 %v3868_v53  ;;  %v3613_v7 = vsub.f32 %v10387_v38, %v3457_v50  ;;  %v3502_v59 = vpop.xlane.xlu1 %3501 }
 0x800   : > { %10386 = vst [vmem:[#allocation44_spill] sm:$0xff] %v8917_v47  ;;  %v8922_v44 = vpop.eup %6206  ;;  %6226 = vpow2.f32 %v3806_v21  ;;  %v3810_v9 = vmul.f32 1.442695, %v3612_v20  ;;  %v3642_v63 = vsub.f32 %v10389_v16, %v3502_v59  ;;  %v3643_v60 = vsub.f32 %v10390_v18, %v3502_v59  ;;  %v10393_v20 = vld [vmem:[#allocation64_spill] sm:$0xff]  ;;  %v10395_v59 = vld [vmem:[#allocation65_spill] sm:$0xff] }
 0x801   : > { %10388 = vst [vmem:[#allocation41_spill] sm:$0xff] %v8922_v44  ;;  %v8926_v48 = vpop.eup %6208  ;;  %6228 = vpow2.f32 %v3808_v12  ;;  %v3812_v23 = vmul.f32 1.442695, %v3613_v7  ;;  %3969 = vadd.xlane.f32.xlu1 %v3968_v6  ;;  %4014 = vadd.xlane.f32.xlu0 %v4013_v33  ;;  %v3505_v53 = vpop.xlane.xlu0 %3504  ;;  %v4016_v50 = vadd.f32 %v8917_v47, %v8914_v45  ;;  %v3971_v6 = vadd.f32 %v8910_v46, %v8906_v25  ;;  %v10397_v45 = vld [vmem:[#allocation55_spill] sm:$0xff] }
 0x802   : > { %10391 = vst [vmem:[#allocation39_spill] sm:$0xff] %v8926_v48  ;;  %v8930_v38 = vpop.eup %6210  ;;  %6230 = vpow2.f32 %v3810_v9  ;;  %v3870_v19 = vmul.f32 1.442695, %v3642_v63  ;;  %v3872_v21 = vmul.f32 1.442695, %v3643_v60  ;;  %v3644_v35 = vsub.f32 %v10393_v20, %v3505_v53  ;;  %v10398_v9 = vld [vmem:[#allocation20_spill] sm:$0xff] }
 0x803   : > { %10392 = vst [vmem:[#allocation48_spill] sm:$0xff] %v8930_v38  ;;  %v8933_v16 = vpop.eup %6212  ;;  %6232 = vpow2.f32 %v3812_v23  ;;  %v3645_v18 = vsub.f32 %v10395_v59, %v3505_v53  ;;  %v3460_v12 = vpop.xlane.xlu1 %3459 }
 0x804   : > { %10394 = vst [vmem:[#allocation46_spill] sm:$0xff] %v8933_v16  ;;  %v8938_v7 = vpop.eup %6214  ;;  %6234 = vpow2.f32 %v3870_v19  ;;  %v3874_v33 = vmul.f32 1.442695, %v3644_v35  ;;  %v3614_v47 = vsub.f32 %v10397_v45, %v3460_v12  ;;  %v3615_v63 = vsub.f32 %v10398_v9, %v3460_v12  ;;  %v10401_v35 = vld [vmem:[#allocation62_spill] sm:$0xff]  ;;  %v10403_v12 = vld [vmem:[#allocation60_spill] sm:$0xff] }
 0x805   : > { %10396 = vst [vmem:[#allocation50_spill] sm:$0xff] %v8938_v7  ;;  %v8942_v60 = vpop.eup %6216  ;;  %6236 = vpow2.f32 %v3872_v21  ;;  %v3876_v20 = vmul.f32 1.442695, %v3645_v18  ;;  %4017 = vadd.xlane.f32.xlu1 %v4016_v50  ;;  %3972 = vadd.xlane.f32.xlu0 %v3971_v6  ;;  %v3463_v23 = vpop.xlane.xlu0 %3462  ;;  %v4022_v53 = vadd.f32 %v8933_v16, %v8930_v38  ;;  %v4019_v50 = vadd.f32 %v8926_v48, %v8922_v44  ;;  %v10405_v38 = vld [vmem:[#allocation66_spill] sm:$0xff] }
 0x806   : > { %10399 = vst [vmem:[#allocation45_spill] sm:$0xff] %v8942_v60  ;;  %v8946_v59 = vpop.eup %6218  ;;  %6238 = vpow2.f32 %v3874_v33  ;;  %v3814_v25 = vmul.f32 1.442695, %v3614_v47  ;;  %v3816_v19 = vmul.f32 1.442695, %v3615_v63  ;;  %v3616_v46 = vsub.f32 %v10401_v35, %v3463_v23  ;;  %v10406_v33 = vld [vmem:[#allocation67_spill] sm:$0xff] }
 0x807   : > { %10400 = vst [vmem:[#allocation51_spill] sm:$0xff] %v8946_v59  ;;  %v8949_v45 = vpop.eup %6220  ;;  %6240 = vpow2.f32 %v3876_v20  ;;  %v3617_v9 = vsub.f32 %v10403_v12, %v3463_v23  ;;  %v3508_v21 = vpop.xlane.xlu1 %3507 }
 0x808   : > { %10402 = vst [vmem:[#allocation52_spill] sm:$0xff] %v8949_v45  ;;  %v8954_v18 = vpop.eup %6222  ;;  %6242 = vpow2.f32 %v3814_v25  ;;  %v3818_v6 = vmul.f32 1.442695, %v3616_v46  ;;  %v3646_v16 = vsub.f32 %v10405_v38, %v3508_v21  ;;  %v3647_v47 = vsub.f32 %v10406_v33, %v3508_v21  ;;  %v10409_v46 = vld [vmem:[#allocation72_spill] sm:$0xff]  ;;  %v10411_v21 = vld [vmem:[#allocation74_spill] sm:$0xff] }
 0x809   : > { %10404 = vst [vmem:[#allocation49_spill] sm:$0xff] %v8954_v18  ;;  %v8958_v63 = vpop.eup %6224  ;;  %6244 = vpow2.f32 %v3816_v19  ;;  %v3820_v35 = vmul.f32 1.442695, %v3617_v9  ;;  %4023 = vadd.xlane.f32.xlu1 %v4022_v53  ;;  %4020 = vadd.xlane.f32.xlu0 %v4019_v50  ;;  %v3511_v20 = vpop.xlane.xlu0 %3510  ;;  %v4070_v23 = vadd.f32 %v8949_v45, %v8946_v59  ;;  %v4025_v53 = vadd.f32 %v8942_v60, %v8938_v7  ;;  %v10413_v59 = vld [vmem:[#allocation61_spill] sm:$0xff] }
 0x80a   : > { %10407 = vst [vmem:[#allocation47_spill] sm:$0xff] %v8958_v63  ;;  %v8962_v12 = vpop.eup %6226  ;;  %6246 = vpow2.f32 %v3818_v6  ;;  %v3878_v44 = vmul.f32 1.442695, %v3646_v16  ;;  %v3880_v25 = vmul.f32 1.442695, %v3647_v47  ;;  %v3648_v48 = vsub.f32 %v10409_v46, %v3511_v20  ;;  %v10414_v6 = vld [vmem:[#allocation70_spill] sm:$0xff] }
 0x80b   : > { %10408 = vst [vmem:[#allocation56_spill] sm:$0xff] %v8962_v12  ;;  %v8965_v38 = vpop.eup %6228  ;;  %6248 = vpow2.f32 %v3820_v35  ;;  %v3649_v33 = vsub.f32 %v10411_v21, %v3511_v20  ;;  %v3466_v19 = vpop.xlane.xlu1 %3465 }
 0x80c   : > { %10410 = vst [vmem:[#allocation54_spill] sm:$0xff] %v8965_v38  ;;  %v8970_v9 = vpop.eup %6230  ;;  %6250 = vpow2.f32 %v3878_v44  ;;  %v3882_v50 = vmul.f32 1.442695, %v3648_v48  ;;  %v3618_v45 = vsub.f32 %v10413_v59, %v3466_v19  ;;  %v3619_v16 = vsub.f32 %v10414_v6, %v3466_v19  ;;  %v10417_v48 = vld [vmem:[#allocation73_spill] sm:$0xff] }
 0x80d   : > { %10412 = vst [vmem:[#allocation58_spill] sm:$0xff] %v8970_v9  ;;  %v8974_v47 = vpop.eup %6232  ;;  %6252 = vpow2.f32 %v3880_v25  ;;  %v3884_v46 = vmul.f32 1.442695, %v3649_v33  ;;  %4071 = vadd.xlane.f32.xlu1 %v4070_v23  ;;  %4026 = vadd.xlane.f32.xlu0 %v4025_v53  ;;  %v3469_v35 = vpop.xlane.xlu0 %3468  ;;  %v4028_v20 = vadd.f32 %v8965_v38, %v8962_v12  ;;  %v10419_v19 = vld [vmem:[#allocation81_spill] sm:$0xff]  ;;  %v4073_v23 = vadd.f32 %v8958_v63, %v8954_v18  ;;  %v10421_v12 = vld [vmem:[#allocation63_spill] sm:$0xff] }
 0x80e   : > { %10415 = vst [vmem:[#allocation21_spill] sm:$0xff] %v8974_v47  ;;  %v8978_v21 = vpop.eup %6234  ;;  %6254 = vpow2.f32 %v3882_v50  ;;  %v3822_v7 = vmul.f32 1.442695, %v3618_v45  ;;  %v3824_v44 = vmul.f32 1.442695, %v3619_v16  ;;  %v3620_v60 = vsub.f32 %v10417_v48, %v3469_v35  ;;  %v10422_v50 = vld [vmem:[#allocation75_spill] sm:$0xff] }
 0x80f   : > { %10416 = vst [vmem:[#allocation59_spill] sm:$0xff] %v8978_v21  ;;  %v8981_v59 = vpop.eup %6236  ;;  %6256 = vpow2.f32 %v3884_v46  ;;  %v3621_v6 = vsub.f32 %v10419_v19, %v3469_v35  ;;  %v3514_v25 = vpop.xlane.xlu1 %3513 }
 0x810   : > { %10418 = vst [vmem:[#allocation19_spill] sm:$0xff] %v8981_v59  ;;  %v8986_v33 = vpop.eup %6238  ;;  %6258 = vpow2.f32 %v3822_v7  ;;  %v3826_v53 = vmul.f32 1.442695, %v3620_v60  ;;  %v3650_v38 = vsub.f32 %v10421_v12, %v3514_v25  ;;  %v3651_v45 = vsub.f32 %v10422_v50, %v3514_v25  ;;  %v10425_v60 = vld [vmem:[#allocation68_spill] sm:$0xff] }
 0x811   : > { %10420 = vst [vmem:[#allocation57_spill] sm:$0xff] %v8986_v33  ;;  %v8990_v16 = vpop.eup %6240  ;;  %6260 = vpow2.f32 %v3824_v44  ;;  %v3828_v48 = vmul.f32 1.442695, %v3621_v6  ;;  %4029 = vadd.xlane.f32.xlu1 %v4028_v20  ;;  %4074 = vadd.xlane.f32.xlu0 %v4073_v23  ;;  %v3517_v46 = vpop.xlane.xlu0 %3516  ;;  %v4076_v35 = vadd.f32 %v8981_v59, %v8978_v21  ;;  %v10427_v25 = vld [vmem:[#allocation80_spill] sm:$0xff]  ;;  %v4031_v20 = vadd.f32 %v8974_v47, %v8970_v9  ;;  %v10429_v21 = vld [vmem:[#allocation69_spill] sm:$0xff] }
 0x812   : > { %10423 = vst [vmem:[#allocation53_spill] sm:$0xff] %v8990_v16  ;;  %v8994_v19 = vpop.eup %6242  ;;  %6262 = vpow2.f32 %v3826_v53  ;;  %v3886_v18 = vmul.f32 1.442695, %v3650_v38  ;;  %v3888_v7 = vmul.f32 1.442695, %v3651_v45  ;;  %v3652_v63 = vsub.f32 %v10425_v60, %v3517_v46  ;;  %v10430_v53 = vld [vmem:[#allocation82_spill] sm:$0xff] }
 0x813   : > { %10424 = vst [vmem:[#allocation64_spill] sm:$0xff] %v8994_v19  ;;  %v8997_v12 = vpop.eup %6244  ;;  %6264 = vpow2.f32 %v3828_v48  ;;  %v3653_v50 = vsub.f32 %v10427_v25, %v3517_v46  ;;  %v3472_v44 = vpop.xlane.xlu1 %3471 }
 0x814   : > { %10426 = vst [vmem:[#allocation65_spill] sm:$0xff] %v8997_v12  ;;  %v9002_v6 = vpop.eup %6246  ;;  %6266 = vpow2.f32 %v3886_v18  ;;  %v3890_v23 = vmul.f32 1.442695, %v3652_v63  ;;  %v3622_v59 = vsub.f32 %v10429_v21, %v3472_v44  ;;  %v3623_v38 = vsub.f32 %v10430_v53, %v3472_v44  ;;  %v10433_v63 = vld [vmem:[#allocation76_spill] sm:$0xff]  ;;  %v10435_v44 = vld [vmem:[#allocation89_spill] sm:$0xff] }
 0x815   : > { %10428 = vst [vmem:[#allocation55_spill] sm:$0xff] %v9002_v6  ;;  %v9006_v45 = vpop.eup %6248  ;;  %6268 = vpow2.f32 %v3888_v7  ;;  %v3892_v60 = vmul.f32 1.442695, %v3653_v50  ;;  %4077 = vadd.xlane.f32.xlu1 %v4076_v35  ;;  %4032 = vadd.xlane.f32.xlu0 %v4031_v20  ;;  %v3475_v48 = vpop.xlane.xlu0 %3474  ;;  %v4034_v46 = vadd.f32 %v8997_v12, %v8994_v19  ;;  %v4079_v35 = vadd.f32 %v8990_v16, %v8986_v33  ;;  %v10437_v19 = vld [vmem:[#allocation71_spill] sm:$0xff] }
 0x816   : > { %10431 = vst [vmem:[#allocation20_spill] sm:$0xff] %v9006_v45  ;;  %v9010_v25 = vpop.eup %6250  ;;  %6270 = vpow2.f32 %v3890_v23  ;;  %v3830_v9 = vmul.f32 1.442695, %v3622_v59  ;;  %v3832_v18 = vmul.f32 1.442695, %v3623_v38  ;;  %v3624_v47 = vsub.f32 %v10433_v63, %v3475_v48  ;;  %v10438_v23 = vld [vmem:[#allocation87_spill] sm:$0xff] }
 0x817   : > { %10432 = vst [vmem:[#allocation62_spill] sm:$0xff] %v9010_v25  ;;  %v9013_v21 = vpop.eup %6252  ;;  %6272 = vpow2.f32 %v3892_v60  ;;  %v3625_v53 = vsub.f32 %v10435_v44, %v3475_v48  ;;  %v3520_v7 = vpop.xlane.xlu1 %3519 }
 0x818   : > { %10434 = vst [vmem:[#allocation60_spill] sm:$0xff] %v9013_v21  ;;  %v9018_v50 = vpop.eup %6254  ;;  %6274 = vpow2.f32 %v3830_v9  ;;  %v3834_v20 = vmul.f32 1.442695, %v3624_v47  ;;  %v3654_v12 = vsub.f32 %v10437_v19, %v3520_v7  ;;  %v3655_v59 = vsub.f32 %v10438_v23, %v3520_v7  ;;  %v10441_v47 = vld [vmem:[#allocation78_spill] sm:$0xff]  ;;  %v10443_v7 = vld [vmem:[#allocation88_spill] sm:$0xff] }
 0x819   : > { %10436 = vst [vmem:[#allocation66_spill] sm:$0xff] %v9018_v50  ;;  %v9022_v38 = vpop.eup %6256  ;;  %6276 = vpow2.f32 %v3832_v18  ;;  %v3836_v63 = vmul.f32 1.442695, %v3625_v53  ;;  %4035 = vadd.xlane.f32.xlu1 %v4034_v46  ;;  %4080 = vadd.xlane.f32.xlu0 %v4079_v35  ;;  %v3523_v60 = vpop.xlane.xlu0 %3522  ;;  %v4082_v48 = vadd.f32 %v9013_v21, %v9010_v25  ;;  %v4037_v46 = vadd.f32 %v9006_v45, %v9002_v6  ;;  %v10445_v25 = vld [vmem:[#allocation77_spill] sm:$0xff] }
 0x81a   : > { %10439 = vst [vmem:[#allocation67_spill] sm:$0xff] %v9022_v38  ;;  %v9026_v44 = vpop.eup %6258  ;;  %6278 = vpow2.f32 %v3834_v20  ;;  %v3894_v33 = vmul.f32 1.442695, %v3654_v12  ;;  %v3896_v9 = vmul.f32 1.442695, %v3655_v59  ;;  %v3656_v16 = vsub.f32 %v10441_v47, %v3523_v60  ;;  %v10446_v20 = vld [vmem:[#allocation90_spill] sm:$0xff] }
 0x81b   : > { %10440 = vst [vmem:[#allocation72_spill] sm:$0xff] %v9026_v44  ;;  %v9029_v19 = vpop.eup %6260  ;;  %6280 = vpow2.f32 %v3836_v63  ;;  %v3657_v23 = vsub.f32 %v10443_v7, %v3523_v60  ;;  %v3478_v18 = vpop.xlane.xlu1 %3477 }
 0x81c   : > { %10442 = vst [vmem:[#allocation74_spill] sm:$0xff] %v9029_v19  ;;  %v9034_v53 = vpop.eup %6262  ;;  %6282 = vpow2.f32 %v3894_v33  ;;  %v3898_v35 = vmul.f32 1.442695, %v3656_v16  ;;  %v3626_v21 = vsub.f32 %v10445_v25, %v3478_v18  ;;  %v3627_v12 = vsub.f32 %v10446_v20, %v3478_v18  ;;  %v10449_v16 = vld [vmem:[#allocation83_spill] sm:$0xff]  ;;  %v10451_v18 = vld [vmem:[#allocation86_spill] sm:$0xff] }
 0x81d   : > { %10444 = vst [vmem:[#allocation61_spill] sm:$0xff] %v9034_v53  ;;  %v9038_v59 = vpop.eup %6264  ;;  %6284 = vpow2.f32 %v3896_v9  ;;  %v3900_v47 = vmul.f32 1.442695, %v3657_v23  ;;  %4083 = vadd.xlane.f32.xlu1 %v4082_v48  ;;  %4038 = vadd.xlane.f32.xlu0 %v4037_v46  ;;  %v3481_v63 = vpop.xlane.xlu0 %3480  ;;  %v4040_v60 = vadd.f32 %v9029_v19, %v9026_v44  ;;  %v4085_v48 = vadd.f32 %v9022_v38, %v9018_v50  ;;  %v10453_v44 = vld [vmem:[#allocation79_spill] sm:$0xff] }
 0x81e   : > { %10447 = vst [vmem:[#allocation70_spill] sm:$0xff] %v9038_v59  ;;  %v9042_v7 = vpop.eup %6266  ;;  %6286 = vpow2.f32 %v3898_v35  ;;  %v3838_v6 = vmul.f32 1.442695, %v3626_v21  ;;  %v3840_v33 = vmul.f32 1.442695, %v3627_v12  ;;  %v3628_v45 = vsub.f32 %v10449_v16, %v3481_v63  ;;  %v10454_v35 = vld [vmem:[#allocation95_spill] sm:$0xff] }
 0x81f   : > { %10448 = vst [vmem:[#allocation73_spill] sm:$0xff] %v9042_v7  ;;  %v9045_v25 = vpop.eup %6268  ;;  %6288 = vpow2.f32 %v3900_v47  ;;  %v3629_v20 = vsub.f32 %v10451_v18, %v3481_v63  ;;  %v3526_v9 = vpop.xlane.xlu1 %3525 }
 0x820   : > { %10450 = vst [vmem:[#allocation81_spill] sm:$0xff] %v9045_v25  ;;  %v9050_v23 = vpop.eup %6270  ;;  %6290 = vpow2.f32 %v3838_v6  ;;  %v3842_v46 = vmul.f32 1.442695, %v3628_v45  ;;  %v3658_v19 = vsub.f32 %v10453_v44, %v3526_v9  ;;  %v3659_v21 = vsub.f32 %v10454_v35, %v3526_v9  ;;  %v10457_v45 = vld [vmem:[#allocation85_spill] sm:$0xff]  ;;  %v10459_v9 = vld [vmem:[#allocation84_spill] sm:$0xff] }
 0x821   : > { %10452 = vst [vmem:[#allocation63_spill] sm:$0xff] %v9050_v23  ;;  %v9054_v12 = vpop.eup %6272  ;;  %6292 = vpow2.f32 %v3840_v33  ;;  %v3844_v16 = vmul.f32 1.442695, %v3629_v20  ;;  %4041 = vadd.xlane.f32.xlu1 %v4040_v60  ;;  %4086 = vadd.xlane.f32.xlu0 %v4085_v48  ;;  %v3529_v47 = vpop.xlane.xlu0 %3528  ;;  %v4088_v63 = vadd.f32 %v9045_v25, %v9042_v7  ;;  %v4043_v60 = vadd.f32 %v9038_v59, %v9034_v53  ;;  %v10461_v7 = vld [vmem:[#allocation97_spill] sm:$0xff] }
 0x822   : > { %10455 = vst [vmem:[#allocation75_spill] sm:$0xff] %v9054_v12  ;;  %v9058_v18 = vpop.eup %6274  ;;  %6294 = vpow2.f32 %v3842_v46  ;;  %v3902_v50 = vmul.f32 1.442695, %v3658_v19  ;;  %v3904_v6 = vmul.f32 1.442695, %v3659_v21  ;;  %v3660_v38 = vsub.f32 %v10457_v45, %v3529_v47  ;;  %v10462_v46 = vld [vmem:[#allocation98_spill] sm:$0xff] }
 0x823   : > { %10456 = vst [vmem:[#allocation68_spill] sm:$0xff] %v9058_v18  ;;  %v9061_v44 = vpop.eup %6276  ;;  %6296 = vpow2.f32 %v3844_v16  ;;  %v3661_v35 = vsub.f32 %v10459_v9, %v3529_v47  ;;  %v3484_v33 = vpop.xlane.xlu1 %3483 }
 0x824   : > { %10458 = vst [vmem:[#allocation80_spill] sm:$0xff] %v9061_v44  ;;  %v9066_v20 = vpop.eup %6278  ;;  %6298 = vpow2.f32 %v3902_v50  ;;  %v3906_v48 = vmul.f32 1.442695, %v3660_v38  ;;  %v3630_v25 = vsub.f32 %v10461_v7, %v3484_v33  ;;  %v3631_v19 = vsub.f32 %v10462_v46, %v3484_v33  ;;  %v10465_v38 = vld [vmem:[#allocation94_spill] sm:$0xff]  ;;  %v10467_v33 = vld [vmem:[#allocation104_spill] sm:$0xff] }
 0x825   : > { %10460 = vst [vmem:[#allocation69_spill] sm:$0xff] %v9066_v20  ;;  %v9070_v21 = vpop.eup %6280  ;;  %6300 = vpow2.f32 %v3904_v6  ;;  %v3908_v45 = vmul.f32 1.442695, %v3661_v35  ;;  %4089 = vadd.xlane.f32.xlu1 %v4088_v63  ;;  %4044 = vadd.xlane.f32.xlu0 %v4043_v60  ;;  %v3487_v16 = vpop.xlane.xlu0 %3486  ;;  %v4046_v47 = vadd.f32 %v9061_v44, %v9058_v18  ;;  %v4091_v63 = vadd.f32 %v9054_v12, %v9050_v23  ;;  %v10469_v18 = vld [vmem:[#allocation91_spill] sm:$0xff] }
 0x826   : > { %10463 = vst [vmem:[#allocation82_spill] sm:$0xff] %v9070_v21  ;;  %v9074_v9 = vpop.eup %6282  ;;  %6302 = vpow2.f32 %v3906_v48  ;;  %v3846_v53 = vmul.f32 1.442695, %v3630_v25  ;;  %v3848_v50 = vmul.f32 1.442695, %v3631_v19  ;;  %v3632_v59 = vsub.f32 %v10465_v38, %v3487_v16  ;;  %v10470_v48 = vld [vmem:[#allocation93_spill] sm:$0xff] }
 0x827   : > { %10464 = vst [vmem:[#allocation76_spill] sm:$0xff] %v9074_v9  ;;  %v9077_v7 = vpop.eup %6284  ;;  %6304 = vpow2.f32 %v3908_v45  ;;  %v3633_v46 = vsub.f32 %v10467_v33, %v3487_v16  ;;  %v3532_v6 = vpop.xlane.xlu1 %3531 }
 0x828   : > { %10466 = vst [vmem:[#allocation89_spill] sm:$0xff] %v9077_v7  ;;  %v9082_v35 = vpop.eup %6286  ;;  %6306 = vpow2.f32 %v3846_v53  ;;  %v3850_v60 = vmul.f32 1.442695, %v3632_v59  ;;  %v3662_v44 = vsub.f32 %v10469_v18, %v3532_v6  ;;  %v3663_v25 = vsub.f32 %v10470_v48, %v3532_v6  ;;  %v10473_v59 = vld [vmem:[#allocation96_spill] sm:$0xff] }
 0x829   : > { %10468 = vst [vmem:[#allocation71_spill] sm:$0xff] %v9082_v35  ;;  %v9086_v19 = vpop.eup %6288  ;;  %6308 = vpow2.f32 %v3848_v50  ;;  %v3852_v38 = vmul.f32 1.442695, %v3633_v46  ;;  %4047 = vadd.xlane.f32.xlu1 %v4046_v47  ;;  %4092 = vadd.xlane.f32.xlu0 %v4091_v63  ;;  %v3535_v45 = vpop.xlane.xlu0 %3534  ;;  %v4094_v16 = vadd.f32 %v9077_v7, %v9074_v9  ;;  %v10475_v6 = vld [vmem:[#allocation92_spill] sm:$0xff]  ;;  %v4049_v47 = vadd.f32 %v9070_v21, %v9066_v20  ;;  %v10476_v9 = vld [vmem:[#allocation101_spill] sm:$0xff] }
 0x82a   : > { %10471 = vst [vmem:[#allocation87_spill] sm:$0xff] %v9086_v19  ;;  %v9090_v33 = vpop.eup %6290  ;;  %6310 = vpow2.f32 %v3850_v60  ;;  %v3910_v23 = vmul.f32 1.442695, %v3662_v44  ;;  %v3912_v53 = vmul.f32 1.442695, %v3663_v25  ;;  %v3664_v12 = vsub.f32 %v10473_v59, %v3535_v45  ;;  %v10477_v60 = vld [vmem:[#allocation100_spill] sm:$0xff] }
 0x82b   : > { %10472 = vst [vmem:[#allocation78_spill] sm:$0xff] %v9090_v33  ;;  %v9093_v18 = vpop.eup %6292  ;;  %6312 = vpow2.f32 %v3852_v38  ;;  %v3665_v48 = vsub.f32 %v10475_v6, %v3535_v45  ;;  %v3490_v50 = vpop.xlane.xlu1 %3489 }
 0x82c   : > { %10474 = vst [vmem:[#allocation88_spill] sm:$0xff] %v9093_v18  ;;  %v9098_v46 = vpop.eup %6294  ;;  %6314 = vpow2.f32 %v3910_v23  ;;  %v3914_v63 = vmul.f32 1.442695, %v3664_v12  ;;  %v3634_v7 = vsub.f32 %v10476_v9, %v3490_v50  ;;  %v3635_v44 = vsub.f32 %v10477_v60, %v3490_v50  ;;  %v10478_v12 = vld [vmem:[#allocation105_spill] sm:$0xff] }
 0x82d   : > { %v9102_v25 = vpop.eup %6296  ;;  %6316 = vpow2.f32 %v3912_v53  ;;  %v3916_v59 = vmul.f32 1.442695, %v3665_v48  ;;  %4095 = vadd.xlane.f32.xlu1 %v4094_v16  ;;  %4050 = vadd.xlane.f32.xlu0 %v4049_v47  ;;  %v4052_v38 = vadd.f32 %v9093_v18, %v9090_v33  ;;  %v3493_v45 = vpop.xlane.xlu0 %3492  ;;  %v4097_v53 = vadd.f32 %v9086_v19, %v9082_v35  ;;  %v10479_v48 = vld [vmem:[#allocation12_spill] sm:$0xff]  ;;  %v10480_v33 = vld [vmem:[#allocation103_spill] sm:$0xff] }
 0x82e   : > { %v9106_v6 = vpop.eup %6298  ;;  %6318 = vpow2.f32 %v3914_v63  ;;  %v3854_v20 = vmul.f32 1.442695, %v3634_v7  ;;  %v3856_v23 = vmul.f32 1.442695, %v3635_v44  ;;  %v3636_v21 = vsub.f32 %v10478_v12, %v3493_v45  ;;  %v10481_v63 = vld [vmem:[#allocation99_spill] sm:$0xff] }
 0x82f   : > { %v9109_v9 = vpop.eup %6300  ;;  %6320 = vpow2.f32 %v3916_v59  ;;  %v3637_v16 = vsub.f32 %v10479_v48, %v3493_v45  ;;  %v3538_v47 = vpop.xlane.xlu1 %3537 }
 0x830   : > { %v9114_v50 = vpop.eup %6302  ;;  %6322 = vpow2.f32 %v3854_v20  ;;  %v3858_v60 = vmul.f32 1.442695, %v3636_v21  ;;  %v3666_v18 = vsub.f32 %v10480_v33, %v3538_v47  ;;  %v3667_v7 = vsub.f32 %v10481_v63, %v3538_v47 }
 0x831   : > { %v9118_v44 = vpop.eup %6304  ;;  %6324 = vpow2.f32 %v3856_v23  ;;  %4053 = vadd.xlane.f32.xlu1 %v4052_v38  ;;  %4098 = vadd.xlane.f32.xlu0 %v4097_v53  ;;  %v4100_v59 = vadd.f32 %v9109_v9, %v9106_v6  ;;  %v3541_v12 = vpop.xlane.xlu0 %3540  ;;  %v3860_v45 = vmul.f32 1.442695, %v3637_v16  ;;  %v4055_v33 = vadd.f32 %v9102_v25, %v9098_v46  ;;  %v10482_v23 = vld [vmem:[#allocation22_spill] sm:$0xff] }
 0x832   : > { %v9122_v35 = vpop.eup %6306  ;;  %v3918_v48 = vmul.f32 1.442695, %v3666_v18  ;;  %v3920_v19 = vmul.f32 1.442695, %v3667_v7  ;;  %v3668_v20 = vsub.f32 %v8652_v8, %v3541_v12  ;;  %6326 = vpow2.f32 %v3858_v60 }
 0x833   : > { %v9125_v21 = vpop.eup %6308  ;;  %v3669_v38 = vsub.f32 %v10482_v23, %v3541_v12  ;;  %v4103_v7 = vadd.f32 %v9118_v44, %v9114_v50 }
 0x834   : > { %v9130_v53 = vpop.eup %6310  ;;  %6328 = vpow2.f32 %v3918_v48  ;;  %v3922_v18 = vmul.f32 1.442695, %v3668_v20  ;;  %v4058_v8 = vadd.f32 %v9125_v21, %v9122_v35 }
 0x835   : > { %10483 = vst [vmem:[#allocation77_spill] sm:$0xff] %v9130_v53  ;;  %v9132_v47 = vpop.eup %6312  ;;  %6330 = vpow2.f32 %v3920_v19  ;;  %4101 = vadd.xlane.f32.xlu1 %v4100_v59  ;;  %4056 = vadd.xlane.f32.xlu0 %v4055_v33  ;;  %v3924_v60 = vmul.f32 1.442695, %v3669_v38 }
 0x836   : > { %v9136_v16 = vpop.eup %6314  ;;  %6332 = vpow2.f32 %v3860_v45  ;;  %v4061_v20 = vadd.f32 %v9132_v47, %v9130_v53 }
 0x837   : > { %10484 = vst [vmem:[#allocation90_spill] sm:$0xff] %v9136_v16  ;;  %v9138_v63 = vpop.eup %6316  ;;  %6334 = vpow2.f32 %v3922_v18 }
 0x838   : > { %10485 = vst [vmem:[#allocation83_spill] sm:$0xff] %v9138_v63  ;;  %v9142_v12 = vpop.eup %6318  ;;  %v4106_v19 = vadd.f32 %v9138_v63, %v9136_v16  ;;  %6336 = vpow2.f32 %v3924_v60 }
 0x839   : > { %10486 = vst [vmem:[#allocation86_spill] sm:$0xff] %v9142_v12  ;;  %v9144_v48 = vpop.eup %6320  ;;  %4059 = vadd.xlane.f32.xlu1 %v4058_v8  ;;  %4104 = vadd.xlane.f32.xlu0 %v4103_v7 }
 0x83a   : > { %10487 = vst [vmem:[#allocation79_spill] sm:$0xff] %v9144_v48  ;;  %v9148_v59 = vpop.eup %6322  ;;  %v4109_v8 = vadd.f32 %v9144_v48, %v9142_v12 }
 0x83b   : > { %10488 = vst [vmem:[#allocation95_spill] sm:$0xff] %v9148_v59  ;;  %v9150_v45 = vpop.eup %6324 }
 0x83c   : > { %10489 = vst [vmem:[#allocation85_spill] sm:$0xff] %v9150_v45  ;;  %v9154_v33 = vpop.eup %6326  ;;  %v4064_v23 = vadd.f32 %v9150_v45, %v9148_v59 }
 0x83d   : > { %10490 = vst [vmem:[#allocation84_spill] sm:$0xff] %v9154_v33  ;;  %4107 = vadd.xlane.f32.xlu1 %v4106_v19  ;;  %4062 = vadd.xlane.f32.xlu0 %v4061_v20 }
 0x83e   : > { %v9158_v38 = vpop.eup %6328 }
 0x83f   : > { %10491 = vst [vmem:[#allocation97_spill] sm:$0xff] %v9158_v38  ;;  %v9160_v18 = vpop.eup %6330 }
 0x840   : > { %10492 = vst [vmem:[#allocation98_spill] sm:$0xff] %v9160_v18  ;;  %v9164_v60 = vpop.eup %6332  ;;  %v4112_v7 = vadd.f32 %v9160_v18, %v9158_v38 }
 0x841   : > { %10493 = vst [vmem:[#allocation94_spill] sm:$0xff] %v9164_v60  ;;  %4065 = vadd.xlane.f32.xlu1 %v4064_v23  ;;  %4110 = vadd.xlane.f32.xlu0 %v4109_v8  ;;  %v9168_v16 = vpop.eup %6334  ;;  %v4067_v19 = vadd.f32 %v9164_v60, %v9154_v33  ;;  %v4552_v23 = vld [vmem:[%s9533_s3] sm:$0xff]  ;;  %v4553_v33 = vld [vmem:[%s9533_s3 + $0x8] sm:$0xff] }
 0x842   : > { %10494 = vst [vmem:[#allocation104_spill] sm:$0xff] %v9168_v16  ;;  %v9172_v20 = vpop.eup %6336 }
 0x843   : > { %10495 = vst [vmem:[#allocation91_spill] sm:$0xff] %v9172_v20  ;;  %v4115_v59 = vadd.f32 %v9172_v20, %v9168_v16 }
 0x845   : > { %4113 = vadd.xlane.f32.xlu1 %v4112_v7  ;;  %4068 = vadd.xlane.f32.xlu0 %v4067_v19 }
 0x849   : > { %4116 = vadd.xlane.f32.xlu0 %v4115_v59 }
 0x856   : > { %4556 = vperm.xlu1 %5357, %v4552_v23   ;;  %v3928_v8 = vpop.xlane.xlu1 %3927 }
 0x857   : > { %6338 = vrcp.f32 %v3928_v8 }
 0x85a   : > { %v3976_v38 = vpop.xlane.xlu1 %3975  ;;  %v3931_v18 = vpop.xlane.xlu0 %3930 }
 0x85b   : > { %6340 = vrcp.f32 %v3931_v18 }
 0x85c   : > { %6342 = vrcp.f32 %v3976_v38 }
 0x85e   : > { %v3934_v7 = vpop.xlane.xlu1 %3933  ;;  %v3979_v19 = vpop.xlane.xlu0 %3978 }
 0x85f   : > { %4561 = vperm.xlu0 %5358, %v4553_v33   ;;  %6344 = vrcp.f32 %v3979_v19 }
 0x860   : > { %6346 = vrcp.f32 %v3934_v7 }
 0x861   : > { %v6339_v20 = vpop.eup %6338 }
 0x862   : > { %v3982_v59 = vpop.xlane.xlu1 %3981  ;;  %v3937_v16 = vpop.xlane.xlu0 %3936  ;;  %v4183_v18 = vmul.f32 %v6339_v20, %v8688_v37  ;;  %v4182_v12 = vmul.f32 %v6339_v20, %v8684_v57 }
 0x863   : > { %6348 = vrcp.f32 %v3937_v16 }
 0x864   : > { %6350 = vrcp.f32 %v3982_v59 }
 0x865   : > { %v6341_v23 = vpop.eup %6340 }
 0x866   : > { %v3940_v8 = vpop.xlane.xlu1 %3939  ;;  %v3985_v60 = vpop.xlane.xlu0 %3984  ;;  %v4185_v45 = vmul.f32 %v6341_v23, %v8702_v4  ;;  %v4184_v38 = vmul.f32 %v6341_v23, %v8698_v5 }
 0x867   : > { %v6343_v48 = vpop.eup %6342  ;;  %6352 = vrcp.f32 %v3985_v60 }
 0x868   : > { %v4311_v33 = vpack.c.bf16 %v4185_v45, %v4183_v18  ;;  %v4310_v7 = vpack.c.bf16 %v4184_v38, %v4182_v12  ;;  %6354 = vrcp.f32 %v3940_v8  ;;  %v4215_v59 = vmul.f32 %v6343_v48, %v8681_v15 }
 0x869   : > { %v6345_v19 = vpop.eup %6344  ;;  %v4214_v37 = vmul.f32 %v6343_v48, %v8678_v29 }
 0x86a   : > { %v3988_v63 = vpop.xlane.xlu1 %3987  ;;  %v3943_v16 = vpop.xlane.xlu0 %3942  ;;  %4374 = vmatprep.subr.bf16.mxu1 %v4311_v33  ;;  %v4217_v53 = vmul.f32 %v6345_v19, %v8693_v58  ;;  %v4216_v4 = vmul.f32 %v6345_v19, %v8690_v14 }
 0x86b   : > { %v6347_v57 = vpop.eup %6346  ;;  %6356 = vrcp.f32 %v3943_v16  ;;  %4375 = vmatpush1.bf16.xpose.msra.mxu1 %v4310_v7 }
 0x86c   : > { %v4327_v5 = vpack.c.bf16 %v4217_v53, %v4215_v59  ;;  %v4326_v60 = vpack.c.bf16 %v4216_v4, %v4214_v37  ;;  %6358 = vrcp.f32 %v3988_v63  ;;  %v4187_v23 = vmul.f32 %v6347_v57, %v8707_v0 }
 0x86d   : > { %v6349_v45 = vpop.eup %6348  ;;  %v4186_v58 = vmul.f32 %v6347_v57, %v8704_v61 }
 0x86e   : > { %v3946_v12 = vpop.xlane.xlu1 %3945  ;;  %v3991_v20 = vpop.xlane.xlu0 %3990  ;;  %4414 = vmatprep.subr.bf16.mxu0 %v4327_v5  ;;  %v4189_v15 = vmul.f32 %v6349_v45, %v8718_v10  ;;  %v4188_v29 = vmul.f32 %v6349_v45, %v8714_v1 }
 0x86f   : > { %v6351_v48 = vpop.eup %6350  ;;  %6360 = vrcp.f32 %v3991_v20  ;;  %4415 = vmatpush1.bf16.xpose.msra.mxu0 %v4326_v60 }
 0x870   : > { %v4313_v14 = vpack.c.bf16 %v4189_v15, %v4187_v23  ;;  %v4312_v8 = vpack.c.bf16 %v4188_v29, %v4186_v58  ;;  %6362 = vrcp.f32 %v3946_v12  ;;  %v4219_v38 = vmul.f32 %v6351_v48, %v8725_v24 }
 0x871   : > { %v6353_v53 = vpop.eup %6352  ;;  %v4218_v10 = vmul.f32 %v6351_v48, %v8722_v39 }
 0x872   : > { %v3994_v18 = vpop.xlane.xlu1 %3993  ;;  %v3949_v63 = vpop.xlane.xlu0 %3948  ;;  %4376 = vmatprep.subr.bf16.mxu1 %v4313_v14  ;;  %v4221_v0 = vmul.f32 %v6353_v53, %v8734_v49  ;;  %v4220_v61 = vmul.f32 %v6353_v53, %v8730_v34 }
 0x873   : > { %v6355_v33 = vpop.eup %6354  ;;  %6364 = vrcp.f32 %v3949_v63  ;;  %4377 = vmatpush1.bf16.xpose.msra.mxu1 %v4312_v8 }
 0x874   : > { %v4329_v1 = vpack.c.bf16 %v4221_v0, %v4219_v38  ;;  %v4328_v7 = vpack.c.bf16 %v4220_v61, %v4218_v10  ;;  %6366 = vrcp.f32 %v3994_v18  ;;  %v4191_v37 = vmul.f32 %v6355_v33, %v8741_v40 }
 0x875   : > { %v6357_v19 = vpop.eup %6356  ;;  %v4190_v49 = vmul.f32 %v6355_v33, %v8738_v27 }
 0x876   : > { %v3952_v16 = vpop.xlane.xlu1 %3951  ;;  %v3997_v59 = vpop.xlane.xlu0 %3996  ;;  %4416 = vmatprep.subr.bf16.mxu0 %v4329_v1  ;;  %v4193_v24 = vmul.f32 %v6357_v19, %v8750_v26  ;;  %v4192_v39 = vmul.f32 %v6357_v19, %v8746_v52 }
 0x877   : > { %v6359_v4 = vpop.eup %6358  ;;  %6368 = vrcp.f32 %v3997_v59  ;;  %4417 = vmatpush1.bf16.xpose.msra.mxu0 %v4328_v7 }
 0x878   : > { %v4315_v34 = vpack.c.bf16 %v4193_v24, %v4191_v37  ;;  %v4314_v57 = vpack.c.bf16 %v4192_v39, %v4190_v49  ;;  %6370 = vrcp.f32 %v3952_v16  ;;  %v4223_v12 = vmul.f32 %v6359_v4, %v8757_v22  ;;  %v10496_v39 = vld [vmem:[#allocation11_spill] sm:$0xff] }
 0x879   : > { %v6361_v5 = vpop.eup %6360  ;;  %v4222_v26 = vmul.f32 %v6359_v4, %v8754_v36 }
 0x87a   : > { %v4000_v60 = vpop.xlane.xlu1 %3999  ;;  %v3955_v45 = vpop.xlane.xlu0 %3954  ;;  %4378 = vmatprep.subr.bf16.mxu1 %v4315_v34  ;;  %v4225_v40 = vmul.f32 %v6361_v5, %v8766_v31  ;;  %v4224_v27 = vmul.f32 %v6361_v5, %v8762_v55 }
 0x87b   : > { %v6363_v20 = vpop.eup %6362  ;;  %6372 = vrcp.f32 %v3955_v45  ;;  %4379 = vmatpush1.bf16.xpose.msra.mxu1 %v4314_v57  ;;  %v10497_v45 = vld [vmem:[#allocation23_spill] sm:$0xff] }
 0x87c   : > { %v4331_v52 = vpack.c.bf16 %v4225_v40, %v4223_v12  ;;  %v4330_v23 = vpack.c.bf16 %v4224_v27, %v4222_v26  ;;  %6374 = vrcp.f32 %v4000_v60  ;;  %v4195_v48 = vmul.f32 %v6363_v20, %v8773_v28  ;;  %v10498_v40 = vld [vmem:[#allocation16_spill] sm:$0xff]  ;;  %v10499_v26 = vld [vmem:[#allocation15_spill] sm:$0xff]  ;;  %v10500_v27 = vld [vmem:[#allocation13_spill] sm:$0xff] }
 0x87d   : > { %v6365_v15 = vpop.eup %6364  ;;  %v4194_v31 = vmul.f32 %v6363_v20, %v8770_v11 }
 0x87e   : > { %v3958_v58 = vpop.xlane.xlu1 %3957  ;;  %v4003_v29 = vpop.xlane.xlu0 %4002  ;;  %4418 = vmatprep.subr.bf16.mxu0 %v4331_v52  ;;  %v4197_v22 = vmul.f32 %v6365_v15, %v8782_v2  ;;  %v4196_v36 = vmul.f32 %v6365_v15, %v8778_v3 }
 0x87f   : > { %v6367_v14 = vpop.eup %6366  ;;  %6376 = vrcp.f32 %v4003_v29  ;;  %4419 = vmatpush1.bf16.xpose.msra.mxu0 %v4330_v23 }
 0x880   : > { %v4317_v55 = vpack.c.bf16 %v4197_v22, %v4195_v48  ;;  %v4316_v8 = vpack.c.bf16 %v4196_v36, %v4194_v31  ;;  %6378 = vrcp.f32 %v3958_v58  ;;  %v4227_v38 = vmul.f32 %v6367_v14, %v8789_v54  ;;  %v10501_v48 = vld [vmem:[#allocation17_spill] sm:$0xff]  ;;  %v10502_v31 = vld [vmem:[#allocation24_spill] sm:$0xff] }
 0x881   : > { %v6369_v53 = vpop.eup %6368  ;;  %v4226_v2 = vmul.f32 %v6367_v14, %v8786_v51  ;;  %v10503_v14 = vld [vmem:[#allocation14_spill] sm:$0xff] }
 0x882   : > { %v4006_v18 = vpop.xlane.xlu1 %4005  ;;  %v3961_v63 = vpop.xlane.xlu0 %3960  ;;  %4380 = vmatprep.subr.bf16.mxu1 %v4317_v55  ;;  %v4229_v28 = vmul.f32 %v6369_v53, %v8798_v42  ;;  %v4228_v11 = vmul.f32 %v6369_v53, %v8794_v17 }
 0x883   : > { %v6371_v0 = vpop.eup %6370  ;;  %6380 = vrcp.f32 %v3961_v63  ;;  %4381 = vmatpush1.bf16.xpose.msra.mxu1 %v4316_v8  ;;  %v10504_v8 = vld [vmem:[#allocation18_spill] sm:$0xff] }
 0x884   : > { %v4333_v3 = vpack.c.bf16 %v4229_v28, %v4227_v38  ;;  %v4332_v10 = vpack.c.bf16 %v4228_v11, %v4226_v2  ;;  %6382 = vrcp.f32 %v4006_v18  ;;  %v4199_v7 = vmul.f32 %v6371_v0, %v8805_v62 }
 0x885   : > { %v6373_v61 = vpop.eup %6372  ;;  %v4198_v42 = vmul.f32 %v6371_v0, %v8802_v56  ;;  %v10505_v0 = vld [vmem:[#allocation30_spill] sm:$0xff] }
 0x886   : > { %v3964_v33 = vpop.xlane.xlu1 %3963  ;;  %v4009_v1 = vpop.xlane.xlu0 %4008  ;;  %4420 = vmatprep.subr.bf16.mxu0 %v4333_v3  ;;  %v4201_v54 = vmul.f32 %v6373_v61, %v8814_v13  ;;  %v4200_v51 = vmul.f32 %v6373_v61, %v8810_v43 }
 0x887   : > { %v6375_v19 = vpop.eup %6374  ;;  %6384 = vrcp.f32 %v4009_v1  ;;  %4421 = vmatpush1.bf16.xpose.msra.mxu0 %v4332_v10  ;;  %v10506_v10 = vld [vmem:[#allocation29_spill] sm:$0xff] }
 0x888   : > { %v4319_v17 = vpack.c.bf16 %v4201_v54, %v4199_v7  ;;  %v4318_v16 = vpack.c.bf16 %v4200_v51, %v4198_v42  ;;  %6386 = vrcp.f32 %v3964_v33  ;;  %v4231_v49 = vmul.f32 %v6375_v19, %v8821_v30  ;;  %v10507_v33 = vld [vmem:[#allocation25_spill] sm:$0xff]  ;;  %v10508_v7 = vld [vmem:[#allocation34_spill] sm:$0xff] }
 0x889   : > { %v6377_v59 = vpop.eup %6376  ;;  %v4230_v13 = vmul.f32 %v6375_v19, %v8818_v32 }
 0x88a   : > { %v4012_v37 = vpop.xlane.xlu1 %4011  ;;  %v3967_v24 = vpop.xlane.xlu0 %3966  ;;  %4382 = vmatprep.subr.bf16.mxu1 %v4319_v17  ;;  %v4233_v62 = vmul.f32 %v6377_v59, %v8830_v41  ;;  %v4232_v56 = vmul.f32 %v6377_v59, %v10496_v39 }
 0x88b   : > { %v6379_v4 = vpop.eup %6378  ;;  %6388 = vrcp.f32 %v3967_v24  ;;  %4383 = vmatpush1.bf16.xpose.msra.mxu1 %v4318_v16 }
 0x88c   : > { %v4335_v43 = vpack.c.bf16 %v4233_v62, %v4231_v49  ;;  %v4334_v34 = vpack.c.bf16 %v4232_v56, %v4230_v13  ;;  %6390 = vrcp.f32 %v4012_v37  ;;  %v4203_v12 = vmul.f32 %v6379_v4, %v10497_v45  ;;  %v10509_v37 = vld [vmem:[#allocation36_spill] sm:$0xff]  ;;  %v10510_v49 = vld [vmem:[#allocation31_spill] sm:$0xff]  ;;  %v10512_v56 = vld [vmem:[#allocation33_spill] sm:$0xff] }
 0x88d   : > { %v6381_v57 = vpop.eup %6380  ;;  %v4202_v41 = vmul.f32 %v6379_v4, %v10499_v26  ;;  %v10511_v13 = vld [vmem:[#allocation35_spill] sm:$0xff] }
 0x88e   : > { %v3970_v5 = vpop.xlane.xlu1 %3969  ;;  %v4015_v60 = vpop.xlane.xlu0 %4014  ;;  %4422 = vmatprep.subr.bf16.mxu0 %v4335_v43  ;;  %v4205_v30 = vmul.f32 %v6381_v57, %v10498_v40  ;;  %v4204_v32 = vmul.f32 %v6381_v57, %v10500_v27 }
 0x88f   : > { %v6383_v20 = vpop.eup %6382  ;;  %6392 = vrcp.f32 %v4015_v60  ;;  %4423 = vmatpush1.bf16.xpose.msra.mxu0 %v4334_v34 }
 0x890   : > { %v4321_v52 = vpack.c.bf16 %v4205_v30, %v4203_v12  ;;  %v4320_v23 = vpack.c.bf16 %v4204_v32, %v4202_v41  ;;  %6394 = vrcp.f32 %v3970_v5  ;;  %v4235_v22 = vmul.f32 %v6383_v20, %v10501_v48  ;;  %v10513_v12 = vld [vmem:[#allocation38_spill] sm:$0xff]  ;;  %v10514_v30 = vld [vmem:[#allocation37_spill] sm:$0xff]  ;;  %v10515_v41 = vld [vmem:[#allocation40_spill] sm:$0xff] }
 0x891   : > { %v6385_v15 = vpop.eup %6384  ;;  %v4234_v55 = vmul.f32 %v6383_v20, %v10503_v14  ;;  %v10516_v32 = vld [vmem:[#allocation42_spill] sm:$0xff] }
 0x892   : > { %v4018_v58 = vpop.xlane.xlu1 %4017  ;;  %v3973_v29 = vpop.xlane.xlu0 %3972  ;;  %4384 = vmatprep.subr.bf16.mxu1 %v4321_v52  ;;  %v4237_v36 = vmul.f32 %v6385_v15, %v10502_v31  ;;  %v4236_v53 = vmul.f32 %v6385_v15, %v10504_v8 }
 0x893   : > { %v6387_v18 = vpop.eup %6386  ;;  %6396 = vrcp.f32 %v3973_v29  ;;  %4385 = vmatpush1.bf16.xpose.msra.mxu1 %v4320_v23 }
 0x894   : > { %v4337_v63 = vpack.c.bf16 %v4237_v36, %v4235_v22  ;;  %v4336_v38 = vpack.c.bf16 %v4236_v53, %v4234_v55  ;;  %6398 = vrcp.f32 %v4018_v58  ;;  %v4207_v3 = vmul.f32 %v6387_v18, %v10505_v0  ;;  %v10517_v22 = vld [vmem:[#allocation44_spill] sm:$0xff]  ;;  %v10518_v36 = vld [vmem:[#allocation39_spill] sm:$0xff]  ;;  %v10520_v53 = vld [vmem:[#allocation41_spill] sm:$0xff] }
 0x895   : > { %v6389_v28 = vpop.eup %6388  ;;  %v4206_v1 = vmul.f32 %v6387_v18, %v10507_v33  ;;  %v10519_v55 = vld [vmem:[#allocation43_spill] sm:$0xff]  ;;  %v10522_v33 = vld [vmem:[#allocation45_spill] sm:$0xff] }
 0x896   : > { %v4024_v2 = vpop.xlane.xlu1 %4023  ;;  %v4021_v11 = vpop.xlane.xlu0 %4020  ;;  %4424 = vmatprep.subr.bf16.mxu0 %v4337_v63  ;;  %v4209_v61 = vmul.f32 %v6389_v28, %v10506_v10  ;;  %v4208_v54 = vmul.f32 %v6389_v28, %v10508_v7  ;;  %v10521_v10 = vld [vmem:[#allocation46_spill] sm:$0xff]  ;;  %v10523_v7 = vld [vmem:[#allocation48_spill] sm:$0xff] }
 0x897   : > { %v6391_v42 = vpop.eup %6390  ;;  %6400 = vrcp.f32 %v4021_v11  ;;  %4425 = vmatpush1.bf16.xpose.msra.mxu0 %v4336_v38 }
 0x898   : > { %v4323_v51 = vpack.c.bf16 %v4209_v61, %v4207_v3  ;;  %v4322_v19 = vpack.c.bf16 %v4208_v54, %v4206_v1  ;;  %6402 = vrcp.f32 %v4024_v2  ;;  %v4239_v24 = vmul.f32 %v6391_v42, %v10509_v37 }
 0x899   : > { %v6393_v17 = vpop.eup %6392  ;;  %v4238_v39 = vmul.f32 %v6391_v42, %v10511_v13  ;;  %v10524_v42 = vld [vmem:[#allocation50_spill] sm:$0xff] }
 0x89a   : > { %v4072_v16 = vpop.xlane.xlu1 %4071  ;;  %v4027_v59 = vpop.xlane.xlu0 %4026  ;;  %4386 = vmatprep.subr.bf16.mxu1 %v4323_v51  ;;  %v4241_v62 = vmul.f32 %v6393_v17, %v10510_v49  ;;  %v4240_v4 = vmul.f32 %v6393_v17, %v10512_v56  ;;  %v10526_v13 = vld [vmem:[#allocation102_spill] sm:$0xff] }
 0x89b   : > { %v6395_v43 = vpop.eup %6394  ;;  %6404 = vrcp.f32 %v4027_v59  ;;  %4387 = vmatpush1.bf16.xpose.msra.mxu1 %v4322_v19 }
 0x89c   : > { %6406 = vrcp.f32 %v4072_v16  ;;  %v4339_v34 = vpack.c.bf16 %v4241_v62, %v4239_v24  ;;  %v4338_v57 = vpack.c.bf16 %v4240_v4, %v4238_v39  ;;  %v4211_v40 = vmul.f32 %v6395_v43, %v10513_v12  ;;  %v10525_v24 = vld [vmem:[#allocation52_spill] sm:$0xff]  ;;  %v10527_v39 = vld [vmem:[#allocation47_spill] sm:$0xff] }
 0x89d   : > { %v6397_v5 = vpop.eup %6396  ;;  %v4210_v27 = vmul.f32 %v6395_v43, %v10515_v41  ;;  %v10528_v4 = vld [vmem:[#allocation51_spill] sm:$0xff] }
 0x89e   : > { %v4030_v60 = vpop.xlane.xlu1 %4029  ;;  %v4075_v45 = vpop.xlane.xlu0 %4074  ;;  %4426 = vmatprep.subr.bf16.mxu0 %v4339_v34  ;;  %v4213_v26 = vmul.f32 %v6397_v5, %v10514_v30  ;;  %v4212_v20 = vmul.f32 %v6397_v5, %v10516_v32  ;;  %v10529_v34 = vld [vmem:[#allocation49_spill] sm:$0xff]  ;;  %v10530_v5 = vld [vmem:[#allocation10_spill] sm:$0xff] }
 0x89f   : > { %v6399_v52 = vpop.eup %6398  ;;  %6408 = vrcp.f32 %v4075_v45  ;;  %4427 = vmatpush1.bf16.xpose.msra.mxu0 %v4338_v57  ;;  %v10533_v32 = vld [vmem:[#allocation21_spill] sm:$0xff] }
 0x8a0   : > { %6410 = vrcp.f32 %v4030_v60  ;;  %v4325_v23 = vpack.c.bf16 %v4213_v26, %v4211_v40  ;;  %v4324_v15 = vpack.c.bf16 %v4212_v20, %v4210_v27  ;;  %v4243_v31 = vmul.f32 %v6399_v52, %v10517_v22  ;;  %v10531_v26 = vld [vmem:[#allocation54_spill] sm:$0xff]  ;;  %v10532_v27 = vld [vmem:[#allocation9_spill] sm:$0xff] }
 0x8a1   : > { %v6401_v58 = vpop.eup %6400  ;;  %v4242_v8 = vmul.f32 %v6399_v52, %v10519_v55  ;;  %v10534_v52 = vld [vmem:[#allocation56_spill] sm:$0xff] }
 0x8a2   : > { %v4078_v29 = vpop.xlane.xlu1 %4077  ;;  %v4033_v48 = vpop.xlane.xlu0 %4032  ;;  %4388 = vmatprep.subr.bf16.mxu1 %v4325_v23  ;;  %v4245_v14 = vmul.f32 %v6401_v58, %v10518_v36  ;;  %v4244_v18 = vmul.f32 %v6401_v58, %v10520_v53 }
 0x8a3   : > { %v6403_v63 = vpop.eup %6402  ;;  %6412 = vrcp.f32 %v4033_v48  ;;  %4389 = vmatpush1.bf16.xpose.msra.mxu1 %v4324_v15  ;;  %v10535_v15 = vld [vmem:[#allocation58_spill] sm:$0xff]  ;;  %v10536_v48 = vld [vmem:[#allocation27_spill] sm:$0xff] }
 0x8a4   : > { %v4341_v38 = vpack.c.bf16 %v4245_v14, %v4243_v31  ;;  %v4340_v28 = vpack.c.bf16 %v4244_v18, %v4242_v8  ;;  %6414 = vrcp.f32 %v4078_v29  ;;  %v4247_v61 = vmul.f32 %v6403_v63, %v10521_v10  ;;  %v10537_v8 = vld [vmem:[#allocation19_spill] sm:$0xff]  ;;  %v10538_v18 = vld [vmem:[#allocation53_spill] sm:$0xff] }
 0x8a5   : > { %v6405_v2 = vpop.eup %6404  ;;  %v4246_v54 = vmul.f32 %v6403_v63, %v10523_v7  ;;  %v10541_v7 = vld [vmem:[#allocation65_spill] sm:$0xff] }
 0x8a6   : > { %v4036_v11 = vpop.xlane.xlu1 %4035  ;;  %v4081_v0 = vpop.xlane.xlu0 %4080  ;;  %4428 = vmatprep.subr.bf16.mxu0 %v4341_v38  ;;  %v4249_v1 = vmul.f32 %v6405_v2, %v10522_v33  ;;  %v4248_v51 = vmul.f32 %v6405_v2, %v10524_v42  ;;  %v10539_v38 = vld [vmem:[#allocation59_spill] sm:$0xff]  ;;  %v10540_v2 = vld [vmem:[#allocation57_spill] sm:$0xff]  ;;  %v10542_v42 = vld [vmem:[#allocation20_spill] sm:$0xff] }
 0x8a7   : > { %v6407_v3 = vpop.eup %6406  ;;  %6416 = vrcp.f32 %v4081_v0  ;;  %4429 = vmatpush1.bf16.xpose.msra.mxu0 %v4340_v28 }
 0x8a8   : > { %v4343_v19 = vpack.c.bf16 %v4249_v1, %v4247_v61  ;;  %v4342_v17 = vpack.c.bf16 %v4248_v51, %v4246_v54  ;;  %6418 = vrcp.f32 %v4036_v11  ;;  %v4279_v49 = vmul.f32 %v6407_v3, %v10525_v24 }
 0x8a9   : > { %v6409_v16 = vpop.eup %6408  ;;  %v4278_v43 = vmul.f32 %v6407_v3, %v10528_v4 }
 0x8aa   : > { %v4084_v59 = vpop.xlane.xlu1 %4083  ;;  %v4039_v37 = vpop.xlane.xlu0 %4038  ;;  %4407 = vmatmul.mubr.bf16.vlgmr.msra.gmra.mrb[136].mxu1 %v10526_v13  ;;  %4454 = vmatprep.subr.bf16.mxu1 %v4343_v19  ;;  %v4281_v56 = vmul.f32 %v6409_v16, %v10527_v39  ;;  %v4280_v57 = vmul.f32 %v6409_v16, %v10529_v34  ;;  %v10543_v19 = vld [vmem:[#allocation64_spill] sm:$0xff]  ;;  %v10544_v16 = vld [vmem:[#allocation55_spill] sm:$0xff] }
 0x8ab   : > { %v6411_v62 = vpop.eup %6410  ;;  %6420 = vrcp.f32 %v4039_v37  ;;  %4455 = vmatpush1.bf16.xpose.msra.mxu1 %v4342_v17  ;;  %4486 = vmatprep.mubr.bf16.mxu1 %v10530_v5 }
 0x8ac   : > { %v4359_v60 = vpack.c.bf16 %v4281_v56, %v4279_v49  ;;  %v4358_v45 = vpack.c.bf16 %v4280_v57, %v4278_v43  ;;  %6422 = vrcp.f32 %v4084_v59  ;;  %v4251_v41 = vmul.f32 %v6411_v62, %v10531_v26  ;;  %v10545_v56 = vld [vmem:[#allocation60_spill] sm:$0xff]  ;;  %v10546_v43 = vld [vmem:[#allocation67_spill] sm:$0xff]  ;;  %v10547_v57 = vld [vmem:[#allocation62_spill] sm:$0xff] }
 0x8ad   : > { %v6413_v12 = vpop.eup %6412  ;;  %v4250_v23 = vmul.f32 %v6411_v62, %v10534_v52  ;;  %v10550_v52 = vld [vmem:[#allocation70_spill] sm:$0xff] }
 0x8ae   : > { %v4042_v40 = vpop.xlane.xlu1 %4041  ;;  %v4087_v30 = vpop.xlane.xlu0 %4086  ;;  %4447 = vmatmul.mubr.bf16.vlgmr.msra.gmra.mrb[148].mxu0 %v10532_v27  ;;  %4494 = vmatprep.subr.bf16.mxu0 %v4359_v60  ;;  %v4253_v20 = vmul.f32 %v6413_v12, %v10533_v32  ;;  %v4252_v58 = vmul.f32 %v6413_v12, %v10535_v15  ;;  %v10548_v60 = vld [vmem:[#allocation66_spill] sm:$0xff]  ;;  %v10551_v15 = vld [vmem:[#allocation72_spill] sm:$0xff] }
 0x8af   : > { %v6415_v29 = vpop.eup %6414  ;;  %6424 = vrcp.f32 %v4087_v30  ;;  %4495 = vmatpush1.bf16.xpose.msra.mxu0 %v4358_v45  ;;  %4526 = vmatprep.mubr.bf16.mxu0 %v10536_v48  ;;  %v10549_v32 = vld [vmem:[#allocation74_spill] sm:$0xff] }
 0x8b0   : > { %v4345_v22 = vpack.c.bf16 %v4253_v20, %v4251_v41  ;;  %v4344_v31 = vpack.c.bf16 %v4252_v58, %v4250_v23  ;;  %6426 = vrcp.f32 %v4042_v40  ;;  %v4283_v53 = vmul.f32 %v6415_v29, %v10537_v8 }
 0x8b1   : > { %v6417_v36 = vpop.eup %6416  ;;  %v4282_v28 = vmul.f32 %v6415_v29, %v10539_v38  ;;  %v10552_v29 = vld [vmem:[#allocation61_spill] sm:$0xff] }
 0x8b2   : > { %v4090_v14 = vpop.xlane.xlu1 %4089  ;;  %v4045_v55 = vpop.xlane.xlu0 %4044  ;;  %4456 = vmatprep.subr.bf16.mxu1 %v4345_v22  ;;  %v4285_v63 = vmul.f32 %v6417_v36, %v10538_v18  ;;  %v4284_v11 = vmul.f32 %v6417_v36, %v10540_v2 }
 0x8b3   : > { %v6419_v0 = vpop.eup %6418  ;;  %6428 = vrcp.f32 %v4045_v55  ;;  %4457 = vmatpush1.bf16.xpose.msra.mxu1 %v4344_v31 }
 0x8b4   : > { %v4361_v3 = vpack.c.bf16 %v4285_v63, %v4283_v53  ;;  %v4360_v10 = vpack.c.bf16 %v4284_v11, %v4282_v28  ;;  %6430 = vrcp.f32 %v4090_v14  ;;  %v4255_v54 = vmul.f32 %v6419_v0, %v10541_v7  ;;  %v10553_v53 = vld [vmem:[#allocation81_spill] sm:$0xff]  ;;  %v10554_v63 = vld [vmem:[#allocation75_spill] sm:$0xff] }
 0x8b5   : > { %v6421_v61 = vpop.eup %6420  ;;  %v4254_v17 = vmul.f32 %v6419_v0, %v10543_v19  ;;  %v10555_v28 = vld [vmem:[#allocation73_spill] sm:$0xff]  ;;  %v10556_v11 = vld [vmem:[#allocation63_spill] sm:$0xff] }
 0x8b6   : > { %v4048_v33 = vpop.xlane.xlu1 %4047  ;;  %v4093_v1 = vpop.xlane.xlu0 %4092  ;;  %4496 = vmatprep.subr.bf16.mxu0 %v4361_v3  ;;  %v4257_v51 = vmul.f32 %v6421_v61, %v10542_v42  ;;  %v4256_v59 = vmul.f32 %v6421_v61, %v10544_v16 }
 0x8b7   : > { %v6423_v37 = vpop.eup %6422  ;;  %6432 = vrcp.f32 %v4093_v1  ;;  %4497 = vmatpush1.bf16.xpose.msra.mxu0 %v4360_v10 }
 0x8b8   : > { %v4347_v24 = vpack.c.bf16 %v4257_v51, %v4255_v54  ;;  %v4346_v49 = vpack.c.bf16 %v4256_v59, %v4254_v17  ;;  %6434 = vrcp.f32 %v4048_v33  ;;  %v4287_v4 = vmul.f32 %v6423_v37, %v10545_v56  ;;  %v10557_v54 = vld [vmem:[#allocation80_spill] sm:$0xff]  ;;  %v10558_v51 = vld [vmem:[#allocation82_spill] sm:$0xff]  ;;  %v10560_v59 = vld [vmem:[#allocation69_spill] sm:$0xff] }
 0x8b9   : > { %v6425_v62 = vpop.eup %6424  ;;  %v4286_v5 = vmul.f32 %v6423_v37, %v10547_v57  ;;  %v10559_v17 = vld [vmem:[#allocation68_spill] sm:$0xff] }
 0x8ba   : > { %v4096_v13 = vpop.xlane.xlu1 %4095  ;;  %v4051_v39 = vpop.xlane.xlu0 %4050  ;;  %4458 = vmatprep.subr.bf16.mxu1 %v4347_v24  ;;  %v4289_v34 = vmul.f32 %v6425_v62, %v10546_v43  ;;  %v4288_v45 = vmul.f32 %v6425_v62, %v10548_v60 }
 0x8bb   : > { %v6427_v12 = vpop.eup %6426  ;;  %6436 = vrcp.f32 %v4051_v39  ;;  %4459 = vmatpush1.bf16.xpose.msra.mxu1 %v4346_v49 }
 0x8bc   : > { %v4363_v40 = vpack.c.bf16 %v4289_v34, %v4287_v4  ;;  %v4362_v30 = vpack.c.bf16 %v4288_v45, %v4286_v5  ;;  %6438 = vrcp.f32 %v4096_v13  ;;  %v4259_v20 = vmul.f32 %v6427_v12, %v10549_v32  ;;  %v10561_v4 = vld [vmem:[#allocation89_spill] sm:$0xff]  ;;  %v10562_v34 = vld [vmem:[#allocation87_spill] sm:$0xff]  ;;  %v10563_v5 = vld [vmem:[#allocation76_spill] sm:$0xff] }
 0x8bd   : > { %v6429_v26 = vpop.eup %6428  ;;  %v4258_v58 = vmul.f32 %v6427_v12, %v10551_v15  ;;  %v10564_v45 = vld [vmem:[#allocation71_spill] sm:$0xff]  ;;  %v10566_v15 = vld [vmem:[#allocation78_spill] sm:$0xff] }
 0x8be   : > { %v4054_v41 = vpop.xlane.xlu1 %4053  ;;  %v4099_v27 = vpop.xlane.xlu0 %4098  ;;  %4498 = vmatprep.subr.bf16.mxu0 %v4363_v40  ;;  %v4261_v23 = vmul.f32 %v6429_v26, %v10550_v52  ;;  %v4260_v48 = vmul.f32 %v6429_v26, %v10552_v29 }
 0x8bf   : > { %v6431_v22 = vpop.eup %6430  ;;  %6440 = vrcp.f32 %v4099_v27  ;;  %4499 = vmatpush1.bf16.xpose.msra.mxu0 %v4362_v30 }
 0x8c0   : > { %v4349_v31 = vpack.c.bf16 %v4261_v23, %v4259_v20  ;;  %v4348_v36 = vpack.c.bf16 %v4260_v48, %v4258_v58  ;;  %6442 = vrcp.f32 %v4054_v41  ;;  %v4291_v18 = vmul.f32 %v6431_v22, %v10553_v53  ;;  %v10565_v20 = vld [vmem:[#allocation88_spill] sm:$0xff] }
 0x8c1   : > { %v6433_v14 = vpop.eup %6432  ;;  %v4290_v2 = vmul.f32 %v6431_v22, %v10555_v28 }
 0x8c2   : > { %v4102_v55 = vpop.xlane.xlu1 %4101  ;;  %v4057_v8 = vpop.xlane.xlu0 %4056  ;;  %4460 = vmatprep.subr.bf16.mxu1 %v4349_v31  ;;  %v4293_v38 = vmul.f32 %v6433_v14, %v10554_v63  ;;  %v4292_v0 = vmul.f32 %v6433_v14, %v10556_v11 }
 0x8c3   : > { %v6435_v3 = vpop.eup %6434  ;;  %6444 = vrcp.f32 %v4057_v8  ;;  %4461 = vmatpush1.bf16.xpose.msra.mxu1 %v4348_v36 }
 0x8c4   : > { %v4365_v10 = vpack.c.bf16 %v4293_v38, %v4291_v18  ;;  %v4364_v61 = vpack.c.bf16 %v4292_v0, %v4290_v2  ;;  %6446 = vrcp.f32 %v4102_v55  ;;  %v4263_v42 = vmul.f32 %v6435_v3, %v10557_v54 }
 0x8c5   : > { %v6437_v33 = vpop.eup %6436  ;;  %v4262_v16 = vmul.f32 %v6435_v3, %v10559_v17 }
 0x8c6   : > { %v4060_v1 = vpop.xlane.xlu1 %4059  ;;  %v4105_v7 = vpop.xlane.xlu0 %4104  ;;  %4500 = vmatprep.subr.bf16.mxu0 %v4365_v10  ;;  %v4265_v19 = vmul.f32 %v6437_v33, %v10558_v51  ;;  %v4264_v37 = vmul.f32 %v6437_v33, %v10560_v59  ;;  %v10568_v33 = vld [vmem:[#allocation83_spill] sm:$0xff]  ;;  %v10571_v51 = vld [vmem:[#allocation86_spill] sm:$0xff] }
 0x8c7   : > { %v6439_v24 = vpop.eup %6438  ;;  %6448 = vrcp.f32 %v4105_v7  ;;  %4501 = vmatpush1.bf16.xpose.msra.mxu0 %v4364_v61  ;;  %v10569_v7 = vld [vmem:[#allocation79_spill] sm:$0xff] }
 0x8c8   : > { %6450 = vrcp.f32 %v4060_v1  ;;  %v4351_v49 = vpack.c.bf16 %v4265_v19, %v4263_v42  ;;  %v4350_v62 = vpack.c.bf16 %v4264_v37, %v4262_v16  ;;  %v4295_v43 = vmul.f32 %v6439_v24, %v10561_v4  ;;  %v10570_v42 = vld [vmem:[#allocation90_spill] sm:$0xff]  ;;  %v10572_v37 = vld [vmem:[#allocation85_spill] sm:$0xff] }
 0x8c9   : > { %v6441_v13 = vpop.eup %6440  ;;  %v4294_v60 = vmul.f32 %v6439_v24, %v10563_v5  ;;  %v10576_v5 = vld [vmem:[#allocation98_spill] sm:$0xff] }
 0x8ca   : > { %v4108_v39 = vpop.xlane.xlu1 %4107  ;;  %v4063_v56 = vpop.xlane.xlu0 %4062  ;;  %4462 = vmatprep.subr.bf16.mxu1 %v4351_v49  ;;  %v4297_v57 = vmul.f32 %v6441_v13, %v10562_v34  ;;  %v4296_v12 = vmul.f32 %v6441_v13, %v10564_v45  ;;  %v10573_v49 = vld [vmem:[#allocation94_spill] sm:$0xff]  ;;  %v10574_v13 = vld [vmem:[#allocation95_spill] sm:$0xff] }
 0x8cb   : > { %v6443_v40 = vpop.eup %6442  ;;  %6452 = vrcp.f32 %v4063_v56  ;;  %4463 = vmatpush1.bf16.xpose.msra.mxu1 %v4350_v62  ;;  %v10575_v56 = vld [vmem:[#allocation84_spill] sm:$0xff]  ;;  %v10577_v45 = vld [vmem:[#allocation91_spill] sm:$0xff] }
 0x8cc   : > { %v4367_v30 = vpack.c.bf16 %v4297_v57, %v4295_v43  ;;  %v4366_v26 = vpack.c.bf16 %v4296_v12, %v4294_v60  ;;  %6454 = vrcp.f32 %v4108_v39  ;;  %v4267_v52 = vmul.f32 %v6443_v40, %v10565_v20  ;;  %v10580_v20 = vld [vmem:[#allocation26_spill] sm:$0xff] }
 0x8cd   : > { %v6445_v41 = vpop.eup %6444  ;;  %v4266_v58 = vmul.f32 %v6443_v40, %v10566_v15  ;;  %v10578_v40 = vld [vmem:[#allocation97_spill] sm:$0xff] }
 0x8ce   : > { %v4066_v27 = vpop.xlane.xlu1 %4065  ;;  %v4111_v32 = vpop.xlane.xlu0 %4110  ;;  %4502 = vmatprep.subr.bf16.mxu0 %v4367_v30  ;;  %v4269_v23 = vmul.f32 %v6445_v41, %v9102_v25  ;;  %v4268_v29 = vmul.f32 %v6445_v41, %v9098_v46 }
 0x8cf   : > { %v6447_v48 = vpop.eup %6446  ;;  %6456 = vrcp.f32 %v4111_v32  ;;  %4503 = vmatpush1.bf16.xpose.msra.mxu0 %v4366_v26  ;;  %v10579_v26 = vld [vmem:[#allocation104_spill] sm:$0xff] }
 0x8d0   : > { %v4353_v22 = vpack.c.bf16 %v4269_v23, %v4267_v52  ;;  %v4352_v31 = vpack.c.bf16 %v4268_v29, %v4266_v58  ;;  %6458 = vrcp.f32 %v4066_v27  ;;  %v4299_v53 = vmul.f32 %v6447_v48, %v9109_v9  ;;  %v10582_v23 = vld [vmem:[#allocation32_spill] sm:$0xff] }
 0x8d1   : > { %v6449_v36 = vpop.eup %6448  ;;  %v4298_v25 = vmul.f32 %v6447_v48, %v9106_v6  ;;  %v10581_v52 = vmov 0  }
 0x8d2   : > { %v4114_v14 = vpop.xlane.xlu1 %4113  ;;  %v4069_v55 = vpop.xlane.xlu0 %4068  ;;  %4464 = vmatprep.subr.bf16.mxu1 %v4353_v22  ;;  %v4301_v18 = vmul.f32 %v6449_v36, %v9118_v44  ;;  %v4300_v63 = vmul.f32 %v6449_v36, %v9114_v50  ;;  %v10567_v44 = vld [vmem:[#allocation77_spill] sm:$0xff] }
 0x8d3   : > { %v6451_v8 = vpop.eup %6450  ;;  %6460 = vrcp.f32 %v4069_v55  ;;  %4465 = vmatpush1.bf16.xpose.msra.mxu1 %v4352_v31 }
 0x8d4   : > { %6462 = vrcp.f32 %v4114_v14  ;;  %v4369_v46 = vpack.c.bf16 %v4301_v18, %v4299_v53  ;;  %v4368_v38 = vpack.c.bf16 %v4300_v63, %v4298_v25  ;;  %v4271_v11 = vmul.f32 %v6451_v8, %v9125_v21 }
 0x8d5   : > { %v6453_v28 = vpop.eup %6452  ;;  %v4270_v9 = vmul.f32 %v6451_v8, %v9122_v35 }
 0x8d6   : > { %v4117_v2 = vpop.xlane.xlu0 %4116  ;;  %4504 = vmatprep.subr.bf16.mxu0 %v4369_v46  ;;  %v4273_v0 = vmul.f32 %v6453_v28, %v9132_v47  ;;  %v4272_v3 = vmul.f32 %v6453_v28, %v10567_v44  ;;  %v6455_v6 = vpop.eup %6454 }
 0x8d7   : > { %6464 = vrcp.f32 %v4117_v2  ;;  %4505 = vmatpush1.bf16.xpose.msra.mxu0 %v4368_v38  ;;  %v4303_v1 = vmul.f32 %v6455_v6, %v10568_v33  ;;  %v4302_v21 = vmul.f32 %v6455_v6, %v10570_v42  ;;  %v4557_v44 = vpop.permute.xlu1 %4556  ;;  %v4616_v6 = vstv %s4615_s21  ;;  %s5290_s21 = sshll.u32 %s6715_s29, 9  ;;  %s9489_s29 = scalar_lea.sflag [#allocation4], %s445_s16 }
 0x8d8   : > { %v4355_v50 = vpack.c.bf16 %v4273_v0, %v4271_v11  ;;  %v4354_v10 = vpack.c.bf16 %v4272_v3, %v4270_v9  ;;  %v5690_v0 = vld [vmem:[%s10583_s2] sm:$0xff]   ;;  %v10584_v9 = vld [vmem:[#allocation28_spill] sm:$0xff] }
 0x8d9   : > { %v6457_v61 = vpop.eup %6456 }
 0x8da   : > { %4466 = vmatprep.subr.bf16.mxu1 %v4355_v50  ;;  %v4305_v54 = vmul.f32 %v6457_v61, %v10569_v7  ;;  %v4304_v19 = vmul.f32 %v6457_v61, %v10571_v51  ;;  %v6459_v17 = vpop.eup %6458 }
 0x8db   : > { %4467 = vmatpush1.bf16.xpose.msra.mxu1 %v4354_v10  ;;  %v4275_v24 = vmul.f32 %v6459_v17, %v10572_v37  ;;  %v4274_v39 = vmul.f32 %v6459_v17, %v10574_v13  ;;  %v6534_v37 = vld [vmem:[%s6765_s24 + $0x10] sm:$0xff] }
 0x8dc   : > { %v4371_v47 = vpack.c.bf16 %v4305_v54, %v4303_v1  ;;  %v4370_v35 = vpack.c.bf16 %v4304_v19, %v4302_v21  ;;  %v6532_v19 = vld [vmem:[%s6765_s24] sm:$0xff] }
 0x8dd   : > { %v6461_v16 = vpop.eup %6460 }
 0x8de   : > { %v6463_v59 = vpop.eup %6462  ;;  %4506 = vmatprep.subr.bf16.mxu0 %v4371_v47  ;;  %v4277_v62 = vmul.f32 %v6461_v16, %v10573_v49  ;;  %v4276_v4 = vmul.f32 %v6461_v16, %v10575_v56  ;;  %v4562_v61 = vpop.permute.xlu0 %4561 }
 0x8df   : > { %4507 = vmatpush1.bf16.xpose.msra.mxu0 %v4370_v35  ;;  %v4307_v60 = vmul.f32 %v6463_v59, %v10576_v5  ;;  %v4306_v30 = vmul.f32 %v6463_v59, %v10578_v40  ;;  %v6533_v35 = vld [vmem:[%s6765_s24 + $0x8] sm:$0xff]  ;;  %v4718_v5 = vld [vmem:[%s9535_s5 + $0x18] sm:$0xff] }
 0x8e0   : > { %v4357_v34 = vpack.c.bf16 %v4277_v62, %v4275_v24  ;;  %v4356_v57 = vpack.c.bf16 %v4276_v4, %v4274_v39  ;;  %v6535_v62 = vld [vmem:[%s6765_s24 + $0x18] sm:$0xff]  ;;  %v4673_v4 = vld [vmem:[%s9540_s10] sm:$0xff] }
 0x8e1   : > { %v6465_v43 = vpop.eup %6464 }
 0x8e2   : > { %v4309_v12 = vmul.f32 %v6465_v43, %v10577_v45  ;;  %v4308_v41 = vmul.f32 %v6465_v43, %v10579_v26  ;;  %4468 = vmatprep.subr.bf16.mxu1 %v4357_v34  ;;  %v4689_v43 = vld [vmem:[%s9541_s11] sm:$0xff]  ;;  %v4690_v34 = vld [vmem:[%s9541_s11 + $0x8] sm:$0xff]  ;;  %v4722_v45 = vld [vmem:[%s9535_s5 + $0x38] sm:$0xff] }
 0x8e3   : > { %4469 = vmatpush1.bf16.xpose.msra.mxu1 %v4356_v57  ;;  %v4716_v57 = vld [vmem:[%s9535_s5 + $0x8] sm:$0xff] }
 0x8e4   : > { %v4373_v27 = vpack.c.bf16 %v4309_v12, %v4307_v60  ;;  %v4372_v32 = vpack.c.bf16 %v4308_v41, %v4306_v30  ;;  %v4720_v60 = vld [vmem:[%s9535_s5 + $0x28] sm:$0xff] }
 0x8e5   : > { %v4991_v12 = vld [vmem:[%s9537_s7 + $0x8] sm:$0xff] }
 0x8e6   : > { %4508 = vmatprep.subr.bf16.mxu0 %v4373_v27 }
 0x8e7   : > { %4509 = vmatpush1.bf16.xpose.msra.mxu0 %v4372_v32 }
 0x8ea   : > { %4487 = vmatmul.mubr.bf16.vlgmr.msra.gmra.mrb[140].mxu1 %v10580_v20 }
 0x8eb   : > { %4604 = vmatprep.mubr.bf16.mxu1 %v10581_v52 }
 0x8ee   : > { %4527 = vmatmul.mubr.bf16.vlgmr.msra.gmra.mrb[152].mxu0 %v10582_v23 }
 0x8ef   : > { %5043 = vmatprep.mubr.bf16.mxu0 %v10581_v52 }
 0x97d   : > { %v4408_v15 = vpop.f32.mrb[136].mxu1 }
 0x97e   : > { %v4410_v58 = vpop.f32.mrb[137].mxu1 }
 0x97f   : > { %v4411_v29 = vpop.f32.mrb[138].mxu1 }
 0x980   : > { %v4412_v48 = vpop.f32.mrb[139].mxu1 }
 0x981   : > { %v4448_v22 = vpop.f32.mrb[148].mxu0 }
 0x982   : > { %v4538_v31 = vcombine.low %v4408_v15, %v4448_v22  ;;  %v4450_v36 = vpop.f32.mrb[149].mxu0 }
 0x983   : > { %v4451_v14 = vpop.f32.mrb[150].mxu0 }
 0x984   : > { %v4452_v55 = vpop.f32.mrb[151].mxu0 }
 0x9bd   : > { %v4488_v8 = vpop.f32.mrb[140].mxu1 }
 0x9be   : > { %v4490_v53 = vpop.f32.mrb[141].mxu1 }
 0x9bf   : > { %v4491_v18 = vpop.f32.mrb[142].mxu1 }
 0x9c0   : > { %v4492_v25 = vpop.f32.mrb[143].mxu1  ;;  %v4674_v18 = vld [vmem:[%s9540_s10 + $0x8] sm:$0xff] }
 0x9c1   : > { %v4528_v63 = vpop.f32.mrb[152].mxu0  ;;  %v4715_v25 = vld [vmem:[%s9535_s5] sm:$0xff] }
 0x9c2   : > { %v4539_v46 = vcombine.low %v4488_v8, %v4528_v63  ;;  %v4530_v38 = vpop.f32.mrb[153].mxu0  ;;  %v4717_v63 = vld [vmem:[%s9535_s5 + $0x10] sm:$0xff] }
 0x9c3   : > { %v4531_v28 = vpop.f32.mrb[154].mxu0  ;;  %v4721_v38 = vld [vmem:[%s9535_s5 + $0x30] sm:$0xff] }
 0x9c4   : > { %v4551_v2 = vpack.c.bf16 %v4539_v46, %v4538_v31  ;;  %v4532_v11 = vpop.f32.mrb[155].mxu0  ;;  %v4719_v46 = vld [vmem:[%s9535_s5 + $0x20] sm:$0xff] }
 0x9c5   : > { %v4990_v28 = vld [vmem:[%s9537_s7] sm:$0xff] }
 0x9c6   : > { %4572 = vmatprep.subr.bf16.mxu1 %v4551_v2 }
 0x9c7   : > { %4573 = vmatpush1.bf16.msra.mxu1 %v10584_v9 }
 0x9ca   : > { %5256 = vmatmul.mubr.msk.bf16.vlgmr.msra.gmra.mrb[144].mxu1 %vm561_vm0, %v5690_v0 }
 0x9cb   : > { %4827 = vmatprep.mubr.bf16.mxu1 %v10581_v52 }
 0xa9d   : > { %v4606_v3 = vpop.f32.mrb[144].mxu1 }
 0xa9e   : > { %v4607_v50 = vadd.f32 %v4606_v3, %v4557_v44  ;;  %v4608_v10 = vpop.f32.mrb[145].mxu1 }
 0xa9f   : > { %v4609_v33 = vadd.f32 %v4608_v10, %v4557_v44  ;;  %v4610_v1 = vpop.f32.mrb[146].mxu1 }
 0xaa0   : > { %v4617_v7 = vmul.f32 %v4616_v6, %v4607_v50  ;;  %v4611_v54 = vadd.f32 %v4610_v1, %v4562_v61  ;;  %v4612_v42 = vpop.f32.mrb[147].mxu1 }
 0xaa1   : > { %v4618_v21 = vmul.f32 %v4616_v6, %v4609_v33  ;;  %v4613_v51 = vadd.f32 %v4612_v42, %v4562_v61 }
 0xaa2   : > { %v9325_v17 = vadd.f32 %v6532_v19, %v4617_v7  ;;  %v4619_v47 = vmul.f32 %v4616_v6, %v4611_v54 }
 0xaa3   : > { %v9328_v16 = vadd.f32 %v6533_v35, %v4618_v21  ;;  %v4620_v59 = vmul.f32 %v4616_v6, %v4613_v51 }
 0xaa4   : > { %v9331_v24 = vadd.f32 %v6534_v37, %v4619_v47 }
 0xaa5   : > { %v4625_v49 = vadd.f32 %v9328_v16, %v9325_v17  ;;  %v9336_v13 = vadd.f32 %v6535_v62, %v4620_v59 }
 0xaa7   : > { %v4626_v39 = vadd.f32 %v4625_v49, %v9331_v24 }
 0xaa9   : > { %v4627_v56 = vadd.f32 %v4626_v39, %v9336_v13 }
 0xaab   : > { %4628 = vadd.xlane.f32.xlu1 %v4627_v56 }
 0xabc   : > { %4677 = vperm.xlu1 %5357, %v4673_v4  }
 0xac0   : > { %4693 = vperm.xlu1 %5357, %v4689_v43  }
 0xac4   : > { %4698 = vperm.xlu1 %5357, %v4690_v34   ;;  %v5691_v34 = vld [vmem:[%s9534_s4] sm:$0xff]  }
 0xac8   : > { %4730 = vperm.xlu1 %5357, %v4716_v57   ;;  %v5692_v57 = vld [vmem:[%s9534_s4 + $0x8] sm:$0xff]  }
 0xacc   : > { %4740 = vperm.xlu1 %5357, %v4718_v5   ;;  %v5693_v5 = vld [vmem:[%s9534_s4 + $0x10] sm:$0xff]  }
 0xad0   : > { %4750 = vperm.xlu1 %5357, %v4720_v60   ;;  %v5694_v60 = vld [vmem:[%s9534_s4 + $0x18] sm:$0xff]  }
 0xad4   : > { %4760 = vperm.xlu1 %5357, %v4722_v45  }
 0xad8   : > { %4999 = vperm.xlu1 %5357, %v4991_v12  }
 0xb38   : > { %v4629_v40 = vpop.xlane.xlu1 %4628 }
 0xb39   : > { %v4630_v30 = vrot.slane %v4629_v40, 4 }
 0xb3b   : > { %v4631_v26 = vadd.f32 %v4630_v30, %v4629_v40 }
 0xb3c   : > { %v4678_v61 = vpop.permute.xlu1 %4677 }
 0xb3d   : > { %v4632_v41 = vrot.slane %v4631_v26, 2 }
 0xb3f   : > { %v4633_v27 = vadd.f32 %v4632_v41, %v4631_v26 }
 0xb40   : > { %v4694_v33 = vpop.permute.xlu1 %4693 }
 0xb41   : > { %v4634_v32 = vrot.slane %v4633_v27, 1 }
 0xb43   : > { %v4635_v20 = vadd.f32 %v4634_v32, %v4633_v27 }
 0xb44   : > { %v4699_v37 = vpop.permute.xlu1 %4698 }
 0xb45   : > { %5297 = vpush %v4635_v20 }
 0xb48   : > { %v4731_v26 = vpop.permute.xlu1 %4730 }
 0xb76   : > { %s5298_s0 = spop %5297 }
 0xb77   : > { %s4639_s1 = smul.f32 0.00024414063, %s5298_s0  ;;  %s5162_s0 = sshll.u32 %s445_s16, 5 }
 0xb79   : > { %v4640_v23 = vstv %s4639_s1  ;;  %s447_s1 = scalar_lea.vmem [#allocation6], %s5162_s0 }
 0xb7a   : > { %v4641_v15 = vsub.f32 %v9325_v17, %v4640_v23  ;;  %v4642_v58 = vsub.f32 %v9328_v16, %v4640_v23  ;;  %v4643_v29 = vsub.f32 %v9331_v24, %v4640_v23  ;;  %v4644_v48 = vsub.f32 %v9336_v13, %v4640_v23  ;;  %s5082_s24 = sshll.u32 %s447_s1, 4  ;;  %s9478_s24 = int_to_ptr.vmem [resolvable:$true] %s5082_s24 }
 0xb7c   : > { %v4645_v22 = vmul.f32 %v4641_v15, %v4641_v15  ;;  %v4646_v31 = vmul.f32 %v4642_v58, %v4642_v58  ;;  %v4647_v36 = vmul.f32 %v4643_v29, %v4643_v29  ;;  %v4648_v55 = vmul.f32 %v4644_v48, %v4644_v48 }
 0xb7e   : > { %v4649_v14 = vadd.f32 %v4646_v31, %v4645_v22 }
 0xb80   : > { %v4650_v8 = vadd.f32 %v4649_v14, %v4647_v36  ;;  %v4741_v14 = vpop.permute.xlu1 %4740 }
 0xb82   : > { %v4651_v53 = vadd.f32 %v4650_v8, %v4648_v55 }
 0xb84   : > { %4652 = vadd.xlane.f32.xlu0 %v4651_v53 }
 0xb9a   : > { %4682 = vperm.xlu0 %5358, %v4674_v18  }
 0xb9e   : > { %4725 = vperm.xlu0 %5358, %v4715_v25  }
 0xba2   : > { %4735 = vperm.xlu0 %5358, %v4717_v63  }
 0xba6   : > { %4745 = vperm.xlu0 %5358, %v4719_v46  }
 0xbaa   : > { %4755 = vperm.xlu0 %5358, %v4721_v38  }
 0xbae   : > { %4994 = vperm.xlu0 %5358, %v4990_v28  }
 0xc11   : > { %v4653_v2 = vpop.xlane.xlu0 %4652 }
 0xc12   : > { %v4654_v11 = vrot.slane %v4653_v2, 4 }
 0xc14   : > { %v4655_v0 = vadd.f32 %v4654_v11, %v4653_v2 }
 0xc16   : > { %v4656_v9 = vrot.slane %v4655_v0, 2 }
 0xc18   : > { %v4657_v44 = vadd.f32 %v4656_v9, %v4655_v0 }
 0xc19   : > { %v4683_v51 = vpop.permute.xlu0 %4682 }
 0xc1a   : > { %v4658_v3 = vrot.slane %v4657_v44, 1 }
 0xc1c   : > { %v4659_v6 = vadd.f32 %v4658_v3, %v4657_v44 }
 0xc1d   : > { %v4726_v45 = vpop.permute.xlu0 %4725 }
 0xc1e   : > { %5299 = vpush %v4659_v6 }
 0xc4f   : > { %s5300_s22 = spop %5299 }
 0xc50   : > { %s4663_s20 = smul.f32 0.00024414063, %s5300_s22 }
 0xc52   : > { %s4664_s23 = sadd.f32 1e-05, %s4663_s20 }
 0xc54   : > { %v4665_v50 = vstv %s4664_s23  ;;  %s9484_s23 = scalar_lea.hbm %s9543_s13, %s5290_s21 }
 0xc55   : > { %6466 = vrsqrt.f32 %v4665_v50 }
 0xc5f   : > { %v6467_v10 = vpop.eup %6466 }
 0xc60   : > { %5301 = vpush %v6467_v10 }
 0xc91   : > { %s5302_s30 = spop %5301 }
 0xc92   : > { %v4668_v1 = vstv %s5302_s30  ;;  %s6551_s30 = scalar_lea.vmem %s9478_s24, 512 }
 0xc93   : > { %v4669_v7 = vmul.f32 %v4668_v1, %v4641_v15  ;;  %v4670_v54 = vmul.f32 %v4668_v1, %v4642_v58  ;;  %v4671_v42 = vmul.f32 %v4668_v1, %v4643_v29  ;;  %v4672_v21 = vmul.f32 %v4668_v1, %v4644_v48  ;;  %v4736_v48 = vpop.permute.xlu0 %4735  ;;  %p6552_p9 = scmp.ne.s32.totalorder %s9478_s24, %s6551_s30 }
 0xc95   : > { %v4685_v19 = vmul.f32 %v4678_v61, %v4669_v7  ;;  %v4686_v47 = vmul.f32 %v4678_v61, %v4670_v54  ;;  %v4687_v35 = vmul.f32 %v4683_v51, %v4671_v42  ;;  %v4688_v59 = vmul.f32 %v4683_v51, %v4672_v21  ;;  %p6553_p10 = pnand %p6552_p9, %p6732_p5 }
 0xc97   : > { %v4701_v49 = vadd.f32 %v4694_v33, %v4685_v19  ;;  %v4703_v62 = vadd.f32 %v4699_v37, %v4687_v35  ;;  %v4702_v39 = vadd.f32 %v4694_v33, %v4686_v47  ;;  %v4704_v56 = vadd.f32 %v4699_v37, %v4688_v59  ;;  %v4746_v0 = vpop.permute.xlu0 %4745  ;;  %v4751_v33 = vpop.permute.xlu1 %4750  ;;  %p6554_p12 = pneg %p6553_p10 }
 0xc99   : > { %v4714_v4 = vpack.c.bf16 %v4704_v56, %v4702_v39  ;;  %v4713_v43 = vpack.c.bf16 %v4703_v62, %v4701_v49 }
 0xc9b   : > { %4795 = vmatprep.subr.bf16.mxu1 %v4714_v4  ;;  %v4756_v39 = vpop.permute.xlu0 %4755 }
 0xc9c   : > { %4796 = vmatpush1.bf16.msra.mxu1 %v4713_v43 }
 0xc9f   : > { %5261 = vmatmul.mubr.msk.bf16.vlgmr.msra.gmra.mrb[148].mxu1 %vm561_vm0, %v5691_v34 }
 0xca0   : > { %4837 = vmatprep.mubr.bf16.mxu1 %v10581_v52 }
 0xca7   : > { %5262 = vmatmul.mubr.msk.bf16.gmra.mrb[152].mxu1 %vm561_vm0, %v5692_v57 }
 0xca8   : > { %4847 = vmatprep.mubr.bf16.mxu1 %v10581_v52 }
 0xcaf   : > { %5263 = vmatmul.mubr.msk.bf16.gmra.mrb[156].mxu1 %vm561_vm0, %v5693_v5 }
 0xcb0   : > { %4857 = vmatprep.mubr.bf16.mxu1 %v10581_v52 }
 0xcb7   : > { %5264 = vmatmul.mubr.msk.bf16.gmra.mrb[160].mxu1 %vm561_vm0, %v5694_v60 }
 0xd72   : > { %v4829_v12 = vpop.f32.mrb[148].mxu1 }
 0xd73   : > { %v9405_v40 = vadd.f32 %v4829_v12, %v4726_v45  ;;  %v4831_v30 = vpop.f32.mrb[149].mxu1 }
 0xd74   : > { %v9407_v41 = vadd.f32 %v4831_v30, %v4726_v45  ;;  %v4833_v27 = vpop.f32.mrb[150].mxu1  ;;  %v4761_v45 = vpop.permute.xlu1 %4760 }
 0xd75   : > { %v5265_v32 = vmul.f32 -1.442695, %v9405_v40  ;;  %v9410_v20 = vadd.f32 %v4833_v27, %v4731_v26  ;;  %v4835_v52 = vpop.f32.mrb[151].mxu1 }
 0xd76   : > { %v5266_v23 = vmul.f32 -1.442695, %v9407_v41  ;;  %v9413_v15 = vadd.f32 %v4835_v52, %v4731_v26 }
 0xd77   : > { %6468 = vpow2.f32 %v5265_v32  ;;  %v5267_v58 = vmul.f32 -1.442695, %v9410_v20 }
 0xd78   : > { %6470 = vpow2.f32 %v5266_v23  ;;  %v5268_v29 = vmul.f32 -1.442695, %v9413_v15 }
 0xd79   : > { %6472 = vpow2.f32 %v5267_v58 }
 0xd7a   : > { %6474 = vpow2.f32 %v5268_v29  ;;  %v4839_v22 = vpop.f32.mrb[152].mxu1 }
 0xd7b   : > { %v9417_v31 = vadd.f32 %v4839_v22, %v4736_v48  ;;  %v4841_v36 = vpop.f32.mrb[153].mxu1 }
 0xd7c   : > { %v9419_v55 = vadd.f32 %v4841_v36, %v4736_v48  ;;  %v4843_v8 = vpop.f32.mrb[154].mxu1 }
 0xd7d   : > { %v5269_v53 = vmul.f32 -1.442695, %v9417_v31  ;;  %v9422_v18 = vadd.f32 %v4843_v8, %v4741_v14  ;;  %v4845_v25 = vpop.f32.mrb[155].mxu1 }
 0xd7e   : > { %v5270_v63 = vmul.f32 -1.442695, %v9419_v55  ;;  %v9425_v46 = vadd.f32 %v4845_v25, %v4741_v14 }
 0xd7f   : > { %6476 = vpow2.f32 %v5269_v53  ;;  %v5271_v38 = vmul.f32 -1.442695, %v9422_v18 }
 0xd80   : > { %6478 = vpow2.f32 %v5270_v63  ;;  %v5272_v28 = vmul.f32 -1.442695, %v9425_v46 }
 0xd81   : > { %v6469_v2 = vpop.eup %6468  ;;  %6480 = vpow2.f32 %v5271_v38 }
 0xd82   : > { %v6471_v11 = vpop.eup %6470  ;;  %v4916_v9 = vadd.f32 1.0, %v6469_v2  ;;  %6482 = vpow2.f32 %v5272_v28  ;;  %v4849_v44 = vpop.f32.mrb[156].mxu1 }
 0xd83   : > { %v6473_v3 = vpop.eup %6472  ;;  %v4917_v6 = vadd.f32 1.0, %v6471_v11  ;;  %v9429_v50 = vadd.f32 %v4849_v44, %v4746_v0  ;;  %v4851_v10 = vpop.f32.mrb[157].mxu1 }
 0xd84   : > { %v6475_v61 = vpop.eup %6474  ;;  %6484 = vrcp.f32 %v4916_v9  ;;  %v4918_v1 = vadd.f32 1.0, %v6473_v3  ;;  %v9431_v7 = vadd.f32 %v4851_v10, %v4746_v0  ;;  %v4853_v54 = vpop.f32.mrb[158].mxu1 }
 0xd85   : > { %6486 = vrcp.f32 %v4917_v6  ;;  %v4919_v42 = vadd.f32 1.0, %v6475_v61  ;;  %v5273_v21 = vmul.f32 -1.442695, %v9429_v50  ;;  %v9434_v51 = vadd.f32 %v4853_v54, %v4751_v33  ;;  %v4855_v19 = vpop.f32.mrb[159].mxu1 }
 0xd86   : > { %6488 = vrcp.f32 %v4918_v1  ;;  %v5274_v47 = vmul.f32 -1.442695, %v9431_v7  ;;  %v9437_v35 = vadd.f32 %v4855_v19, %v4751_v33 }
 0xd87   : > { %6490 = vrcp.f32 %v4919_v42  ;;  %v5275_v59 = vmul.f32 -1.442695, %v9434_v51 }
 0xd88   : > { %6492 = vpow2.f32 %v5273_v21  ;;  %v5276_v37 = vmul.f32 -1.442695, %v9437_v35 }
 0xd89   : > { %v6477_v49 = vpop.eup %6476  ;;  %6494 = vpow2.f32 %v5274_v47 }
 0xd8a   : > { %v6479_v62 = vpop.eup %6478  ;;  %v4920_v56 = vadd.f32 1.0, %v6477_v49  ;;  %6496 = vpow2.f32 %v5275_v59  ;;  %v4859_v4 = vpop.f32.mrb[160].mxu1 }
 0xd8b   : > { %v6481_v43 = vpop.eup %6480  ;;  %v4921_v34 = vadd.f32 1.0, %v6479_v62  ;;  %6498 = vpow2.f32 %v5276_v37  ;;  %v9441_v57 = vadd.f32 %v4859_v4, %v4756_v39  ;;  %v4861_v5 = vpop.f32.mrb[161].mxu1 }
 0xd8c   : > { %v6483_v60 = vpop.eup %6482  ;;  %6500 = vrcp.f32 %v4920_v56  ;;  %v4922_v12 = vadd.f32 1.0, %v6481_v43  ;;  %v9443_v30 = vadd.f32 %v4861_v5, %v4756_v39  ;;  %v4863_v26 = vpop.f32.mrb[162].mxu1 }
 0xd8d   : > { %6502 = vrcp.f32 %v4921_v34  ;;  %v4923_v27 = vadd.f32 1.0, %v6483_v60  ;;  %v5277_v32 = vmul.f32 -1.442695, %v9441_v57  ;;  %v9446_v52 = vadd.f32 %v4863_v26, %v4761_v45  ;;  %v4865_v23 = vpop.f32.mrb[163].mxu1 }
 0xd8e   : > { %v6485_v58 = vpop.eup %6484  ;;  %6504 = vrcp.f32 %v4922_v12  ;;  %v5278_v29 = vmul.f32 -1.442695, %v9443_v30  ;;  %v9449_v48 = vadd.f32 %v4865_v23, %v4761_v45 }
 0xd8f   : > { %v6487_v22 = vpop.eup %6486  ;;  %6506 = vrcp.f32 %v4923_v27  ;;  %v5279_v36 = vmul.f32 -1.442695, %v9446_v52  ;;  %v4964_v25 = vmul.f32 %v6485_v58, %v9405_v40 }
 0xd90   : > { %v6489_v14 = vpop.eup %6488  ;;  %6508 = vpow2.f32 %v5277_v32  ;;  %v5280_v8 = vmul.f32 -1.442695, %v9449_v48  ;;  %v4965_v28 = vmul.f32 %v6487_v22, %v9407_v41 }
 0xd91   : > { %v6491_v53 = vpop.eup %6490  ;;  %v4966_v63 = vmul.f32 %v6489_v14, %v9410_v20  ;;  %6510 = vpow2.f32 %v5278_v29  ;;  %v4995_v14 = vpop.permute.xlu0 %4994 }
 0xd92   : > { %v6493_v38 = vpop.eup %6492  ;;  %v4967_v2 = vmul.f32 %v6491_v53, %v9413_v15  ;;  %6512 = vpow2.f32 %v5279_v36  ;;  %v5695_v36 = vld [vmem:[%s9536_s6] sm:$0xff]  }
 0xd93   : > { %v6495_v11 = vpop.eup %6494  ;;  %v4982_v0 = vpack.c.bf16 %v4966_v63, %v4964_v25  ;;  %v4924_v9 = vadd.f32 1.0, %v6493_v38  ;;  %6514 = vpow2.f32 %v5280_v8  ;;  %v5000_v8 = vpop.permute.xlu1 %4999 }
 0xd94   : > { %v6497_v44 = vpop.eup %6496  ;;  %v4925_v3 = vadd.f32 1.0, %v6495_v11  ;;  %v4983_v6 = vpack.c.bf16 %v4967_v2, %v4965_v28 }
 0xd95   : > { %v6499_v10 = vpop.eup %6498  ;;  %6516 = vrcp.f32 %v4924_v9  ;;  %v4926_v61 = vadd.f32 1.0, %v6497_v44 }
 0xd96   : > { %v6501_v40 = vpop.eup %6500  ;;  %6518 = vrcp.f32 %v4925_v3  ;;  %v4927_v20 = vadd.f32 1.0, %v6499_v10  ;;  %5011 = vmatprep.subr.bf16.mxu0 %v4983_v6 }
 0xd97   : > { %v6503_v33 = vpop.eup %6502  ;;  %6520 = vrcp.f32 %v4926_v61  ;;  %5012 = vmatpush1.bf16.msra.mxu0 %v4982_v0  ;;  %v4968_v1 = vmul.f32 %v6501_v40, %v9417_v31 }
 0xd98   : > { %v6505_v41 = vpop.eup %6504  ;;  %6522 = vrcp.f32 %v4927_v20  ;;  %v4969_v21 = vmul.f32 %v6503_v33, %v9419_v55 }
 0xd99   : > { %v6507_v15 = vpop.eup %6506  ;;  %v4970_v54 = vmul.f32 %v6505_v41, %v9422_v18 }
 0xd9a   : > { %v6509_v42 = vpop.eup %6508  ;;  %v4971_v19 = vmul.f32 %v6507_v15, %v9425_v46 }
 0xd9b   : > { %v6511_v47 = vpop.eup %6510  ;;  %v4984_v59 = vpack.c.bf16 %v4970_v54, %v4968_v1  ;;  %v4928_v37 = vadd.f32 1.0, %v6509_v42 }
 0xd9c   : > { %v6513_v49 = vpop.eup %6512  ;;  %v4929_v62 = vadd.f32 1.0, %v6511_v47  ;;  %v4985_v39 = vpack.c.bf16 %v4971_v19, %v4969_v21 }
 0xd9d   : > { %v6515_v56 = vpop.eup %6514  ;;  %6524 = vrcp.f32 %v4928_v37  ;;  %v4930_v4 = vadd.f32 1.0, %v6513_v49 }
 0xd9e   : > { %6526 = vrcp.f32 %v4929_v62  ;;  %v4931_v43 = vadd.f32 1.0, %v6515_v56  ;;  %5013 = vmatprep.subr.bf16.mxu0 %v4985_v39 }
 0xd9f   : > { %v6517_v31 = vpop.eup %6516  ;;  %6528 = vrcp.f32 %v4930_v4  ;;  %5014 = vmatpush1.bf16.msra.mxu0 %v4984_v59 }
 0xda0   : > { %v6519_v18 = vpop.eup %6518  ;;  %6530 = vrcp.f32 %v4931_v43  ;;  %v4972_v46 = vmul.f32 %v6517_v31, %v9429_v50 }
 0xda1   : > { %v6521_v55 = vpop.eup %6520  ;;  %v4973_v60 = vmul.f32 %v6519_v18, %v9431_v7 }
 0xda2   : > { %v6523_v34 = vpop.eup %6522  ;;  %v4974_v5 = vmul.f32 %v6521_v55, %v9434_v51 }
 0xda3   : > { %v4975_v45 = vmul.f32 %v6523_v34, %v9437_v35 }
 0xda4   : > { %v4986_v12 = vpack.c.bf16 %v4974_v5, %v4972_v46 }
 0xda5   : > { %v4987_v26 = vpack.c.bf16 %v4975_v45, %v4973_v60 }
 0xda7   : > { %v6525_v27 = vpop.eup %6524  ;;  %5015 = vmatprep.subr.bf16.mxu0 %v4987_v26 }
 0xda8   : > { %v6527_v32 = vpop.eup %6526  ;;  %5016 = vmatpush1.bf16.msra.mxu0 %v4986_v12  ;;  %v4976_v29 = vmul.f32 %v6525_v27, %v9441_v57 }
 0xda9   : > { %v6529_v23 = vpop.eup %6528  ;;  %v4977_v51 = vmul.f32 %v6527_v32, %v9443_v30  ;;  %v5055_v30 = vstv %s5283_s15  ;;  %s6621_s15 = smov [#allocation6]  }
 0xdaa   : > { %v6531_v58 = vpop.eup %6530  ;;  %v4978_v50 = vmul.f32 %v6529_v23, %v9446_v52  ;;  %s6555_s0 = sshll.u32 %s6621_s15, 4  ;;  %s6556_s0 = int_to_ptr.vmem [resolvable:$false] %s6555_s0 }
 0xdab   : > { %v4979_v7 = vmul.f32 %v6531_v58, %v9449_v48  ;;  %s6557_s2 = scalar_lea.vmem %s6556_s0, 1024  ;;  %p6558_p13 = scmp.lt.s32.totalorder %s9478_s24, %s6556_s0 }
 0xdac   : > { %v4988_v22 = vpack.c.bf16 %v4978_v50, %v4976_v29  ;;  %p6559_p0 = scmp.lt.s32.totalorder %s6557_s2, %s6551_s30 }
 0xdad   : > { %v4989_v35 = vpack.c.bf16 %v4979_v7, %v4977_v51 }
 0xdae   : > { %p6560_p1 = por %p6559_p0, %p6558_p13 }
 0xdaf   : > { %5017 = vmatprep.subr.bf16.mxu0 %v4989_v35 }
 0xdb0   : > { %5018 = vmatpush1.bf16.msra.mxu0 %v4988_v22  ;;  %p6561_p2 = pnand %p6560_p1, %p6554_p12 }
 0xdb3   : > { %5282 = vmatmul.mubr.msk.bf16.vlgmr.msra.gmra.mrb[156].mxu0 %vm5007_vm3, %v5695_v36 }
 0xe86   : > { %v5045_v57 = vpop.f32.mrb[156].mxu0 }
 0xe87   : > { %v5046_v52 = vadd.f32 %v5045_v57, %v4995_v14  ;;  %v5047_v48 = vpop.f32.mrb[157].mxu0 }
 0xe88   : > { %v5048_v53 = vadd.f32 %v5047_v48, %v4995_v14  ;;  %v5049_v25 = vpop.f32.mrb[158].mxu0 }
 0xe89   : > { %v5056_v63 = vmul.f32 %v5055_v30, %v5046_v52  ;;  %v5050_v38 = vadd.f32 %v5049_v25, %v5000_v8  ;;  %v5051_v28 = vpop.f32.mrb[159].mxu0 }
 0xe8a   : > { %v5057_v2 = vmul.f32 %v5055_v30, %v5048_v53  ;;  %v5052_v11 = vadd.f32 %v5051_v28, %v5000_v8 }
 0xe8b   : > { %v5060_v0 = vadd.f32 %v5056_v63, %v9325_v17  ;;  %v5058_v9 = vmul.f32 %v5055_v30, %v5050_v38 }
 0xe8c   : > { %v5061_v44 = vadd.f32 %v5057_v2, %v9328_v16  ;;  %v5059_v3 = vmul.f32 %v5055_v30, %v5052_v11 }
 0xe8d   : > { %5064 = vst [vmem:[%s447_s1] sm:$0xff] %v5060_v0  ;;  %v5062_v6 = vadd.f32 %v5058_v9, %v9331_v24 }
 0xe8e   : > { %5065 = vst [vmem:[%s447_s1 + $0x8] sm:$0xff] %v5061_v44  ;;  %v5063_v17 = vadd.f32 %v5059_v3, %v9336_v13 }
 0xe8f   : > { %5066 = vst [vmem:[%s447_s1 + $0x10] sm:$0xff] %v5062_v6 }
 0xe90   : > { %5067 = vst [vmem:[%s447_s1 + $0x18] sm:$0xff] %v5063_v17 }
 0xe91   : > { %6564 = shalt.err (!%p6561_p2)
}
 0xe92   : > { %s6565_s16 = scalar_lea.hbm %s9484_s23, 512  ;;  %s6569_s22 = scalar_lea.hbm %s9543_s13, 1024 }
 0xe93   : > { %p6566_p3 = scmp.ne.s32.totalorder %s9484_s23, %s6565_s16  ;;  %p6570_p8 = scmp.lt.u32.totalorder %s9484_s23, %s9543_s13 }
 0xe94   : > { %p6571_p11 = scmp.lt.u32.totalorder %s6569_s22, %s6565_s16  ;;  %p6573_p10 = scmp.lt.u32.totalorder %s6565_s16, %s9484_s23 }
 0xe95   : > { %p6567_p4 = pnand %p6566_p3, %p6732_p5 }
 0xe96   : > { %p6572_p9 = por %p6571_p11, %p6570_p8 }
 0xe97   : > { %p6568_p7 = pneg %p6567_p4 }
 0xe98   : > { %p6574_p12 = por %p6573_p10, %p6572_p9 }
 0xe9a   : > { %p6575_p13 = pnand %p6574_p12, %p6568_p7 }
 0xe9c   : > { %6578 = shalt.err (!%p6575_p13)
}
 0xe9d   : > { %s6622_s2 = smov 256   ;;  %s6623_s30 = smov 16  }
 0xe9e   : > { %5307 = dma.vmem_to_hbm [thread:$0]  (%p6732_p5), %s9478_s24, 512, %s9484_s23, %s9489_s29, %s6622_s2, %s6622_s2, %s6623_s30  }
 0xe9f PF: > { %p5319_p0 = scmp.ge.s32.totalorder %s6617_s28, 2  ;;  %s5097_s0 = sand.u32 1, %s6605_s25  }
 0xea0   : > { %s5098_s16 = scalar_lea.sflag [#allocation4], %s5097_s0 }
 0xea1   : > { %p5314_p1 = pnand %p5319_p0, %p6736_p6 }
 0xea3   : > { %6600 = dma.done.wait (!%p5314_p1), %s5098_s16, 512  }
 0xea4   : > { %6602 = vsyncadd (!%p5314_p1), %s5098_s16, 4294966784  ;;  %p24_p2 = scmp.ge.s32.totalorder %s6719_s14, 4   ;;  %s10585_s25 = smov %s6609_s26 }
 0xea5   : > { %s10586_s26 = smov %s6613_s27  ;;  %s10587_s27 = smov %s6730_s17 }
 0xea6   : > { %s10588_s28 = smov %s6719_s14  ;;  %26 = sbr.rel (!%p24_p2) target bundleno = 8 (0x8), region = 112 }
 0xead   :  { %5103 = vsyncpa [#allocation4], 1 }
 0xeae   :  { %5105 = vsyncpa [#allocation4 + $0x1], 1 }
 0xeaf   :  { %5106 = vsyncpa [#allocation5], 1 }
 0xeb0   :  { %5108 = vsyncpa [#allocation5 + $0x1], 1 }

</bundles_post_ra>
